<compile_context>
chip_gen: v7x
topology: tpu7x:2x2x1
jax: 0.10.0
libtpu: 0.0.40
codegen_flags: <defaults>
</compile_context>

<pallas_src>
import numpy as np
import jax
import jax.numpy as jnp
from jax.experimental import pallas as pl
from jax.experimental.pallas import tpu as pltpu

# ----------------------------- configuration -------------------------------
D = 128              # hidden_size
F = 512              # FFN intermediate size
H = 8                # attention heads
DH = D // H          # per-head dim
LN_EPS = 1e-12       # BertLayerNorm eps (pytorch_pretrained_bert)

B = 2                # batch
T = 64               # max_piece_len (wordpiece sequence length)
MAX_CHUNK_NUMBER = 16
MAX_CHUNK_LEN = 8

NEG_BIG = -1e9       # blocks cross-chunk attention exactly (exp underflows to 0)


def _layer_norm(x, gamma, beta):
    u = jnp.mean(x, axis=-1, keepdims=True)
    xc = x - u
    s = jnp.mean(xc * xc, axis=-1, keepdims=True)
    return gamma * (xc * jax.lax.rsqrt(s + LN_EPS)) + beta


def _gelu_exact(x):
    # exact GELU as in pytorch_pretrained_bert (reference only).
    return 0.5 * x * (1.0 + jax.lax.erf(x * 0.7071067811865476))


def _gelu_tanh(x):
    # tanh-approx GELU: transcendental goes to the otherwise-idle EUP slot
    # instead of erf's long VPU polynomial; |diff| <= ~3e-3.
    return 0.5 * x * (1.0 + jnp.tanh(0.7978845608028654 * (x + 0.044715 * x * x * x)))


# ------------------------------ Pallas kernel -------------------------------
def bert_layer_kernel(x_ref, key_add_ref, mask_ref,
                      wqv_ref, u_ref, bvo_ref, g1_ref, b1_ref,
                      wi_ref, bi_ref, wo2_ref, bo2_ref, g2_ref, b2_ref,
                      out_ref):
    x = x_ref[...]                                   # (M, D) bf16
    M, d = x.shape
    nh = wqv_ref.shape[0]

    # combined additive mask: constant block-diagonal part + per-step key
    # padding row; built once, reused by every head.
    mask = mask_ref[...] + key_add_ref[0]            # (M, M) f32

    acc = jnp.zeros((M, d), jnp.float32)
    for h in range(nh):                              # static unroll over heads
        # fused (Wq Wk^T | Wv Wo) projection: one full-width (D, 2D) MXU matmul
        qv = jnp.dot(x, wqv_ref[h], preferred_element_type=jnp.float32)   # (M, 2D) f32
        qx = (qv[:, :d] + u_ref[h]).astype(jnp.bfloat16)   # scaled q·Wk^T rows (+key bias)
        vp = qv[:, d:].astype(jnp.bfloat16)                # v' = x · (Wv_h Wo_h)

        # scores contract over D=128 (full MXU fill), bf16 operands, f32 acc
        s = jax.lax.dot_general(qx, x, (((1,), (1,)), ((), ())),
                                preferred_element_type=jnp.float32)        # (M, M)
        s = s + mask
        s = s - jnp.max(s, axis=-1, keepdims=True)
        p = jnp.exp(s)
        p = p * pl.reciprocal(jnp.sum(p, axis=-1, keepdims=True), approx=True)

        acc = acc + jnp.dot(p.astype(jnp.bfloat16), vp,
                            preferred_element_type=jnp.float32)            # (M, D)

    xf = x.astype(jnp.float32)
    h1 = _layer_norm(acc + bvo_ref[...] + xf, g1_ref[...], b1_ref[...])

    inter = jnp.dot(h1.astype(jnp.bfloat16), wi_ref[...],
                    preferred_element_type=jnp.float32) + bi_ref[...]
    inter = _gelu_tanh(inter)
    out2 = jnp.dot(inter.astype(jnp.bfloat16), wo2_ref[...],
                   preferred_element_type=jnp.float32) + bo2_ref[...]
    out_ref[...] = _layer_norm(out2 + h1, g2_ref[...], b2_ref[...]).astype(out_ref.dtype)


def _const_spec(arr):
    nd = arr.ndim
    return pl.BlockSpec(arr.shape, lambda g, _nd=nd: (0,) * _nd)


def bert_layer_pallas(x_chunks, key_valid, kernel_params):
    """x_chunks: (N, L, D) bf16 chunked features; key_valid: (N, L) 1/0 float."""
    N, L, d = x_chunks.shape
    key_valid = np.asarray(key_valid, np.float32)

    # M = cb*L = 128 rows per step, and >= 2 "parallel" steps so both v7x
    # TensorCores get work (no-op on single-TC v5e/v6e); M is kept at 128 to
    # bound the masked-softmax exp area (EUP is the binding unit there).
    cb = max(1, min(pl.cdiv(128, L), max(1, N // 2)))
    n_steps = pl.cdiv(N, cb)
    pad = n_steps * cb - N
    if pad:
        x_chunks = jnp.concatenate(
            [x_chunks, jnp.zeros((pad, L, d), x_chunks.dtype)], axis=0)
        key_valid = np.concatenate(
            [key_valid, np.zeros((pad, L), np.float32)], axis=0)
    M = cb * L

    x2 = x_chunks.reshape(n_steps * M, d)
    key_add = jnp.asarray(((1.0 - key_valid) * -10000.0)
                          .reshape(n_steps, 1, M).astype(np.float32))

    # block-diagonal (per-chunk) additive mask, hoisted out of the kernel
    rows = np.arange(M) // L
    block_mask = jnp.asarray(
        np.where(rows[:, None] == rows[None, :], 0.0, NEG_BIG).astype(np.float32))

    in_specs = [
        pl.BlockSpec((M, d), lambda g: (g, 0)),         # x (lane-dense)
        pl.BlockSpec((1, 1, M), lambda g: (g, 0, 0)),   # additive key mask (lane-dense)
        _const_spec(block_mask),                        # constant block-diag mask
    ] + [_const_spec(p) for p in kernel_params]
    out_spec = pl.BlockSpec((M, d), lambda g: (g, 0))

    # advisory cost estimate for XLA scheduling around the custom call
    flops_step = (H * (2 * M * d * (2 * d)      # fused qk/vo projection
                       + 2 * M * M * d          # scores
                       + 2 * M * M * d)         # p @ v'
                  + 2 * 2 * M * d * F)          # FFN
    trans_step = H * M * M + M * F              # exp + tanh
    w_bytes = int(sum(int(np.prod(p.shape)) * p.dtype.itemsize for p in kernel_params))
    cost = pl.CostEstimate(
        flops=int(n_steps * flops_step),
        transcendentals=int(n_steps * trans_step),
        bytes_accessed=int(n_steps * (M * d * (2 + 4) + M * 4) + M * M * 4 + w_bytes))

    out2 = pl.pallas_call(
        bert_layer_kernel,
        out_shape=jax.ShapeDtypeStruct((n_steps * M, d), jnp.float32),
        grid_spec=pltpu.PrefetchScalarGridSpec(
            num_scalar_prefetch=0,
            grid=(n_steps,),
            in_specs=in_specs,
            out_specs=out_spec),
        compiler_params=pltpu.CompilerParams(
            dimension_semantics=("parallel",)),
        cost_estimate=cost,
    )(x2, key_add, block_mask, *kernel_params)

    return out2.reshape(n_steps * cb, L, d)[:N]


# ----------------------- pure-JAX reference (test only) ---------------------
def bert_layer_ref(x_chunks, key_valid, math_params):
    """Standard (transpose-based, per-chunk) f32 MHA reference on the same bf16
    inputs.  Padded chunk slots are NOT zeroed (the downstream scatter masks)."""
    (wq, bq, wk, bk, wv, bv, wo, bo, g1, b1,
     wi, bi, wo2, bo2, g2, b2) = math_params
    x = x_chunks.astype(jnp.float32)                              # (N, L, D)
    N, L, d = x.shape
    key_valid = jnp.asarray(key_valid, jnp.float32)
    add_mask = ((1.0 - key_valid) * -10000.0)[:, None, None, :]   # (N,1,1,L)

    q = x @ wq + bq
    k = x @ wk + bk
    v = x @ wv + bv
    qh = q.reshape(N, L, H, DH).transpose(0, 2, 1, 3)
    kh = k.reshape(N, L, H, DH).transpose(0, 2, 1, 3)
    vh = v.reshape(N, L, H, DH).transpose(0, 2, 1, 3)
    s = jnp.einsum('nhqd,nhkd->nhqk', qh, kh) / np.sqrt(DH) + add_mask
    p = jax.nn.softmax(s, axis=-1)
    ctx = jnp.einsum('nhqk,nhkd->nhqd', p, vh).transpose(0, 2, 1, 3).reshape(N, L, d)
    attn = ctx @ wo + bo
    h1 = _layer_norm(attn + x, g1, b1)
    inter = _gelu_exact(h1 @ wi + bi)
    out = inter @ wo2 + bo2
    y = _layer_norm(out + h1, g2, b2)
    return y


# ------------------------- chunk scatter/gather glue -------------------------
def build_maps(chunk_lens):
    """Host-side replica of the Python chunk loops in the PyTorch forward
    (including truncation of chunks longer than MAX_CHUNK_LEN)."""
    gather_idx = np.zeros((B, MAX_CHUNK_NUMBER, MAX_CHUNK_LEN), np.int32)
    gather_valid = np.zeros((B, MAX_CHUNK_NUMBER, MAX_CHUNK_LEN), np.float32)
    scatter_chunk = np.zeros((B, T), np.int32)
    scatter_slot = np.zeros((B, T), np.int32)
    scatter_valid = np.zeros((B, T), np.float32)
    for b in range(B):
        wp = 0
        for c in range(MAX_CHUNK_NUMBER):
            ln = int(chunk_lens[b, c])
            trunc = min(ln, MAX_CHUNK_LEN)
            for j in range(trunc):
                gather_idx[b, c, j] = wp + j
                gather_valid[b, c, j] = 1.0
                scatter_chunk[b, wp + j] = c
                scatter_slot[b, wp + j] = j
                scatter_valid[b, wp + j] = 1.0
            wp += ln
    return gather_idx, gather_valid, scatter_chunk, scatter_slot, scatter_valid


def chunk_encoder_forward(token_level_features, chunk_lens, kernel_params):
    gather_idx, gather_valid, sc_chunk, sc_slot, sc_valid = build_maps(chunk_lens)
    b_idx = np.arange(B)[:, None, None]
    feat = jnp.asarray(token_level_features)[b_idx, gather_idx] * gather_valid[..., None]
    x_chunks = feat.reshape(B * MAX_CHUNK_NUMBER, MAX_CHUNK_LEN, D).astype(jnp.bfloat16)
    key_valid = gather_valid.reshape(B * MAX_CHUNK_NUMBER, MAX_CHUNK_LEN)

    encoded = bert_layer_pallas(x_chunks, key_valid, kernel_params)   # (N, L, D) f32

    encoded4 = encoded.reshape(B, MAX_CHUNK_NUMBER, MAX_CHUNK_LEN, D)
    b2_idx = np.arange(B)[:, None]
    span_adapted = encoded4[b2_idx, sc_chunk, sc_slot] * sc_valid[..., None]
    # TODO(synk): pretrained token-level BERT encoder, dropout (eval mode) and the
    # classifier/loss head of PASentForSequenceClassification stay in plain JAX/XLA.
    return span_adapted, encoded, x_chunks, key_valid


# ------------------------------- parameters ---------------------------------
def init_params(key):
    """Math-layout params: y = x @ W + b.  (Real PyTorch nn.Linear checkpoints
    store (out_features, in_features); transpose when porting.)"""
    ks = jax.random.split(key, 10)

    def w(k, shape):   # bf16-representable values so bf16 kernel storage is lossless
        return (0.02 * jax.random.normal(k, shape, jnp.float32)
                ).astype(jnp.bfloat16).astype(jnp.float32)

    wq, wk, wv, wo = (w(ks[i], (D, D)) for i in range(4))
    wi = w(ks[4], (D, F))
    wo2 = w(ks[5], (F, D))
    bq = 0.01 * jax.random.normal(ks[6], (D,), jnp.float32)
    bv = 0.01 * jax.random.normal(ks[7], (D,), jnp.float32)
    bk = jnp.zeros((D,), jnp.float32)
    bo = jnp.zeros((D,), jnp.float32)
    bi = jnp.zeros((F,), jnp.float32)
    bo2 = jnp.zeros((D,), jnp.float32)
    g1 = jnp.ones((D,), jnp.float32)
    b1 = jnp.zeros((D,), jnp.float32)
    g2 = jnp.ones((D,), jnp.float32)
    b2 = jnp.zeros((D,), jnp.float32)
    return (wq, bq, wk, bk, wv, bv, wo, bo, g1, b1, wi, bi, wo2, bo2, g2, b2)


def prep_kernel_params(math_params):
    """Kernel layout (folded):
       wqv[h] = concat( Wq_h @ Wk_h^T / sqrt(DH) , Wv_h @ Wo_h ) : (H, D, 2D) bf16
       u[h]   = Wk_h @ bq_h / sqrt(DH)                           : (H, 1, D) f32
       bvo    = bv @ Wo + bo                                     : (1, D) f32
    Per-query score-bias terms cancel in softmax; bk drops out entirely."""
    (wq, bq, wk, bk, wv, bv, wo, bo, g1, b1,
     wi, bi, wo2, bo2, g2, b2) = math_params
    scale = 1.0 / np.sqrt(DH)

    wqv_list, u_list = [], []
    for h in range(H):
        sl = slice(h * DH, (h + 1) * DH)
        wq_h = wq[:, sl]            # (D, DH)
        wk_h = wk[:, sl]            # (D, DH)
        wv_h = wv[:, sl]            # (D, DH)
        wo_h = wo[sl, :]            # (DH, D)
        wqk_h = scale * (wq_h @ wk_h.T)     # (D, D)
        wvo_h = wv_h @ wo_h                 # (D, D)
        wqv_list.append(jnp.concatenate([wqk_h, wvo_h], axis=1))   # (D, 2D)
        u_list.append(scale * (wk_h @ bq[sl]))                     # (D,)
    wqv = jnp.stack(wqv_list).astype(jnp.bfloat16)                 # (H, D, 2D)
    u = jnp.stack(u_list).reshape(H, 1, D).astype(jnp.float32)
    bvo = (bv @ wo + bo).reshape(1, D).astype(jnp.float32)

    return (wqv, u, bvo,
            g1.reshape(1, D), b1.reshape(1, D),
            wi.astype(jnp.bfloat16), bi.reshape(1, F),
            wo2.astype(jnp.bfloat16), bo2.reshape(1, D),
            g2.reshape(1, D), b2.reshape(1, D))


# ----------------------------------- main -----------------------------------
if __name__ == "__main__":
    key = jax.random.PRNGKey(0)
    k_x, k_p = jax.random.split(key)

    token_level_features = jax.random.normal(k_x, (B, T, D), jnp.float32)
    # deterministic chunk lengths; includes zero-length chunks and one chunk
    # longer than MAX_CHUNK_LEN (truncation path); per-row sums <= T
    chunk_lens = np.array(
        [[3, 5, 2, 0, 4, 1, 6, 2, 3, 2, 5, 1, 0, 4, 2, 3],
         [9, 4, 1, 2, 8, 3, 0, 5, 2, 6, 1, 3, 4, 0, 2, 7]], dtype=np.int32)

    math_params = init_params(k_p)
    kernel_params = prep_kernel_params(math_params)

    span_adapted, encoded, x_chunks, key_valid = chunk_encoder_forward(
        token_level_features, chunk_lens, kernel_params)
    encoded = jax.block_until_ready(encoded)
    span_adapted = jax.block_until_ready(span_adapted)

    encoded_ref = bert_layer_ref(x_chunks, key_valid, math_params)
    np.testing.assert_allclose(np.asarray(encoded), np.asarray(encoded_ref),
                               rtol=3e-2, atol=3e-2)
    assert span_adapted.shape == (B, T, D)
    print("KERNEL_OK")
</pallas_src>

<mosaic_0001>
module attributes {stable_mosaic.version = 11 : i64} {
  func.func @bert_layer_kernel(%arg0: i32, %arg1: memref<128x128xbf16, #tpu.memory_space<vmem>>, %arg2: memref<1x1x128xf32, #tpu.memory_space<vmem>>, %arg3: memref<128x128xf32, #tpu.memory_space<vmem>>, %arg4: memref<8x128x256xbf16, #tpu.memory_space<vmem>>, %arg5: memref<8x1x128xf32, #tpu.memory_space<vmem>>, %arg6: memref<1x128xf32, #tpu.memory_space<vmem>>, %arg7: memref<1x128xf32, #tpu.memory_space<vmem>>, %arg8: memref<1x128xf32, #tpu.memory_space<vmem>>, %arg9: memref<128x512xbf16, #tpu.memory_space<vmem>>, %arg10: memref<1x512xf32, #tpu.memory_space<vmem>>, %arg11: memref<512x128xbf16, #tpu.memory_space<vmem>>, %arg12: memref<1x128xf32, #tpu.memory_space<vmem>>, %arg13: memref<1x128xf32, #tpu.memory_space<vmem>>, %arg14: memref<1x128xf32, #tpu.memory_space<vmem>>, %arg15: memref<128x128xf32, #tpu.memory_space<vmem>>) attributes {dimension_semantics = [#tpu.dimension_semantics<parallel>], iteration_bounds = array<i64: 2>, scalar_prefetch = 0 : i64, scratch_operands = 0 : i64, tpu.core_type = #tpu.core_type<tc>, window_params = [{transform_indices = @transform_0, window_bounds = array<i64: 128, 128>}, {transform_indices = @transform_1, window_bounds = array<i64: 1, 1, 128>}, {pipeline_mode = #tpu.pipeline_mode<synchronous>, transform_indices = @transform_2, window_bounds = array<i64: 128, 128>}, {pipeline_mode = #tpu.pipeline_mode<synchronous>, transform_indices = @transform_3, window_bounds = array<i64: 8, 128, 256>}, {pipeline_mode = #tpu.pipeline_mode<synchronous>, transform_indices = @transform_4, window_bounds = array<i64: 8, 1, 128>}, {pipeline_mode = #tpu.pipeline_mode<synchronous>, transform_indices = @transform_5, window_bounds = array<i64: 1, 128>}, {pipeline_mode = #tpu.pipeline_mode<synchronous>, transform_indices = @transform_6, window_bounds = array<i64: 1, 128>}, {pipeline_mode = #tpu.pipeline_mode<synchronous>, transform_indices = @transform_7, window_bounds = array<i64: 1, 128>}, {pipeline_mode = #tpu.pipeline_mode<synchronous>, transform_indices = @transform_8, window_bounds = array<i64: 128, 512>}, {pipeline_mode = #tpu.pipeline_mode<synchronous>, transform_indices = @transform_9, window_bounds = array<i64: 1, 512>}, {pipeline_mode = #tpu.pipeline_mode<synchronous>, transform_indices = @transform_10, window_bounds = array<i64: 512, 128>}, {pipeline_mode = #tpu.pipeline_mode<synchronous>, transform_indices = @transform_11, window_bounds = array<i64: 1, 128>}, {pipeline_mode = #tpu.pipeline_mode<synchronous>, transform_indices = @transform_12, window_bounds = array<i64: 1, 128>}, {pipeline_mode = #tpu.pipeline_mode<synchronous>, transform_indices = @transform_13, window_bounds = array<i64: 1, 128>}, {transform_indices = @transform_14, window_bounds = array<i64: 128, 128>}]} {
    %c0 = arith.constant 0 : index
    %c0_0 = arith.constant 0 : index
    %0 = vector.load %arg1[%c0, %c0_0] : memref<128x128xbf16, #tpu.memory_space<vmem>>, vector<128x128xbf16>
    %c0_1 = arith.constant 0 : index
    %c0_2 = arith.constant 0 : index
    %1 = vector.load %arg3[%c0_1, %c0_2] : memref<128x128xf32, #tpu.memory_space<vmem>>, vector<128x128xf32>
    %c0_3 = arith.constant 0 : index
    %c0_4 = arith.constant 0 : index
    %c0_5 = arith.constant 0 : index
    %2 = vector.load %arg2[%c0_3, %c0_4, %c0_5] : memref<1x1x128xf32, #tpu.memory_space<vmem>>, vector<1x1x128xf32>
    %3 = vector.shape_cast %2 : vector<1x1x128xf32> to vector<1x128xf32>
    %4 = vector.broadcast %3 : vector<1x128xf32> to vector<128x128xf32>
    %5 = arith.addf %1, %4 : vector<128x128xf32>
    %cst = arith.constant 0.000000e+00 : f32
    %6 = vector.broadcast %cst : f32 to vector<128x128xf32>
    %c0_6 = arith.constant 0 : index
    %c0_7 = arith.constant 0 : index
    %c0_8 = arith.constant 0 : index
    %7 = vector.load %arg4[%c0_6, %c0_7, %c0_8] : memref<8x128x256xbf16, #tpu.memory_space<vmem>>, vector<1x128x256xbf16>
    %8 = vector.shape_cast %7 : vector<1x128x256xbf16> to vector<128x256xbf16>
    %cst_9 = arith.constant dense<0.000000e+00> : vector<128x256xf32>
    %9 = tpu.matmul %0, %8, %cst_9 {dimension_numbers = #tpu.dot_dimension_numbers<[1], [0], [0], [1], [0, 0, 1, 1], [], []>} : vector<128x128xbf16>, vector<128x256xbf16>, vector<128x256xf32> -> vector<128x256xf32>
    %10 = vector.extract_strided_slice %9 {offsets = [0, 0], sizes = [128, 128], strides = [1, 1]} : vector<128x256xf32> to vector<128x128xf32>
    %c0_10 = arith.constant 0 : index
    %c0_11 = arith.constant 0 : index
    %c0_12 = arith.constant 0 : index
    %11 = vector.load %arg5[%c0_10, %c0_11, %c0_12] : memref<8x1x128xf32, #tpu.memory_space<vmem>>, vector<1x1x128xf32>
    %12 = vector.shape_cast %11 : vector<1x1x128xf32> to vector<1x128xf32>
    %13 = vector.broadcast %12 : vector<1x128xf32> to vector<128x128xf32>
    %14 = arith.addf %10, %13 : vector<128x128xf32>
    %15 = arith.truncf %14 : vector<128x128xf32> to vector<128x128xbf16>
    %16 = vector.extract_strided_slice %9 {offsets = [0, 128], sizes = [128, 128], strides = [1, 1]} : vector<128x256xf32> to vector<128x128xf32>
    %17 = arith.truncf %16 : vector<128x128xf32> to vector<128x128xbf16>
    %cst_13 = arith.constant dense<0.000000e+00> : vector<128x128xf32>
    %18 = tpu.matmul %15, %0, %cst_13 {dimension_numbers = #tpu.dot_dimension_numbers<[1], [1], [0], [0], [0, 0, 1, 0], [], []>} : vector<128x128xbf16>, vector<128x128xbf16>, vector<128x128xf32> -> vector<128x128xf32>
    %19 = arith.addf %18, %5 : vector<128x128xf32>
    %cst_14 = arith.constant dense<0xFF800000> : vector<128xf32>
    %20 = vector.multi_reduction <maximumf>, %19, %cst_14 [1] : vector<128x128xf32> to vector<128xf32>
    %21 = vector.shape_cast %20 : vector<128xf32> to vector<128x1xf32>
    %22 = vector.broadcast %21 : vector<128x1xf32> to vector<128x128xf32>
    %23 = arith.subf %19, %22 : vector<128x128xf32>
    %24 = math.exp %23 : vector<128x128xf32>
    %cst_15 = arith.constant dense<0.000000e+00> : vector<128xf32>
    %25 = vector.multi_reduction <add>, %24, %cst_15 [1] : vector<128x128xf32> to vector<128xf32>
    %26 = vector.shape_cast %25 : vector<128xf32> to vector<128x1xf32>
    %27 = tpu.reciprocal %26 {approx = true} : vector<128x1xf32> -> vector<128x1xf32>
    %28 = vector.broadcast %27 : vector<128x1xf32> to vector<128x128xf32>
    %29 = arith.mulf %24, %28 : vector<128x128xf32>
    %30 = arith.truncf %29 : vector<128x128xf32> to vector<128x128xbf16>
    %cst_16 = arith.constant dense<0.000000e+00> : vector<128x128xf32>
    %31 = tpu.matmul %30, %17, %cst_16 {dimension_numbers = #tpu.dot_dimension_numbers<[1], [0], [0], [1], [0, 0, 1, 1], [], []>} : vector<128x128xbf16>, vector<128x128xbf16>, vector<128x128xf32> -> vector<128x128xf32>
    %32 = arith.addf %6, %31 : vector<128x128xf32>
    %c1 = arith.constant 1 : index
    %c0_17 = arith.constant 0 : index
    %c0_18 = arith.constant 0 : index
    %33 = vector.load %arg4[%c1, %c0_17, %c0_18] : memref<8x128x256xbf16, #tpu.memory_space<vmem>>, vector<1x128x256xbf16>
    %34 = vector.shape_cast %33 : vector<1x128x256xbf16> to vector<128x256xbf16>
    %cst_19 = arith.constant dense<0.000000e+00> : vector<128x256xf32>
    %35 = tpu.matmul %0, %34, %cst_19 {dimension_numbers = #tpu.dot_dimension_numbers<[1], [0], [0], [1], [0, 0, 1, 1], [], []>} : vector<128x128xbf16>, vector<128x256xbf16>, vector<128x256xf32> -> vector<128x256xf32>
    %36 = vector.extract_strided_slice %35 {offsets = [0, 0], sizes = [128, 128], strides = [1, 1]} : vector<128x256xf32> to vector<128x128xf32>
    %c1_20 = arith.constant 1 : index
    %c0_21 = arith.constant 0 : index
    %c0_22 = arith.constant 0 : index
    %37 = vector.load %arg5[%c1_20, %c0_21, %c0_22] : memref<8x1x128xf32, #tpu.memory_space<vmem>>, vector<1x1x128xf32>
    %38 = vector.shape_cast %37 : vector<1x1x128xf32> to vector<1x128xf32>
    %39 = vector.broadcast %38 : vector<1x128xf32> to vector<128x128xf32>
    %40 = arith.addf %36, %39 : vector<128x128xf32>
    %41 = arith.truncf %40 : vector<128x128xf32> to vector<128x128xbf16>
    %42 = vector.extract_strided_slice %35 {offsets = [0, 128], sizes = [128, 128], strides = [1, 1]} : vector<128x256xf32> to vector<128x128xf32>
    %43 = arith.truncf %42 : vector<128x128xf32> to vector<128x128xbf16>
    %cst_23 = arith.constant dense<0.000000e+00> : vector<128x128xf32>
    %44 = tpu.matmul %41, %0, %cst_23 {dimension_numbers = #tpu.dot_dimension_numbers<[1], [1], [0], [0], [0, 0, 1, 0], [], []>} : vector<128x128xbf16>, vector<128x128xbf16>, vector<128x128xf32> -> vector<128x128xf32>
    %45 = arith.addf %44, %5 : vector<128x128xf32>
    %cst_24 = arith.constant dense<0xFF800000> : vector<128xf32>
    %46 = vector.multi_reduction <maximumf>, %45, %cst_24 [1] : vector<128x128xf32> to vector<128xf32>
    %47 = vector.shape_cast %46 : vector<128xf32> to vector<128x1xf32>
    %48 = vector.broadcast %47 : vector<128x1xf32> to vector<128x128xf32>
    %49 = arith.subf %45, %48 : vector<128x128xf32>
    %50 = math.exp %49 : vector<128x128xf32>
    %cst_25 = arith.constant dense<0.000000e+00> : vector<128xf32>
    %51 = vector.multi_reduction <add>, %50, %cst_25 [1] : vector<128x128xf32> to vector<128xf32>
    %52 = vector.shape_cast %51 : vector<128xf32> to vector<128x1xf32>
    %53 = tpu.reciprocal %52 {approx = true} : vector<128x1xf32> -> vector<128x1xf32>
    %54 = vector.broadcast %53 : vector<128x1xf32> to vector<128x128xf32>
    %55 = arith.mulf %50, %54 : vector<128x128xf32>
    %56 = arith.truncf %55 : vector<128x128xf32> to vector<128x128xbf16>
    %cst_26 = arith.constant dense<0.000000e+00> : vector<128x128xf32>
    %57 = tpu.matmul %56, %43, %cst_26 {dimension_numbers = #tpu.dot_dimension_numbers<[1], [0], [0], [1], [0, 0, 1, 1], [], []>} : vector<128x128xbf16>, vector<128x128xbf16>, vector<128x128xf32> -> vector<128x128xf32>
    %58 = arith.addf %32, %57 : vector<128x128xf32>
    %c2 = arith.constant 2 : index
    %c0_27 = arith.constant 0 : index
    %c0_28 = arith.constant 0 : index
    %59 = vector.load %arg4[%c2, %c0_27, %c0_28] : memref<8x128x256xbf16, #tpu.memory_space<vmem>>, vector<1x128x256xbf16>
    %60 = vector.shape_cast %59 : vector<1x128x256xbf16> to vector<128x256xbf16>
    %cst_29 = arith.constant dense<0.000000e+00> : vector<128x256xf32>
    %61 = tpu.matmul %0, %60, %cst_29 {dimension_numbers = #tpu.dot_dimension_numbers<[1], [0], [0], [1], [0, 0, 1, 1], [], []>} : vector<128x128xbf16>, vector<128x256xbf16>, vector<128x256xf32> -> vector<128x256xf32>
    %62 = vector.extract_strided_slice %61 {offsets = [0, 0], sizes = [128, 128], strides = [1, 1]} : vector<128x256xf32> to vector<128x128xf32>
    %c2_30 = arith.constant 2 : index
    %c0_31 = arith.constant 0 : index
    %c0_32 = arith.constant 0 : index
    %63 = vector.load %arg5[%c2_30, %c0_31, %c0_32] : memref<8x1x128xf32, #tpu.memory_space<vmem>>, vector<1x1x128xf32>
    %64 = vector.shape_cast %63 : vector<1x1x128xf32> to vector<1x128xf32>
    %65 = vector.broadcast %64 : vector<1x128xf32> to vector<128x128xf32>
    %66 = arith.addf %62, %65 : vector<128x128xf32>
    %67 = arith.truncf %66 : vector<128x128xf32> to vector<128x128xbf16>
    %68 = vector.extract_strided_slice %61 {offsets = [0, 128], sizes = [128, 128], strides = [1, 1]} : vector<128x256xf32> to vector<128x128xf32>
    %69 = arith.truncf %68 : vector<128x128xf32> to vector<128x128xbf16>
    %cst_33 = arith.constant dense<0.000000e+00> : vector<128x128xf32>
    %70 = tpu.matmul %67, %0, %cst_33 {dimension_numbers = #tpu.dot_dimension_numbers<[1], [1], [0], [0], [0, 0, 1, 0], [], []>} : vector<128x128xbf16>, vector<128x128xbf16>, vector<128x128xf32> -> vector<128x128xf32>
    %71 = arith.addf %70, %5 : vector<128x128xf32>
    %cst_34 = arith.constant dense<0xFF800000> : vector<128xf32>
    %72 = vector.multi_reduction <maximumf>, %71, %cst_34 [1] : vector<128x128xf32> to vector<128xf32>
    %73 = vector.shape_cast %72 : vector<128xf32> to vector<128x1xf32>
    %74 = vector.broadcast %73 : vector<128x1xf32> to vector<128x128xf32>
    %75 = arith.subf %71, %74 : vector<128x128xf32>
    %76 = math.exp %75 : vector<128x128xf32>
    %cst_35 = arith.constant dense<0.000000e+00> : vector<128xf32>
    %77 = vector.multi_reduction <add>, %76, %cst_35 [1] : vector<128x128xf32> to vector<128xf32>
    %78 = vector.shape_cast %77 : vector<128xf32> to vector<128x1xf32>
    %79 = tpu.reciprocal %78 {approx = true} : vector<128x1xf32> -> vector<128x1xf32>
    %80 = vector.broadcast %79 : vector<128x1xf32> to vector<128x128xf32>
    %81 = arith.mulf %76, %80 : vector<128x128xf32>
    %82 = arith.truncf %81 : vector<128x128xf32> to vector<128x128xbf16>
    %cst_36 = arith.constant dense<0.000000e+00> : vector<128x128xf32>
    %83 = tpu.matmul %82, %69, %cst_36 {dimension_numbers = #tpu.dot_dimension_numbers<[1], [0], [0], [1], [0, 0, 1, 1], [], []>} : vector<128x128xbf16>, vector<128x128xbf16>, vector<128x128xf32> -> vector<128x128xf32>
    %84 = arith.addf %58, %83 : vector<128x128xf32>
    %c3 = arith.constant 3 : index
    %c0_37 = arith.constant 0 : index
    %c0_38 = arith.constant 0 : index
    %85 = vector.load %arg4[%c3, %c0_37, %c0_38] : memref<8x128x256xbf16, #tpu.memory_space<vmem>>, vector<1x128x256xbf16>
    %86 = vector.shape_cast %85 : vector<1x128x256xbf16> to vector<128x256xbf16>
    %cst_39 = arith.constant dense<0.000000e+00> : vector<128x256xf32>
    %87 = tpu.matmul %0, %86, %cst_39 {dimension_numbers = #tpu.dot_dimension_numbers<[1], [0], [0], [1], [0, 0, 1, 1], [], []>} : vector<128x128xbf16>, vector<128x256xbf16>, vector<128x256xf32> -> vector<128x256xf32>
    %88 = vector.extract_strided_slice %87 {offsets = [0, 0], sizes = [128, 128], strides = [1, 1]} : vector<128x256xf32> to vector<128x128xf32>
    %c3_40 = arith.constant 3 : index
    %c0_41 = arith.constant 0 : index
    %c0_42 = arith.constant 0 : index
    %89 = vector.load %arg5[%c3_40, %c0_41, %c0_42] : memref<8x1x128xf32, #tpu.memory_space<vmem>>, vector<1x1x128xf32>
    %90 = vector.shape_cast %89 : vector<1x1x128xf32> to vector<1x128xf32>
    %91 = vector.broadcast %90 : vector<1x128xf32> to vector<128x128xf32>
    %92 = arith.addf %88, %91 : vector<128x128xf32>
    %93 = arith.truncf %92 : vector<128x128xf32> to vector<128x128xbf16>
    %94 = vector.extract_strided_slice %87 {offsets = [0, 128], sizes = [128, 128], strides = [1, 1]} : vector<128x256xf32> to vector<128x128xf32>
    %95 = arith.truncf %94 : vector<128x128xf32> to vector<128x128xbf16>
    %cst_43 = arith.constant dense<0.000000e+00> : vector<128x128xf32>
    %96 = tpu.matmul %93, %0, %cst_43 {dimension_numbers = #tpu.dot_dimension_numbers<[1], [1], [0], [0], [0, 0, 1, 0], [], []>} : vector<128x128xbf16>, vector<128x128xbf16>, vector<128x128xf32> -> vector<128x128xf32>
    %97 = arith.addf %96, %5 : vector<128x128xf32>
    %cst_44 = arith.constant dense<0xFF800000> : vector<128xf32>
    %98 = vector.multi_reduction <maximumf>, %97, %cst_44 [1] : vector<128x128xf32> to vector<128xf32>
    %99 = vector.shape_cast %98 : vector<128xf32> to vector<128x1xf32>
    %100 = vector.broadcast %99 : vector<128x1xf32> to vector<128x128xf32>
    %101 = arith.subf %97, %100 : vector<128x128xf32>
    %102 = math.exp %101 : vector<128x128xf32>
    %cst_45 = arith.constant dense<0.000000e+00> : vector<128xf32>
    %103 = vector.multi_reduction <add>, %102, %cst_45 [1] : vector<128x128xf32> to vector<128xf32>
    %104 = vector.shape_cast %103 : vector<128xf32> to vector<128x1xf32>
    %105 = tpu.reciprocal %104 {approx = true} : vector<128x1xf32> -> vector<128x1xf32>
    %106 = vector.broadcast %105 : vector<128x1xf32> to vector<128x128xf32>
    %107 = arith.mulf %102, %106 : vector<128x128xf32>
    %108 = arith.truncf %107 : vector<128x128xf32> to vector<128x128xbf16>
    %cst_46 = arith.constant dense<0.000000e+00> : vector<128x128xf32>
    %109 = tpu.matmul %108, %95, %cst_46 {dimension_numbers = #tpu.dot_dimension_numbers<[1], [0], [0], [1], [0, 0, 1, 1], [], []>} : vector<128x128xbf16>, vector<128x128xbf16>, vector<128x128xf32> -> vector<128x128xf32>
    %110 = arith.addf %84, %109 : vector<128x128xf32>
    %c4 = arith.constant 4 : index
    %c0_47 = arith.constant 0 : index
    %c0_48 = arith.constant 0 : index
    %111 = vector.load %arg4[%c4, %c0_47, %c0_48] : memref<8x128x256xbf16, #tpu.memory_space<vmem>>, vector<1x128x256xbf16>
    %112 = vector.shape_cast %111 : vector<1x128x256xbf16> to vector<128x256xbf16>
    %cst_49 = arith.constant dense<0.000000e+00> : vector<128x256xf32>
    %113 = tpu.matmul %0, %112, %cst_49 {dimension_numbers = #tpu.dot_dimension_numbers<[1], [0], [0], [1], [0, 0, 1, 1], [], []>} : vector<128x128xbf16>, vector<128x256xbf16>, vector<128x256xf32> -> vector<128x256xf32>
    %114 = vector.extract_strided_slice %113 {offsets = [0, 0], sizes = [128, 128], strides = [1, 1]} : vector<128x256xf32> to vector<128x128xf32>
    %c4_50 = arith.constant 4 : index
    %c0_51 = arith.constant 0 : index
    %c0_52 = arith.constant 0 : index
    %115 = vector.load %arg5[%c4_50, %c0_51, %c0_52] : memref<8x1x128xf32, #tpu.memory_space<vmem>>, vector<1x1x128xf32>
    %116 = vector.shape_cast %115 : vector<1x1x128xf32> to vector<1x128xf32>
    %117 = vector.broadcast %116 : vector<1x128xf32> to vector<128x128xf32>
    %118 = arith.addf %114, %117 : vector<128x128xf32>
    %119 = arith.truncf %118 : vector<128x128xf32> to vector<128x128xbf16>
    %120 = vector.extract_strided_slice %113 {offsets = [0, 128], sizes = [128, 128], strides = [1, 1]} : vector<128x256xf32> to vector<128x128xf32>
    %121 = arith.truncf %120 : vector<128x128xf32> to vector<128x128xbf16>
    %cst_53 = arith.constant dense<0.000000e+00> : vector<128x128xf32>
    %122 = tpu.matmul %119, %0, %cst_53 {dimension_numbers = #tpu.dot_dimension_numbers<[1], [1], [0], [0], [0, 0, 1, 0], [], []>} : vector<128x128xbf16>, vector<128x128xbf16>, vector<128x128xf32> -> vector<128x128xf32>
    %123 = arith.addf %122, %5 : vector<128x128xf32>
    %cst_54 = arith.constant dense<0xFF800000> : vector<128xf32>
    %124 = vector.multi_reduction <maximumf>, %123, %cst_54 [1] : vector<128x128xf32> to vector<128xf32>
    %125 = vector.shape_cast %124 : vector<128xf32> to vector<128x1xf32>
    %126 = vector.broadcast %125 : vector<128x1xf32> to vector<128x128xf32>
    %127 = arith.subf %123, %126 : vector<128x128xf32>
    %128 = math.exp %127 : vector<128x128xf32>
    %cst_55 = arith.constant dense<0.000000e+00> : vector<128xf32>
    %129 = vector.multi_reduction <add>, %128, %cst_55 [1] : vector<128x128xf32> to vector<128xf32>
    %130 = vector.shape_cast %129 : vector<128xf32> to vector<128x1xf32>
    %131 = tpu.reciprocal %130 {approx = true} : vector<128x1xf32> -> vector<128x1xf32>
    %132 = vector.broadcast %131 : vector<128x1xf32> to vector<128x128xf32>
    %133 = arith.mulf %128, %132 : vector<128x128xf32>
    %134 = arith.truncf %133 : vector<128x128xf32> to vector<128x128xbf16>
    %cst_56 = arith.constant dense<0.000000e+00> : vector<128x128xf32>
    %135 = tpu.matmul %134, %121, %cst_56 {dimension_numbers = #tpu.dot_dimension_numbers<[1], [0], [0], [1], [0, 0, 1, 1], [], []>} : vector<128x128xbf16>, vector<128x128xbf16>, vector<128x128xf32> -> vector<128x128xf32>
    %136 = arith.addf %110, %135 : vector<128x128xf32>
    %c5 = arith.constant 5 : index
    %c0_57 = arith.constant 0 : index
    %c0_58 = arith.constant 0 : index
    %137 = vector.load %arg4[%c5, %c0_57, %c0_58] : memref<8x128x256xbf16, #tpu.memory_space<vmem>>, vector<1x128x256xbf16>
    %138 = vector.shape_cast %137 : vector<1x128x256xbf16> to vector<128x256xbf16>
    %cst_59 = arith.constant dense<0.000000e+00> : vector<128x256xf32>
    %139 = tpu.matmul %0, %138, %cst_59 {dimension_numbers = #tpu.dot_dimension_numbers<[1], [0], [0], [1], [0, 0, 1, 1], [], []>} : vector<128x128xbf16>, vector<128x256xbf16>, vector<128x256xf32> -> vector<128x256xf32>
    %140 = vector.extract_strided_slice %139 {offsets = [0, 0], sizes = [128, 128], strides = [1, 1]} : vector<128x256xf32> to vector<128x128xf32>
    %c5_60 = arith.constant 5 : index
    %c0_61 = arith.constant 0 : index
    %c0_62 = arith.constant 0 : index
    %141 = vector.load %arg5[%c5_60, %c0_61, %c0_62] : memref<8x1x128xf32, #tpu.memory_space<vmem>>, vector<1x1x128xf32>
    %142 = vector.shape_cast %141 : vector<1x1x128xf32> to vector<1x128xf32>
    %143 = vector.broadcast %142 : vector<1x128xf32> to vector<128x128xf32>
    %144 = arith.addf %140, %143 : vector<128x128xf32>
    %145 = arith.truncf %144 : vector<128x128xf32> to vector<128x128xbf16>
    %146 = vector.extract_strided_slice %139 {offsets = [0, 128], sizes = [128, 128], strides = [1, 1]} : vector<128x256xf32> to vector<128x128xf32>
    %147 = arith.truncf %146 : vector<128x128xf32> to vector<128x128xbf16>
    %cst_63 = arith.constant dense<0.000000e+00> : vector<128x128xf32>
    %148 = tpu.matmul %145, %0, %cst_63 {dimension_numbers = #tpu.dot_dimension_numbers<[1], [1], [0], [0], [0, 0, 1, 0], [], []>} : vector<128x128xbf16>, vector<128x128xbf16>, vector<128x128xf32> -> vector<128x128xf32>
    %149 = arith.addf %148, %5 : vector<128x128xf32>
    %cst_64 = arith.constant dense<0xFF800000> : vector<128xf32>
    %150 = vector.multi_reduction <maximumf>, %149, %cst_64 [1] : vector<128x128xf32> to vector<128xf32>
    %151 = vector.shape_cast %150 : vector<128xf32> to vector<128x1xf32>
    %152 = vector.broadcast %151 : vector<128x1xf32> to vector<128x128xf32>
    %153 = arith.subf %149, %152 : vector<128x128xf32>
    %154 = math.exp %153 : vector<128x128xf32>
    %cst_65 = arith.constant dense<0.000000e+00> : vector<128xf32>
    %155 = vector.multi_reduction <add>, %154, %cst_65 [1] : vector<128x128xf32> to vector<128xf32>
    %156 = vector.shape_cast %155 : vector<128xf32> to vector<128x1xf32>
    %157 = tpu.reciprocal %156 {approx = true} : vector<128x1xf32> -> vector<128x1xf32>
    %158 = vector.broadcast %157 : vector<128x1xf32> to vector<128x128xf32>
    %159 = arith.mulf %154, %158 : vector<128x128xf32>
    %160 = arith.truncf %159 : vector<128x128xf32> to vector<128x128xbf16>
    %cst_66 = arith.constant dense<0.000000e+00> : vector<128x128xf32>
    %161 = tpu.matmul %160, %147, %cst_66 {dimension_numbers = #tpu.dot_dimension_numbers<[1], [0], [0], [1], [0, 0, 1, 1], [], []>} : vector<128x128xbf16>, vector<128x128xbf16>, vector<128x128xf32> -> vector<128x128xf32>
    %162 = arith.addf %136, %161 : vector<128x128xf32>
    %c6 = arith.constant 6 : index
    %c0_67 = arith.constant 0 : index
    %c0_68 = arith.constant 0 : index
    %163 = vector.load %arg4[%c6, %c0_67, %c0_68] : memref<8x128x256xbf16, #tpu.memory_space<vmem>>, vector<1x128x256xbf16>
    %164 = vector.shape_cast %163 : vector<1x128x256xbf16> to vector<128x256xbf16>
    %cst_69 = arith.constant dense<0.000000e+00> : vector<128x256xf32>
    %165 = tpu.matmul %0, %164, %cst_69 {dimension_numbers = #tpu.dot_dimension_numbers<[1], [0], [0], [1], [0, 0, 1, 1], [], []>} : vector<128x128xbf16>, vector<128x256xbf16>, vector<128x256xf32> -> vector<128x256xf32>
    %166 = vector.extract_strided_slice %165 {offsets = [0, 0], sizes = [128, 128], strides = [1, 1]} : vector<128x256xf32> to vector<128x128xf32>
    %c6_70 = arith.constant 6 : index
    %c0_71 = arith.constant 0 : index
    %c0_72 = arith.constant 0 : index
    %167 = vector.load %arg5[%c6_70, %c0_71, %c0_72] : memref<8x1x128xf32, #tpu.memory_space<vmem>>, vector<1x1x128xf32>
    %168 = vector.shape_cast %167 : vector<1x1x128xf32> to vector<1x128xf32>
    %169 = vector.broadcast %168 : vector<1x128xf32> to vector<128x128xf32>
    %170 = arith.addf %166, %169 : vector<128x128xf32>
    %171 = arith.truncf %170 : vector<128x128xf32> to vector<128x128xbf16>
    %172 = vector.extract_strided_slice %165 {offsets = [0, 128], sizes = [128, 128], strides = [1, 1]} : vector<128x256xf32> to vector<128x128xf32>
    %173 = arith.truncf %172 : vector<128x128xf32> to vector<128x128xbf16>
    %cst_73 = arith.constant dense<0.000000e+00> : vector<128x128xf32>
    %174 = tpu.matmul %171, %0, %cst_73 {dimension_numbers = #tpu.dot_dimension_numbers<[1], [1], [0], [0], [0, 0, 1, 0], [], []>} : vector<128x128xbf16>, vector<128x128xbf16>, vector<128x128xf32> -> vector<128x128xf32>
    %175 = arith.addf %174, %5 : vector<128x128xf32>
    %cst_74 = arith.constant dense<0xFF800000> : vector<128xf32>
    %176 = vector.multi_reduction <maximumf>, %175, %cst_74 [1] : vector<128x128xf32> to vector<128xf32>
    %177 = vector.shape_cast %176 : vector<128xf32> to vector<128x1xf32>
    %178 = vector.broadcast %177 : vector<128x1xf32> to vector<128x128xf32>
    %179 = arith.subf %175, %178 : vector<128x128xf32>
    %180 = math.exp %179 : vector<128x128xf32>
    %cst_75 = arith.constant dense<0.000000e+00> : vector<128xf32>
    %181 = vector.multi_reduction <add>, %180, %cst_75 [1] : vector<128x128xf32> to vector<128xf32>
    %182 = vector.shape_cast %181 : vector<128xf32> to vector<128x1xf32>
    %183 = tpu.reciprocal %182 {approx = true} : vector<128x1xf32> -> vector<128x1xf32>
    %184 = vector.broadcast %183 : vector<128x1xf32> to vector<128x128xf32>
    %185 = arith.mulf %180, %184 : vector<128x128xf32>
    %186 = arith.truncf %185 : vector<128x128xf32> to vector<128x128xbf16>
    %cst_76 = arith.constant dense<0.000000e+00> : vector<128x128xf32>
    %187 = tpu.matmul %186, %173, %cst_76 {dimension_numbers = #tpu.dot_dimension_numbers<[1], [0], [0], [1], [0, 0, 1, 1], [], []>} : vector<128x128xbf16>, vector<128x128xbf16>, vector<128x128xf32> -> vector<128x128xf32>
    %188 = arith.addf %162, %187 : vector<128x128xf32>
    %c7 = arith.constant 7 : index
    %c0_77 = arith.constant 0 : index
    %c0_78 = arith.constant 0 : index
    %189 = vector.load %arg4[%c7, %c0_77, %c0_78] : memref<8x128x256xbf16, #tpu.memory_space<vmem>>, vector<1x128x256xbf16>
    %190 = vector.shape_cast %189 : vector<1x128x256xbf16> to vector<128x256xbf16>
    %cst_79 = arith.constant dense<0.000000e+00> : vector<128x256xf32>
    %191 = tpu.matmul %0, %190, %cst_79 {dimension_numbers = #tpu.dot_dimension_numbers<[1], [0], [0], [1], [0, 0, 1, 1], [], []>} : vector<128x128xbf16>, vector<128x256xbf16>, vector<128x256xf32> -> vector<128x256xf32>
    %192 = vector.extract_strided_slice %191 {offsets = [0, 0], sizes = [128, 128], strides = [1, 1]} : vector<128x256xf32> to vector<128x128xf32>
    %c7_80 = arith.constant 7 : index
    %c0_81 = arith.constant 0 : index
    %c0_82 = arith.constant 0 : index
    %193 = vector.load %arg5[%c7_80, %c0_81, %c0_82] : memref<8x1x128xf32, #tpu.memory_space<vmem>>, vector<1x1x128xf32>
    %194 = vector.shape_cast %193 : vector<1x1x128xf32> to vector<1x128xf32>
    %195 = vector.broadcast %194 : vector<1x128xf32> to vector<128x128xf32>
    %196 = arith.addf %192, %195 : vector<128x128xf32>
    %197 = arith.truncf %196 : vector<128x128xf32> to vector<128x128xbf16>
    %198 = vector.extract_strided_slice %191 {offsets = [0, 128], sizes = [128, 128], strides = [1, 1]} : vector<128x256xf32> to vector<128x128xf32>
    %199 = arith.truncf %198 : vector<128x128xf32> to vector<128x128xbf16>
    %cst_83 = arith.constant dense<0.000000e+00> : vector<128x128xf32>
    %200 = tpu.matmul %197, %0, %cst_83 {dimension_numbers = #tpu.dot_dimension_numbers<[1], [1], [0], [0], [0, 0, 1, 0], [], []>} : vector<128x128xbf16>, vector<128x128xbf16>, vector<128x128xf32> -> vector<128x128xf32>
    %201 = arith.addf %200, %5 : vector<128x128xf32>
    %cst_84 = arith.constant dense<0xFF800000> : vector<128xf32>
    %202 = vector.multi_reduction <maximumf>, %201, %cst_84 [1] : vector<128x128xf32> to vector<128xf32>
    %203 = vector.shape_cast %202 : vector<128xf32> to vector<128x1xf32>
    %204 = vector.broadcast %203 : vector<128x1xf32> to vector<128x128xf32>
    %205 = arith.subf %201, %204 : vector<128x128xf32>
    %206 = math.exp %205 : vector<128x128xf32>
    %cst_85 = arith.constant dense<0.000000e+00> : vector<128xf32>
    %207 = vector.multi_reduction <add>, %206, %cst_85 [1] : vector<128x128xf32> to vector<128xf32>
    %208 = vector.shape_cast %207 : vector<128xf32> to vector<128x1xf32>
    %209 = tpu.reciprocal %208 {approx = true} : vector<128x1xf32> -> vector<128x1xf32>
    %210 = vector.broadcast %209 : vector<128x1xf32> to vector<128x128xf32>
    %211 = arith.mulf %206, %210 : vector<128x128xf32>
    %212 = arith.truncf %211 : vector<128x128xf32> to vector<128x128xbf16>
    %cst_86 = arith.constant dense<0.000000e+00> : vector<128x128xf32>
    %213 = tpu.matmul %212, %199, %cst_86 {dimension_numbers = #tpu.dot_dimension_numbers<[1], [0], [0], [1], [0, 0, 1, 1], [], []>} : vector<128x128xbf16>, vector<128x128xbf16>, vector<128x128xf32> -> vector<128x128xf32>
    %214 = arith.addf %188, %213 : vector<128x128xf32>
    %215 = arith.extf %0 : vector<128x128xbf16> to vector<128x128xf32>
    %c0_87 = arith.constant 0 : index
    %c0_88 = arith.constant 0 : index
    %216 = vector.load %arg6[%c0_87, %c0_88] : memref<1x128xf32, #tpu.memory_space<vmem>>, vector<1x128xf32>
    %217 = vector.broadcast %216 : vector<1x128xf32> to vector<128x128xf32>
    %218 = arith.addf %214, %217 : vector<128x128xf32>
    %219 = arith.addf %218, %215 : vector<128x128xf32>
    %c0_89 = arith.constant 0 : index
    %c0_90 = arith.constant 0 : index
    %220 = vector.load %arg7[%c0_89, %c0_90] : memref<1x128xf32, #tpu.memory_space<vmem>>, vector<1x128xf32>
    %c0_91 = arith.constant 0 : index
    %c0_92 = arith.constant 0 : index
    %221 = vector.load %arg8[%c0_91, %c0_92] : memref<1x128xf32, #tpu.memory_space<vmem>>, vector<1x128xf32>
    %cst_93 = arith.constant dense<0.000000e+00> : vector<128xf32>
    %222 = vector.multi_reduction <add>, %219, %cst_93 [1] : vector<128x128xf32> to vector<128xf32>
    %223 = vector.shape_cast %222 : vector<128xf32> to vector<128x1xf32>
    %cst_94 = arith.constant 1.280000e+02 : f32
    %224 = vector.broadcast %cst_94 : f32 to vector<128x1xf32>
    %225 = arith.divf %223, %224 : vector<128x1xf32>
    %226 = vector.broadcast %225 : vector<128x1xf32> to vector<128x128xf32>
    %227 = arith.subf %219, %226 : vector<128x128xf32>
    %228 = arith.mulf %227, %227 : vector<128x128xf32>
    %cst_95 = arith.constant dense<0.000000e+00> : vector<128xf32>
    %229 = vector.multi_reduction <add>, %228, %cst_95 [1] : vector<128x128xf32> to vector<128xf32>
    %230 = vector.shape_cast %229 : vector<128xf32> to vector<128x1xf32>
    %cst_96 = arith.constant 1.280000e+02 : f32
    %231 = vector.broadcast %cst_96 : f32 to vector<128x1xf32>
    %232 = arith.divf %230, %231 : vector<128x1xf32>
    %cst_97 = arith.constant 9.99999996E-13 : f32
    %233 = vector.broadcast %cst_97 : f32 to vector<128x1xf32>
    %234 = arith.addf %232, %233 : vector<128x1xf32>
    %235 = math.rsqrt %234 : vector<128x1xf32>
    %236 = vector.broadcast %235 : vector<128x1xf32> to vector<128x128xf32>
    %237 = arith.mulf %227, %236 : vector<128x128xf32>
    %238 = vector.broadcast %220 : vector<1x128xf32> to vector<128x128xf32>
    %239 = arith.mulf %238, %237 : vector<128x128xf32>
    %240 = vector.broadcast %221 : vector<1x128xf32> to vector<128x128xf32>
    %241 = arith.addf %239, %240 : vector<128x128xf32>
    %242 = arith.truncf %241 : vector<128x128xf32> to vector<128x128xbf16>
    %c0_98 = arith.constant 0 : index
    %c0_99 = arith.constant 0 : index
    %243 = vector.load %arg9[%c0_98, %c0_99] : memref<128x512xbf16, #tpu.memory_space<vmem>>, vector<128x512xbf16>
    %cst_100 = arith.constant dense<0.000000e+00> : vector<128x512xf32>
    %244 = tpu.matmul %242, %243, %cst_100 {dimension_numbers = #tpu.dot_dimension_numbers<[1], [0], [0], [1], [0, 0, 1, 1], [], []>} : vector<128x128xbf16>, vector<128x512xbf16>, vector<128x512xf32> -> vector<128x512xf32>
    %c0_101 = arith.constant 0 : index
    %c0_102 = arith.constant 0 : index
    %245 = vector.load %arg10[%c0_101, %c0_102] : memref<1x512xf32, #tpu.memory_space<vmem>>, vector<1x512xf32>
    %246 = vector.broadcast %245 : vector<1x512xf32> to vector<128x512xf32>
    %247 = arith.addf %244, %246 : vector<128x512xf32>
    %cst_103 = arith.constant 5.000000e-01 : f32
    %248 = vector.broadcast %cst_103 : f32 to vector<128x512xf32>
    %249 = arith.mulf %248, %247 : vector<128x512xf32>
    %cst_104 = arith.constant 4.471500e-02 : f32
    %250 = vector.broadcast %cst_104 : f32 to vector<128x512xf32>
    %251 = arith.mulf %250, %247 : vector<128x512xf32>
    %252 = arith.mulf %251, %247 : vector<128x512xf32>
    %253 = arith.mulf %252, %247 : vector<128x512xf32>
    %254 = arith.addf %247, %253 : vector<128x512xf32>
    %cst_105 = arith.constant 0.797884583 : f32
    %255 = vector.broadcast %cst_105 : f32 to vector<128x512xf32>
    %256 = arith.mulf %255, %254 : vector<128x512xf32>
    %257 = math.tanh %256 : vector<128x512xf32>
    %cst_106 = arith.constant 1.000000e+00 : f32
    %258 = vector.broadcast %cst_106 : f32 to vector<128x512xf32>
    %259 = arith.addf %258, %257 : vector<128x512xf32>
    %260 = arith.mulf %249, %259 : vector<128x512xf32>
    %261 = arith.truncf %260 : vector<128x512xf32> to vector<128x512xbf16>
    %c0_107 = arith.constant 0 : index
    %c0_108 = arith.constant 0 : index
    %262 = vector.load %arg11[%c0_107, %c0_108] : memref<512x128xbf16, #tpu.memory_space<vmem>>, vector<512x128xbf16>
    %cst_109 = arith.constant dense<0.000000e+00> : vector<128x128xf32>
    %263 = tpu.matmul %261, %262, %cst_109 {dimension_numbers = #tpu.dot_dimension_numbers<[1], [0], [0], [1], [0, 0, 1, 1], [], []>} : vector<128x512xbf16>, vector<512x128xbf16>, vector<128x128xf32> -> vector<128x128xf32>
    %c0_110 = arith.constant 0 : index
    %c0_111 = arith.constant 0 : index
    %264 = vector.load %arg12[%c0_110, %c0_111] : memref<1x128xf32, #tpu.memory_space<vmem>>, vector<1x128xf32>
    %265 = vector.broadcast %264 : vector<1x128xf32> to vector<128x128xf32>
    %266 = arith.addf %263, %265 : vector<128x128xf32>
    %267 = arith.addf %266, %241 : vector<128x128xf32>
    %c0_112 = arith.constant 0 : index
    %c0_113 = arith.constant 0 : index
    %268 = vector.load %arg13[%c0_112, %c0_113] : memref<1x128xf32, #tpu.memory_space<vmem>>, vector<1x128xf32>
    %c0_114 = arith.constant 0 : index
    %c0_115 = arith.constant 0 : index
    %269 = vector.load %arg14[%c0_114, %c0_115] : memref<1x128xf32, #tpu.memory_space<vmem>>, vector<1x128xf32>
    %cst_116 = arith.constant dense<0.000000e+00> : vector<128xf32>
    %270 = vector.multi_reduction <add>, %267, %cst_116 [1] : vector<128x128xf32> to vector<128xf32>
    %271 = vector.shape_cast %270 : vector<128xf32> to vector<128x1xf32>
    %cst_117 = arith.constant 1.280000e+02 : f32
    %272 = vector.broadcast %cst_117 : f32 to vector<128x1xf32>
    %273 = arith.divf %271, %272 : vector<128x1xf32>
    %274 = vector.broadcast %273 : vector<128x1xf32> to vector<128x128xf32>
    %275 = arith.subf %267, %274 : vector<128x128xf32>
    %276 = arith.mulf %275, %275 : vector<128x128xf32>
    %cst_118 = arith.constant dense<0.000000e+00> : vector<128xf32>
    %277 = vector.multi_reduction <add>, %276, %cst_118 [1] : vector<128x128xf32> to vector<128xf32>
    %278 = vector.shape_cast %277 : vector<128xf32> to vector<128x1xf32>
    %cst_119 = arith.constant 1.280000e+02 : f32
    %279 = vector.broadcast %cst_119 : f32 to vector<128x1xf32>
    %280 = arith.divf %278, %279 : vector<128x1xf32>
    %cst_120 = arith.constant 9.99999996E-13 : f32
    %281 = vector.broadcast %cst_120 : f32 to vector<128x1xf32>
    %282 = arith.addf %280, %281 : vector<128x1xf32>
    %283 = math.rsqrt %282 : vector<128x1xf32>
    %284 = vector.broadcast %283 : vector<128x1xf32> to vector<128x128xf32>
    %285 = arith.mulf %275, %284 : vector<128x128xf32>
    %286 = vector.broadcast %268 : vector<1x128xf32> to vector<128x128xf32>
    %287 = arith.mulf %286, %285 : vector<128x128xf32>
    %288 = vector.broadcast %269 : vector<1x128xf32> to vector<128x128xf32>
    %289 = arith.addf %287, %288 : vector<128x128xf32>
    %c0_121 = arith.constant 0 : index
    %c0_122 = arith.constant 0 : index
    %290 = vector.load %arg15[%c0_121, %c0_122] : memref<128x128xf32, #tpu.memory_space<vmem>>, vector<128x128xf32>
    tpu.vector_store %arg15[%c0_121, %c0_122], %289 {strides = array<i32>} : memref<128x128xf32, #tpu.memory_space<vmem>>, vector<128x128xf32>,
    return
  }
  func.func @transform_0(%arg0: i32) -> (i32, i32) {
    %c0_i32 = arith.constant 0 : i32
    %c0_i32_0 = arith.constant 0 : i32
    return %arg0, %c0_i32 : i32, i32
  }
  func.func @transform_1(%arg0: i32) -> (i32, i32, i32) {
    %c0_i32 = arith.constant 0 : i32
    %c0_i32_0 = arith.constant 0 : i32
    %c0_i32_1 = arith.constant 0 : i32
    return %arg0, %c0_i32, %c0_i32_0 : i32, i32, i32
  }
  func.func @transform_2(%arg0: i32) -> (i32, i32) {
    %c0_i32 = arith.constant 0 : i32
    %c0_i32_0 = arith.constant 0 : i32
    %c0_i32_1 = arith.constant 0 : i32
    return %c0_i32, %c0_i32_0 : i32, i32
  }
  func.func @transform_3(%arg0: i32) -> (i32, i32, i32) {
    %c0_i32 = arith.constant 0 : i32
    %c0_i32_0 = arith.constant 0 : i32
    %c0_i32_1 = arith.constant 0 : i32
    %c0_i32_2 = arith.constant 0 : i32
    return %c0_i32, %c0_i32_0, %c0_i32_1 : i32, i32, i32
  }
  func.func @transform_4(%arg0: i32) -> (i32, i32, i32) {
    %c0_i32 = arith.constant 0 : i32
    %c0_i32_0 = arith.constant 0 : i32
    %c0_i32_1 = arith.constant 0 : i32
    %c0_i32_2 = arith.constant 0 : i32
    return %c0_i32, %c0_i32_0, %c0_i32_1 : i32, i32, i32
  }
  func.func @transform_5(%arg0: i32) -> (i32, i32) {
    %c0_i32 = arith.constant 0 : i32
    %c0_i32_0 = arith.constant 0 : i32
    %c0_i32_1 = arith.constant 0 : i32
    return %c0_i32, %c0_i32_0 : i32, i32
  }
  func.func @transform_6(%arg0: i32) -> (i32, i32) {
    %c0_i32 = arith.constant 0 : i32
    %c0_i32_0 = arith.constant 0 : i32
    %c0_i32_1 = arith.constant 0 : i32
    return %c0_i32, %c0_i32_0 : i32, i32
  }
  func.func @transform_7(%arg0: i32) -> (i32, i32) {
    %c0_i32 = arith.constant 0 : i32
    %c0_i32_0 = arith.constant 0 : i32
    %c0_i32_1 = arith.constant 0 : i32
    return %c0_i32, %c0_i32_0 : i32, i32
  }
  func.func @transform_8(%arg0: i32) -> (i32, i32) {
    %c0_i32 = arith.constant 0 : i32
    %c0_i32_0 = arith.constant 0 : i32
    %c0_i32_1 = arith.constant 0 : i32
    return %c0_i32, %c0_i32_0 : i32, i32
  }
  func.func @transform_9(%arg0: i32) -> (i32, i32) {
    %c0_i32 = arith.constant 0 : i32
    %c0_i32_0 = arith.constant 0 : i32
    %c0_i32_1 = arith.constant 0 : i32
    return %c0_i32, %c0_i32_0 : i32, i32
  }
  func.func @transform_10(%arg0: i32) -> (i32, i32) {
    %c0_i32 = arith.constant 0 : i32
    %c0_i32_0 = arith.constant 0 : i32
    %c0_i32_1 = arith.constant 0 : i32
    return %c0_i32, %c0_i32_0 : i32, i32
  }
  func.func @transform_11(%arg0: i32) -> (i32, i32) {
    %c0_i32 = arith.constant 0 : i32
    %c0_i32_0 = arith.constant 0 : i32
    %c0_i32_1 = arith.constant 0 : i32
    return %c0_i32, %c0_i32_0 : i32, i32
  }
  func.func @transform_12(%arg0: i32) -> (i32, i32) {
    %c0_i32 = arith.constant 0 : i32
    %c0_i32_0 = arith.constant 0 : i32
    %c0_i32_1 = arith.constant 0 : i32
    return %c0_i32, %c0_i32_0 : i32, i32
  }
  func.func @transform_13(%arg0: i32) -> (i32, i32) {
    %c0_i32 = arith.constant 0 : i32
    %c0_i32_0 = arith.constant 0 : i32
    %c0_i32_1 = arith.constant 0 : i32
    return %c0_i32, %c0_i32_0 : i32, i32
  }
  func.func @transform_14(%arg0: i32) -> (i32, i32) {
    %c0_i32 = arith.constant 0 : i32
    %c0_i32_0 = arith.constant 0 : i32
    return %arg0, %c0_i32 : i32, i32
  }
}

</mosaic_0001>

<bundles_post_ra>
// kernel: tpu_custom_call.1
= control target key start
LH: loop header
LB: loop body
LE: loop exit
PB: predicated region body
PF: predicated region fallthrough
CT: control target
= control target key end

     0   :  { %s14068_s0 = inlined_call_operand.hbm [shape: bf16[256,128], index: 0, kind: input, shape index: {}]   ;;  %s14069_s1 = inlined_call_operand.vmem [shape: f32[2,1,128], index: 1, kind: input, shape index: {}]   ;;  %s14070_s2 = inlined_call_operand.hbm [shape: f32[128,128], index: 2, kind: input, shape index: {}]   ;;  %s14071_s3 = inlined_call_operand.hbm [shape: bf16[8,128,256], index: 3, kind: input, shape index: {}]   ;;  %s14072_s4 = inlined_call_operand.vmem [shape: f32[8,1,128], index: 4, kind: input, shape index: {}]   ;;  %s14073_s5 = inlined_call_operand.vmem [shape: f32[1,128], index: 5, kind: input, shape index: {}]   ;;  %s14074_s6 = inlined_call_operand.vmem [shape: f32[1,128], index: 6, kind: input, shape index: {}]   ;;  %s14075_s7 = inlined_call_operand.vmem [shape: f32[1,128], index: 7, kind: input, shape index: {}]   ;;  %s14076_s8 = inlined_call_operand.hbm [shape: bf16[128,512], index: 8, kind: input, shape index: {}]   ;;  %s14077_s9 = inlined_call_operand.vmem [shape: f32[1,512], index: 9, kind: input, shape index: {}]   ;;  %s14078_s10 = inlined_call_operand.hbm [shape: bf16[512,128], index: 10, kind: input, shape index: {}]   ;;  %s14079_s11 = inlined_call_operand.vmem [shape: f32[1,128], index: 11, kind: input, shape index: {}]   ;;  %s14080_s12 = inlined_call_operand.vmem [shape: f32[1,128], index: 12, kind: input, shape index: {}]   ;;  %s14081_s13 = inlined_call_operand.vmem [shape: f32[1,128], index: 13, kind: input, shape index: {}]   ;;  %s14082_s14 = inlined_call_operand.hbm [shape: f32[256,128], index: 14, kind: output, shape index: {}]  }
   0x1   :  { %14267 = sst [smem:[#allocation85_spill]] %s14070_s2 }
   0x2   :  { %14268 = sst [smem:[#allocation86_spill]] %s14077_s9 }
   0x3   :  { %14269 = sst [smem:[#allocation87_spill]] %s14079_s11 }
   0x4   :  { %14270 = sst [smem:[#allocation88_spill]] %s14080_s12 }
   0x5   :  { %14271 = sst [smem:[#allocation89_spill]] %s14081_s13 }
   0x6   :  { %14272 = sst [smem:[#allocation90_spill]] %s14082_s14 }
   0x7   :  { %19 = vsyncpa [#allocation3], 0 }
   0x8   :  { %21 = vsyncpa [#allocation3 + $0x1], 0 }
   0x9   :  { %22 = vsyncpa [#allocation6], 0 }
   0xa   :  { %23 = vsyncpa [#allocation9], 0 }
   0xb   :  { %24 = vsyncpa [#allocation4], 0 }
   0xc   :  { %26 = vsyncpa [#allocation4 + $0x1], 0  ;;  %s10363_s29 = smov 0   ;;  %s10365_s30 = smov 0  }
   0xd   :  { %s10367_s15 = smov 0   ;;  %s10369_s16 = smov 0  }
   0xe LB: > { %14273 = sst [smem:[#allocation16_spill]] %s10259_s29  ;;  %s10384_s17 = sadd.s32 4294967295, %s10271_s16   ;;  %s10271_s16 = sphi %s10369_s16, %s14656_s16   ;;  %s10267_s15 = sphi %s10367_s15, %s14655_s15   ;;  %s10263_s30 = sphi %s10365_s30, %s14654_s30   ;;  %s10259_s29 = sphi %s10363_s29, %s14653_s29  }
   0xf   : > { %s7705_s18 = sadd.s32 4294967294, %s10271_s16   ;;  %p52_p0 = scmp.ne.s32.totalorder %s10263_s30, %s10259_s29 }
  0x10   : > { %p14086_p1 = scmp.eq.s32.totalorder %s10384_s17, 0  ;;  %p360_p3 = scmp.eq.s32.totalorder %s7705_s18, 1 }
  0x11   : > { %p7706_p5 = scmp.ge.s32.totalorder %s10271_s16, 1  ;;  %p367_p7 = scmp.lt.s32.totalorder %s10271_s16, 3 }
  0x12   : > { %p10393_p4 = por %p14086_p1, %p52_p0  ;;  %p10398_p6 = por %p360_p3, %p52_p0 }
  0x13   : > { %p10403_p8 = pnand %p7706_p5, %p367_p7  ;;  %s10273_s22 = smov [#allocation5]  }
  0x14   : > { %s14274_s19 = scalar_select %p10393_p4, 1, 0 }
  0x15   : > { %s14275_s20 = scalar_select %p10398_p6, 1, 0 }
  0x16   : > { %s14277_s21 = scalar_select %p10403_p8, 1, 0 }
  0x17   : > { %14276 = sst [smem:[#allocation17_spill]] %s14275_s20  ;;  %s379_s23 = sshll.u32 %s10273_s22, 4  ;;  %s10407_s23 = int_to_ptr.vmem [resolvable:$true] %s379_s23 }
  0x18   : > { %p8979_p9 = pneg %p10403_p8  ;;  %s10274_s25 = smov [#allocation8]  }
  0x19   : > { %s417_s26 = sshll.u32 %s10274_s25, 4  ;;  %s14279_s2 = sld [smem:[#allocation85_spill]]  ;;  %s10418_s26 = int_to_ptr.vmem [resolvable:$true] %s417_s26 }
  0x1a   : > { %p10414_p11 = pnand %p8979_p9, %p14086_p1 }
  0x1c   : > { %p10428_p13 = pneg %p10414_p11 }
  0x1f   : > { %s10055_s18 = scalar_lea.hbm %s14279_s2, 2048 }
  0x20   : > { %p10056_p12 = scmp.ne.s32.totalorder %s14279_s2, %s10055_s18  ;;  %p10062_p5 = scmp.lt.u32.totalorder %s10055_s18, %s14279_s2 }
  0x22   : > { %p10058_p0 = pnand %p10428_p13, %p10056_p12 }
  0x24   : > { %p10059_p3 = pneg %p10058_p0 }
  0x26   : > { %p10064_p7 = pnand %p10062_p5, %p10059_p3 }
  0x28   : > { %10067 = shalt.err (!%p10064_p7)
}
  0x29   : > { %s10068_s20 = scalar_lea.vmem %s10407_s23, 2048  ;;  %p10076_p2 = scmp.lt.s32.totalorder %s10407_s23, %s10407_s23 }
  0x2a   : > { %p10069_p9 = scmp.ne.s32.totalorder %s10407_s23, %s10068_s20  ;;  %p10077_p6 = scmp.lt.s32.totalorder %s10068_s20, %s10068_s20 }
  0x2c   : > { %p10071_p10 = pnand %p10069_p9, %p10428_p13  ;;  %p10078_p12 = por %p10077_p6, %p10076_p2 }
  0x2e   : > { %p10072_p1 = pneg %p10071_p10 }
  0x30   : > { %p10079_p0 = pnand %p10078_p12, %p10072_p1 }
  0x32   : > { %10082 = shalt.err (!%p10079_p0)
}
  0x33   : > { %s14087_s27 = smov 128   ;;  %s14088_s14 = smov 8  }
  0x34   : > { %8982 = dma.hbm_to_vmem [thread:$0]  (!%p10414_p11), %s14279_s2, 2048, %s10407_s23, [#allocation6], %s14087_s27, %s14087_s27, %s14088_s14  }
  0x35   : > { %s10083_s20 = scalar_lea.hbm %s14076_s8, 4096 }
  0x36   : > { %p10084_p1 = scmp.ne.s32.totalorder %s14076_s8, %s10083_s20  ;;  %p10090_p10 = scmp.lt.u32.totalorder %s10083_s20, %s14076_s8 }
  0x38   : > { %p10086_p2 = pnand %p10084_p1, %p10428_p13 }
  0x3a   : > { %p10087_p6 = pneg %p10086_p2 }
  0x3c   : > { %p10092_p3 = pnand %p10090_p10, %p10087_p6 }
  0x3e   : > { %10095 = shalt.err (!%p10092_p3)
}
  0x3f   : > { %s10096_s23 = scalar_lea.vmem %s10418_s26, 4096  ;;  %p10104_p12 = scmp.lt.s32.totalorder %s10418_s26, %s10418_s26 }
  0x40   : > { %p10097_p5 = scmp.ne.s32.totalorder %s10418_s26, %s10096_s23  ;;  %p10105_p0 = scmp.lt.s32.totalorder %s10096_s23, %s10096_s23 }
  0x42   : > { %p10099_p7 = pnand %p10097_p5, %p10428_p13  ;;  %p10106_p1 = por %p10105_p0, %p10104_p12 }
  0x44   : > { %p10100_p9 = pneg %p10099_p7 }
  0x46   : > { %p10107_p2 = pnand %p10106_p1, %p10100_p9 }
  0x48   : > { %10110 = shalt.err (!%p10107_p2)
}
  0x49   : > { %s10277_s12 = smov 256   ;;  %s10278_s9 = smov 16  }
  0x4a   : > { %8988 = dma.hbm_to_vmem [thread:$0]  (!%p10414_p11), %s14076_s8, 4096, %s10418_s26, [#allocation9], %s10277_s12, %s10277_s12, %s10278_s9  }
  0x4b   : > { %s10279_s28 = smov [#allocation7]   ;;  %s10280_s22 = smov [#allocation10]  }
  0x4c   : > { %s392_s18 = sshll.u32 %s10279_s28, 4  ;;  %s433_s25 = sshll.u32 %s10280_s22, 4  ;;  %s393_s18 = int_to_ptr.vmem [resolvable:$true] %s392_s18  ;;  %s10475_s25 = int_to_ptr.vmem [resolvable:$true] %s433_s25 }
  0x4d   : > { %s10111_s27 = scalar_lea.hbm %s14071_s3, 16384 }
  0x4e   : > { %p10112_p6 = scmp.ne.s32.totalorder %s14071_s3, %s10111_s27  ;;  %p10118_p5 = scmp.lt.u32.totalorder %s10111_s27, %s14071_s3 }
  0x50   : > { %p10114_p10 = pnand %p10112_p6, %p10428_p13 }
  0x52   : > { %p10115_p3 = pneg %p10114_p10 }
  0x54   : > { %p10120_p7 = pnand %p10118_p5, %p10115_p3 }
  0x56   : > { %10123 = shalt.err (!%p10120_p7)
}
  0x57   : > { %s10124_s12 = scalar_lea.vmem %s393_s18, 16384  ;;  %p10132_p1 = scmp.lt.s32.totalorder %s393_s18, %s393_s18 }
  0x58   : > { %p10125_p9 = scmp.ne.s32.totalorder %s393_s18, %s10124_s12  ;;  %p10133_p2 = scmp.lt.s32.totalorder %s10124_s12, %s10124_s12 }
  0x5a   : > { %p10127_p12 = pnand %p10125_p9, %p10428_p13  ;;  %p10134_p4 = por %p10133_p2, %p10132_p1 }
  0x5c   : > { %p10128_p0 = pneg %p10127_p12 }
  0x5e   : > { %p10135_p8 = pnand %p10134_p4, %p10128_p0 }
  0x60   : > { %10138 = shalt.err (!%p10135_p8)
}
  0x61   : > { %s14281_s2 = smov 8   ;;  %s14282_s14 = smov 128  }
  0x62   : > { %8985 = dma.hbm_to_vmem [thread:$0]  (!%p10414_p11), %s14071_s3, 16384, %s393_s18, [#allocation6], %s14282_s14, %s14282_s14, %s14281_s2  }
  0x63   : > { %s10139_s22 = scalar_lea.hbm %s14078_s10, 4096 }
  0x64   : > { %p10140_p6 = scmp.ne.s32.totalorder %s14078_s10, %s10139_s22  ;;  %p10146_p10 = scmp.lt.u32.totalorder %s10139_s22, %s14078_s10 }
  0x66   : > { %p10142_p4 = pnand %p10140_p6, %p10428_p13 }
  0x68   : > { %p10143_p8 = pneg %p10142_p4 }
  0x6a   : > { %p10148_p3 = pnand %p10146_p10, %p10143_p8 }
  0x6c   : > { %10151 = shalt.err (!%p10148_p3)
}
  0x6d   : > { %s10152_s18 = scalar_lea.vmem %s10475_s25, 4096  ;;  %p10160_p12 = scmp.lt.s32.totalorder %s10475_s25, %s10475_s25 }
  0x6e   : > { %p10153_p5 = scmp.ne.s32.totalorder %s10475_s25, %s10152_s18  ;;  %p10161_p0 = scmp.lt.s32.totalorder %s10152_s18, %s10152_s18 }
  0x70   : > { %p10155_p7 = pnand %p10153_p5, %p10428_p13  ;;  %p10162_p1 = por %p10161_p0, %p10160_p12 }
  0x72   : > { %p10156_p9 = pneg %p10155_p7 }
  0x74   : > { %p10163_p2 = pnand %p10162_p1, %p10156_p9 }
  0x76   : > { %10166 = shalt.err (!%p10163_p2)
}
  0x77   : > { %s10281_s12 = smov 64   ;;  %s10282_s29 = smov 4  }
  0x78   : > { %8991 = dma.hbm_to_vmem [thread:$0]  (!%p10414_p11), %s14078_s10, 4096, %s10475_s25, [#allocation9], %s10281_s12, %s10281_s12, %s10282_s29  }
  0x79   : > { %s10525_s9 = sadd.s32 1, %s10271_s16   ;;  %s39_s13 = sadd.s32 1, %s10267_s15 }
  0x7a   : > { %s36_s27 = ssub.s32 %s10271_s16, %s10525_s9  ;;  %p46_p6 = scmp.ne.s32.totalorder %s10267_s15, %s10263_s30 }
  0x7b   : > { %p37_p13 = scmp.eq.s32.totalorder %s36_s27, 0  ;;  %p47_p4 = scmp.eq.s32.totalorder %s10271_s16, 0 }
  0x7c   : > { %p14283_p10 = scmp.eq.s32.totalorder %s10384_s17, 1  ;;  %p9004_p5 = scmp.lt.s32.totalorder %s10271_s16, 2 }
  0x7d   : > { %s10534_s28 = scalar_select %p37_p13, %s10267_s15, %s39_s13  }
  0x7e   : > { %p48_p8 = por %p47_p4, %p46_p6  ;;  %p10538_p3 = por %p14283_p10, %p46_p6 }
  0x7f   : > { %s456_s22 = sand.u32 1, %s10267_s15   ;;  %s7949_s25 = sshll.u32 %s10271_s16, 10 }
  0x80   : > { %s7712_s20 = sshll.u32 %s456_s22, 6  ;;  %s10548_s26 = scalar_lea.hbm %s14068_s0, %s7949_s25 }
  0x81   : > { %s460_s18 = scalar_lea.vmem [#allocation2], %s7712_s20  ;;  %p10552_p11 = pnand %p9004_p5, %p48_p8 }
  0x82   : > { %s467_s2 = sshll.u32 %s460_s18, 4  ;;  %s10556_s27 = scalar_lea.sflag [#allocation3], %s456_s22  ;;  %s10550_s2 = int_to_ptr.vmem [resolvable:$true] %s467_s2 }
  0x83   : > { %s10167_s13 = scalar_lea.hbm %s10548_s26, 1024  ;;  %p10169_p9 = pneg %p10552_p11 }
  0x84   : > { %p10168_p7 = scmp.ne.s32.totalorder %s10548_s26, %s10167_s13  ;;  %s10172_s23 = scalar_lea.hbm %s14068_s0, 2048 }
  0x85   : > { %p10173_p1 = scmp.lt.u32.totalorder %s10548_s26, %s14068_s0  ;;  %p10174_p2 = scmp.lt.u32.totalorder %s10172_s23, %s10167_s13 }
  0x86   : > { %p10170_p12 = pnand %p10169_p9, %p10168_p7  ;;  %p10176_p6 = scmp.lt.u32.totalorder %s10167_s13, %s10548_s26 }
  0x87   : > { %p10175_p13 = por %p10174_p2, %p10173_p1 }
  0x88   : > { %p10171_p0 = pneg %p10170_p12 }
  0x89   : > { %p10177_p4 = por %p10176_p6, %p10175_p13 }
  0x8b   : > { %p10178_p8 = pnand %p10177_p4, %p10171_p0 }
  0x8d   : > { %10181 = shalt.err (!%p10178_p8)
}
  0x8e   : > { %s10182_s22 = scalar_lea.vmem %s10550_s2, 1024  ;;  %s10283_s20 = smov [#allocation2]  }
  0x8f   : > { %p10183_p10 = scmp.ne.s32.totalorder %s10550_s2, %s10182_s22  ;;  %s10187_s25 = sshll.u32 %s10283_s20, 4  ;;  %s10188_s25 = int_to_ptr.vmem [resolvable:$false] %s10187_s25 }
  0x90   : > { %s10189_s11 = scalar_lea.vmem %s10188_s25, 2048  ;;  %p10190_p12 = scmp.lt.s32.totalorder %s10550_s2, %s10188_s25 }
  0x91   : > { %p10185_p5 = pnand %p10183_p10, %p10169_p9  ;;  %p10191_p1 = scmp.lt.s32.totalorder %s10189_s11, %s10182_s22 }
  0x93   : > { %p10186_p7 = pneg %p10185_p5  ;;  %p10192_p2 = por %p10191_p1, %p10190_p12 }
  0x95   : > { %p10193_p13 = pnand %p10192_p2, %p10186_p7 }
  0x97   : > { %10196 = shalt.err (!%p10193_p13)
}
  0x98   : > { %8995 = dma.hbm_to_vmem [thread:$0]  (!%p10552_p11), %s10548_s26, 1024, %s10550_s2, %s10556_s27, %s10281_s12, %s10281_s12, %s10282_s29  }
  0x99   : > { %p14286_p9 = scmp.ne.s32.totalorder %s14277_s21, 0 }
  0x9b   : > { %485 = sbr.rel (%p14286_p9) target bundleno = 5603 (0x15e3), region = 76 }
  0xa2   : > { %s10590_s13 = sand.u32 1, %s10263_s30   ;;  %p14287_p0 = scmp.ne.s32.totalorder %s14274_s19, 0 }
  0xa3   : > { %s7716_s23 = sshll.u32 %s10590_s13, 6  ;;  %s488_s18 = scalar_lea.sflag [#allocation3], %s10590_s13 }
  0xa4   : > { %s10594_s22 = scalar_lea.vmem [#allocation2], %s7716_s23 }
  0xa5   : > { %10242 = dma.done.wait (%p14287_p0), %s488_s18, 1024  }
  0xa6   : > { %10244 = vsyncadd (%p14287_p0), %s488_s18, 4294966272  ;;  %p14288_p11 = scmp.eq.s32.totalorder %s10384_s17, 0 }
  0xa8   : > { %10246 = dma.done.wait (%p14288_p11), [#allocation6], 18432   ;;  %p14289_p6 = pmov %p14288_p11 }
  0xaa   : > { %10248 = vsyncadd (%p14289_p6), [#allocation6], 4294948864  ;;  %p14290_p4 = pmov %p14289_p6 }
  0xac   : > { %10250 = dma.done.wait (%p14290_p4), [#allocation9], 8192   ;;  %p14291_p8 = pmov %p14290_p4 }
  0xad   : > { %v14091_v0 = vmov 0   ;;  %v9055_v1 = vld [vmem:[#allocation7 + $0x4] ss:$8 sps:$4 sm:$0xff]   ;;  %v9059_v3 = vld [vmem:[#allocation7] ss:$8 sps:$4 sm:$0xff]   ;;  %v10623_v35 = vld [vmem:[%s10594_s22 + $0x10] sm:$0xff]  }
  0xae   : > { %10252 = vsyncadd (%p14291_p8), [#allocation9], 4294959104  ;;  %792 = vmatprep.mubr.bf16.mxu1 %v14091_v0  ;;  %1290 = vmatprep.mubr.bf16.mxu0 %v14091_v0  ;;  %v9057_v2 = vld [vmem:[#allocation7 + $0x84] ss:$8 sps:$4 sm:$0xff]   ;;  %v9060_v4 = vld [vmem:[#allocation7 + $0x80] ss:$8 sps:$4 sm:$0xff]  }
  0xaf   : > { %760 = vmatprep.subr.bf16.mxu1 %v9055_v1  ;;  %1258 = vmatprep.subr.bf16.mxu0 %v9057_v2  ;;  %v9061_v5 = vld [vmem:[#allocation7 + $0x14] ss:$8 sps:$4 sm:$0xff]   ;;  %v9065_v7 = vld [vmem:[#allocation7 + $0x10] ss:$8 sps:$4 sm:$0xff]   ;;  %v9067_v9 = vld [vmem:[#allocation7 + $0x24] ss:$8 sps:$4 sm:$0xff]  }
  0xb0   : > { %761 = vmatpush1.bf16.msra.mxu1 %v9059_v3  ;;  %1259 = vmatpush1.bf16.msra.mxu0 %v9060_v4  ;;  %v9063_v6 = vld [vmem:[#allocation7 + $0x94] ss:$8 sps:$4 sm:$0xff]   ;;  %v9066_v8 = vld [vmem:[#allocation7 + $0x90] ss:$8 sps:$4 sm:$0xff]   ;;  %v9069_v10 = vld [vmem:[#allocation7 + $0xa4] ss:$8 sps:$4 sm:$0xff]  }
  0xb1   : > { %762 = vmatprep.subr.bf16.mxu1 %v9061_v5  ;;  %1260 = vmatprep.subr.bf16.mxu0 %v9063_v6  ;;  %v9071_v11 = vld [vmem:[#allocation7 + $0x20] ss:$8 sps:$4 sm:$0xff]   ;;  %v9073_v13 = vld [vmem:[#allocation7 + $0x34] ss:$8 sps:$4 sm:$0xff]   ;;  %v9077_v15 = vld [vmem:[#allocation7 + $0x30] ss:$8 sps:$4 sm:$0xff]  }
  0xb2   : > { %v9072_v12 = vld [vmem:[#allocation7 + $0xa0] ss:$8 sps:$4 sm:$0xff]   ;;  %v9075_v14 = vld [vmem:[#allocation7 + $0xb4] ss:$8 sps:$4 sm:$0xff]   ;;  %v9078_v16 = vld [vmem:[#allocation7 + $0xb0] ss:$8 sps:$4 sm:$0xff]  }
  0xb3   : > { %v9079_v17 = vld [vmem:[#allocation7 + $0x44] ss:$8 sps:$4 sm:$0xff]   ;;  %v9083_v19 = vld [vmem:[#allocation7 + $0x40] ss:$8 sps:$4 sm:$0xff]   ;;  %v9085_v21 = vld [vmem:[#allocation7 + $0x54] ss:$8 sps:$4 sm:$0xff]  }
  0xb4   : > { %763 = vmatpush1.bf16.msra.mxu1 %v9065_v7  ;;  %1261 = vmatpush1.bf16.msra.mxu0 %v9066_v8  ;;  %v9081_v18 = vld [vmem:[#allocation7 + $0xc4] ss:$8 sps:$4 sm:$0xff]   ;;  %v9084_v20 = vld [vmem:[#allocation7 + $0xc0] ss:$8 sps:$4 sm:$0xff]   ;;  %v9087_v22 = vld [vmem:[#allocation7 + $0xd4] ss:$8 sps:$4 sm:$0xff]  }
  0xb5   : > { %764 = vmatprep.subr.bf16.mxu1 %v9067_v9  ;;  %1262 = vmatprep.subr.bf16.mxu0 %v9069_v10  ;;  %v9089_v23 = vld [vmem:[#allocation7 + $0x50] ss:$8 sps:$4 sm:$0xff]   ;;  %v9091_v25 = vld [vmem:[#allocation7 + $0x64] ss:$8 sps:$4 sm:$0xff]   ;;  %v9095_v27 = vld [vmem:[#allocation7 + $0x60] ss:$8 sps:$4 sm:$0xff]  }
  0xb6   : > { %v9090_v24 = vld [vmem:[#allocation7 + $0xd0] ss:$8 sps:$4 sm:$0xff]   ;;  %v9093_v26 = vld [vmem:[#allocation7 + $0xe4] ss:$8 sps:$4 sm:$0xff]   ;;  %v9096_v28 = vld [vmem:[#allocation7 + $0xe0] ss:$8 sps:$4 sm:$0xff]  }
  0xb7   : > { %v9097_v29 = vld [vmem:[#allocation7 + $0x74] ss:$8 sps:$4 sm:$0xff]   ;;  %v9101_v31 = vld [vmem:[#allocation7 + $0x70] ss:$8 sps:$4 sm:$0xff]   ;;  %v10611_v33 = vld [vmem:[%s10594_s22] sm:$0xff]   ;;  %14294 = vst [vmem:[#allocation20_spill] sm:$0xff] %v10623_v35 }
  0xb8   : > { %765 = vmatpush1.bf16.msra.mxu1 %v9071_v11  ;;  %1263 = vmatpush1.bf16.msra.mxu0 %v9072_v12  ;;  %v9099_v30 = vld [vmem:[#allocation7 + $0xf4] ss:$8 sps:$4 sm:$0xff]   ;;  %v9102_v32 = vld [vmem:[#allocation7 + $0xf0] ss:$8 sps:$4 sm:$0xff]   ;;  %14292 = vst [vmem:[#allocation18_spill] sm:$0xff] %v10611_v33  ;;  %v10615_v34 = vld [vmem:[%s10594_s22 + $0x8] sm:$0xff]  }
  0xb9   : > { %766 = vmatprep.subr.bf16.mxu1 %v9073_v13  ;;  %1264 = vmatprep.subr.bf16.mxu0 %v9075_v14  ;;  %14293 = vst [vmem:[#allocation19_spill] sm:$0xff] %v10615_v34  ;;  %v10632_v36 = vld [vmem:[%s10594_s22 + $0x18] sm:$0xff]   ;;  %v10641_v37 = vld [vmem:[%s10594_s22 + $0x20] sm:$0xff]   ;;  %v10650_v38 = vld [vmem:[%s10594_s22 + $0x28] sm:$0xff]   ;;  %p556_p10 = scmp.lt.s32.totalorder %s10384_s17, 1  ;;  %s14495_s21 = sld [smem:[#allocation86_spill]] }
  0xba   : > { %14295 = vst [vmem:[#allocation21_spill] sm:$0xff] %v10632_v36  ;;  %14296 = vst [vmem:[#allocation22_spill] sm:$0xff] %v10641_v37  ;;  %v10659_v39 = vld [vmem:[%s10594_s22 + $0x30] sm:$0xff]   ;;  %v10668_v40 = vld [vmem:[%s10594_s22 + $0x38] sm:$0xff]   ;;  %s7721_s20 = sshll.u32 %s10590_s13, 7  ;;  %s14646_s11 = sld [smem:[#allocation89_spill]] }
  0xbb   : > { %14297 = vst [vmem:[#allocation23_spill] sm:$0xff] %v10650_v38  ;;  %14298 = vst [vmem:[#allocation24_spill] sm:$0xff] %v10659_v39  ;;  %v10684_v41 = vld [vmem:[%s14072_s4 + $0x1] ss:$0 sm:$0xff]  ;;  %v10689_v43 = vld [vmem:[%s14072_s4] ss:$0 sm:$0xff] }
  0xbc   : > { %767 = vmatpush1.bf16.msra.mxu1 %v9077_v15  ;;  %1265 = vmatpush1.bf16.msra.mxu0 %v9078_v16  ;;  %14299 = vst [vmem:[#allocation25_spill] sm:$0xff] %v10668_v40  ;;  %s557_s26 = scalar_select %p556_p10, %s10384_s17, 1 }
  0xbd   : > { %768 = vmatprep.subr.bf16.mxu1 %v9079_v17  ;;  %1266 = vmatprep.subr.bf16.mxu0 %v9081_v18  ;;  %s13956_s23 = scalar_lea.vmem [#allocation11], %s7721_s20  ;;  %s7950_s18 = sshll.u32 %s10384_s17, 11 }
  0xbe   : > { %s558_s27 = scalar_lea.vmem %s14069_s1, %s557_s26  ;;  %s14628_s26 = sld [smem:[#allocation87_spill]] }
  0xbf   : > { %s7585_s19 = sshll.u32 %s13956_s23, 4  ;;  %s14647_s29 = sld [smem:[#allocation90_spill]]  ;;  %s14021_s19 = int_to_ptr.vmem [resolvable:$true] %s7585_s19 }
  0xc0   : > { %769 = vmatpush1.bf16.msra.mxu1 %v9083_v19  ;;  %1267 = vmatpush1.bf16.msra.mxu0 %v9084_v20  ;;  %s7572_s17 = scalar_lea.sflag [#allocation4], %s10590_s13  ;;  %s10197_s14 = scalar_lea.vmem %s14021_s19, 2048 }
  0xc1   : > { %770 = vmatprep.subr.bf16.mxu1 %v9085_v21  ;;  %1268 = vmatprep.subr.bf16.mxu0 %v9087_v22  ;;  %p10198_p5 = scmp.ne.s32.totalorder %s14021_s19, %s10197_s14 }
  0xc3   : > { %p10199_p7 = pnand %p10198_p5, %p10538_p3 }
  0xc4   : > { %771 = vmatpush1.bf16.msra.mxu1 %v9089_v23  ;;  %1269 = vmatpush1.bf16.msra.mxu0 %v9090_v24 }
  0xc5   : > { %772 = vmatprep.subr.bf16.mxu1 %v9091_v25  ;;  %1270 = vmatprep.subr.bf16.mxu0 %v9093_v26  ;;  %s14019_s2 = scalar_lea.hbm %s14647_s29, %s7950_s18  ;;  %p10200_p12 = pneg %p10199_p7 }
  0xc8   : > { %773 = vmatpush1.bf16.msra.mxu1 %v9095_v27  ;;  %1271 = vmatpush1.bf16.msra.mxu0 %v9096_v28 }
  0xc9   : > { %774 = vmatprep.subr.bf16.mxu1 %v9097_v29  ;;  %1272 = vmatprep.subr.bf16.mxu0 %v9099_v30 }
  0xcc   : > { %775 = vmatpush1.bf16.msra.mxu1 %v9101_v31  ;;  %1273 = vmatpush1.bf16.msra.mxu0 %v9102_v32 }
  0xcd   : > { %8335 = vmatprep.subr.bf16.mxu1 %v10611_v33 }
  0xcf   : > { %793 = vmatmul.mubr.bf16.vlgmr.msra.gmra.mrb[0].mxu1 %v10611_v33  ;;  %1291 = vmatmul.mubr.bf16.vlgmr.msra.gmra.mrb[0].mxu0 %v10611_v33 }
  0xd0   : > { %802 = vmatprep.mubr.bf16.mxu1 %v14091_v0  ;;  %1300 = vmatprep.mubr.bf16.mxu0 %v14091_v0 }
  0xd5   : > { %8336 = vmatpush3.bf16.xpose.msra.mxu1 %v10611_v33 }
  0xd6   : > { %8337 = vmatprep.subr.bf16.mxu1 %v10615_v34 }
  0xd7   : > { %803 = vmatmul.mubr.bf16.gmra.mrb[4].mxu1 %v10615_v34  ;;  %1301 = vmatmul.mubr.bf16.gmra.mrb[4].mxu0 %v10615_v34 }
  0xd8   : > { %812 = vmatprep.mubr.bf16.mxu1 %v14091_v0  ;;  %1310 = vmatprep.mubr.bf16.mxu0 %v14091_v0 }
  0xdd   : > { %8338 = vmatpush3.bf16.xpose.msra.mxu1 %v10615_v34 }
  0xde   : > { %8339 = vmatprep.subr.bf16.mxu1 %v10623_v35 }
  0xdf   : > { %813 = vmatmul.mubr.bf16.gmra.mrb[8].mxu1 %v10623_v35  ;;  %1311 = vmatmul.mubr.bf16.gmra.mrb[8].mxu0 %v10623_v35 }
  0xe0   : > { %822 = vmatprep.mubr.bf16.mxu1 %v14091_v0  ;;  %1320 = vmatprep.mubr.bf16.mxu0 %v14091_v0 }
  0xe5   : > { %8340 = vmatpush3.bf16.xpose.msra.mxu1 %v10623_v35 }
  0xe6   : > { %8341 = vmatprep.subr.bf16.mxu1 %v10632_v36 }
  0xe7   : > { %823 = vmatmul.mubr.bf16.gmra.mrb[12].mxu1 %v10632_v36  ;;  %1321 = vmatmul.mubr.bf16.gmra.mrb[12].mxu0 %v10632_v36 }
  0xe8   : > { %832 = vmatprep.mubr.bf16.mxu1 %v14091_v0  ;;  %1330 = vmatprep.mubr.bf16.mxu0 %v14091_v0 }
  0xed   : > { %8342 = vmatpush3.bf16.xpose.msra.mxu1 %v10632_v36 }
  0xee   : > { %8343 = vmatprep.subr.bf16.mxu1 %v10641_v37 }
  0xef   : > { %833 = vmatmul.mubr.bf16.gmra.mrb[16].mxu1 %v10641_v37  ;;  %1331 = vmatmul.mubr.bf16.gmra.mrb[16].mxu0 %v10641_v37 }
  0xf0   : > { %842 = vmatprep.mubr.bf16.mxu1 %v14091_v0  ;;  %1340 = vmatprep.mubr.bf16.mxu0 %v14091_v0 }
  0xf5   : > { %8344 = vmatpush3.bf16.xpose.msra.mxu1 %v10641_v37 }
  0xf6   : > { %8345 = vmatprep.subr.bf16.mxu1 %v10650_v38 }
  0xf7   : > { %843 = vmatmul.mubr.bf16.gmra.mrb[20].mxu1 %v10650_v38  ;;  %1341 = vmatmul.mubr.bf16.gmra.mrb[20].mxu0 %v10650_v38 }
  0xf8   : > { %852 = vmatprep.mubr.bf16.mxu1 %v14091_v0  ;;  %1350 = vmatprep.mubr.bf16.mxu0 %v14091_v0 }
  0xfd   : > { %8346 = vmatpush3.bf16.xpose.msra.mxu1 %v10650_v38 }
  0xfe   : > { %8347 = vmatprep.subr.bf16.mxu1 %v10659_v39 }
  0xff   : > { %853 = vmatmul.mubr.bf16.gmra.mrb[24].mxu1 %v10659_v39  ;;  %1351 = vmatmul.mubr.bf16.gmra.mrb[24].mxu0 %v10659_v39 }
 0x100   : > { %862 = vmatprep.mubr.bf16.mxu1 %v14091_v0  ;;  %1360 = vmatprep.mubr.bf16.mxu0 %v14091_v0 }
 0x105   : > { %8348 = vmatpush3.bf16.xpose.msra.mxu1 %v10659_v39 }
 0x106   : > { %8349 = vmatprep.subr.bf16.mxu1 %v10668_v40 }
 0x107   : > { %863 = vmatmul.mubr.bf16.gmra.mrb[28].mxu1 %v10668_v40  ;;  %1361 = vmatmul.mubr.bf16.gmra.mrb[28].mxu0 %v10668_v40 }
 0x10d   : > { %8350 = vmatpush3.bf16.xpose.msra.mxu1 %v10668_v40 }
 0x10e   : > { %8367 = vmatprep.subr.bf16.mxu1 %v10611_v33 }
 0x1a2   : > { %v794_v42 = vpop.f32.mrb[0].mxu1  ;;  %v1292_v44 = vpop.f32.mrb[0].mxu0 }
 0x1a3   : > { %v796_v45 = vpop.f32.mrb[1].mxu1  ;;  %v10692_v46 = vadd.f32 %v10684_v41, %v1292_v44  ;;  %v1294_v47 = vpop.f32.mrb[1].mxu0  ;;  %v880_v50 = vadd.f32 %v10689_v43, %v794_v42 }
 0x1a4   : > { %v798_v48 = vpop.f32.mrb[2].mxu1  ;;  %v1296_v49 = vpop.f32.mrb[2].mxu0 }
 0x1a5   : > { %v881_v51 = vadd.f32 %v10689_v43, %v798_v48  ;;  %v800_v52 = vpop.f32.mrb[3].mxu1  ;;  %v10697_v53 = vadd.f32 %v10684_v41, %v1296_v49  ;;  %v1298_v54 = vpop.f32.mrb[3].mxu0 }
 0x1a6   : > { %v10699_v55 = vpack.c.bf16 %v800_v52, %v796_v45  ;;  %v1403_v56 = vpack.c.bf16 %v1298_v54, %v1294_v47 }
 0x1a7   : > { %v896_v57 = vpack.c.bf16 %v881_v51, %v880_v50  ;;  %v1395_v58 = vpack.c.bf16 %v10697_v53, %v10692_v46  ;;  %v9114_v46 = vld [vmem:[#allocation7 + $0x110] ss:$8 sps:$4 sm:$0xff]   ;;  %v9119_v53 = vld [vmem:[#allocation7 + $0x124] ss:$8 sps:$4 sm:$0xff]  }
 0x1a8   : > { %14300 = vst [vmem:[#allocation26_spill] sm:$0xff] %v10699_v55  ;;  %8399 = vmatprep.subr.bf16.mxu0 %v1403_v56 }
 0x1a9   : > { %8351 = vmatprep.mubr.bf16.mxu1 %v896_v57  ;;  %8400 = vmatpush3.bf16.msra.mxu0 %v1403_v56 }
 0x1aa   : > { %v804_v59 = vpop.f32.mrb[4].mxu1  ;;  %v1302_v60 = vpop.f32.mrb[4].mxu0 }
 0x1ab   : > { %v806_v61 = vpop.f32.mrb[5].mxu1  ;;  %v10704_v62 = vadd.f32 %v10684_v41, %v1302_v60  ;;  %v1304_v63 = vpop.f32.mrb[5].mxu0  ;;  %v882_v3 = vadd.f32 %v10689_v43, %v804_v59 }
 0x1ac   : > { %v808_v1 = vpop.f32.mrb[6].mxu1  ;;  %v1306_v2 = vpop.f32.mrb[6].mxu0 }
 0x1ad   : > { %v883_v4 = vadd.f32 %v10689_v43, %v808_v1  ;;  %v810_v5 = vpop.f32.mrb[7].mxu1  ;;  %v10709_v6 = vadd.f32 %v10684_v41, %v1306_v2  ;;  %v1308_v7 = vpop.f32.mrb[7].mxu0 }
 0x1ae   : > { %v10711_v8 = vpack.c.bf16 %v810_v5, %v806_v61  ;;  %v1404_v9 = vpack.c.bf16 %v1308_v7, %v1304_v63 }
 0x1af   : > { %v897_v10 = vpack.c.bf16 %v883_v4, %v882_v3  ;;  %v1396_v11 = vpack.c.bf16 %v10709_v6, %v10704_v62  ;;  %v9120_v62 = vld [vmem:[#allocation7 + $0x130] ss:$8 sps:$4 sm:$0xff]   ;;  %v9125_v6 = vld [vmem:[#allocation7 + $0x144] ss:$8 sps:$4 sm:$0xff]  }
 0x1b0   : > { %14301 = vst [vmem:[#allocation27_spill] sm:$0xff] %v10711_v8  ;;  %8401 = vmatprep.subr.bf16.mxu0 %v1404_v9 }
 0x1b1   : > { %8352 = vmatmul.mubr.bf16.vlgmr.msra.gmra.mrb[32].mxu1 %v897_v10  ;;  %8402 = vmatpush3.bf16.msra.mxu0 %v1404_v9 }
 0x1b2   : > { %8368 = vmatpush3.bf16.xpose.msra.mxu1 %v10611_v33  ;;  %v814_v12 = vpop.f32.mrb[8].mxu1  ;;  %v1312_v13 = vpop.f32.mrb[8].mxu0 }
 0x1b3   : > { %v884_v14 = vadd.f32 %v10689_v43, %v814_v12  ;;  %v816_v15 = vpop.f32.mrb[9].mxu1  ;;  %8369 = vmatprep.subr.bf16.mxu1 %v10615_v34  ;;  %v10719_v16 = vadd.f32 %v10684_v41, %v1312_v13  ;;  %v1314_v17 = vpop.f32.mrb[9].mxu0 }
 0x1b4   : > { %v818_v18 = vpop.f32.mrb[10].mxu1  ;;  %v1316_v19 = vpop.f32.mrb[10].mxu0 }
 0x1b5   : > { %v885_v20 = vadd.f32 %v10689_v43, %v818_v18  ;;  %v820_v21 = vpop.f32.mrb[11].mxu1  ;;  %v10723_v22 = vadd.f32 %v10684_v41, %v1316_v19  ;;  %v1318_v23 = vpop.f32.mrb[11].mxu0 }
 0x1b6   : > { %v10725_v24 = vpack.c.bf16 %v820_v21, %v816_v15  ;;  %v1405_v25 = vpack.c.bf16 %v1318_v23, %v1314_v17 }
 0x1b7   : > { %v898_v26 = vpack.c.bf16 %v885_v20, %v884_v14  ;;  %v1397_v27 = vpack.c.bf16 %v10723_v22, %v10719_v16  ;;  %v9128_v16 = vld [vmem:[#allocation7 + $0x154] ss:$8 sps:$4 sm:$0xff]   ;;  %v9126_v22 = vld [vmem:[#allocation7 + $0x150] ss:$8 sps:$4 sm:$0xff]  }
 0x1b8   : > { %14302 = vst [vmem:[#allocation28_spill] sm:$0xff] %v10725_v24  ;;  %8403 = vmatprep.subr.bf16.mxu0 %v1405_v25 }
 0x1b9   : > { %8355 = vmatprep.mubr.bf16.mxu1 %v898_v26  ;;  %8404 = vmatpush3.bf16.msra.mxu0 %v1405_v25 }
 0x1ba   : > { %8370 = vmatpush3.bf16.xpose.msra.mxu1 %v10615_v34  ;;  %v824_v28 = vpop.f32.mrb[12].mxu1  ;;  %v1322_v29 = vpop.f32.mrb[12].mxu0 }
 0x1bb   : > { %v886_v30 = vadd.f32 %v10689_v43, %v824_v28  ;;  %v826_v31 = vpop.f32.mrb[13].mxu1  ;;  %8371 = vmatprep.subr.bf16.mxu1 %v10623_v35  ;;  %v10733_v32 = vadd.f32 %v10684_v41, %v1322_v29  ;;  %v1324_v42 = vpop.f32.mrb[13].mxu0 }
 0x1bc   : > { %v828_v44 = vpop.f32.mrb[14].mxu1  ;;  %v1326_v45 = vpop.f32.mrb[14].mxu0 }
 0x1bd   : > { %v887_v47 = vadd.f32 %v10689_v43, %v828_v44  ;;  %v830_v48 = vpop.f32.mrb[15].mxu1  ;;  %v10737_v49 = vadd.f32 %v10684_v41, %v1326_v45  ;;  %v1328_v50 = vpop.f32.mrb[15].mxu0 }
 0x1be   : > { %v10739_v51 = vpack.c.bf16 %v830_v48, %v826_v31  ;;  %v1406_v52 = vpack.c.bf16 %v1328_v50, %v1324_v42 }
 0x1bf   : > { %v899_v54 = vpack.c.bf16 %v887_v47, %v886_v30  ;;  %v1398_v56 = vpack.c.bf16 %v10737_v49, %v10733_v32  ;;  %v9129_v32 = vld [vmem:[#allocation7 + $0x160] ss:$8 sps:$4 sm:$0xff]   ;;  %v9134_v49 = vld [vmem:[#allocation7 + $0x174] ss:$8 sps:$4 sm:$0xff]  }
 0x1c0   : > { %14303 = vst [vmem:[#allocation29_spill] sm:$0xff] %v10739_v51  ;;  %8405 = vmatprep.subr.bf16.mxu0 %v1406_v52 }
 0x1c1   : > { %8356 = vmatmul.mubr.bf16.gmra.mrb[36].mxu1 %v899_v54  ;;  %8406 = vmatpush3.bf16.msra.mxu0 %v1406_v52 }
 0x1c2   : > { %8372 = vmatpush3.bf16.xpose.msra.mxu1 %v10623_v35  ;;  %v834_v57 = vpop.f32.mrb[16].mxu1  ;;  %v1332_v59 = vpop.f32.mrb[16].mxu0 }
 0x1c3   : > { %v888_v60 = vadd.f32 %v10689_v43, %v834_v57  ;;  %v836_v61 = vpop.f32.mrb[17].mxu1  ;;  %8373 = vmatprep.subr.bf16.mxu1 %v10632_v36  ;;  %v10747_v63 = vadd.f32 %v10684_v41, %v1332_v59  ;;  %v1334_v1 = vpop.f32.mrb[17].mxu0 }
 0x1c4   : > { %v838_v2 = vpop.f32.mrb[18].mxu1  ;;  %v1336_v3 = vpop.f32.mrb[18].mxu0 }
 0x1c5   : > { %v889_v4 = vadd.f32 %v10689_v43, %v838_v2  ;;  %v840_v5 = vpop.f32.mrb[19].mxu1  ;;  %v10751_v7 = vadd.f32 %v10684_v41, %v1336_v3  ;;  %v1338_v9 = vpop.f32.mrb[19].mxu0 }
 0x1c6   : > { %v10753_v10 = vpack.c.bf16 %v840_v5, %v836_v61  ;;  %v1407_v12 = vpack.c.bf16 %v1338_v9, %v1334_v1 }
 0x1c7   : > { %v900_v13 = vpack.c.bf16 %v889_v4, %v888_v60  ;;  %v1399_v14 = vpack.c.bf16 %v10751_v7, %v10747_v63  ;;  %v579_v63 = vld [vmem:[#allocation5 + $0x10] sm:$0xff]  ;;  %v10850_v7 = vld [vmem:[%s558_s27] ss:$0 sm:$0xff]  ;;  %s14645_s27 = sld [smem:[#allocation88_spill]] }
 0x1c8   : > { %14304 = vst [vmem:[#allocation30_spill] sm:$0xff] %v10753_v10  ;;  %8407 = vmatprep.subr.bf16.mxu0 %v1407_v12  ;;  %v590_v10 = vld [vmem:[#allocation5 + $0x68] sm:$0xff] }
 0x1c9   : > { %8359 = vmatprep.mubr.bf16.mxu1 %v900_v13  ;;  %8408 = vmatpush3.bf16.msra.mxu0 %v1407_v12 }
 0x1ca   : > { %8374 = vmatpush3.bf16.xpose.msra.mxu1 %v10632_v36  ;;  %v844_v15 = vpop.f32.mrb[20].mxu1  ;;  %v1342_v17 = vpop.f32.mrb[20].mxu0 }
 0x1cb   : > { %v890_v18 = vadd.f32 %v10689_v43, %v844_v15  ;;  %v846_v19 = vpop.f32.mrb[21].mxu1  ;;  %8375 = vmatprep.subr.bf16.mxu1 %v10641_v37  ;;  %v10761_v20 = vadd.f32 %v10684_v41, %v1342_v17  ;;  %v1344_v21 = vpop.f32.mrb[21].mxu0 }
 0x1cc   : > { %v848_v23 = vpop.f32.mrb[22].mxu1  ;;  %v1346_v25 = vpop.f32.mrb[22].mxu0 }
 0x1cd   : > { %v891_v26 = vadd.f32 %v10689_v43, %v848_v23  ;;  %v850_v28 = vpop.f32.mrb[23].mxu1  ;;  %v10765_v29 = vadd.f32 %v10684_v41, %v1346_v25  ;;  %v1348_v30 = vpop.f32.mrb[23].mxu0 }
 0x1ce   : > { %v10767_v31 = vpack.c.bf16 %v850_v28, %v846_v19  ;;  %v1408_v42 = vpack.c.bf16 %v1348_v30, %v1344_v21 }
 0x1cf   : > { %v901_v44 = vpack.c.bf16 %v891_v26, %v890_v18  ;;  %v1400_v45 = vpack.c.bf16 %v10765_v29, %v10761_v20  ;;  %v10853_v20 = vadd.f32 %v10850_v7, %v579_v63  ;;  %v577_v29 = vld [vmem:[#allocation5] sm:$0xff] }
 0x1d0   : > { %14305 = vst [vmem:[#allocation31_spill] sm:$0xff] %v10767_v31  ;;  %8409 = vmatprep.subr.bf16.mxu0 %v1408_v42 }
 0x1d1   : > { %8360 = vmatmul.mubr.bf16.gmra.mrb[40].mxu1 %v901_v44  ;;  %8410 = vmatpush3.bf16.msra.mxu0 %v1408_v42  ;;  %14308 = vst [vmem:[#allocation34_spill] sm:$0xff] %v10853_v20 }
 0x1d2   : > { %8376 = vmatpush3.bf16.xpose.msra.mxu1 %v10641_v37  ;;  %v854_v47 = vpop.f32.mrb[24].mxu1  ;;  %v1352_v48 = vpop.f32.mrb[24].mxu0 }
 0x1d3   : > { %v892_v50 = vadd.f32 %v10689_v43, %v854_v47  ;;  %v10774_v52 = vadd.f32 %v10684_v41, %v1352_v48  ;;  %v856_v54 = vpop.f32.mrb[25].mxu1  ;;  %v1354_v57 = vpop.f32.mrb[25].mxu0  ;;  %8377 = vmatprep.subr.bf16.mxu1 %v10650_v38 }
 0x1d4   : > { %v858_v59 = vpop.f32.mrb[26].mxu1  ;;  %v1356_v60 = vpop.f32.mrb[26].mxu0 }
 0x1d5   : > { %v893_v61 = vadd.f32 %v10689_v43, %v858_v59  ;;  %v1392_v1 = vadd.f32 %v10684_v41, %v1356_v60  ;;  %v860_v2 = vpop.f32.mrb[27].mxu1  ;;  %v1358_v3 = vpop.f32.mrb[27].mxu0  ;;  %v578_v59 = vld [vmem:[#allocation5 + $0x8] sm:$0xff] }
 0x1d6   : > { %v10779_v4 = vpack.c.bf16 %v860_v2, %v856_v54  ;;  %v1409_v5 = vpack.c.bf16 %v1358_v3, %v1354_v57  ;;  %v9122_v54 = vld [vmem:[#allocation7 + $0x134] ss:$8 sps:$4 sm:$0xff]  }
 0x1d7   : > { %v1401_v9 = vpack.c.bf16 %v1392_v1, %v10774_v52  ;;  %v902_v12 = vpack.c.bf16 %v893_v61, %v892_v50  ;;  %v9116_v52 = vld [vmem:[#allocation7 + $0x114] ss:$8 sps:$4 sm:$0xff]   ;;  %v10862_v1 = vadd.f32 %v10850_v7, %v577_v29 }
 0x1d8   : > { %14306 = vst [vmem:[#allocation32_spill] sm:$0xff] %v10779_v4  ;;  %8411 = vmatprep.subr.bf16.mxu0 %v1409_v5 }
 0x1d9   : > { %8412 = vmatpush3.bf16.msra.mxu0 %v1409_v5  ;;  %8363 = vmatprep.mubr.bf16.mxu1 %v902_v12  ;;  %14311 = vst [vmem:[#allocation37_spill] sm:$0xff] %v10862_v1 }
 0x1da   : > { %8378 = vmatpush3.bf16.xpose.msra.mxu1 %v10650_v38  ;;  %v864_v13 = vpop.f32.mrb[28].mxu1  ;;  %v1362_v15 = vpop.f32.mrb[28].mxu0 }
 0x1db   : > { %v894_v17 = vadd.f32 %v10689_v43, %v864_v13  ;;  %v1393_v18 = vadd.f32 %v10684_v41, %v1362_v15  ;;  %v866_v19 = vpop.f32.mrb[29].mxu1  ;;  %v1364_v21 = vpop.f32.mrb[29].mxu0  ;;  %8379 = vmatprep.subr.bf16.mxu1 %v10659_v39 }
 0x1dc   : > { %v868_v23 = vpop.f32.mrb[30].mxu1  ;;  %v1366_v25 = vpop.f32.mrb[30].mxu0 }
 0x1dd   : > { %v895_v26 = vadd.f32 %v10689_v43, %v868_v23  ;;  %v1394_v28 = vadd.f32 %v10684_v41, %v1366_v25  ;;  %v1368_v30 = vpop.f32.mrb[31].mxu0  ;;  %v870_v42 = vpop.f32.mrb[31].mxu1  ;;  %v9113_v41 = vld [vmem:[#allocation7 + $0x104] ss:$8 sps:$4 sm:$0xff]   ;;  %v9111_v43 = vld [vmem:[#allocation7 + $0x100] ss:$8 sps:$4 sm:$0xff]  }
 0x1de   : > { %v1410_v44 = vpack.c.bf16 %v1368_v30, %v1364_v21  ;;  %v10788_v47 = vpack.c.bf16 %v870_v42, %v866_v19 }
 0x1df   : > { %v1402_v48 = vpack.c.bf16 %v1394_v28, %v1393_v18  ;;  %v903_v50 = vpack.c.bf16 %v895_v26, %v894_v17 }
 0x1e0   : > { %14307 = vst [vmem:[#allocation33_spill] sm:$0xff] %v10788_v47  ;;  %8413 = vmatprep.subr.bf16.mxu0 %v1410_v44 }
 0x1e1   : > { %8364 = vmatmul.mubr.bf16.gmra.mrb[44].mxu1 %v903_v50  ;;  %8414 = vmatpush3.bf16.msra.mxu0 %v1410_v44 }
 0x1e2   : > { %8380 = vmatpush3.bf16.xpose.msra.mxu1 %v10659_v39  ;;  %8383 = vmatprep.mubr.bf16.mxu1 %v1395_v58  ;;  %v9117_v58 = vld [vmem:[#allocation7 + $0x120] ss:$8 sps:$4 sm:$0xff]  }
 0x1e3   : > { %8431 = vmatprep.subr.bf16.mxu0 %v10699_v55  ;;  %8381 = vmatprep.subr.bf16.mxu1 %v10668_v40 }
 0x1ea   : > { %8382 = vmatpush3.bf16.xpose.msra.mxu1 %v10668_v40 }
 0x1eb   : > { %1951 = vmatprep.subr.bf16.mxu1 %v9113_v41 }
 0x1f1   : > { %8384 = vmatmul.mubr.bf16.vlgmr.msra.gmra.mrb[48].mxu1 %v1396_v11  ;;  %v9123_v11 = vld [vmem:[#allocation7 + $0x140] ss:$8 sps:$4 sm:$0xff]  }
 0x1f2   : > { %8387 = vmatprep.mubr.bf16.mxu1 %v1397_v27  ;;  %1952 = vmatpush1.bf16.msra.mxu1 %v9111_v43  ;;  %v9131_v27 = vld [vmem:[#allocation7 + $0x164] ss:$8 sps:$4 sm:$0xff]  }
 0x1f3   : > { %1953 = vmatprep.subr.bf16.mxu1 %v9116_v52 }
 0x1f6   : > { %1954 = vmatpush1.bf16.msra.mxu1 %v9114_v46 }
 0x1f7   : > { %1955 = vmatprep.subr.bf16.mxu1 %v9119_v53  ;;  %v583_v53 = vld [vmem:[#allocation5 + $0x30] sm:$0xff] }
 0x1f9   : > { %8388 = vmatmul.mubr.bf16.gmra.mrb[52].mxu1 %v1398_v56  ;;  %v9132_v56 = vld [vmem:[#allocation7 + $0x170] ss:$8 sps:$4 sm:$0xff]  }
 0x1fa   : > { %8391 = vmatprep.mubr.bf16.mxu1 %v1399_v14  ;;  %1956 = vmatpush1.bf16.msra.mxu1 %v9117_v58  ;;  %v580_v14 = vld [vmem:[#allocation5 + $0x18] sm:$0xff] }
 0x1fb   : > { %1957 = vmatprep.subr.bf16.mxu1 %v9122_v54 }
 0x1fe   : > { %1958 = vmatpush1.bf16.msra.mxu1 %v9120_v62  ;;  %v584_v62 = vld [vmem:[#allocation5 + $0x38] sm:$0xff] }
 0x1ff   : > { %1959 = vmatprep.subr.bf16.mxu1 %v9125_v6  ;;  %v10920_v6 = vadd.f32 %v10850_v7, %v583_v53 }
 0x201   : > { %8392 = vmatmul.mubr.bf16.gmra.mrb[56].mxu1 %v1400_v45  ;;  %v10856_v45 = vadd.f32 %v10850_v7, %v580_v14  ;;  %14315 = vst [vmem:[#allocation41_spill] sm:$0xff] %v10920_v6 }
 0x202   : > { %8395 = vmatprep.mubr.bf16.mxu1 %v1401_v9  ;;  %1960 = vmatpush1.bf16.msra.mxu1 %v9123_v11  ;;  %v10869_v9 = vadd.f32 %v10850_v7, %v578_v59 }
 0x203   : > { %1961 = vmatprep.subr.bf16.mxu1 %v9128_v16  ;;  %14309 = vst [vmem:[#allocation35_spill] sm:$0xff] %v10856_v45 }
 0x204   : > { %14313 = vst [vmem:[#allocation39_spill] sm:$0xff] %v10869_v9 }
 0x206   : > { %1962 = vmatpush1.bf16.msra.mxu1 %v9126_v22 }
 0x207   : > { %1963 = vmatprep.subr.bf16.mxu1 %v9131_v27  ;;  %v10927_v27 = vadd.f32 %v10850_v7, %v584_v62  ;;  %v585_v62 = vld [vmem:[#allocation5 + $0x40] sm:$0xff] }
 0x209   : > { %8396 = vmatmul.mubr.bf16.gmra.mrb[60].mxu1 %v1402_v48  ;;  %14316 = vst [vmem:[#allocation42_spill] sm:$0xff] %v10927_v27 }
 0x20a   : > { %1964 = vmatpush1.bf16.msra.mxu1 %v9129_v32  ;;  %1983 = vmatprep.mubr.bf16.mxu1 %v14091_v0  ;;  %v581_v32 = vld [vmem:[#allocation5 + $0x20] sm:$0xff] }
 0x20b   : > { %1965 = vmatprep.subr.bf16.mxu1 %v9134_v49  ;;  %v10934_v29 = vadd.f32 %v10850_v7, %v581_v32 }
 0x20d   : > { %14317 = vst [vmem:[#allocation43_spill] sm:$0xff] %v10934_v29 }
 0x20e   : > { %1966 = vmatpush1.bf16.msra.mxu1 %v9132_v56  ;;  %v582_v56 = vld [vmem:[#allocation5 + $0x28] sm:$0xff] }
 0x20f   : > { %8463 = vmatprep.subr.bf16.mxu1 %v10611_v33  ;;  %v10938_v59 = vadd.f32 %v10850_v7, %v582_v56  ;;  %v10962_v56 = vadd.f32 %v10850_v7, %v585_v62 }
 0x211   : > { %1984 = vmatmul.mubr.bf16.vlgmr.msra.gmra.mrb[64].mxu1 %v10611_v33  ;;  %14318 = vst [vmem:[#allocation44_spill] sm:$0xff] %v10938_v59  ;;  %14321 = vst [vmem:[#allocation47_spill] sm:$0xff] %v10962_v56 }
 0x212   : > { %1993 = vmatprep.mubr.bf16.mxu1 %v14091_v0 }
 0x217   : > { %8464 = vmatpush3.bf16.xpose.msra.mxu1 %v10611_v33 }
 0x218   : > { %8465 = vmatprep.subr.bf16.mxu1 %v10615_v34 }
 0x219   : > { %1994 = vmatmul.mubr.bf16.gmra.mrb[68].mxu1 %v10615_v34 }
 0x21a   : > { %2003 = vmatprep.mubr.bf16.mxu1 %v14091_v0 }
 0x21f   : > { %8466 = vmatpush3.bf16.xpose.msra.mxu1 %v10615_v34 }
 0x220   : > { %8467 = vmatprep.subr.bf16.mxu1 %v10623_v35 }
 0x221   : > { %2004 = vmatmul.mubr.bf16.gmra.mrb[72].mxu1 %v10623_v35 }
 0x222   : > { %2013 = vmatprep.mubr.bf16.mxu1 %v14091_v0 }
 0x227   : > { %8468 = vmatpush3.bf16.xpose.msra.mxu1 %v10623_v35 }
 0x228   : > { %8469 = vmatprep.subr.bf16.mxu1 %v10632_v36 }
 0x229   : > { %2014 = vmatmul.mubr.bf16.gmra.mrb[76].mxu1 %v10632_v36 }
 0x22a   : > { %2023 = vmatprep.mubr.bf16.mxu1 %v14091_v0 }
 0x22f   : > { %8470 = vmatpush3.bf16.xpose.msra.mxu1 %v10632_v36 }
 0x230   : > { %8471 = vmatprep.subr.bf16.mxu1 %v10641_v37 }
 0x231   : > { %2024 = vmatmul.mubr.bf16.gmra.mrb[80].mxu1 %v10641_v37 }
 0x232   : > { %2033 = vmatprep.mubr.bf16.mxu1 %v14091_v0 }
 0x237   : > { %8472 = vmatpush3.bf16.xpose.msra.mxu1 %v10641_v37 }
 0x238   : > { %8473 = vmatprep.subr.bf16.mxu1 %v10650_v38 }
 0x239   : > { %2034 = vmatmul.mubr.bf16.gmra.mrb[84].mxu1 %v10650_v38 }
 0x23a   : > { %2043 = vmatprep.mubr.bf16.mxu1 %v14091_v0 }
 0x23f   : > { %8474 = vmatpush3.bf16.xpose.msra.mxu1 %v10650_v38 }
 0x240   : > { %8475 = vmatprep.subr.bf16.mxu1 %v10659_v39 }
 0x241   : > { %2044 = vmatmul.mubr.bf16.gmra.mrb[88].mxu1 %v10659_v39 }
 0x242   : > { %2053 = vmatprep.mubr.bf16.mxu1 %v14091_v0 }
 0x247   : > { %8476 = vmatpush3.bf16.xpose.msra.mxu1 %v10659_v39 }
 0x248   : > { %8477 = vmatprep.subr.bf16.mxu1 %v10668_v40 }
 0x249   : > { %2054 = vmatmul.mubr.bf16.gmra.mrb[92].mxu1 %v10668_v40 }
 0x24f   : > { %8478 = vmatpush3.bf16.xpose.msra.mxu1 %v10668_v40 }
 0x250   : > { %8527 = vmatprep.subr.bf16.mxu1 %v10611_v33 }
 0x284   : > { %v8353_v57 = vpop.f32.mrb[32].mxu1 }
 0x285   : > { %v946_v60 = vpop.f32.mrb[33].mxu1  ;;  %v10859_v61 = vadd.f32 %v8353_v57, %v10853_v20  ;;  %v587_v57 = vld [vmem:[#allocation5 + $0x50] sm:$0xff] }
 0x286   : > { %v8354_v2 = vpop.f32.mrb[34].mxu1  ;;  %v10873_v12 = vadd.f32 %v946_v60, %v10862_v1 }
 0x287   : > { %14310 = vst [vmem:[#allocation36_spill] sm:$0xff] %v10859_v61  ;;  %1013 = vmax.xlane.f32.xlu0 %v10859_v61  ;;  %v949_v3 = vpop.f32.mrb[35].mxu1  ;;  %v10866_v5 = vadd.f32 %v8354_v2, %v10856_v45  ;;  %v588_v2 = vld [vmem:[#allocation5 + $0x58] sm:$0xff] }
 0x288   : > { %v10877_v13 = vadd.f32 %v949_v3, %v10869_v9  ;;  %v10955_v53 = vadd.f32 %v10850_v7, %v588_v2 }
 0x289   : > { %14312 = vst [vmem:[#allocation38_spill] sm:$0xff] %v10866_v5  ;;  %1015 = vmax.xlane.f32.xlu1 %v10866_v5 }
 0x28a   : > { %14314 = vst [vmem:[#allocation40_spill] sm:$0xff] %v10877_v13  ;;  %14320 = vst [vmem:[#allocation46_spill] sm:$0xff] %v10955_v53 }
 0x28b   : > { %1009 = vmax.xlane.f32.xlu0 %v10873_v12 }
 0x28d   : > { %1011 = vmax.xlane.f32.xlu1 %v10877_v13 }
 0x294   : > { %v10880_v15 = vpop.f32.mrb[36].mxu1 }
 0x295   : > { %v10882_v17 = vpop.f32.mrb[37].mxu1 }
 0x296   : > { %v10884_v18 = vpop.f32.mrb[38].mxu1 }
 0x297   : > { %v10886_v19 = vpop.f32.mrb[39].mxu1 }
 0x298   : > { %v11017_v55 = vadd.f32 %v10886_v19, %v10938_v59 }
 0x2a4   : > { %v10888_v21 = vpop.f32.mrb[40].mxu1 }
 0x2a5   : > { %v10890_v23 = vpop.f32.mrb[41].mxu1 }
 0x2a6   : > { %v10892_v25 = vpop.f32.mrb[42].mxu1 }
 0x2a7   : > { %v10894_v26 = vpop.f32.mrb[43].mxu1 }
 0x2b4   : > { %v10896_v28 = vpop.f32.mrb[44].mxu1 }
 0x2b5   : > { %v10898_v30 = vpop.f32.mrb[45].mxu1 }
 0x2b6   : > { %v10900_v42 = vpop.f32.mrb[46].mxu1 }
 0x2b7   : > { %v10902_v44 = vpop.f32.mrb[47].mxu1 }
 0x2c4   : > { %v8385_v48 = vpop.f32.mrb[48].mxu1 }
 0x2c5   : > { %v1445_v50 = vpop.f32.mrb[49].mxu1  ;;  %v10905_v41 = vadd.f32 %v8385_v48, %v10853_v20  ;;  %v10947_v48 = vadd.f32 %v10850_v7, %v587_v57 }
 0x2c6   : > { %v8386_v43 = vpop.f32.mrb[50].mxu1  ;;  %v10908_v52 = vadd.f32 %v1445_v50, %v10862_v1 }
 0x2c7   : > { %v1448_v46 = vpop.f32.mrb[51].mxu1  ;;  %1512 = vmax.xlane.f32.xlu1 %v10905_v41  ;;  %v10913_v58 = vadd.f32 %v8386_v43, %v10856_v45  ;;  %14319 = vst [vmem:[#allocation45_spill] sm:$0xff] %v10947_v48 }
 0x2c8   : > { %1508 = vmax.xlane.f32.xlu0 %v10908_v52  ;;  %v10916_v54 = vadd.f32 %v1448_v46, %v10869_v9 }
 0x2cb   : > { %1514 = vmax.xlane.f32.xlu1 %v10913_v58 }
 0x2cc   : > { %v8389_v11 = vpop.f32.mrb[52].mxu1  ;;  %1510 = vmax.xlane.f32.xlu0 %v10916_v54 }
 0x2cd   : > { %v1461_v16 = vpop.f32.mrb[53].mxu1  ;;  %v10924_v22 = vadd.f32 %v8389_v11, %v10920_v6 }
 0x2ce   : > { %v8390_v49 = vpop.f32.mrb[54].mxu1  ;;  %v10941_v60 = vadd.f32 %v1461_v16, %v10934_v29  ;;  %v586_v16 = vld [vmem:[#allocation5 + $0x48] sm:$0xff] }
 0x2cf   : > { %v1464_v63 = vpop.f32.mrb[55].mxu1  ;;  %v10930_v14 = vadd.f32 %v8390_v49, %v10927_v27  ;;  %v10966_v57 = vadd.f32 %v10850_v7, %v586_v16 }
 0x2d0   : > { %1520 = vmax.xlane.f32.xlu0 %v10924_v22  ;;  %v10944_v3 = vadd.f32 %v1464_v63, %v10938_v59  ;;  %v591_v63 = vld [vmem:[#allocation5 + $0x70] sm:$0xff] }
 0x2d1   : > { %1522 = vmax.xlane.f32.xlu1 %v10930_v14  ;;  %14322 = vst [vmem:[#allocation48_spill] sm:$0xff] %v10966_v57 }
 0x2d4   : > { %v8393_v50 = vpop.f32.mrb[56].mxu1  ;;  %1516 = vmax.xlane.f32.xlu0 %v10941_v60 }
 0x2d5   : > { %v1477_v43 = vpop.f32.mrb[57].mxu1  ;;  %1518 = vmax.xlane.f32.xlu1 %v10944_v3  ;;  %v10952_v46 = vadd.f32 %v8393_v50, %v10947_v48  ;;  %v592_v50 = vld [vmem:[#allocation5 + $0x78] sm:$0xff] }
 0x2d6   : > { %v8394_v11 = vpop.f32.mrb[58].mxu1  ;;  %v10969_v2 = vadd.f32 %v1477_v43, %v10962_v56  ;;  %v10983_v16 = vadd.f32 %v10850_v7, %v592_v50  ;;  %v589_v43 = vld [vmem:[#allocation5 + $0x60] sm:$0xff] }
 0x2d7   : > { %v1480_v32 = vpop.f32.mrb[59].mxu1  ;;  %v10958_v49 = vadd.f32 %v8394_v11, %v10955_v53  ;;  %v10975_v11 = vadd.f32 %v10850_v7, %v591_v63  ;;  %v10990_v63 = vadd.f32 %v10850_v7, %v589_v43 }
 0x2d8   : > { %1528 = vmax.xlane.f32.xlu0 %v10952_v46  ;;  %v10972_v0 = vadd.f32 %v1480_v32, %v10966_v57  ;;  %14324 = vst [vmem:[#allocation50_spill] sm:$0xff] %v10983_v16 }
 0x2d9   : > { %1530 = vmax.xlane.f32.xlu1 %v10958_v49  ;;  %14323 = vst [vmem:[#allocation49_spill] sm:$0xff] %v10975_v11  ;;  %14325 = vst [vmem:[#allocation51_spill] sm:$0xff] %v10990_v63 }
 0x2dc   : > { %v8397_v47 = vpop.f32.mrb[60].mxu1  ;;  %1524 = vmax.xlane.f32.xlu0 %v10969_v2 }
 0x2dd   : > { %v1493_v62 = vpop.f32.mrb[61].mxu1  ;;  %1526 = vmax.xlane.f32.xlu1 %v10972_v0  ;;  %v10980_v4 = vadd.f32 %v8397_v47, %v10975_v11  ;;  %v10994_v47 = vadd.f32 %v10850_v7, %v590_v10  ;;  %v11011_v10 = vadd.f32 %v10882_v17, %v10934_v29  ;;  %v11025_v17 = vadd.f32 %v10880_v15, %v10920_v6 }
 0x2de   : > { %v8398_v31 = vpop.f32.mrb[62].mxu1  ;;  %v10997_v50 = vadd.f32 %v1493_v62, %v10990_v63 }
 0x2df   : > { %v1496_v32 = vpop.f32.mrb[63].mxu1  ;;  %v10986_v51 = vadd.f32 %v8398_v31, %v10983_v16  ;;  %14326 = vst [vmem:[#allocation52_spill] sm:$0xff] %v10994_v47  ;;  %v11005_v31 = vld [vmem:[%s14072_s4 + $0x2] ss:$0 sm:$0xff] }
 0x2e0   : > { %1536 = vmax.xlane.f32.xlu0 %v10980_v4  ;;  %v11000_v24 = vadd.f32 %v1496_v32, %v10994_v47 }
 0x2e1   : > { %1538 = vmax.xlane.f32.xlu1 %v10986_v51 }
 0x2e4   : > { %v1985_v8 = vpop.f32.mrb[64].mxu1  ;;  %1532 = vmax.xlane.f32.xlu0 %v10997_v50 }
 0x2e5   : > { %v1987_v43 = vpop.f32.mrb[65].mxu1  ;;  %1534 = vmax.xlane.f32.xlu1 %v11000_v24  ;;  %v2072_v7 = vadd.f32 %v11005_v31, %v1985_v8  ;;  %v11029_v8 = vadd.f32 %v10884_v18, %v10927_v27  ;;  %v11041_v18 = vadd.f32 %v10894_v26, %v10966_v57 }
 0x2e6   : > { %v1989_v5 = vpop.f32.mrb[66].mxu1 }
 0x2e7   : > { %v2073_v62 = vadd.f32 %v11005_v31, %v1989_v5  ;;  %v1991_v32 = vpop.f32.mrb[67].mxu1 }
 0x2e8   : > { %v11019_v61 = vpack.c.bf16 %v1991_v32, %v1987_v43  ;;  %1017 = vmax.xlane.f32.xlu0 %v11011_v10 }
 0x2e9   : > { %v2088_v13 = vpack.c.bf16 %v2073_v62, %v2072_v7  ;;  %1019 = vmax.xlane.f32.xlu1 %v11017_v55  ;;  %v11035_v7 = vadd.f32 %v10890_v23, %v10962_v56  ;;  %v11049_v23 = vadd.f32 %v10888_v21, %v10947_v48  ;;  %v11061_v21 = vadd.f32 %v10898_v30, %v10990_v63 }
 0x2ea   : > { %14327 = vst [vmem:[#allocation53_spill] sm:$0xff] %v11019_v61  ;;  %v11075_v30 = vadd.f32 %v10896_v28, %v10975_v11 }
 0x2eb   : > { %8479 = vmatprep.mubr.bf16.mxu1 %v2088_v13  ;;  %14329 = vst [vmem:[#allocation55_spill] sm:$0xff] %v11049_v23  ;;  %14331 = vst [vmem:[#allocation57_spill] sm:$0xff] %v11061_v21 }
 0x2ec   : > { %v1995_v5 = vpop.f32.mrb[68].mxu1  ;;  %1021 = vmax.xlane.f32.xlu0 %v11025_v17  ;;  %14334 = vst [vmem:[#allocation60_spill] sm:$0xff] %v11075_v30 }
 0x2ed   : > { %v1997_v19 = vpop.f32.mrb[69].mxu1  ;;  %1023 = vmax.xlane.f32.xlu1 %v11029_v8  ;;  %v2074_v62 = vadd.f32 %v11005_v31, %v1995_v5  ;;  %v11053_v5 = vadd.f32 %v10892_v25, %v10955_v53 }
 0x2ee   : > { %v1999_v43 = vpop.f32.mrb[70].mxu1 }
 0x2ef   : > { %v2075_v15 = vadd.f32 %v11005_v31, %v1999_v43  ;;  %v2001_v13 = vpop.f32.mrb[71].mxu1  ;;  %14330 = vst [vmem:[#allocation56_spill] sm:$0xff] %v11053_v5 }
 0x2f0   : > { %v11043_v32 = vpack.c.bf16 %v2001_v13, %v1997_v19  ;;  %1025 = vmax.xlane.f32.xlu0 %v11035_v7 }
 0x2f1   : > { %v2089_v61 = vpack.c.bf16 %v2075_v15, %v2074_v62  ;;  %1027 = vmax.xlane.f32.xlu1 %v11041_v18  ;;  %v11067_v15 = vadd.f32 %v10902_v44, %v10994_v47 }
 0x2f2   : > { %14328 = vst [vmem:[#allocation54_spill] sm:$0xff] %v11043_v32 }
 0x2f3   : > { %8480 = vmatmul.mubr.bf16.vlgmr.msra.gmra.mrb[96].mxu1 %v2089_v61  ;;  %14332 = vst [vmem:[#allocation58_spill] sm:$0xff] %v11067_v15 }
 0x2f4   : > { %v2005_v43 = vpop.f32.mrb[72].mxu1  ;;  %1029 = vmax.xlane.f32.xlu0 %v11049_v23  ;;  %8528 = vmatpush3.bf16.xpose.msra.mxu1 %v10611_v33 }
 0x2f5   : > { %v2007_v26 = vpop.f32.mrb[73].mxu1  ;;  %1031 = vmax.xlane.f32.xlu1 %v11053_v5  ;;  %8529 = vmatprep.subr.bf16.mxu1 %v10615_v34  ;;  %v2076_v61 = vadd.f32 %v11005_v31, %v2005_v43  ;;  %v11079_v43 = vadd.f32 %v10900_v42, %v10983_v16 }
 0x2f6   : > { %v2009_v19 = vpop.f32.mrb[74].mxu1 }
 0x2f7   : > { %v2077_v25 = vadd.f32 %v11005_v31, %v2009_v19  ;;  %v2011_v62 = vpop.f32.mrb[75].mxu1  ;;  %14335 = vst [vmem:[#allocation61_spill] sm:$0xff] %v11079_v43 }
 0x2f8   : > { %v11069_v13 = vpack.c.bf16 %v2011_v62, %v2007_v26  ;;  %1033 = vmax.xlane.f32.xlu0 %v11061_v21 }
 0x2f9   : > { %v2090_v33 = vpack.c.bf16 %v2077_v25, %v2076_v61  ;;  %1035 = vmax.xlane.f32.xlu1 %v11067_v15 }
 0x2fa   : > { %14333 = vst [vmem:[#allocation59_spill] sm:$0xff] %v11069_v13 }
 0x2fb   : > { %8483 = vmatprep.mubr.bf16.mxu1 %v2090_v33 }
 0x2fc   : > { %v2015_v19 = vpop.f32.mrb[76].mxu1  ;;  %1037 = vmax.xlane.f32.xlu0 %v11075_v30  ;;  %8530 = vmatpush3.bf16.xpose.msra.mxu1 %v10615_v34 }
 0x2fd   : > { %v2017_v44 = vpop.f32.mrb[77].mxu1  ;;  %1039 = vmax.xlane.f32.xlu1 %v11079_v43  ;;  %8531 = vmatprep.subr.bf16.mxu1 %v10623_v35  ;;  %v2078_v61 = vadd.f32 %v11005_v31, %v2015_v19 }
 0x2fe   : > { %v2019_v26 = vpop.f32.mrb[78].mxu1 }
 0x2ff   : > { %v2079_v28 = vadd.f32 %v11005_v31, %v2019_v26  ;;  %v2021_v33 = vpop.f32.mrb[79].mxu1 }
 0x300   : > { %v11087_v25 = vpack.c.bf16 %v2021_v33, %v2017_v44 }
 0x301   : > { %v2091_v42 = vpack.c.bf16 %v2079_v28, %v2078_v61 }
 0x302   : > { %14336 = vst [vmem:[#allocation62_spill] sm:$0xff] %v11087_v25 }
 0x303   : > { %8484 = vmatmul.mubr.bf16.gmra.mrb[100].mxu1 %v2091_v42 }
 0x304   : > { %v2025_v62 = vpop.f32.mrb[80].mxu1  ;;  %8532 = vmatpush3.bf16.xpose.msra.mxu1 %v10623_v35 }
 0x305   : > { %v2027_v13 = vpop.f32.mrb[81].mxu1  ;;  %8533 = vmatprep.subr.bf16.mxu1 %v10632_v36  ;;  %v2080_v32 = vadd.f32 %v11005_v31, %v2025_v62 }
 0x306   : > { %v2029_v34 = vpop.f32.mrb[82].mxu1 }
 0x307   : > { %v2081_v43 = vadd.f32 %v11005_v31, %v2029_v34  ;;  %v2031_v30 = vpop.f32.mrb[83].mxu1 }
 0x308   : > { %v11093_v19 = vpack.c.bf16 %v2031_v30, %v2027_v13 }
 0x309   : > { %v2092_v26 = vpack.c.bf16 %v2081_v43, %v2080_v32 }
 0x30a   : > { %14337 = vst [vmem:[#allocation63_spill] sm:$0xff] %v11093_v19 }
 0x30b   : > { %8487 = vmatprep.mubr.bf16.mxu1 %v2092_v26 }
 0x30c   : > { %v2035_v44 = vpop.f32.mrb[84].mxu1  ;;  %8534 = vmatpush3.bf16.xpose.msra.mxu1 %v10632_v36 }
 0x30d   : > { %v2037_v61 = vpop.f32.mrb[85].mxu1  ;;  %8535 = vmatprep.subr.bf16.mxu1 %v10641_v37  ;;  %v2082_v33 = vadd.f32 %v11005_v31, %v2035_v44 }
 0x30e   : > { %v2039_v28 = vpop.f32.mrb[86].mxu1 }
 0x30f   : > { %v2083_v42 = vadd.f32 %v11005_v31, %v2039_v28  ;;  %v2041_v35 = vpop.f32.mrb[87].mxu1 }
 0x310   : > { %v11099_v62 = vpack.c.bf16 %v2041_v35, %v2037_v61 }
 0x311   : > { %v2093_v34 = vpack.c.bf16 %v2083_v42, %v2082_v33 }
 0x312   : > { %14338 = vst [vmem:[#allocation64_spill] sm:$0xff] %v11099_v62 }
 0x313   : > { %8488 = vmatmul.mubr.bf16.gmra.mrb[104].mxu1 %v2093_v34 }
 0x314   : > { %v2045_v13 = vpop.f32.mrb[88].mxu1  ;;  %8536 = vmatpush3.bf16.xpose.msra.mxu1 %v10641_v37 }
 0x315   : > { %v2047_v32 = vpop.f32.mrb[89].mxu1  ;;  %8537 = vmatprep.subr.bf16.mxu1 %v10650_v38  ;;  %v2084_v43 = vadd.f32 %v11005_v31, %v2045_v13 }
 0x316   : > { %v2049_v30 = vpop.f32.mrb[90].mxu1 }
 0x317   : > { %v2085_v26 = vadd.f32 %v11005_v31, %v2049_v30  ;;  %v2051_v36 = vpop.f32.mrb[91].mxu1 }
 0x318   : > { %v11105_v44 = vpack.c.bf16 %v2051_v36, %v2047_v32  ;;  %v11116_v36 = vpop.xlane.xlu1 %1015  ;;  %v11118_v32 = vpop.xlane.xlu0 %1013 }
 0x319   : > { %v2094_v28 = vpack.c.bf16 %v2085_v26, %v2084_v43 }
 0x31a   : > { %14339 = vst [vmem:[#allocation65_spill] sm:$0xff] %v11105_v44 }
 0x31b   : > { %8491 = vmatprep.mubr.bf16.mxu1 %v2094_v28 }
 0x31c   : > { %v2055_v35 = vpop.f32.mrb[92].mxu1  ;;  %8538 = vmatpush3.bf16.xpose.msra.mxu1 %v10650_v38  ;;  %v11120_v43 = vpop.xlane.xlu1 %1011 }
 0x31d   : > { %v2057_v61 = vpop.f32.mrb[93].mxu1  ;;  %8539 = vmatprep.subr.bf16.mxu1 %v10659_v39  ;;  %v2086_v42 = vadd.f32 %v11005_v31, %v2055_v35  ;;  %v11122_v26 = vpop.xlane.xlu0 %1009 }
 0x31e   : > { %v2059_v33 = vpop.f32.mrb[94].mxu1 }
 0x31f   : > { %v2087_v34 = vadd.f32 %v11005_v31, %v2059_v33  ;;  %v2061_v37 = vpop.f32.mrb[95].mxu1 }
 0x320   : > { %v11111_v13 = vpack.c.bf16 %v2061_v37, %v2057_v61 }
 0x321   : > { %v2095_v30 = vpack.c.bf16 %v2087_v34, %v2086_v42 }
 0x322   : > { %14340 = vst [vmem:[#allocation66_spill] sm:$0xff] %v11111_v13 }
 0x323   : > { %8492 = vmatmul.mubr.bf16.gmra.mrb[108].mxu1 %v2095_v30 }
 0x324   : > { %8540 = vmatpush3.bf16.xpose.msra.mxu1 %v10659_v39 }
 0x325   : > { %8541 = vmatprep.subr.bf16.mxu1 %v10668_v40 }
 0x32c   : > { %8542 = vmatpush3.bf16.xpose.msra.mxu1 %v10668_v40 }
 0x354   : > { %v1513_v31 = vpop.xlane.xlu1 %1512 }
 0x355   : > { %v1542_v37 = vsub.f32 %v10905_v41, %v1513_v31  ;;  %v1509_v28 = vpop.xlane.xlu0 %1508 }
 0x356   : > { %v1540_v35 = vsub.f32 %v10908_v52, %v1509_v28 }
 0x357   : > { %v1560_v61 = vmul.f32 1.442695, %v1542_v37 }
 0x358   : > { %v1556_v33 = vmul.f32 1.442695, %v1540_v35  ;;  %v1515_v42 = vpop.xlane.xlu1 %1514 }
 0x359   : > { %9343 = vpow2.f32 %v1560_v61  ;;  %v1543_v34 = vsub.f32 %v10913_v58, %v1515_v42  ;;  %v1511_v30 = vpop.xlane.xlu0 %1510 }
 0x35a   : > { %v1541_v40 = vsub.f32 %v10916_v54, %v1511_v30  ;;  %9345 = vpow2.f32 %v1556_v33 }
 0x35b   : > { %v1562_v39 = vmul.f32 1.442695, %v1543_v34 }
 0x35c   : > { %v1558_v38 = vmul.f32 1.442695, %v1541_v40 }
 0x35d   : > { %9347 = vpow2.f32 %v1562_v39  ;;  %v1521_v54 = vpop.xlane.xlu0 %1520 }
 0x35e   : > { %9349 = vpow2.f32 %v1558_v38  ;;  %v11140_v39 = vpop.xlane.xlu1 %1522 }
 0x361   : > { %v1517_v38 = vpop.xlane.xlu0 %1516 }
 0x362   : > { %v11142_v40 = vpop.xlane.xlu1 %1518 }
 0x363   : > { %v11128_v13 = vpop.eup %9343 }
 0x364   : > { %1592 = vadd.xlane.f32.xlu0 %v11128_v13  ;;  %v11131_v41 = vpop.eup %9345 }
 0x365   : > { %v11144_v31 = vpop.xlane.xlu0 %1528 }
 0x366   : > { %v11146_v37 = vpop.xlane.xlu1 %1530 }
 0x367   : > { %v11133_v52 = vpop.eup %9347 }
 0x368   : > { %1594 = vadd.xlane.f32.xlu1 %v11133_v52  ;;  %1588 = vadd.xlane.f32.xlu0 %v11131_v41  ;;  %v11137_v58 = vpop.eup %9349 }
 0x369   : > { %v11148_v28 = vpop.xlane.xlu0 %1524 }
 0x36a   : > { %v11150_v35 = vpop.xlane.xlu1 %1526 }
 0x36c   : > { %1590 = vadd.xlane.f32.xlu1 %v11137_v58 }
 0x36d   : > { %v11152_v61 = vpop.xlane.xlu0 %1536 }
 0x36e   : > { %v11154_v42 = vpop.xlane.xlu1 %1538 }
 0x371   : > { %v11159_v62 = vpop.xlane.xlu0 %1532 }
 0x372   : > { %v11169_v21 = vpop.xlane.xlu1 %1534 }
 0x3c6   : > { %v8481_v33 = vpop.f32.mrb[96].mxu1 }
 0x3c7   : > { %v11157_v34 = vadd.f32 %v8481_v33, %v10853_v20  ;;  %v2138_v30 = vpop.f32.mrb[97].mxu1  ;;  %v11175_v20 = vpop.xlane.xlu0 %1017 }
 0x3c8   : > { %v8482_v44 = vpop.f32.mrb[98].mxu1  ;;  %v11166_v15 = vadd.f32 %v2138_v30, %v10862_v1 }
 0x3c9   : > { %14341 = vst [vmem:[#allocation67_spill] sm:$0xff] %v11157_v34  ;;  %v11162_v19 = vadd.f32 %v8482_v44, %v10856_v45  ;;  %v2141_v25 = vpop.f32.mrb[99].mxu1  ;;  %2205 = vmax.xlane.f32.xlu0 %v11157_v34  ;;  %v11178_v44 = vpop.xlane.xlu1 %1019 }
 0x3ca   : > { %14343 = vst [vmem:[#allocation69_spill] sm:$0xff] %v11166_v15  ;;  %v11172_v33 = vadd.f32 %v2141_v25, %v10869_v9 }
 0x3cb   : > { %14342 = vst [vmem:[#allocation68_spill] sm:$0xff] %v11162_v19  ;;  %2207 = vmax.xlane.f32.xlu1 %v11162_v19  ;;  %v11180_v45 = vpop.xlane.xlu0 %1021 }
 0x3cc   : > { %14344 = vst [vmem:[#allocation70_spill] sm:$0xff] %v11172_v33 }
 0x3cd   : > { %2201 = vmax.xlane.f32.xlu0 %v11166_v15  ;;  %v11185_v5 = vpop.xlane.xlu1 %1023 }
 0x3cf   : > { %2203 = vmax.xlane.f32.xlu1 %v11172_v33  ;;  %v11191_v15 = vpop.xlane.xlu0 %1025 }
 0x3d6   : > { %v8485_v34 = vpop.f32.mrb[100].mxu1 }
 0x3d7   : > { %v11183_v30 = vadd.f32 %v8485_v34, %v10920_v6  ;;  %v2154_v1 = vpop.f32.mrb[101].mxu1  ;;  %v11201_v6 = vpop.xlane.xlu1 %1027 }
 0x3d8   : > { %v8486_v19 = vpop.f32.mrb[102].mxu1  ;;  %v11194_v33 = vadd.f32 %v2154_v1, %v10934_v29 }
 0x3d9   : > { %14345 = vst [vmem:[#allocation71_spill] sm:$0xff] %v11183_v30  ;;  %v11188_v25 = vadd.f32 %v8486_v19, %v10927_v27  ;;  %v2157_v9 = vpop.f32.mrb[103].mxu1  ;;  %2213 = vmax.xlane.f32.xlu0 %v11183_v30  ;;  %v11204_v19 = vpop.xlane.xlu0 %1029 }
 0x3da   : > { %14347 = vst [vmem:[#allocation73_spill] sm:$0xff] %v11194_v33  ;;  %v11198_v34 = vadd.f32 %v2157_v9, %v10938_v59 }
 0x3db   : > { %14346 = vst [vmem:[#allocation72_spill] sm:$0xff] %v11188_v25  ;;  %2215 = vmax.xlane.f32.xlu1 %v11188_v25  ;;  %v11206_v27 = vpop.xlane.xlu1 %1031 }
 0x3dc   : > { %14348 = vst [vmem:[#allocation74_spill] sm:$0xff] %v11198_v34  ;;  %14349 = vst [vmem:[#allocation75_spill] sm:$0xff] %v11206_v27 }
 0x3dd   : > { %2209 = vmax.xlane.f32.xlu0 %v11194_v33  ;;  %v11208_v23 = vpop.xlane.xlu0 %1033 }
 0x3de   : > { %14350 = vst [vmem:[#allocation76_spill] sm:$0xff] %v11208_v23  ;;  %v1546_v23 = vsub.f32 %v10924_v22, %v1521_v54 }
 0x3df   : > { %2211 = vmax.xlane.f32.xlu1 %v11198_v34  ;;  %v11217_v33 = vpop.xlane.xlu1 %1035 }
 0x3e6   : > { %v8489_v30 = vpop.f32.mrb[104].mxu1 }
 0x3e7   : > { %v11211_v1 = vadd.f32 %v8489_v30, %v10947_v48  ;;  %v2170_v29 = vpop.f32.mrb[105].mxu1  ;;  %v1544_v30 = vsub.f32 %v10941_v60, %v1517_v38  ;;  %v11225_v48 = vpop.xlane.xlu0 %1037  ;;  %v1547_v60 = vsub.f32 %v10930_v14, %v11140_v39  ;;  %v1548_v38 = vsub.f32 %v10969_v2, %v11148_v28 }
 0x3e8   : > { %v8490_v25 = vpop.f32.mrb[106].mxu1  ;;  %v11220_v34 = vadd.f32 %v2170_v29, %v10962_v56  ;;  %v1568_v29 = vmul.f32 1.442695, %v1546_v23  ;;  %v11234_v56 = vpop.xlane.xlu1 %1039  ;;  %v1550_v39 = vsub.f32 %v10952_v46, %v11144_v31  ;;  %v1552_v31 = vsub.f32 %v10997_v50, %v11159_v62 }
 0x3e9   : > { %v11214_v9 = vadd.f32 %v8490_v25, %v10955_v53  ;;  %v2173_v59 = vpop.f32.mrb[107].mxu1  ;;  %2221 = vmax.xlane.f32.xlu0 %v11211_v1  ;;  %v1545_v25 = vsub.f32 %v10944_v3, %v11142_v40  ;;  %v1564_v53 = vmul.f32 1.442695, %v1544_v30  ;;  %v1570_v30 = vmul.f32 1.442695, %v1547_v60 }
 0x3ea   : > { %v11228_v27 = vadd.f32 %v2173_v59, %v10966_v57  ;;  %9351 = vpow2.f32 %v1568_v29  ;;  %v1572_v28 = vmul.f32 1.442695, %v1548_v38  ;;  %v1576_v46 = vmul.f32 1.442695, %v1550_v39 }
 0x3eb   : > { %14351 = vst [vmem:[#allocation77_spill] sm:$0xff] %v11214_v9  ;;  %2223 = vmax.xlane.f32.xlu1 %v11214_v9  ;;  %v1566_v22 = vmul.f32 1.442695, %v1545_v25  ;;  %9353 = vpow2.f32 %v1564_v53  ;;  %v1549_v25 = vsub.f32 %v10972_v0, %v11150_v35  ;;  %v1551_v0 = vsub.f32 %v10958_v49, %v11146_v37 }
 0x3ec   : > { %v1553_v37 = vsub.f32 %v11000_v24, %v11169_v21  ;;  %v1580_v50 = vmul.f32 1.442695, %v1552_v31 }
 0x3ed   : > { %2217 = vmax.xlane.f32.xlu0 %v11220_v34  ;;  %9355 = vpow2.f32 %v1566_v22  ;;  %v1574_v35 = vmul.f32 1.442695, %v1549_v25  ;;  %v1578_v49 = vmul.f32 1.442695, %v1551_v0  ;;  %v1555_v25 = vsub.f32 %v10986_v51, %v11154_v42 }
 0x3ef   : > { %2219 = vmax.xlane.f32.xlu1 %v11228_v27 }
 0x3f1   : > { %v1593_v9 = vpop.xlane.xlu0 %1592 }
 0x3f4   : > { %v11261_v60 = vpop.eup %9351 }
 0x3f5   : > { %v1595_v59 = vpop.xlane.xlu1 %1594  ;;  %v1589_v54 = vpop.xlane.xlu0 %1588 }
 0x3f6   : > { %v8493_v3 = vpop.f32.mrb[108].mxu1  ;;  %9357 = vrcp.f32 %v1595_v59  ;;  %v11265_v59 = vpop.eup %9353 }
 0x3f7   : > { %v11241_v23 = vadd.f32 %v8493_v3, %v10975_v11  ;;  %v2186_v40 = vpop.f32.mrb[109].mxu1  ;;  %9359 = vrcp.f32 %v1589_v54  ;;  %v11268_v54 = vpop.eup %9355 }
 0x3f8   : > { %v8494_v29 = vpop.f32.mrb[110].mxu1  ;;  %9361 = vrcp.f32 %v1593_v9  ;;  %v11252_v22 = vadd.f32 %v2186_v40, %v10990_v63  ;;  %v1554_v40 = vsub.f32 %v10980_v4, %v11152_v61  ;;  %v1041_v4 = vsub.f32 %v10873_v12, %v11122_v26  ;;  %v14353_v12 = vld [vmem:[#allocation36_spill] sm:$0xff] }
 0x3f9   : > { %v11246_v14 = vadd.f32 %v8494_v29, %v10983_v16  ;;  %v2189_v53 = vpop.f32.mrb[111].mxu1  ;;  %2229 = vmax.xlane.f32.xlu0 %v11241_v23  ;;  %v1591_v2 = vpop.xlane.xlu1 %1590  ;;  %v1582_v29 = vmul.f32 1.442695, %v1553_v37  ;;  %v1043_v26 = vsub.f32 %v14353_v12, %v11118_v32  ;;  %v14356_v37 = vld [vmem:[#allocation27_spill] sm:$0xff]  ;;  %v14365_v12 = vld [vmem:[#allocation57_spill] sm:$0xff] }
 0x3fa   : > { %9363 = vrcp.f32 %v1591_v2  ;;  %v11258_v9 = vadd.f32 %v2189_v53, %v10994_v47  ;;  %v1584_v61 = vmul.f32 1.442695, %v1554_v40 }
 0x3fb   : > { %2231 = vmax.xlane.f32.xlu1 %v11246_v14  ;;  %9365 = vpow2.f32 %v1570_v30  ;;  %v1061_v32 = vmul.f32 1.442695, %v1043_v26 }
 0x3fc   : > { %9367 = vpow2.f32 %v1572_v28 }
 0x3fd   : > { %2225 = vmax.xlane.f32.xlu0 %v11252_v22  ;;  %9369 = vpow2.f32 %v1574_v35  ;;  %v14354_v35 = vld [vmem:[#allocation26_spill] sm:$0xff] }
 0x3fe   : > { %9371 = vpow2.f32 %v1576_v46 }
 0x3ff   : > { %2227 = vmax.xlane.f32.xlu1 %v11258_v9  ;;  %9373 = vpow2.f32 %v1578_v49 }
 0x400   : > { %v9358_v38 = vpop.eup %9357  ;;  %9375 = vpow2.f32 %v1580_v50  ;;  %v1046_v50 = vsub.f32 %v11017_v55, %v11178_v44  ;;  %v1048_v55 = vsub.f32 %v11029_v8, %v11185_v5  ;;  %v14358_v44 = vld [vmem:[#allocation29_spill] sm:$0xff]  ;;  %v1050_v8 = vsub.f32 %v11041_v18, %v11201_v6  ;;  %v14359_v5 = vld [vmem:[#allocation30_spill] sm:$0xff]  ;;  %v14361_v6 = vld [vmem:[#allocation75_spill] sm:$0xff] }
 0x401   : > { %1596 = vadd.xlane.f32.xlu0 %v11265_v59  ;;  %v9360_v3 = vpop.eup %9359  ;;  %v1639_v24 = vmul.f32 %v9358_v38, %v11133_v52  ;;  %v14352_v52 = vld [vmem:[#allocation40_spill] sm:$0xff]  ;;  %9377 = vpow2.f32 %v1582_v29 }
 0x402   : > { %v9362_v62 = vpop.eup %9361  ;;  %v1636_v21 = vmul.f32 %v9360_v3, %v11131_v41  ;;  %v1042_v28 = vsub.f32 %v14352_v52, %v11120_v43  ;;  %v1586_v41 = vmul.f32 1.442695, %v1555_v25  ;;  %9379 = vpow2.f32 %v1584_v61  ;;  %v14355_v43 = vld [vmem:[#allocation38_spill] sm:$0xff]  ;;  %v14362_v18 = vld [vmem:[#allocation56_spill] sm:$0xff] }
 0x403   : > { %1598 = vadd.xlane.f32.xlu1 %v11268_v54  ;;  %v1638_v39 = vmul.f32 %v9362_v62, %v11128_v13  ;;  %v1057_v13 = vmul.f32 1.442695, %v1041_v4  ;;  %v1044_v31 = vsub.f32 %v14355_v43, %v11116_v36  ;;  %v1045_v3 = vsub.f32 %v11011_v10, %v11175_v20  ;;  %v14357_v62 = vld [vmem:[#allocation28_spill] sm:$0xff]  ;;  %v14366_v43 = vld [vmem:[#allocation58_spill] sm:$0xff] }
 0x404   : > { %v9364_v30 = vpop.eup %9363  ;;  %v1059_v49 = vmul.f32 1.442695, %v1042_v28  ;;  %9381 = vpow2.f32 %v1586_v41  ;;  %v1047_v20 = vsub.f32 %v11025_v17, %v11180_v45  ;;  %v1067_v29 = vmul.f32 1.442695, %v1046_v50  ;;  %v14363_v28 = vld [vmem:[#allocation31_spill] sm:$0xff] }
 0x405   : > { %1600 = vadd.xlane.f32.xlu0 %v11261_v60  ;;  %v1637_v53 = vmul.f32 %v9364_v30, %v11137_v58  ;;  %v11282_v2 = vpop.eup %9365  ;;  %v1653_v58 = vpack.c.bf16 %v1639_v24, %v1638_v39  ;;  %9383 = vpow2.f32 %v1057_v13  ;;  %v1063_v36 = vmul.f32 1.442695, %v1044_v31 }
 0x406   : > { %v11288_v42 = vpop.eup %9367  ;;  %9385 = vpow2.f32 %v1059_v49  ;;  %v1065_v25 = vmul.f32 1.442695, %v1045_v3  ;;  %v1049_v45 = vsub.f32 %v11035_v7, %v11191_v15  ;;  %v14360_v7 = vld [vmem:[#allocation55_spill] sm:$0xff]  ;;  %v1052_v52 = vsub.f32 %v14362_v18, %v14361_v6  ;;  %v14367_v49 = vld [vmem:[#allocation32_spill] sm:$0xff] }
 0x407   : > { %1602 = vadd.xlane.f32.xlu1 %v11282_v2  ;;  %v1652_v51 = vpack.c.bf16 %v1637_v53, %v1636_v21  ;;  %v11293_v0 = vpop.eup %9369  ;;  %9387 = vpow2.f32 %v1061_v32  ;;  %v1069_v21 = vmul.f32 1.442695, %v1047_v20  ;;  %v1071_v53 = vmul.f32 1.442695, %v1048_v55  ;;  %v14368_v3 = vld [vmem:[#allocation60_spill] sm:$0xff]  ;;  %v14370_v20 = vld [vmem:[#allocation33_spill] sm:$0xff] }
 0x408   : > { %v11299_v46 = vpop.eup %9371  ;;  %9389 = vpow2.f32 %v1063_v36  ;;  %v1073_v61 = vmul.f32 1.442695, %v1049_v45  ;;  %v1051_v15 = vsub.f32 %v14360_v7, %v11204_v19  ;;  %v14364_v19 = vld [vmem:[#allocation76_spill] sm:$0xff]  ;;  %v1054_v31 = vsub.f32 %v14366_v43, %v11217_v33  ;;  %v14369_v33 = vld [vmem:[#allocation61_spill] sm:$0xff]  ;;  %v14372_v18 = vld [vmem:[#allocation67_spill] sm:$0xff] }
 0x409   : > { %1604 = vadd.xlane.f32.xlu0 %v11288_v42  ;;  %8415 = vmatprep.mubr.bf16.mxu0 %v1652_v51  ;;  %v11305_v38 = vpop.eup %9373  ;;  %9391 = vpow2.f32 %v1065_v25  ;;  %v1075_v51 = vmul.f32 1.442695, %v1050_v8  ;;  %v1053_v26 = vsub.f32 %v14365_v12, %v14364_v19  ;;  %v1055_v36 = vsub.f32 %v14368_v3, %v11225_v48  ;;  %v14374_v12 = vld [vmem:[#allocation68_spill] sm:$0xff]  ;;  %v14375_v43 = vld [vmem:[#allocation70_spill] sm:$0xff] }
 0x40a   : > { %8416 = vmatmul.mubr.bf16.vlgmr.msra.gmra.mrb[32].mxu0 %v1653_v58  ;;  %v11311_v40 = vpop.eup %9375  ;;  %9393 = vpow2.f32 %v1067_v29  ;;  %v1077_v58 = vmul.f32 1.442695, %v1051_v15  ;;  %v1056_v25 = vsub.f32 %v14369_v33, %v11234_v56 }
 0x40b   : > { %8432 = vmatpush3.bf16.msra.mxu0 %v14354_v35  ;;  %1606 = vadd.xlane.f32.xlu1 %v11293_v0  ;;  %v11317_v30 = vpop.eup %9377  ;;  %9395 = vpow2.f32 %v1069_v21  ;;  %v1079_v35 = vmul.f32 1.442695, %v1052_v52  ;;  %v1081_v32 = vmul.f32 1.442695, %v1053_v26  ;;  %v1085_v55 = vmul.f32 1.442695, %v1055_v36 }
 0x40c   : > { %8433 = vmatprep.subr.bf16.mxu0 %v14356_v37  ;;  %v11323_v10 = vpop.eup %9379  ;;  %9397 = vpow2.f32 %v1071_v53  ;;  %v14371_v21 = vld [vmem:[#allocation53_spill] sm:$0xff] }
 0x40d   : > { %1608 = vadd.xlane.f32.xlu0 %v11299_v46  ;;  %9399 = vpow2.f32 %v1073_v61 }
 0x40e   : > { %v11329_v24 = vpop.eup %9381  ;;  %9401 = vpow2.f32 %v1075_v51 }
 0x40f   : > { %8434 = vmatpush3.bf16.msra.mxu0 %v14356_v37  ;;  %1610 = vadd.xlane.f32.xlu1 %v11305_v38  ;;  %v11335_v17 = vpop.eup %9383  ;;  %9403 = vpow2.f32 %v1077_v58 }
 0x410   : > { %8435 = vmatprep.subr.bf16.mxu0 %v14357_v62  ;;  %v11341_v4 = vpop.eup %9385  ;;  %9405 = vpow2.f32 %v1079_v35 }
 0x411   : > { %1612 = vadd.xlane.f32.xlu0 %v11311_v40  ;;  %v11347_v39 = vpop.eup %9387  ;;  %9407 = vpow2.f32 %v1081_v32 }
 0x412   : > { %v11353_v41 = vpop.eup %9389 }
 0x413   : > { %8436 = vmatpush3.bf16.msra.mxu0 %v14357_v62  ;;  %1614 = vadd.xlane.f32.xlu1 %v11317_v30  ;;  %v11359_v13 = vpop.eup %9391  ;;  %v1083_v62 = vmul.f32 1.442695, %v1054_v31 }
 0x414   : > { %8437 = vmatprep.subr.bf16.mxu0 %v14358_v44  ;;  %v11365_v37 = vpop.eup %9393 }
 0x415   : > { %1616 = vadd.xlane.f32.xlu0 %v11323_v10  ;;  %v11371_v50 = vpop.eup %9395  ;;  %9409 = vpow2.f32 %v1083_v62 }
 0x416   : > { %v11377_v29 = vpop.eup %9397  ;;  %9411 = vpow2.f32 %v1085_v55  ;;  %v14376_v55 = vld [vmem:[#allocation71_spill] sm:$0xff] }
 0x417   : > { %8438 = vmatpush3.bf16.msra.mxu0 %v14358_v44  ;;  %1618 = vadd.xlane.f32.xlu1 %v11329_v24  ;;  %v11381_v48 = vpop.eup %9399  ;;  %v1087_v44 = vmul.f32 1.442695, %v1056_v25 }
 0x418   : > { %8439 = vmatprep.subr.bf16.mxu0 %v14359_v5  ;;  %v11385_v56 = vpop.eup %9401 }
 0x419   : > { %1089 = vadd.xlane.f32.xlu0 %v11335_v17  ;;  %v11388_v45 = vpop.eup %9403  ;;  %9413 = vpow2.f32 %v1087_v44 }
 0x41a   : > { %v11391_v53 = vpop.eup %9405 }
 0x41b   : > { %8440 = vmatpush3.bf16.msra.mxu0 %v14359_v5  ;;  %1091 = vadd.xlane.f32.xlu1 %v11341_v4  ;;  %v11394_v8 = vpop.eup %9407 }
 0x41c   : > { %8441 = vmatprep.subr.bf16.mxu0 %v14363_v28 }
 0x41d   : > { %1093 = vadd.xlane.f32.xlu0 %v11347_v39 }
 0x41f   : > { %8442 = vmatpush3.bf16.msra.mxu0 %v14363_v28  ;;  %1095 = vadd.xlane.f32.xlu1 %v11353_v41  ;;  %v11397_v5 = vpop.eup %9409  ;;  %v14373_v28 = vld [vmem:[#allocation69_spill] sm:$0xff] }
 0x420   : > { %8443 = vmatprep.subr.bf16.mxu0 %v14367_v49  ;;  %v11400_v61 = vpop.eup %9411 }
 0x421   : > { %1097 = vadd.xlane.f32.xlu0 %v11359_v13 }
 0x423   : > { %8444 = vmatpush3.bf16.msra.mxu0 %v14367_v49  ;;  %1099 = vadd.xlane.f32.xlu1 %v11365_v37  ;;  %v11403_v7 = vpop.eup %9413 }
 0x424   : > { %8445 = vmatprep.subr.bf16.mxu0 %v14370_v20 }
 0x425   : > { %1101 = vadd.xlane.f32.xlu0 %v11371_v50 }
 0x427   : > { %8446 = vmatpush3.bf16.msra.mxu0 %v14370_v20  ;;  %1103 = vadd.xlane.f32.xlu1 %v11377_v29 }
 0x428   : > { %8495 = vmatprep.subr.bf16.mxu0 %v14371_v21 }
 0x429   : > { %1105 = vadd.xlane.f32.xlu0 %v11381_v48 }
 0x42b   : > { %1107 = vadd.xlane.f32.xlu1 %v11385_v56 }
 0x42d   : > { %1109 = vadd.xlane.f32.xlu0 %v11388_v45 }
 0x42f   : > { %1111 = vadd.xlane.f32.xlu1 %v11391_v53 }
 0x431   : > { %1113 = vadd.xlane.f32.xlu0 %v11394_v8 }
 0x433   : > { %1115 = vadd.xlane.f32.xlu1 %v11397_v5 }
 0x435   : > { %1117 = vadd.xlane.f32.xlu0 %v11400_v61 }
 0x437   : > { %1119 = vadd.xlane.f32.xlu1 %v11403_v7 }
 0x456   : > { %v2206_v15 = vpop.xlane.xlu0 %2205 }
 0x457   : > { %v2235_v52 = vsub.f32 %v14372_v18, %v2206_v15  ;;  %v14377_v15 = vld [vmem:[#allocation73_spill] sm:$0xff] }
 0x458   : > { %v2208_v51 = vpop.xlane.xlu1 %2207 }
 0x459   : > { %v2236_v26 = vsub.f32 %v14374_v12, %v2208_v51  ;;  %v2253_v49 = vmul.f32 1.442695, %v2235_v52  ;;  %v14378_v52 = vld [vmem:[#allocation72_spill] sm:$0xff] }
 0x45a   : > { %v2202_v6 = vpop.xlane.xlu0 %2201 }
 0x45b   : > { %v2233_v58 = vsub.f32 %v14373_v28, %v2202_v6  ;;  %v2255_v3 = vmul.f32 1.442695, %v2236_v26 }
 0x45c   : > { %v2204_v19 = vpop.xlane.xlu1 %2203 }
 0x45d   : > { %v2249_v35 = vmul.f32 1.442695, %v2233_v58  ;;  %v2234_v31 = vsub.f32 %v14375_v43, %v2204_v19  ;;  %v14379_v19 = vld [vmem:[#allocation74_spill] sm:$0xff] }
 0x45f   : > { %9415 = vpow2.f32 %v2249_v35  ;;  %v2251_v32 = vmul.f32 1.442695, %v2234_v31 }
 0x461   : > { %9417 = vpow2.f32 %v2251_v32 }
 0x462   : > { %9419 = vpow2.f32 %v2253_v49 }
 0x463   : > { %9421 = vpow2.f32 %v2255_v3 }
 0x466   : > { %v2214_v36 = vpop.xlane.xlu0 %2213 }
 0x467   : > { %v2239_v44 = vsub.f32 %v14376_v55, %v2214_v36 }
 0x468   : > { %v2216_v62 = vpop.xlane.xlu1 %2215 }
 0x469   : > { %v11410_v33 = vpop.eup %9415  ;;  %v2240_v28 = vsub.f32 %v14378_v52, %v2216_v62  ;;  %v2261_v35 = vmul.f32 1.442695, %v2239_v44 }
 0x46a   : > { %2281 = vadd.xlane.f32.xlu0 %v11410_v33  ;;  %v2210_v25 = vpop.xlane.xlu0 %2209 }
 0x46b   : > { %v11413_v20 = vpop.eup %9417  ;;  %v2237_v51 = vsub.f32 %v14377_v15, %v2210_v25  ;;  %v2263_v31 = vmul.f32 1.442695, %v2240_v28 }
 0x46c   : > { %2283 = vadd.xlane.f32.xlu1 %v11413_v20  ;;  %v2212_v6 = vpop.xlane.xlu1 %2211  ;;  %v11418_v18 = vpop.eup %9419 }
 0x46d   : > { %v2257_v58 = vmul.f32 1.442695, %v2237_v51  ;;  %v2238_v12 = vsub.f32 %v14379_v19, %v2212_v6  ;;  %v11423_v26 = vpop.eup %9421  ;;  %v14380_v51 = vld [vmem:[#allocation77_spill] sm:$0xff] }
 0x46e   : > { %2285 = vadd.xlane.f32.xlu0 %v11418_v18 }
 0x46f   : > { %9423 = vpow2.f32 %v2257_v58  ;;  %v2259_v43 = vmul.f32 1.442695, %v2238_v12 }
 0x470   : > { %2287 = vadd.xlane.f32.xlu1 %v11423_v26 }
 0x471   : > { %9425 = vpow2.f32 %v2259_v43 }
 0x472   : > { %9427 = vpow2.f32 %v2261_v35 }
 0x473   : > { %9429 = vpow2.f32 %v2263_v31 }
 0x476   : > { %v2222_v49 = vpop.xlane.xlu0 %2221 }
 0x477   : > { %v2243_v25 = vsub.f32 %v11211_v1, %v2222_v49 }
 0x478   : > { %v2224_v32 = vpop.xlane.xlu1 %2223 }
 0x479   : > { %v11426_v3 = vpop.eup %9423  ;;  %v2244_v6 = vsub.f32 %v14380_v51, %v2224_v32  ;;  %v2269_v19 = vmul.f32 1.442695, %v2243_v25 }
 0x47a   : > { %2289 = vadd.xlane.f32.xlu0 %v11426_v3  ;;  %v2218_v36 = vpop.xlane.xlu0 %2217 }
 0x47b   : > { %v11429_v62 = vpop.eup %9425  ;;  %v2241_v55 = vsub.f32 %v11220_v34, %v2218_v36  ;;  %v2271_v34 = vmul.f32 1.442695, %v2244_v6 }
 0x47c   : > { %2291 = vadd.xlane.f32.xlu1 %v11429_v62  ;;  %v2220_v44 = vpop.xlane.xlu1 %2219  ;;  %v11434_v15 = vpop.eup %9427 }
 0x47d   : > { %v2265_v52 = vmul.f32 1.442695, %v2241_v55  ;;  %v2242_v28 = vsub.f32 %v11228_v27, %v2220_v44  ;;  %v11439_v58 = vpop.eup %9429 }
 0x47e   : > { %2293 = vadd.xlane.f32.xlu0 %v11434_v15 }
 0x47f   : > { %9431 = vpow2.f32 %v2265_v52  ;;  %v2267_v12 = vmul.f32 1.442695, %v2242_v28 }
 0x480   : > { %2295 = vadd.xlane.f32.xlu1 %v11439_v58 }
 0x481   : > { %9433 = vpow2.f32 %v2267_v12 }
 0x482   : > { %9435 = vpow2.f32 %v2269_v19 }
 0x483   : > { %9437 = vpow2.f32 %v2271_v34 }
 0x486   : > { %v2230_v1 = vpop.xlane.xlu0 %2229 }
 0x487   : > { %v2247_v35 = vsub.f32 %v11241_v23, %v2230_v1 }
 0x488   : > { %v2232_v43 = vpop.xlane.xlu1 %2231 }
 0x489   : > { %v11443_v31 = vpop.eup %9431  ;;  %v2277_v27 = vmul.f32 1.442695, %v2247_v35  ;;  %v2248_v25 = vsub.f32 %v11246_v14, %v2232_v43 }
 0x48a   : > { %2297 = vadd.xlane.f32.xlu0 %v11443_v31  ;;  %v2226_v49 = vpop.xlane.xlu0 %2225 }
 0x48b   : > { %v11446_v32 = vpop.eup %9433  ;;  %v2245_v36 = vsub.f32 %v11252_v22, %v2226_v49  ;;  %9439 = vpow2.f32 %v2277_v27  ;;  %v2279_v19 = vmul.f32 1.442695, %v2248_v25 }
 0x48c   : > { %2299 = vadd.xlane.f32.xlu1 %v11446_v32  ;;  %v2228_v55 = vpop.xlane.xlu1 %2227  ;;  %v11451_v44 = vpop.eup %9435 }
 0x48d   : > { %v2273_v51 = vmul.f32 1.442695, %v2245_v36  ;;  %v2246_v23 = vsub.f32 %v11258_v9, %v2228_v55  ;;  %v11455_v52 = vpop.eup %9437 }
 0x48e   : > { %2301 = vadd.xlane.f32.xlu0 %v11451_v44  ;;  %v1597_v6 = vpop.xlane.xlu0 %1596 }
 0x48f   : > { %9441 = vpow2.f32 %v2273_v51  ;;  %v2275_v28 = vmul.f32 1.442695, %v2246_v23 }
 0x490   : > { %9443 = vrcp.f32 %v1597_v6  ;;  %2303 = vadd.xlane.f32.xlu1 %v11455_v52  ;;  %v1599_v14 = vpop.xlane.xlu1 %1598 }
 0x491   : > { %9445 = vpow2.f32 %v2275_v28 }
 0x492   : > { %9447 = vrcp.f32 %v1599_v14  ;;  %v1601_v22 = vpop.xlane.xlu0 %1600 }
 0x493   : > { %9449 = vrcp.f32 %v1601_v22 }
 0x494   : > { %9451 = vpow2.f32 %v2279_v19  ;;  %v1603_v12 = vpop.xlane.xlu1 %1602 }
 0x495   : > { %9453 = vrcp.f32 %v1603_v12  ;;  %v11458_v34 = vpop.eup %9439 }
 0x496   : > { %v1605_v9 = vpop.xlane.xlu0 %1604 }
 0x497   : > { %9455 = vrcp.f32 %v1605_v9 }
 0x498   : > { %v1607_v1 = vpop.xlane.xlu1 %1606 }
 0x499   : > { %v11460_v35 = vpop.eup %9441  ;;  %9457 = vrcp.f32 %v1607_v1 }
 0x49a   : > { %v9444_v43 = vpop.eup %9443  ;;  %2305 = vadd.xlane.f32.xlu0 %v11460_v35  ;;  %v1609_v27 = vpop.xlane.xlu0 %1608 }
 0x49b   : > { %v11463_v49 = vpop.eup %9445  ;;  %9459 = vrcp.f32 %v1609_v27  ;;  %v1640_v51 = vmul.f32 %v9444_v43, %v11265_v59 }
 0x49c   : > { %v9448_v36 = vpop.eup %9447  ;;  %2307 = vadd.xlane.f32.xlu1 %v11463_v49  ;;  %v1611_v25 = vpop.xlane.xlu1 %1610 }
 0x49d   : > { %v9450_v55 = vpop.eup %9449  ;;  %9461 = vrcp.f32 %v1611_v25  ;;  %v1641_v23 = vmul.f32 %v9448_v36, %v11268_v54 }
 0x49e   : > { %v11468_v6 = vpop.eup %9451  ;;  %2309 = vadd.xlane.f32.xlu0 %v11458_v34  ;;  %v1613_v28 = vpop.xlane.xlu0 %1612  ;;  %v1642_v12 = vmul.f32 %v9450_v55, %v11261_v60 }
 0x49f   : > { %v9454_v19 = vpop.eup %9453  ;;  %9463 = vrcp.f32 %v1613_v28  ;;  %v1654_v14 = vpack.c.bf16 %v1641_v23, %v1640_v51 }
 0x4a0   : > { %2311 = vadd.xlane.f32.xlu1 %v11468_v6  ;;  %v1615_v22 = vpop.xlane.xlu1 %1614  ;;  %v1643_v9 = vmul.f32 %v9454_v19, %v11282_v2 }
 0x4a1   : > { %v9456_v1 = vpop.eup %9455  ;;  %9465 = vrcp.f32 %v1615_v22  ;;  %8419 = vmatprep.mubr.bf16.mxu0 %v1654_v14 }
 0x4a2   : > { %v1617_v59 = vpop.xlane.xlu0 %1616  ;;  %v1655_v54 = vpack.c.bf16 %v1643_v9, %v1642_v12  ;;  %v1644_v36 = vmul.f32 %v9456_v1, %v11288_v42 }
 0x4a3   : > { %v9458_v43 = vpop.eup %9457  ;;  %9467 = vrcp.f32 %v1617_v59 }
 0x4a4   : > { %v1619_v27 = vpop.xlane.xlu1 %1618  ;;  %8420 = vmatmul.mubr.bf16.gmra.mrb[36].mxu0 %v1655_v54  ;;  %v1645_v25 = vmul.f32 %v9458_v43, %v11293_v0 }
 0x4a5   : > { %v9460_v51 = vpop.eup %9459  ;;  %9469 = vrcp.f32 %v1619_v27 }
 0x4a6   : > { %v1090_v23 = vpop.xlane.xlu0 %1089  ;;  %v1656_v28 = vpack.c.bf16 %v1645_v25, %v1644_v36  ;;  %v1646_v55 = vmul.f32 %v9460_v51, %v11299_v46 }
 0x4a7   : > { %v9462_v60 = vpop.eup %9461  ;;  %9471 = vrcp.f32 %v1090_v23 }
 0x4a8   : > { %v1092_v2 = vpop.xlane.xlu1 %1091  ;;  %8423 = vmatprep.mubr.bf16.mxu0 %v1656_v28  ;;  %v1647_v19 = vmul.f32 %v9462_v60, %v11305_v38 }
 0x4a9   : > { %v9464_v14 = vpop.eup %9463  ;;  %9473 = vrcp.f32 %v1092_v2 }
 0x4aa   : > { %v1094_v22 = vpop.xlane.xlu0 %1093  ;;  %v1657_v12 = vpack.c.bf16 %v1647_v19, %v1646_v55  ;;  %v1648_v0 = vmul.f32 %v9464_v14, %v11311_v40 }
 0x4ab   : > { %v9466_v9 = vpop.eup %9465  ;;  %9475 = vrcp.f32 %v1094_v22 }
 0x4ac   : > { %v1096_v42 = vpop.xlane.xlu1 %1095  ;;  %8424 = vmatmul.mubr.bf16.gmra.mrb[40].mxu0 %v1657_v12  ;;  %v1649_v1 = vmul.f32 %v9466_v9, %v11317_v30 }
 0x4ad   : > { %v9468_v59 = vpop.eup %9467  ;;  %9477 = vrcp.f32 %v1096_v42 }
 0x4ae   : > { %v1098_v54 = vpop.xlane.xlu0 %1097  ;;  %v1658_v43 = vpack.c.bf16 %v1649_v1, %v1648_v0  ;;  %v1650_v38 = vmul.f32 %v9468_v59, %v11323_v10 }
 0x4af   : > { %v9470_v27 = vpop.eup %9469  ;;  %9479 = vrcp.f32 %v1098_v54 }
 0x4b0   : > { %v1100_v46 = vpop.xlane.xlu1 %1099  ;;  %8427 = vmatprep.mubr.bf16.mxu0 %v1658_v43  ;;  %v1651_v36 = vmul.f32 %v9470_v27, %v11329_v24 }
 0x4b1   : > { %v9472_v25 = vpop.eup %9471  ;;  %9481 = vrcp.f32 %v1100_v46 }
 0x4b2   : > { %v1102_v51 = vpop.xlane.xlu0 %1101  ;;  %v1659_v23 = vpack.c.bf16 %v1651_v36, %v1650_v38  ;;  %v1137_v30 = vmul.f32 %v9472_v25, %v11335_v17 }
 0x4b3   : > { %v9474_v28 = vpop.eup %9473  ;;  %9483 = vrcp.f32 %v1102_v51 }
 0x4b4   : > { %v1104_v40 = vpop.xlane.xlu1 %1103  ;;  %8428 = vmatmul.mubr.bf16.gmra.mrb[44].mxu0 %v1659_v23  ;;  %v1138_v60 = vmul.f32 %v9474_v28, %v11341_v4 }
 0x4b5   : > { %v9476_v2 = vpop.eup %9475  ;;  %9485 = vrcp.f32 %v1104_v40 }
 0x4b6   : > { %v1106_v55 = vpop.xlane.xlu0 %1105  ;;  %v1153_v19 = vpack.c.bf16 %v1138_v60, %v1137_v30  ;;  %v1139_v10 = vmul.f32 %v9476_v2, %v11347_v39  ;;  %v14381_v39 = vld [vmem:[#allocation54_spill] sm:$0xff] }
 0x4b7   : > { %v9478_v14 = vpop.eup %9477  ;;  %9487 = vrcp.f32 %v1106_v55 }
 0x4b8   : > { %v1140_v24 = vmul.f32 %v9478_v14, %v11353_v41  ;;  %v1108_v22 = vpop.xlane.xlu1 %1107  ;;  %8447 = vmatprep.mubr.bf16.mxu0 %v1153_v19  ;;  %v14384_v19 = vld [vmem:[#allocation63_spill] sm:$0xff] }
 0x4b9   : > { %v9480_v12 = vpop.eup %9479  ;;  %9489 = vrcp.f32 %v1108_v22  ;;  %v14385_v22 = vld [vmem:[#allocation64_spill] sm:$0xff] }
 0x4ba   : > { %v1110_v9 = vpop.xlane.xlu0 %1109  ;;  %v1154_v42 = vpack.c.bf16 %v1140_v24, %v1139_v10  ;;  %v1141_v4 = vmul.f32 %v9480_v12, %v11359_v13  ;;  %v14382_v13 = vld [vmem:[#allocation59_spill] sm:$0xff] }
 0x4bb   : > { %v9482_v0 = vpop.eup %9481  ;;  %9491 = vrcp.f32 %v1110_v9 }
 0x4bc   : > { %v1112_v17 = vpop.xlane.xlu1 %1111  ;;  %8448 = vmatmul.mubr.bf16.vlgmr.msra.gmra.mrb[32].mxu0 %v1154_v42  ;;  %v1142_v1 = vmul.f32 %v9482_v0, %v11365_v37  ;;  %v14386_v42 = vld [vmem:[#allocation65_spill] sm:$0xff] }
 0x4bd   : > { %v9484_v59 = vpop.eup %9483  ;;  %9493 = vrcp.f32 %v1112_v17  ;;  %8496 = vmatpush3.bf16.msra.mxu0 %v14371_v21 }
 0x4be   : > { %8497 = vmatprep.subr.bf16.mxu0 %v14381_v39  ;;  %v1114_v41 = vpop.xlane.xlu0 %1113  ;;  %v1155_v54 = vpack.c.bf16 %v1142_v1, %v1141_v4  ;;  %v1143_v46 = vmul.f32 %v9484_v59, %v11371_v50  ;;  %v14383_v50 = vld [vmem:[#allocation62_spill] sm:$0xff] }
 0x4bf   : > { %v9486_v43 = vpop.eup %9485  ;;  %9495 = vrcp.f32 %v1114_v41 }
 0x4c0   : > { %v1116_v27 = vpop.xlane.xlu1 %1115  ;;  %8451 = vmatprep.mubr.bf16.mxu0 %v1155_v54  ;;  %v1144_v38 = vmul.f32 %v9486_v43, %v11377_v29 }
 0x4c1   : > { %v9488_v36 = vpop.eup %9487  ;;  %9497 = vrcp.f32 %v1116_v27  ;;  %8498 = vmatpush3.bf16.msra.mxu0 %v14381_v39 }
 0x4c2   : > { %8499 = vmatprep.subr.bf16.mxu0 %v14382_v13  ;;  %v1118_v37 = vpop.xlane.xlu0 %1117  ;;  %v1156_v21 = vpack.c.bf16 %v1144_v38, %v1143_v46  ;;  %v1145_v23 = vmul.f32 %v9488_v36, %v11381_v48 }
 0x4c3   : > { %v9490_v25 = vpop.eup %9489  ;;  %9499 = vrcp.f32 %v1118_v37  ;;  %v9135_v37 = vld [vmem:[#allocation7 + $0x180] ss:$8 sps:$4 sm:$0xff]  }
 0x4c4   : > { %v1120_v51 = vpop.xlane.xlu1 %1119  ;;  %8452 = vmatmul.mubr.bf16.gmra.mrb[36].mxu0 %v1156_v21  ;;  %v1146_v28 = vmul.f32 %v9490_v25, %v11385_v56 }
 0x4c5   : > { %v9492_v40 = vpop.eup %9491  ;;  %9501 = vrcp.f32 %v1120_v51  ;;  %8500 = vmatpush3.bf16.msra.mxu0 %v14382_v13  ;;  %v9140_v51 = vld [vmem:[#allocation7 + $0x194] ss:$8 sps:$4 sm:$0xff]  }
 0x4c6   : > { %8501 = vmatprep.subr.bf16.mxu0 %v14383_v50  ;;  %v1157_v29 = vpack.c.bf16 %v1146_v28, %v1145_v23  ;;  %v1147_v60 = vmul.f32 %v9492_v40, %v11388_v45  ;;  %v9143_v23 = vld [vmem:[#allocation7 + $0x1a4] ss:$8 sps:$4 sm:$0xff]  }
 0x4c7   : > { %v9494_v30 = vpop.eup %9493 }
 0x4c8   : > { %8455 = vmatprep.mubr.bf16.mxu0 %v1157_v29  ;;  %v1148_v2 = vmul.f32 %v9494_v30, %v11391_v53 }
 0x4c9   : > { %v9496_v55 = vpop.eup %9495  ;;  %8502 = vmatpush3.bf16.msra.mxu0 %v14383_v50 }
 0x4ca   : > { %8503 = vmatprep.subr.bf16.mxu0 %v14384_v19  ;;  %v1158_v48 = vpack.c.bf16 %v1148_v2, %v1147_v60  ;;  %v1149_v14 = vmul.f32 %v9496_v55, %v11394_v8  ;;  %v14387_v8 = vld [vmem:[#allocation66_spill] sm:$0xff]  ;;  %v9144_v60 = vld [vmem:[#allocation7 + $0x1b0] ss:$8 sps:$4 sm:$0xff]  }
 0x4cb   : > { %v9498_v56 = vpop.eup %9497 }
 0x4cc   : > { %8456 = vmatmul.mubr.bf16.gmra.mrb[40].mxu0 %v1158_v48  ;;  %v1150_v10 = vmul.f32 %v9498_v56, %v11397_v5  ;;  %v9137_v5 = vld [vmem:[#allocation7 + $0x184] ss:$8 sps:$4 sm:$0xff]  }
 0x4cd   : > { %v9500_v24 = vpop.eup %9499  ;;  %8504 = vmatpush3.bf16.msra.mxu0 %v14384_v19  ;;  %v9149_v19 = vld [vmem:[#allocation7 + $0x1c4] ss:$8 sps:$4 sm:$0xff]  }
 0x4ce   : > { %8505 = vmatprep.subr.bf16.mxu0 %v14385_v22  ;;  %v1159_v45 = vpack.c.bf16 %v1150_v10, %v1149_v14  ;;  %v1151_v53 = vmul.f32 %v9500_v24, %v11400_v61 }
 0x4cf   : > { %v9502_v12 = vpop.eup %9501 }
 0x4d0   : > { %8459 = vmatprep.mubr.bf16.mxu0 %v1159_v45  ;;  %v1152_v9 = vmul.f32 %v9502_v12, %v11403_v7  ;;  %v9150_v12 = vld [vmem:[#allocation7 + $0x1d0] ss:$8 sps:$4 sm:$0xff]  }
 0x4d1   : > { %8506 = vmatpush3.bf16.msra.mxu0 %v14385_v22  ;;  %v9152_v22 = vld [vmem:[#allocation7 + $0x1d4] ss:$8 sps:$4 sm:$0xff]  }
 0x4d2   : > { %8507 = vmatprep.subr.bf16.mxu0 %v14386_v42  ;;  %v1160_v0 = vpack.c.bf16 %v1152_v9, %v1151_v53  ;;  %v9155_v53 = vld [vmem:[#allocation7 + $0x1e4] ss:$8 sps:$4 sm:$0xff]  }
 0x4d4   : > { %8460 = vmatmul.mubr.bf16.gmra.mrb[44].mxu0 %v1160_v0 }
 0x4d5   : > { %8508 = vmatpush3.bf16.msra.mxu0 %v14386_v42 }
 0x4d6   : > { %8509 = vmatprep.subr.bf16.mxu0 %v14387_v8 }
 0x4d9   : > { %8510 = vmatpush3.bf16.msra.mxu0 %v14387_v8 }
 0x4da   : > { %2563 = vmatprep.subr.bf16.mxu0 %v9137_v5 }
 0x4f7   : > { %v2282_v17 = vpop.xlane.xlu0 %2281 }
 0x4f8   : > { %9503 = vrcp.f32 %v2282_v17  ;;  %v9156_v17 = vld [vmem:[#allocation7 + $0x1f0] ss:$8 sps:$4 sm:$0xff]  }
 0x4f9   : > { %v2284_v4 = vpop.xlane.xlu1 %2283 }
 0x4fa   : > { %9505 = vrcp.f32 %v2284_v4 }
 0x4fb   : > { %v2286_v61 = vpop.xlane.xlu0 %2285 }
 0x4fc   : > { %9507 = vrcp.f32 %v2286_v61 }
 0x4fd   : > { %v2288_v7 = vpop.xlane.xlu1 %2287 }
 0x4fe   : > { %9509 = vrcp.f32 %v2288_v7 }
 0x502   : > { %v9504_v1 = vpop.eup %9503 }
 0x503   : > { %v2329_v39 = vmul.f32 %v9504_v1, %v11410_v33 }
 0x504   : > { %v9506_v59 = vpop.eup %9505 }
 0x505   : > { %v2330_v41 = vmul.f32 %v9506_v59, %v11413_v20  ;;  %v9138_v20 = vld [vmem:[#allocation7 + $0x190] ss:$8 sps:$4 sm:$0xff]  }
 0x506   : > { %v9508_v54 = vpop.eup %9507 }
 0x507   : > { %v2290_v43 = vpop.xlane.xlu0 %2289  ;;  %v2345_v27 = vpack.c.bf16 %v2330_v41, %v2329_v39  ;;  %v2331_v38 = vmul.f32 %v9508_v54, %v11418_v18  ;;  %v9141_v18 = vld [vmem:[#allocation7 + $0x1a0] ss:$8 sps:$4 sm:$0xff]  }
 0x508   : > { %v9510_v46 = vpop.eup %9509  ;;  %9511 = vrcp.f32 %v2290_v43 }
 0x509   : > { %v2332_v36 = vmul.f32 %v9510_v46, %v11423_v26  ;;  %v2292_v13 = vpop.xlane.xlu1 %2291  ;;  %8511 = vmatprep.mubr.bf16.mxu0 %v2345_v27  ;;  %v9146_v26 = vld [vmem:[#allocation7 + $0x1b4] ss:$8 sps:$4 sm:$0xff]  }
 0x50a   : > { %9513 = vrcp.f32 %v2292_v13 }
 0x50b   : > { %v2294_v21 = vpop.xlane.xlu0 %2293  ;;  %v2346_v25 = vpack.c.bf16 %v2332_v36, %v2331_v38 }
 0x50c   : > { %9515 = vrcp.f32 %v2294_v21  ;;  %v14388_v21 = vmov 0  }
 0x50d   : > { %v2296_v33 = vpop.xlane.xlu1 %2295  ;;  %8512 = vmatmul.mubr.bf16.vlgmr.msra.gmra.mrb[32].mxu0 %v2346_v25  ;;  %v14389_v25 = vld [vmem:[#allocation18_spill] sm:$0xff] }
 0x50e   : > { %9517 = vrcp.f32 %v2296_v33  ;;  %2564 = vmatpush1.bf16.msra.mxu0 %v9135_v37  ;;  %v14395_v33 = vld [vmem:[#allocation24_spill] sm:$0xff] }
 0x50f   : > { %2565 = vmatprep.subr.bf16.mxu0 %v9140_v51  ;;  %v14390_v51 = vld [vmem:[#allocation19_spill] sm:$0xff] }
 0x512   : > { %v9512_v28 = vpop.eup %9511  ;;  %2566 = vmatpush1.bf16.msra.mxu0 %v9138_v20  ;;  %v14396_v20 = vld [vmem:[#allocation25_spill] sm:$0xff] }
 0x513   : > { %2567 = vmatprep.subr.bf16.mxu0 %v9143_v23  ;;  %v2333_v50 = vmul.f32 %v9512_v28, %v11426_v3  ;;  %v9147_v3 = vld [vmem:[#allocation7 + $0x1c0] ss:$8 sps:$4 sm:$0xff]  }
 0x514   : > { %v9514_v40 = vpop.eup %9513  ;;  %v11548_v28 = vld [vmem:[%s14072_s4 + $0x3] ss:$0 sm:$0xff] }
 0x515   : > { %v2334_v29 = vmul.f32 %v9514_v40, %v11429_v62 }
 0x516   : > { %v9516_v30 = vpop.eup %9515  ;;  %2568 = vmatpush1.bf16.msra.mxu0 %v9141_v18 }
 0x517   : > { %v2298_v2 = vpop.xlane.xlu0 %2297  ;;  %v2347_v55 = vpack.c.bf16 %v2334_v29, %v2333_v50  ;;  %2569 = vmatprep.subr.bf16.mxu0 %v9146_v26  ;;  %v2335_v14 = vmul.f32 %v9516_v30, %v11434_v15  ;;  %v9153_v15 = vld [vmem:[#allocation7 + $0x1e0] ss:$8 sps:$4 sm:$0xff]  }
 0x518   : > { %v9518_v48 = vpop.eup %9517  ;;  %9519 = vrcp.f32 %v2298_v2 }
 0x519   : > { %v2300_v56 = vpop.xlane.xlu1 %2299  ;;  %8515 = vmatprep.mubr.bf16.mxu0 %v2347_v55  ;;  %v2336_v10 = vmul.f32 %v9518_v48, %v11439_v58  ;;  %v9158_v58 = vld [vmem:[#allocation7 + $0x1f4] ss:$8 sps:$4 sm:$0xff]  }
 0x51a   : > { %9521 = vrcp.f32 %v2300_v56  ;;  %2570 = vmatpush1.bf16.msra.mxu0 %v9144_v60 }
 0x51b   : > { %v2302_v24 = vpop.xlane.xlu0 %2301  ;;  %v2348_v62 = vpack.c.bf16 %v2336_v10, %v2335_v14  ;;  %2571 = vmatprep.subr.bf16.mxu0 %v9149_v19 }
 0x51c   : > { %9523 = vrcp.f32 %v2302_v24 }
 0x51d   : > { %v2304_v45 = vpop.xlane.xlu1 %2303  ;;  %8516 = vmatmul.mubr.bf16.gmra.mrb[36].mxu0 %v2348_v62 }
 0x51e   : > { %9525 = vrcp.f32 %v2304_v45  ;;  %2572 = vmatpush1.bf16.msra.mxu0 %v9147_v3 }
 0x51f   : > { %2573 = vmatprep.subr.bf16.mxu0 %v9152_v22 }
 0x522   : > { %v9520_v9 = vpop.eup %9519  ;;  %2574 = vmatpush1.bf16.msra.mxu0 %v9150_v12 }
 0x523   : > { %2575 = vmatprep.subr.bf16.mxu0 %v9155_v53  ;;  %v2337_v0 = vmul.f32 %v9520_v9, %v11443_v31 }
 0x524   : > { %v9522_v42 = vpop.eup %9521 }
 0x525   : > { %v2338_v8 = vmul.f32 %v9522_v42, %v11446_v32 }
 0x526   : > { %v9524_v5 = vpop.eup %9523  ;;  %2576 = vmatpush1.bf16.msra.mxu0 %v9153_v15 }
 0x527   : > { %v2306_v4 = vpop.xlane.xlu0 %2305  ;;  %v2349_v61 = vpack.c.bf16 %v2338_v8, %v2337_v0  ;;  %2577 = vmatprep.subr.bf16.mxu0 %v9158_v58  ;;  %v2339_v59 = vmul.f32 %v9524_v5, %v11451_v44 }
 0x528   : > { %v9526_v7 = vpop.eup %9525  ;;  %9527 = vrcp.f32 %v2306_v4 }
 0x529   : > { %v2308_v1 = vpop.xlane.xlu1 %2307  ;;  %8519 = vmatprep.mubr.bf16.mxu0 %v2349_v61  ;;  %v2340_v39 = vmul.f32 %v9526_v7, %v11455_v52 }
 0x52a   : > { %9529 = vrcp.f32 %v2308_v1  ;;  %2578 = vmatpush1.bf16.msra.mxu0 %v9156_v17 }
 0x52b   : > { %v2310_v41 = vpop.xlane.xlu0 %2309  ;;  %v2350_v31 = vpack.c.bf16 %v2340_v39, %v2339_v59 }
 0x52c   : > { %9531 = vrcp.f32 %v2310_v41 }
 0x52d   : > { %v2312_v32 = vpop.xlane.xlu1 %2311  ;;  %8520 = vmatmul.mubr.bf16.gmra.mrb[40].mxu0 %v2350_v31 }
 0x52e   : > { %9533 = vrcp.f32 %v2312_v32 }
 0x532   : > { %v9528_v54 = vpop.eup %9527 }
 0x533   : > { %v2341_v27 = vmul.f32 %v9528_v54, %v11460_v35  ;;  %v14391_v35 = vld [vmem:[#allocation20_spill] sm:$0xff] }
 0x534   : > { %v9530_v43 = vpop.eup %9529 }
 0x535   : > { %v2342_v46 = vmul.f32 %v9530_v43, %v11463_v49  ;;  %v14392_v49 = vld [vmem:[#allocation21_spill] sm:$0xff] }
 0x536   : > { %v9532_v38 = vpop.eup %9531 }
 0x537   : > { %v2351_v36 = vpack.c.bf16 %v2342_v46, %v2341_v27  ;;  %v2343_v44 = vmul.f32 %v9532_v38, %v11458_v34  ;;  %v14393_v34 = vld [vmem:[#allocation22_spill] sm:$0xff] }
 0x538   : > { %v9534_v13 = vpop.eup %9533 }
 0x539   : > { %8523 = vmatprep.mubr.bf16.mxu0 %v2351_v36  ;;  %v2344_v52 = vmul.f32 %v9534_v13, %v11468_v6  ;;  %v14394_v6 = vld [vmem:[#allocation23_spill] sm:$0xff] }
 0x53b   : > { %v2352_v37 = vpack.c.bf16 %v2344_v52, %v2343_v44 }
 0x53d   : > { %8524 = vmatmul.mubr.bf16.gmra.mrb[44].mxu0 %v2352_v37 }
 0x53e   : > { %2595 = vmatprep.mubr.bf16.mxu0 %v14388_v21 }
 0x545   : > { %2596 = vmatmul.mubr.bf16.vlgmr.msra.gmra.mrb[48].mxu0 %v14389_v25 }
 0x546   : > { %2605 = vmatprep.mubr.bf16.mxu0 %v14388_v21 }
 0x54d   : > { %2606 = vmatmul.mubr.bf16.gmra.mrb[52].mxu0 %v14390_v51 }
 0x54e   : > { %2615 = vmatprep.mubr.bf16.mxu0 %v14388_v21 }
 0x555   : > { %2616 = vmatmul.mubr.bf16.gmra.mrb[56].mxu0 %v14391_v35 }
 0x556   : > { %2625 = vmatprep.mubr.bf16.mxu0 %v14388_v21 }
 0x55d   : > { %2626 = vmatmul.mubr.bf16.gmra.mrb[60].mxu0 %v14392_v49 }
 0x55e   : > { %2635 = vmatprep.mubr.bf16.mxu0 %v14388_v21 }
 0x565   : > { %2636 = vmatmul.mubr.bf16.gmra.mrb[64].mxu0 %v14393_v34 }
 0x566   : > { %2645 = vmatprep.mubr.bf16.mxu0 %v14388_v21 }
 0x56d   : > { %2646 = vmatmul.mubr.bf16.gmra.mrb[68].mxu0 %v14394_v6 }
 0x56e   : > { %2655 = vmatprep.mubr.bf16.mxu0 %v14388_v21 }
 0x575   : > { %2656 = vmatmul.mubr.bf16.gmra.mrb[72].mxu0 %v14395_v33 }
 0x576   : > { %2665 = vmatprep.mubr.bf16.mxu0 %v14388_v21 }
 0x57d   : > { %2666 = vmatmul.mubr.bf16.gmra.mrb[76].mxu0 %v14396_v20 }
 0x618   : > { %v2597_v23 = vpop.f32.mrb[48].mxu0 }
 0x619   : > { %v2599_v18 = vpop.f32.mrb[49].mxu0  ;;  %v2684_v40 = vadd.f32 %v11548_v28, %v2597_v23 }
 0x61a   : > { %v2601_v26 = vpop.f32.mrb[50].mxu0 }
 0x61b   : > { %v2685_v50 = vadd.f32 %v11548_v28, %v2601_v26  ;;  %v2603_v29 = vpop.f32.mrb[51].mxu0 }
 0x61c   : > { %v2708_v30 = vpack.c.bf16 %v2603_v29, %v2599_v18 }
 0x61d   : > { %v2700_v60 = vpack.c.bf16 %v2685_v50, %v2684_v40 }
 0x61e   : > { %8559 = vmatprep.subr.bf16.mxu0 %v2708_v30 }
 0x61f   : > { %8543 = vmatprep.mubr.bf16.mxu1 %v2700_v60  ;;  %8560 = vmatpush3.bf16.msra.mxu0 %v2708_v30 }
 0x620   : > { %v2607_v2 = vpop.f32.mrb[52].mxu0 }
 0x621   : > { %v2609_v55 = vpop.f32.mrb[53].mxu0  ;;  %v2686_v48 = vadd.f32 %v11548_v28, %v2607_v2 }
 0x622   : > { %v2611_v19 = vpop.f32.mrb[54].mxu0 }
 0x623   : > { %v2687_v56 = vadd.f32 %v11548_v28, %v2611_v19  ;;  %v2613_v14 = vpop.f32.mrb[55].mxu0 }
 0x624   : > { %v2709_v10 = vpack.c.bf16 %v2613_v14, %v2609_v55 }
 0x625   : > { %v2701_v3 = vpack.c.bf16 %v2687_v56, %v2686_v48 }
 0x626   : > { %8561 = vmatprep.subr.bf16.mxu0 %v2709_v10 }
 0x627   : > { %8544 = vmatmul.mubr.bf16.vlgmr.msra.gmra.mrb[112].mxu1 %v2701_v3  ;;  %8562 = vmatpush3.bf16.msra.mxu0 %v2709_v10  ;;  %v9159_v3 = vld [vmem:[#allocation7 + $0x200] ss:$8 sps:$4 sm:$0xff]  }
 0x628   : > { %v2617_v24 = vpop.f32.mrb[56].mxu0 }
 0x629   : > { %v2688_v62 = vadd.f32 %v11548_v28, %v2617_v24  ;;  %v2619_v22 = vpop.f32.mrb[57].mxu0  ;;  %v9161_v24 = vld [vmem:[#allocation7 + $0x204] ss:$8 sps:$4 sm:$0xff]  }
 0x62a   : > { %v2621_v45 = vpop.f32.mrb[58].mxu0  ;;  %3175 = vmatprep.subr.bf16.mxu1 %v9161_v24 }
 0x62b   : > { %v2689_v12 = vadd.f32 %v11548_v28, %v2621_v45  ;;  %v2623_v53 = vpop.f32.mrb[59].mxu0  ;;  %3176 = vmatpush1.bf16.msra.mxu1 %v9159_v3  ;;  %v9167_v45 = vld [vmem:[#allocation7 + $0x224] ss:$8 sps:$4 sm:$0xff]  }
 0x62c   : > { %v2710_v9 = vpack.c.bf16 %v2623_v53, %v2619_v22  ;;  %v9162_v22 = vld [vmem:[#allocation7 + $0x210] ss:$8 sps:$4 sm:$0xff]   ;;  %v14404_v3 = vld [vmem:[#allocation42_spill] sm:$0xff] }
 0x62d   : > { %v2702_v15 = vpack.c.bf16 %v2689_v12, %v2688_v62  ;;  %v9164_v62 = vld [vmem:[#allocation7 + $0x214] ss:$8 sps:$4 sm:$0xff]   ;;  %v9168_v53 = vld [vmem:[#allocation7 + $0x230] ss:$8 sps:$4 sm:$0xff]  }
 0x62e   : > { %8563 = vmatprep.subr.bf16.mxu0 %v2710_v9  ;;  %3177 = vmatprep.subr.bf16.mxu1 %v9164_v62  ;;  %v9170_v12 = vld [vmem:[#allocation7 + $0x234] ss:$8 sps:$4 sm:$0xff]   ;;  %v9203_v62 = vld [vmem:[#allocation7 + $0x2e4] ss:$8 sps:$4 sm:$0xff]  }
 0x62f   : > { %8564 = vmatpush3.bf16.msra.mxu0 %v2710_v9  ;;  %8547 = vmatprep.mubr.bf16.mxu1 %v2702_v15  ;;  %v9173_v9 = vld [vmem:[#allocation7 + $0x244] ss:$8 sps:$4 sm:$0xff]   ;;  %v9171_v15 = vld [vmem:[#allocation7 + $0x240] ss:$8 sps:$4 sm:$0xff]  }
 0x630   : > { %v2627_v58 = vpop.f32.mrb[60].mxu0  ;;  %3178 = vmatpush1.bf16.msra.mxu1 %v9162_v22  ;;  %v9201_v22 = vld [vmem:[#allocation7 + $0x2e0] ss:$8 sps:$4 sm:$0xff]  }
 0x631   : > { %v2690_v42 = vadd.f32 %v11548_v28, %v2627_v58  ;;  %v2629_v0 = vpop.f32.mrb[61].mxu0  ;;  %3179 = vmatprep.subr.bf16.mxu1 %v9167_v45  ;;  %v9176_v58 = vld [vmem:[#allocation7 + $0x254] ss:$8 sps:$4 sm:$0xff]  }
 0x632   : > { %v2631_v8 = vpop.f32.mrb[62].mxu0  ;;  %v9206_v45 = vld [vmem:[#allocation7 + $0x2f4] ss:$8 sps:$4 sm:$0xff]  }
 0x633   : > { %v2691_v5 = vadd.f32 %v11548_v28, %v2631_v8  ;;  %v2633_v17 = vpop.f32.mrb[63].mxu0  ;;  %v9177_v8 = vld [vmem:[#allocation7 + $0x260] ss:$8 sps:$4 sm:$0xff]  }
 0x634   : > { %v2711_v4 = vpack.c.bf16 %v2633_v17, %v2629_v0  ;;  %v9179_v0 = vld [vmem:[#allocation7 + $0x264] ss:$8 sps:$4 sm:$0xff]   ;;  %v9180_v17 = vld [vmem:[#allocation7 + $0x270] ss:$8 sps:$4 sm:$0xff]  }
 0x635   : > { %v2703_v61 = vpack.c.bf16 %v2691_v5, %v2690_v42  ;;  %v9174_v42 = vld [vmem:[#allocation7 + $0x250] ss:$8 sps:$4 sm:$0xff]   ;;  %v9182_v5 = vld [vmem:[#allocation7 + $0x274] ss:$8 sps:$4 sm:$0xff]  }
 0x636   : > { %8565 = vmatprep.subr.bf16.mxu0 %v2711_v4 }
 0x637   : > { %8548 = vmatmul.mubr.bf16.gmra.mrb[116].mxu1 %v2703_v61  ;;  %8566 = vmatpush3.bf16.msra.mxu0 %v2711_v4  ;;  %v9185_v4 = vld [vmem:[#allocation7 + $0x284] ss:$8 sps:$4 sm:$0xff]   ;;  %v9183_v61 = vld [vmem:[#allocation7 + $0x280] ss:$8 sps:$4 sm:$0xff]  }
 0x638   : > { %v2637_v7 = vpop.f32.mrb[64].mxu0 }
 0x639   : > { %v2692_v1 = vadd.f32 %v11548_v28, %v2637_v7  ;;  %v2639_v59 = vpop.f32.mrb[65].mxu0  ;;  %v9188_v7 = vld [vmem:[#allocation7 + $0x294] ss:$8 sps:$4 sm:$0xff]  }
 0x63a   : > { %v2641_v39 = vpop.f32.mrb[66].mxu0 }
 0x63b   : > { %v2693_v41 = vadd.f32 %v11548_v28, %v2641_v39  ;;  %v2643_v31 = vpop.f32.mrb[67].mxu0  ;;  %v9189_v39 = vld [vmem:[#allocation7 + $0x2a0] ss:$8 sps:$4 sm:$0xff]  }
 0x63c   : > { %v2712_v32 = vpack.c.bf16 %v2643_v31, %v2639_v59  ;;  %v9191_v59 = vld [vmem:[#allocation7 + $0x2a4] ss:$8 sps:$4 sm:$0xff]   ;;  %v9192_v31 = vld [vmem:[#allocation7 + $0x2b0] ss:$8 sps:$4 sm:$0xff]  }
 0x63d   : > { %v2704_v54 = vpack.c.bf16 %v2693_v41, %v2692_v1  ;;  %v9186_v1 = vld [vmem:[#allocation7 + $0x290] ss:$8 sps:$4 sm:$0xff]   ;;  %v9194_v41 = vld [vmem:[#allocation7 + $0x2b4] ss:$8 sps:$4 sm:$0xff]  }
 0x63e   : > { %8567 = vmatprep.subr.bf16.mxu0 %v2712_v32 }
 0x63f   : > { %8568 = vmatpush3.bf16.msra.mxu0 %v2712_v32  ;;  %8551 = vmatprep.mubr.bf16.mxu1 %v2704_v54  ;;  %v9197_v32 = vld [vmem:[#allocation7 + $0x2c4] ss:$8 sps:$4 sm:$0xff]   ;;  %v9195_v54 = vld [vmem:[#allocation7 + $0x2c0] ss:$8 sps:$4 sm:$0xff]  }
 0x640   : > { %v2647_v43 = vpop.f32.mrb[68].mxu0 }
 0x641   : > { %v2694_v27 = vadd.f32 %v11548_v28, %v2647_v43  ;;  %v2649_v46 = vpop.f32.mrb[69].mxu0 }
 0x642   : > { %v2651_v38 = vpop.f32.mrb[70].mxu0 }
 0x643   : > { %v2695_v36 = vadd.f32 %v11548_v28, %v2651_v38  ;;  %v2653_v13 = vpop.f32.mrb[71].mxu0 }
 0x644   : > { %v2713_v44 = vpack.c.bf16 %v2653_v13, %v2649_v46  ;;  %v14397_v46 = vld [vmem:[#allocation37_spill] sm:$0xff] }
 0x645   : > { %v2705_v52 = vpack.c.bf16 %v2695_v36, %v2694_v27 }
 0x646   : > { %8569 = vmatprep.subr.bf16.mxu0 %v2713_v44 }
 0x647   : > { %8552 = vmatmul.mubr.bf16.gmra.mrb[120].mxu1 %v2705_v52  ;;  %8570 = vmatpush3.bf16.msra.mxu0 %v2713_v44  ;;  %v14398_v44 = vld [vmem:[#allocation39_spill] sm:$0xff] }
 0x648   : > { %v2657_v37 = vpop.f32.mrb[72].mxu0 }
 0x649   : > { %v2696_v23 = vadd.f32 %v11548_v28, %v2657_v37  ;;  %v2659_v18 = vpop.f32.mrb[73].mxu0  ;;  %v14399_v37 = vld [vmem:[#allocation34_spill] sm:$0xff] }
 0x64a   : > { %v2661_v26 = vpop.f32.mrb[74].mxu0 }
 0x64b   : > { %v2697_v40 = vadd.f32 %v11548_v28, %v2661_v26  ;;  %v2663_v50 = vpop.f32.mrb[75].mxu0 }
 0x64c   : > { %v2714_v29 = vpack.c.bf16 %v2663_v50, %v2659_v18  ;;  %v14400_v18 = vld [vmem:[#allocation35_spill] sm:$0xff] }
 0x64d   : > { %v2706_v30 = vpack.c.bf16 %v2697_v40, %v2696_v23 }
 0x64e   : > { %8571 = vmatprep.subr.bf16.mxu0 %v2714_v29 }
 0x64f   : > { %8572 = vmatpush3.bf16.msra.mxu0 %v2714_v29  ;;  %8555 = vmatprep.mubr.bf16.mxu1 %v2706_v30  ;;  %v14401_v29 = vld [vmem:[#allocation43_spill] sm:$0xff] }
 0x650   : > { %v2667_v60 = vpop.f32.mrb[76].mxu0 }
 0x651   : > { %v2698_v2 = vadd.f32 %v11548_v28, %v2667_v60  ;;  %v2669_v55 = vpop.f32.mrb[77].mxu0 }
 0x652   : > { %v2671_v19 = vpop.f32.mrb[78].mxu0 }
 0x653   : > { %v2699_v48 = vadd.f32 %v11548_v28, %v2671_v19  ;;  %v2673_v56 = vpop.f32.mrb[79].mxu0  ;;  %v9165_v28 = vld [vmem:[#allocation7 + $0x220] ss:$8 sps:$4 sm:$0xff]  }
 0x654   : > { %v2715_v14 = vpack.c.bf16 %v2673_v56, %v2669_v55  ;;  %3180 = vmatpush1.bf16.msra.mxu1 %v9165_v28  ;;  %v14402_v55 = vld [vmem:[#allocation41_spill] sm:$0xff] }
 0x655   : > { %v2707_v10 = vpack.c.bf16 %v2699_v48, %v2698_v2  ;;  %3181 = vmatprep.subr.bf16.mxu1 %v9170_v12  ;;  %v14403_v48 = vld [vmem:[#allocation44_spill] sm:$0xff] }
 0x656   : > { %8573 = vmatprep.subr.bf16.mxu0 %v2715_v14  ;;  %v9204_v12 = vld [vmem:[#allocation7 + $0x2f0] ss:$8 sps:$4 sm:$0xff]  }
 0x657   : > { %8556 = vmatmul.mubr.bf16.gmra.mrb[124].mxu1 %v2707_v10  ;;  %8574 = vmatpush3.bf16.msra.mxu0 %v2715_v14  ;;  %v9198_v14 = vld [vmem:[#allocation7 + $0x2d0] ss:$8 sps:$4 sm:$0xff]   ;;  %v9200_v10 = vld [vmem:[#allocation7 + $0x2d4] ss:$8 sps:$4 sm:$0xff]  }
 0x658   : > { %3207 = vmatprep.mubr.bf16.mxu1 %v14388_v21  ;;  %8591 = vmatprep.subr.bf16.mxu0 %v14389_v25 }
 0x659   : > { %3182 = vmatpush1.bf16.msra.mxu1 %v9168_v53 }
 0x65a   : > { %3183 = vmatprep.subr.bf16.mxu1 %v9173_v9  ;;  %v14405_v9 = vld [vmem:[#allocation47_spill] sm:$0xff] }
 0x65d   : > { %3184 = vmatpush1.bf16.msra.mxu1 %v9171_v15 }
 0x65e   : > { %3185 = vmatprep.subr.bf16.mxu1 %v9176_v58 }
 0x661   : > { %3186 = vmatpush1.bf16.msra.mxu1 %v9174_v42 }
 0x662   : > { %3187 = vmatprep.subr.bf16.mxu1 %v9179_v0  ;;  %v14406_v0 = vld [vmem:[#allocation45_spill] sm:$0xff] }
 0x665   : > { %3188 = vmatpush1.bf16.msra.mxu1 %v9177_v8 }
 0x666   : > { %3189 = vmatprep.subr.bf16.mxu1 %v9182_v5 }
 0x669   : > { %3190 = vmatpush1.bf16.msra.mxu1 %v9180_v17  ;;  %v14407_v17 = vld [vmem:[#allocation46_spill] sm:$0xff] }
 0x66a   : > { %3787 = vmatprep.subr.bf16.mxu1 %v9185_v4 }
 0x66c   : > { %3208 = vmatmul.mubr.bf16.vlgmr.msra.gmra.mrb[128].mxu1 %v14389_v25 }
 0x66d   : > { %3788 = vmatpush1.bf16.msra.mxu1 %v9183_v61  ;;  %3217 = vmatprep.mubr.bf16.mxu1 %v14388_v21 }
 0x66e   : > { %3789 = vmatprep.subr.bf16.mxu1 %v9188_v7 }
 0x671   : > { %3790 = vmatpush1.bf16.msra.mxu1 %v9186_v1 }
 0x672   : > { %3791 = vmatprep.subr.bf16.mxu1 %v9191_v59 }
 0x674   : > { %3218 = vmatmul.mubr.bf16.gmra.mrb[132].mxu1 %v14390_v51 }
 0x675   : > { %3227 = vmatprep.mubr.bf16.mxu1 %v14388_v21  ;;  %3792 = vmatpush1.bf16.msra.mxu1 %v9189_v39 }
 0x676   : > { %3793 = vmatprep.subr.bf16.mxu1 %v9194_v41 }
 0x679   : > { %3794 = vmatpush1.bf16.msra.mxu1 %v9192_v31 }
 0x67a   : > { %3795 = vmatprep.subr.bf16.mxu1 %v9197_v32 }
 0x67c   : > { %3228 = vmatmul.mubr.bf16.gmra.mrb[136].mxu1 %v14391_v35 }
 0x67d   : > { %3237 = vmatprep.mubr.bf16.mxu1 %v14388_v21  ;;  %3796 = vmatpush1.bf16.msra.mxu1 %v9195_v54 }
 0x67e   : > { %3797 = vmatprep.subr.bf16.mxu1 %v9200_v10 }
 0x681   : > { %3798 = vmatpush1.bf16.msra.mxu1 %v9198_v14 }
 0x682   : > { %3799 = vmatprep.subr.bf16.mxu1 %v9203_v62 }
 0x684   : > { %3238 = vmatmul.mubr.bf16.gmra.mrb[140].mxu1 %v14392_v49 }
 0x685   : > { %3247 = vmatprep.mubr.bf16.mxu1 %v14388_v21  ;;  %3800 = vmatpush1.bf16.msra.mxu1 %v9201_v22 }
 0x686   : > { %3801 = vmatprep.subr.bf16.mxu1 %v9206_v45 }
 0x689   : > { %3802 = vmatpush1.bf16.msra.mxu1 %v9204_v12 }
 0x68a   : > { %8655 = vmatprep.subr.bf16.mxu1 %v14389_v25 }
 0x68c   : > { %3248 = vmatmul.mubr.bf16.gmra.mrb[144].mxu1 %v14393_v34 }
 0x68d   : > { %3257 = vmatprep.mubr.bf16.mxu1 %v14388_v21 }
 0x694   : > { %3258 = vmatmul.mubr.bf16.gmra.mrb[148].mxu1 %v14394_v6 }
 0x695   : > { %3267 = vmatprep.mubr.bf16.mxu1 %v14388_v21 }
 0x69c   : > { %3268 = vmatmul.mubr.bf16.gmra.mrb[152].mxu1 %v14395_v33 }
 0x69d   : > { %3277 = vmatprep.mubr.bf16.mxu1 %v14388_v21 }
 0x6a4   : > { %3278 = vmatmul.mubr.bf16.gmra.mrb[156].mxu1 %v14396_v20 }
 0x6a5   : > { %3819 = vmatprep.mubr.bf16.mxu1 %v14388_v21 }
 0x6ac   : > { %3820 = vmatmul.mubr.bf16.vlgmr.msra.gmra.mrb[160].mxu1 %v14389_v25 }
 0x6ad   : > { %3829 = vmatprep.mubr.bf16.mxu1 %v14388_v21  ;;  %8656 = vmatpush3.bf16.xpose.msra.mxu1 %v14389_v25 }
 0x6ae   : > { %8657 = vmatprep.subr.bf16.mxu1 %v14390_v51 }
 0x6b4   : > { %3830 = vmatmul.mubr.bf16.gmra.mrb[164].mxu1 %v14390_v51 }
 0x6b5   : > { %3839 = vmatprep.mubr.bf16.mxu1 %v14388_v21  ;;  %8658 = vmatpush3.bf16.xpose.msra.mxu1 %v14390_v51 }
 0x6b6   : > { %8659 = vmatprep.subr.bf16.mxu1 %v14391_v35 }
 0x6bc   : > { %3840 = vmatmul.mubr.bf16.gmra.mrb[168].mxu1 %v14391_v35 }
 0x6bd   : > { %3849 = vmatprep.mubr.bf16.mxu1 %v14388_v21  ;;  %8660 = vmatpush3.bf16.xpose.msra.mxu1 %v14391_v35 }
 0x6be   : > { %8661 = vmatprep.subr.bf16.mxu1 %v14392_v49 }
 0x6c4   : > { %3850 = vmatmul.mubr.bf16.gmra.mrb[172].mxu1 %v14392_v49 }
 0x6c5   : > { %3859 = vmatprep.mubr.bf16.mxu1 %v14388_v21  ;;  %8662 = vmatpush3.bf16.xpose.msra.mxu1 %v14392_v49 }
 0x6c6   : > { %8663 = vmatprep.subr.bf16.mxu1 %v14393_v34 }
 0x6cc   : > { %3860 = vmatmul.mubr.bf16.gmra.mrb[176].mxu1 %v14393_v34 }
 0x6cd   : > { %3869 = vmatprep.mubr.bf16.mxu1 %v14388_v21  ;;  %8664 = vmatpush3.bf16.xpose.msra.mxu1 %v14393_v34 }
 0x6ce   : > { %8665 = vmatprep.subr.bf16.mxu1 %v14394_v6 }
 0x6d4   : > { %3870 = vmatmul.mubr.bf16.gmra.mrb[180].mxu1 %v14394_v6 }
 0x6d5   : > { %3879 = vmatprep.mubr.bf16.mxu1 %v14388_v21  ;;  %8666 = vmatpush3.bf16.xpose.msra.mxu1 %v14394_v6 }
 0x6d6   : > { %8667 = vmatprep.subr.bf16.mxu1 %v14395_v33 }
 0x6dc   : > { %3880 = vmatmul.mubr.bf16.gmra.mrb[184].mxu1 %v14395_v33 }
 0x6dd   : > { %3889 = vmatprep.mubr.bf16.mxu1 %v14388_v21  ;;  %8668 = vmatpush3.bf16.xpose.msra.mxu1 %v14395_v33 }
 0x6de   : > { %8669 = vmatprep.subr.bf16.mxu1 %v14396_v20 }
 0x6e4   : > { %3890 = vmatmul.mubr.bf16.gmra.mrb[188].mxu1 %v14396_v20 }
 0x6e5   : > { %8670 = vmatpush3.bf16.xpose.msra.mxu1 %v14396_v20 }
 0x6e6   : > { %8719 = vmatprep.subr.bf16.mxu1 %v14389_v25 }
 0x6fa   : > { %v8545_v43 = vpop.f32.mrb[112].mxu1 }
 0x6fb   : > { %v2750_v27 = vpop.f32.mrb[113].mxu1  ;;  %v11588_v23 = vadd.f32 %v8545_v43, %v14399_v37 }
 0x6fc   : > { %v11579_v38 = vadd.f32 %v2750_v27, %v14397_v46  ;;  %v8546_v36 = vpop.f32.mrb[114].mxu1 }
 0x6fd   : > { %v2753_v13 = vpop.f32.mrb[115].mxu1  ;;  %v11592_v26 = vadd.f32 %v8546_v36, %v14400_v18 }
 0x6fe   : > { %v11582_v52 = vadd.f32 %v2753_v13, %v14398_v44  ;;  %2813 = vmax.xlane.f32.xlu0 %v11579_v38 }
 0x700   : > { %2815 = vmax.xlane.f32.xlu1 %v11582_v52 }
 0x702   : > { %2817 = vmax.xlane.f32.xlu0 %v11588_v23 }
 0x704   : > { %2819 = vmax.xlane.f32.xlu1 %v11592_v26 }
 0x70a   : > { %v8549_v40 = vpop.f32.mrb[116].mxu1 }
 0x70b   : > { %v2766_v50 = vpop.f32.mrb[117].mxu1  ;;  %v11602_v19 = vadd.f32 %v8549_v40, %v14402_v55 }
 0x70c   : > { %v11599_v30 = vadd.f32 %v2766_v50, %v14401_v29  ;;  %v8550_v60 = vpop.f32.mrb[118].mxu1 }
 0x70d   : > { %v2769_v2 = vpop.f32.mrb[119].mxu1  ;;  %v11612_v24 = vadd.f32 %v8550_v60, %v14404_v3 }
 0x70e   : > { %v11605_v56 = vadd.f32 %v2769_v2, %v14403_v48  ;;  %2821 = vmax.xlane.f32.xlu0 %v11599_v30 }
 0x710   : > { %2823 = vmax.xlane.f32.xlu1 %v11605_v56 }
 0x712   : > { %2825 = vmax.xlane.f32.xlu0 %v11602_v19 }
 0x714   : > { %2827 = vmax.xlane.f32.xlu1 %v11612_v24 }
 0x71a   : > { %v8553_v28 = vpop.f32.mrb[120].mxu1 }
 0x71b   : > { %v2782_v53 = vpop.f32.mrb[121].mxu1  ;;  %v11621_v8 = vadd.f32 %v8553_v28, %v14406_v0 }
 0x71c   : > { %v11617_v15 = vadd.f32 %v2782_v53, %v14405_v9  ;;  %v8554_v58 = vpop.f32.mrb[122].mxu1 }
 0x71d   : > { %v2785_v42 = vpop.f32.mrb[123].mxu1  ;;  %v11631_v4 = vadd.f32 %v8554_v58, %v14407_v17 }
 0x71e   : > { %v11624_v5 = vadd.f32 %v2785_v42, %v10966_v57  ;;  %2829 = vmax.xlane.f32.xlu0 %v11617_v15 }
 0x720   : > { %2831 = vmax.xlane.f32.xlu1 %v11624_v5 }
 0x722   : > { %2833 = vmax.xlane.f32.xlu0 %v11621_v8 }
 0x724   : > { %2835 = vmax.xlane.f32.xlu1 %v11631_v4 }
 0x72a   : > { %v8557_v61 = vpop.f32.mrb[124].mxu1 }
 0x72b   : > { %v2798_v7 = vpop.f32.mrb[125].mxu1  ;;  %v11644_v41 = vadd.f32 %v8557_v61, %v10975_v11 }
 0x72c   : > { %v11640_v1 = vadd.f32 %v2798_v7, %v10990_v63  ;;  %v8558_v59 = vpop.f32.mrb[126].mxu1 }
 0x72d   : > { %v2801_v39 = vpop.f32.mrb[127].mxu1  ;;  %v11655_v32 = vadd.f32 %v8558_v59, %v10983_v16 }
 0x72e   : > { %v11647_v31 = vadd.f32 %v2801_v39, %v10994_v47  ;;  %2837 = vmax.xlane.f32.xlu0 %v11640_v1 }
 0x730   : > { %2839 = vmax.xlane.f32.xlu1 %v11647_v31 }
 0x732   : > { %2841 = vmax.xlane.f32.xlu0 %v11644_v41 }
 0x734   : > { %2843 = vmax.xlane.f32.xlu1 %v11655_v32 }
 0x78b   : > { %v2814_v54 = vpop.xlane.xlu0 %2813 }
 0x78c   : > { %v2845_v43 = vsub.f32 %v11579_v38, %v2814_v54 }
 0x78d   : > { %v2816_v27 = vpop.xlane.xlu1 %2815 }
 0x78e   : > { %v2861_v36 = vmul.f32 1.442695, %v2845_v43  ;;  %v2846_v13 = vsub.f32 %v11582_v52, %v2816_v27 }
 0x78f   : > { %v2818_v40 = vpop.xlane.xlu0 %2817 }
 0x790   : > { %9535 = vpow2.f32 %v2861_v36  ;;  %v2863_v50 = vmul.f32 1.442695, %v2846_v13  ;;  %v2847_v60 = vsub.f32 %v11588_v23, %v2818_v40 }
 0x791   : > { %v2820_v2 = vpop.xlane.xlu1 %2819 }
 0x792   : > { %9537 = vpow2.f32 %v2863_v50  ;;  %v2865_v14 = vmul.f32 1.442695, %v2847_v60  ;;  %v2848_v10 = vsub.f32 %v11592_v26, %v2820_v2 }
 0x794   : > { %9539 = vpow2.f32 %v2865_v14  ;;  %v2867_v62 = vmul.f32 1.442695, %v2848_v10 }
 0x796   : > { %9541 = vpow2.f32 %v2867_v62 }
 0x79a   : > { %v11684_v22 = vpop.eup %9535 }
 0x79b   : > { %v2822_v38 = vpop.xlane.xlu0 %2821  ;;  %2893 = vadd.xlane.f32.xlu0 %v11684_v22 }
 0x79c   : > { %v11687_v45 = vpop.eup %9537  ;;  %v2849_v52 = vsub.f32 %v11599_v30, %v2822_v38  ;;  %v3209_v38 = vpop.f32.mrb[128].mxu1 }
 0x79d   : > { %v2824_v28 = vpop.xlane.xlu1 %2823  ;;  %2895 = vadd.xlane.f32.xlu1 %v11687_v45 }
 0x79e   : > { %v11691_v23 = vpop.eup %9539  ;;  %v2869_v12 = vmul.f32 1.442695, %v2849_v52  ;;  %v2850_v26 = vsub.f32 %v11605_v56, %v2824_v28  ;;  %v11719_v28 = vld [vmem:[%s14072_s4 + $0x4] ss:$0 sm:$0xff] }
 0x79f   : > { %v2826_v53 = vpop.xlane.xlu0 %2825  ;;  %2897 = vadd.xlane.f32.xlu0 %v11691_v23 }
 0x7a0   : > { %v11695_v58 = vpop.eup %9541  ;;  %9543 = vpow2.f32 %v2869_v12  ;;  %v2871_v42 = vmul.f32 1.442695, %v2850_v26  ;;  %v2851_v61 = vsub.f32 %v11602_v19, %v2826_v53 }
 0x7a1   : > { %v2828_v7 = vpop.xlane.xlu1 %2827  ;;  %2899 = vadd.xlane.f32.xlu1 %v11695_v58 }
 0x7a2   : > { %9545 = vpow2.f32 %v2871_v42  ;;  %v2873_v30 = vmul.f32 1.442695, %v2851_v61  ;;  %v2852_v59 = vsub.f32 %v11612_v24, %v2828_v7 }
 0x7a4   : > { %9547 = vpow2.f32 %v2873_v30  ;;  %v2875_v39 = vmul.f32 1.442695, %v2852_v59 }
 0x7a6   : > { %9549 = vpow2.f32 %v2875_v39 }
 0x7aa   : > { %v11700_v56 = vpop.eup %9543 }
 0x7ab   : > { %v2830_v54 = vpop.xlane.xlu0 %2829  ;;  %2901 = vadd.xlane.f32.xlu0 %v11700_v56 }
 0x7ac   : > { %v11703_v43 = vpop.eup %9545  ;;  %v2853_v27 = vsub.f32 %v11617_v15, %v2830_v54 }
 0x7ad   : > { %v2832_v19 = vpop.xlane.xlu1 %2831  ;;  %2903 = vadd.xlane.f32.xlu1 %v11703_v43 }
 0x7ae   : > { %v11707_v36 = vpop.eup %9547  ;;  %v2877_v13 = vmul.f32 1.442695, %v2853_v27  ;;  %v2854_v24 = vsub.f32 %v11624_v5, %v2832_v19  ;;  %v3211_v5 = vpop.f32.mrb[129].mxu1 }
 0x7af   : > { %v2834_v40 = vpop.xlane.xlu0 %2833  ;;  %2905 = vadd.xlane.f32.xlu0 %v11707_v36  ;;  %v3213_v52 = vpop.f32.mrb[130].mxu1 }
 0x7b0   : > { %v11711_v50 = vpop.eup %9549  ;;  %9551 = vpow2.f32 %v2877_v13  ;;  %v2879_v60 = vmul.f32 1.442695, %v2854_v24  ;;  %v2855_v2 = vsub.f32 %v11621_v8, %v2834_v40  ;;  %v3215_v12 = vpop.f32.mrb[131].mxu1  ;;  %v11722_v8 = vadd.f32 %v11719_v28, %v3209_v38 }
 0x7b1   : > { %v2836_v14 = vpop.xlane.xlu1 %2835  ;;  %2907 = vadd.xlane.f32.xlu1 %v11711_v50  ;;  %v11725_v26 = vadd.f32 %v11719_v28, %v3213_v52  ;;  %v11727_v53 = vpack.c.bf16 %v3215_v12, %v3211_v5  ;;  %v3219_v7 = vpop.f32.mrb[132].mxu1 }
 0x7b2   : > { %9553 = vpow2.f32 %v2879_v60  ;;  %v2881_v15 = vmul.f32 1.442695, %v2855_v2  ;;  %v2856_v10 = vsub.f32 %v11631_v4, %v2836_v14  ;;  %v11739_v54 = vadd.f32 %v11719_v28, %v3219_v7  ;;  %v3221_v27 = vpop.f32.mrb[133].mxu1 }
 0x7b3   : > { %v3223_v40 = vpop.f32.mrb[134].mxu1 }
 0x7b4   : > { %9555 = vpow2.f32 %v2881_v15  ;;  %v2883_v62 = vmul.f32 1.442695, %v2856_v10  ;;  %v11746_v2 = vadd.f32 %v11719_v28, %v3223_v40 }
 0x7b6   : > { %9557 = vpow2.f32 %v2883_v62 }
 0x7ba   : > { %v11729_v4 = vpop.eup %9551 }
 0x7bb   : > { %2909 = vadd.xlane.f32.xlu0 %v11729_v4  ;;  %v2838_v61 = vpop.xlane.xlu0 %2837 }
 0x7bc   : > { %v11734_v30 = vpop.eup %9553  ;;  %v2857_v59 = vsub.f32 %v11640_v1, %v2838_v61  ;;  %v3225_v1 = vpop.f32.mrb[135].mxu1 }
 0x7bd   : > { %2911 = vadd.xlane.f32.xlu1 %v11734_v30  ;;  %v2840_v39 = vpop.xlane.xlu1 %2839  ;;  %v11751_v62 = vpack.c.bf16 %v3225_v1, %v3221_v27  ;;  %v3229_v38 = vpop.f32.mrb[136].mxu1 }
 0x7be   : > { %v11741_v19 = vpop.eup %9555  ;;  %v2885_v13 = vmul.f32 1.442695, %v2857_v59  ;;  %v2858_v24 = vsub.f32 %v11647_v31, %v2840_v39  ;;  %v11757_v52 = vadd.f32 %v11719_v28, %v3229_v38  ;;  %v3231_v12 = vpop.f32.mrb[137].mxu1 }
 0x7bf   : > { %2913 = vadd.xlane.f32.xlu0 %v11741_v19  ;;  %v2842_v60 = vpop.xlane.xlu0 %2841  ;;  %v3233_v59 = vpop.f32.mrb[138].mxu1 }
 0x7c0   : > { %v11748_v14 = vpop.eup %9557  ;;  %9559 = vpow2.f32 %v2885_v13  ;;  %v2887_v15 = vmul.f32 1.442695, %v2858_v24  ;;  %v2859_v10 = vsub.f32 %v11644_v41, %v2842_v60  ;;  %v11761_v41 = vadd.f32 %v11719_v28, %v3233_v59  ;;  %v3235_v13 = vpop.f32.mrb[139].mxu1 }
 0x7c1   : > { %2915 = vadd.xlane.f32.xlu1 %v11748_v14  ;;  %v2844_v31 = vpop.xlane.xlu1 %2843  ;;  %v11765_v24 = vpack.c.bf16 %v3235_v13, %v3231_v12  ;;  %v3239_v60 = vpop.f32.mrb[140].mxu1 }
 0x7c2   : > { %9561 = vpow2.f32 %v2887_v15  ;;  %v2889_v61 = vmul.f32 1.442695, %v2859_v10  ;;  %v2860_v7 = vsub.f32 %v11655_v32, %v2844_v31  ;;  %v11774_v32 = vadd.f32 %v11719_v28, %v3239_v60  ;;  %v3241_v15 = vpop.f32.mrb[141].mxu1 }
 0x7c3   : > { %v3243_v38 = vpop.f32.mrb[142].mxu1 }
 0x7c4   : > { %9563 = vpow2.f32 %v2889_v61  ;;  %v2891_v39 = vmul.f32 1.442695, %v2860_v7  ;;  %v11780_v31 = vadd.f32 %v11719_v28, %v3243_v38  ;;  %v3245_v12 = vpop.f32.mrb[143].mxu1 }
 0x7c5   : > { %v11784_v7 = vpack.c.bf16 %v3245_v12, %v3241_v15  ;;  %v3249_v59 = vpop.f32.mrb[144].mxu1 }
 0x7c6   : > { %9565 = vpow2.f32 %v2891_v39  ;;  %v11790_v13 = vadd.f32 %v11719_v28, %v3249_v59  ;;  %v3251_v60 = vpop.f32.mrb[145].mxu1 }
 0x7c7   : > { %v3253_v27 = vpop.f32.mrb[146].mxu1 }
 0x7c8   : > { %v11793_v5 = vadd.f32 %v11719_v28, %v3253_v27  ;;  %v3255_v42 = vpop.f32.mrb[147].mxu1 }
 0x7c9   : > { %v11797_v15 = vpack.c.bf16 %v3255_v42, %v3251_v60  ;;  %v3259_v12 = vpop.f32.mrb[148].mxu1 }
 0x7ca   : > { %v11767_v40 = vpop.eup %9559  ;;  %v11800_v21 = vadd.f32 %v11719_v28, %v3259_v12  ;;  %v3261_v16 = vpop.f32.mrb[149].mxu1 }
 0x7cb   : > { %2917 = vadd.xlane.f32.xlu0 %v11767_v40  ;;  %v3263_v39 = vpop.f32.mrb[150].mxu1 }
 0x7cc   : > { %v11770_v1 = vpop.eup %9561  ;;  %v11803_v59 = vadd.f32 %v11719_v28, %v3263_v39  ;;  %v3265_v11 = vpop.f32.mrb[151].mxu1 }
 0x7cd   : > { %2919 = vadd.xlane.f32.xlu1 %v11770_v1  ;;  %v11805_v47 = vpack.c.bf16 %v3265_v11, %v3261_v16  ;;  %v3269_v27 = vpop.f32.mrb[152].mxu1 }
 0x7ce   : > { %v11776_v10 = vpop.eup %9563  ;;  %v11810_v38 = vadd.f32 %v11719_v28, %v3269_v27  ;;  %v3271_v42 = vpop.f32.mrb[153].mxu1 }
 0x7cf   : > { %2921 = vadd.xlane.f32.xlu0 %v11776_v10  ;;  %v3273_v60 = vpop.f32.mrb[154].mxu1 }
 0x7d0   : > { %v11782_v61 = vpop.eup %9565  ;;  %v11813_v12 = vadd.f32 %v11719_v28, %v3273_v60  ;;  %v3275_v39 = vpop.f32.mrb[155].mxu1 }
 0x7d1   : > { %2923 = vadd.xlane.f32.xlu1 %v11782_v61  ;;  %v11817_v0 = vpack.c.bf16 %v3275_v39, %v3271_v42  ;;  %v3279_v11 = vpop.f32.mrb[156].mxu1  ;;  %v11832_v42 = vld [vmem:[%s14072_s4 + $0x5] ss:$0 sm:$0xff] }
 0x7d2   : > { %v3281_v16 = vpop.f32.mrb[157].mxu1  ;;  %v11820_v57 = vadd.f32 %v11719_v28, %v3279_v11 }
 0x7d3   : > { %v3283_v63 = vpop.f32.mrb[158].mxu1 }
 0x7d4   : > { %v11823_v27 = vadd.f32 %v11719_v28, %v3283_v63  ;;  %v3285_v9 = vpop.f32.mrb[159].mxu1 }
 0x7d5   : > { %v11825_v3 = vpack.c.bf16 %v3285_v9, %v3281_v16  ;;  %v3821_v55 = vpop.f32.mrb[160].mxu1 }
 0x7d6   : > { %v3823_v39 = vpop.f32.mrb[161].mxu1  ;;  %v3908_v11 = vadd.f32 %v11832_v42, %v3821_v55 }
 0x7d7   : > { %14408 = vst [vmem:[#allocation40_spill] sm:$0xff] %v11825_v3  ;;  %v3825_v17 = vpop.f32.mrb[162].mxu1 }
 0x7d8   : > { %v3909_v48 = vadd.f32 %v11832_v42, %v3825_v17  ;;  %v3827_v63 = vpop.f32.mrb[163].mxu1 }
 0x7d9   : > { %v11836_v28 = vpack.c.bf16 %v3827_v63, %v3823_v39  ;;  %v3831_v16 = vpop.f32.mrb[164].mxu1 }
 0x7da   : > { %v3924_v9 = vpack.c.bf16 %v3909_v48, %v3908_v11  ;;  %v3910_v29 = vadd.f32 %v11832_v42, %v3831_v16  ;;  %v3833_v60 = vpop.f32.mrb[165].mxu1 }
 0x7db   : > { %v3835_v18 = vpop.f32.mrb[166].mxu1 }
 0x7dc   : > { %8671 = vmatprep.mubr.bf16.mxu1 %v3924_v9  ;;  %v3911_v37 = vadd.f32 %v11832_v42, %v3835_v18  ;;  %v3837_v46 = vpop.f32.mrb[167].mxu1 }
 0x7dd   : > { %v11840_v3 = vpack.c.bf16 %v3837_v46, %v3833_v60  ;;  %v3841_v55 = vpop.f32.mrb[168].mxu1 }
 0x7de   : > { %v3925_v44 = vpack.c.bf16 %v3911_v37, %v3910_v29  ;;  %v3912_v48 = vadd.f32 %v11832_v42, %v3841_v55  ;;  %v3843_v17 = vpop.f32.mrb[169].mxu1 }
 0x7df   : > { %14409 = vst [vmem:[#allocation36_spill] sm:$0xff] %v11840_v3  ;;  %v3845_v39 = vpop.f32.mrb[170].mxu1 }
 0x7e0   : > { %8672 = vmatmul.mubr.bf16.vlgmr.msra.gmra.mrb[192].mxu1 %v3925_v44  ;;  %v3913_v11 = vadd.f32 %v11832_v42, %v3845_v39  ;;  %v3847_v63 = vpop.f32.mrb[171].mxu1 }
 0x7e1   : > { %8720 = vmatpush3.bf16.xpose.msra.mxu1 %v14389_v25  ;;  %v11846_v9 = vpack.c.bf16 %v3847_v63, %v3843_v17  ;;  %v3851_v37 = vpop.f32.mrb[172].mxu1 }
 0x7e2   : > { %8721 = vmatprep.subr.bf16.mxu1 %v14390_v51  ;;  %v3926_v18 = vpack.c.bf16 %v3913_v11, %v3912_v48  ;;  %v3914_v46 = vadd.f32 %v11832_v42, %v3851_v37  ;;  %v3853_v44 = vpop.f32.mrb[173].mxu1 }
 0x7e3   : > { %14410 = vst [vmem:[#allocation26_spill] sm:$0xff] %v11846_v9  ;;  %v3855_v29 = vpop.f32.mrb[174].mxu1 }
 0x7e4   : > { %8675 = vmatprep.mubr.bf16.mxu1 %v3926_v18  ;;  %v3915_v60 = vadd.f32 %v11832_v42, %v3855_v29  ;;  %v3857_v55 = vpop.f32.mrb[175].mxu1 }
 0x7e5   : > { %v11852_v3 = vpack.c.bf16 %v3857_v55, %v3853_v44  ;;  %v3861_v48 = vpop.f32.mrb[176].mxu1 }
 0x7e6   : > { %v3927_v16 = vpack.c.bf16 %v3915_v60, %v3914_v46  ;;  %v3916_v17 = vadd.f32 %v11832_v42, %v3861_v48  ;;  %v3863_v39 = vpop.f32.mrb[177].mxu1 }
 0x7e7   : > { %14411 = vst [vmem:[#allocation38_spill] sm:$0xff] %v11852_v3  ;;  %v3865_v11 = vpop.f32.mrb[178].mxu1 }
 0x7e8   : > { %8676 = vmatmul.mubr.bf16.gmra.mrb[196].mxu1 %v3927_v16  ;;  %v3917_v63 = vadd.f32 %v11832_v42, %v3865_v11  ;;  %v3867_v18 = vpop.f32.mrb[179].mxu1 }
 0x7e9   : > { %8722 = vmatpush3.bf16.xpose.msra.mxu1 %v14390_v51  ;;  %v11858_v37 = vpack.c.bf16 %v3867_v18, %v3863_v39  ;;  %v3871_v46 = vpop.f32.mrb[180].mxu1 }
 0x7ea   : > { %8723 = vmatprep.subr.bf16.mxu1 %v14391_v35  ;;  %v3928_v29 = vpack.c.bf16 %v3917_v63, %v3916_v17  ;;  %v3918_v44 = vadd.f32 %v11832_v42, %v3871_v46  ;;  %v3873_v60 = vpop.f32.mrb[181].mxu1 }
 0x7eb   : > { %14412 = vst [vmem:[#allocation27_spill] sm:$0xff] %v11858_v37  ;;  %v3875_v16 = vpop.f32.mrb[182].mxu1 }
 0x7ec   : > { %8679 = vmatprep.mubr.bf16.mxu1 %v3928_v29  ;;  %v3919_v55 = vadd.f32 %v11832_v42, %v3875_v16  ;;  %v3877_v48 = vpop.f32.mrb[183].mxu1 }
 0x7ed   : > { %v11864_v3 = vpack.c.bf16 %v3877_v48, %v3873_v60  ;;  %v3881_v39 = vpop.f32.mrb[184].mxu1 }
 0x7ee   : > { %v3929_v11 = vpack.c.bf16 %v3919_v55, %v3918_v44  ;;  %v3920_v17 = vadd.f32 %v11832_v42, %v3881_v39  ;;  %v3883_v63 = vpop.f32.mrb[185].mxu1 }
 0x7ef   : > { %v3885_v18 = vpop.f32.mrb[186].mxu1 }
 0x7f0   : > { %8680 = vmatmul.mubr.bf16.gmra.mrb[200].mxu1 %v3929_v11  ;;  %v3921_v29 = vadd.f32 %v11832_v42, %v3885_v18  ;;  %v3887_v46 = vpop.f32.mrb[187].mxu1 }
 0x7f1   : > { %8724 = vmatpush3.bf16.xpose.msra.mxu1 %v14391_v35  ;;  %v11870_v37 = vpack.c.bf16 %v3887_v46, %v3883_v63  ;;  %v3891_v60 = vpop.f32.mrb[188].mxu1 }
 0x7f2   : > { %8725 = vmatprep.subr.bf16.mxu1 %v14392_v49  ;;  %v3930_v16 = vpack.c.bf16 %v3921_v29, %v3920_v17  ;;  %v3922_v55 = vadd.f32 %v11832_v42, %v3891_v60  ;;  %v3893_v48 = vpop.f32.mrb[189].mxu1 }
 0x7f3   : > { %14413 = vst [vmem:[#allocation28_spill] sm:$0xff] %v11870_v37  ;;  %v3895_v39 = vpop.f32.mrb[190].mxu1 }
 0x7f4   : > { %8683 = vmatprep.mubr.bf16.mxu1 %v3930_v16  ;;  %v3923_v63 = vadd.f32 %v11832_v42, %v3895_v39  ;;  %v3897_v18 = vpop.f32.mrb[191].mxu1 }
 0x7f5   : > { %v11876_v29 = vpack.c.bf16 %v3897_v18, %v3893_v48 }
 0x7f9   : > { %8726 = vmatpush3.bf16.xpose.msra.mxu1 %v14392_v49 }
 0x7fa   : > { %8727 = vmatprep.subr.bf16.mxu1 %v14393_v34 }
 0x801   : > { %8728 = vmatpush3.bf16.xpose.msra.mxu1 %v14393_v34 }
 0x802   : > { %8729 = vmatprep.subr.bf16.mxu1 %v14394_v6 }
 0x809   : > { %8730 = vmatpush3.bf16.xpose.msra.mxu1 %v14394_v6 }
 0x80a   : > { %8731 = vmatprep.subr.bf16.mxu1 %v14395_v33 }
 0x811   : > { %8732 = vmatpush3.bf16.xpose.msra.mxu1 %v14395_v33 }
 0x812   : > { %8733 = vmatprep.subr.bf16.mxu1 %v14396_v20 }
 0x819   : > { %8734 = vmatpush3.bf16.xpose.msra.mxu1 %v14396_v20 }
 0x828   : > { %v2894_v9 = vpop.xlane.xlu0 %2893 }
 0x829   : > { %9567 = vrcp.f32 %v2894_v9  ;;  %v3931_v9 = vpack.c.bf16 %v3923_v63, %v3922_v55 }
 0x82a   : > { %v2896_v44 = vpop.xlane.xlu1 %2895 }
 0x82b   : > { %9569 = vrcp.f32 %v2896_v44  ;;  %8684 = vmatmul.mubr.bf16.gmra.mrb[204].mxu1 %v3931_v9 }
 0x82c   : > { %v2898_v11 = vpop.xlane.xlu0 %2897 }
 0x82d   : > { %9571 = vrcp.f32 %v2898_v11 }
 0x82e   : > { %v2900_v17 = vpop.xlane.xlu1 %2899 }
 0x82f   : > { %9573 = vrcp.f32 %v2900_v17 }
 0x833   : > { %v9568_v46 = vpop.eup %9567 }
 0x834   : > { %v2941_v44 = vmul.f32 %v9568_v46, %v11684_v22 }
 0x835   : > { %v9570_v16 = vpop.eup %9569 }
 0x836   : > { %v2942_v60 = vmul.f32 %v9570_v16, %v11687_v45 }
 0x837   : > { %v9572_v11 = vpop.eup %9571 }
 0x838   : > { %v2902_v37 = vpop.xlane.xlu0 %2901  ;;  %v2957_v42 = vpack.c.bf16 %v2942_v60, %v2941_v44  ;;  %v2943_v48 = vmul.f32 %v9572_v11, %v11691_v23 }
 0x839   : > { %v9574_v39 = vpop.eup %9573  ;;  %9575 = vrcp.f32 %v2902_v37 }
 0x83a   : > { %v2944_v55 = vmul.f32 %v9574_v39, %v11695_v58  ;;  %v2904_v63 = vpop.xlane.xlu1 %2903  ;;  %8575 = vmatprep.mubr.bf16.mxu0 %v2957_v42 }
 0x83b   : > { %9577 = vrcp.f32 %v2904_v63 }
 0x83c   : > { %v2906_v18 = vpop.xlane.xlu0 %2905  ;;  %v2958_v17 = vpack.c.bf16 %v2944_v55, %v2943_v48 }
 0x83d   : > { %9579 = vrcp.f32 %v2906_v18 }
 0x83e   : > { %v2908_v22 = vpop.xlane.xlu1 %2907  ;;  %8576 = vmatmul.mubr.bf16.vlgmr.msra.gmra.mrb[32].mxu0 %v2958_v17 }
 0x83f   : > { %9581 = vrcp.f32 %v2908_v22  ;;  %8592 = vmatpush3.bf16.xpose.msra.mxu0 %v14389_v25 }
 0x840   : > { %8593 = vmatprep.subr.bf16.mxu0 %v14390_v51 }
 0x843   : > { %v9576_v45 = vpop.eup %9575 }
 0x844   : > { %v2945_v23 = vmul.f32 %v9576_v45, %v11700_v56 }
 0x845   : > { %v9578_v37 = vpop.eup %9577 }
 0x846   : > { %v2946_v58 = vmul.f32 %v9578_v37, %v11703_v43 }
 0x847   : > { %v9580_v9 = vpop.eup %9579  ;;  %8594 = vmatpush3.bf16.xpose.msra.mxu0 %v14390_v51 }
 0x848   : > { %v2910_v46 = vpop.xlane.xlu0 %2909  ;;  %v2959_v16 = vpack.c.bf16 %v2946_v58, %v2945_v23  ;;  %8595 = vmatprep.subr.bf16.mxu0 %v14391_v35  ;;  %v2947_v11 = vmul.f32 %v9580_v9, %v11707_v36 }
 0x849   : > { %v9582_v44 = vpop.eup %9581  ;;  %9583 = vrcp.f32 %v2910_v46 }
 0x84a   : > { %v2912_v60 = vpop.xlane.xlu1 %2911  ;;  %8579 = vmatprep.mubr.bf16.mxu0 %v2959_v16  ;;  %v2948_v42 = vmul.f32 %v9582_v44, %v11711_v50 }
 0x84b   : > { %9585 = vrcp.f32 %v2912_v60 }
 0x84c   : > { %v2914_v39 = vpop.xlane.xlu0 %2913  ;;  %v2960_v56 = vpack.c.bf16 %v2948_v42, %v2947_v11 }
 0x84d   : > { %9587 = vrcp.f32 %v2914_v39 }
 0x84e   : > { %v2916_v43 = vpop.xlane.xlu1 %2915  ;;  %8580 = vmatmul.mubr.bf16.gmra.mrb[36].mxu0 %v2960_v56  ;;  %v14423_v56 = vld [vmem:[#allocation37_spill] sm:$0xff] }
 0x84f   : > { %9589 = vrcp.f32 %v2916_v43  ;;  %8596 = vmatpush3.bf16.xpose.msra.mxu0 %v14391_v35 }
 0x850   : > { %8597 = vmatprep.subr.bf16.mxu0 %v14392_v49 }
 0x853   : > { %v9584_v48 = vpop.eup %9583 }
 0x854   : > { %v2949_v63 = vmul.f32 %v9584_v48, %v11729_v4 }
 0x855   : > { %v9586_v55 = vpop.eup %9585 }
 0x856   : > { %v2950_v18 = vmul.f32 %v9586_v55, %v11734_v30 }
 0x857   : > { %v9588_v36 = vpop.eup %9587  ;;  %8598 = vmatpush3.bf16.xpose.msra.mxu0 %v14392_v49 }
 0x858   : > { %v2918_v50 = vpop.xlane.xlu0 %2917  ;;  %v2961_v17 = vpack.c.bf16 %v2950_v18, %v2949_v63  ;;  %8599 = vmatprep.subr.bf16.mxu0 %v14393_v34  ;;  %v2951_v37 = vmul.f32 %v9588_v36, %v11741_v19  ;;  %v14424_v63 = vld [vmem:[#allocation39_spill] sm:$0xff]  ;;  %v14425_v36 = vld [vmem:[#allocation34_spill] sm:$0xff] }
 0x859   : > { %v9590_v22 = vpop.eup %9589  ;;  %9591 = vrcp.f32 %v2918_v50 }
 0x85a   : > { %v2920_v45 = vpop.xlane.xlu1 %2919  ;;  %8583 = vmatprep.mubr.bf16.mxu0 %v2961_v17  ;;  %v2952_v23 = vmul.f32 %v9590_v22, %v11748_v14  ;;  %v14426_v17 = vld [vmem:[#allocation35_spill] sm:$0xff] }
 0x85b   : > { %9593 = vrcp.f32 %v2920_v45 }
 0x85c   : > { %v2922_v58 = vpop.xlane.xlu0 %2921  ;;  %v2962_v4 = vpack.c.bf16 %v2952_v23, %v2951_v37  ;;  %v14427_v23 = vld [vmem:[#allocation43_spill] sm:$0xff] }
 0x85d   : > { %9595 = vrcp.f32 %v2922_v58 }
 0x85e   : > { %v2924_v30 = vpop.xlane.xlu1 %2923  ;;  %8584 = vmatmul.mubr.bf16.gmra.mrb[40].mxu0 %v2962_v4 }
 0x85f   : > { %9597 = vrcp.f32 %v2924_v30  ;;  %8600 = vmatpush3.bf16.xpose.msra.mxu0 %v14393_v34 }
 0x860   : > { %8601 = vmatprep.subr.bf16.mxu0 %v14394_v6 }
 0x863   : > { %v9592_v9 = vpop.eup %9591 }
 0x864   : > { %v2953_v16 = vmul.f32 %v9592_v9, %v11767_v40  ;;  %v14414_v40 = vpack.c.bf16 %v11725_v26, %v11722_v8  ;;  %v14417_v8 = vpack.c.bf16 %v11780_v31, %v11774_v32  ;;  %v14418_v26 = vpack.c.bf16 %v11793_v5, %v11790_v13  ;;  %v14428_v9 = vld [vmem:[#allocation44_spill] sm:$0xff] }
 0x865   : > { %v9594_v46 = vpop.eup %9593 }
 0x866   : > { %v2954_v44 = vmul.f32 %v9594_v46, %v11770_v1  ;;  %v14415_v1 = vpack.c.bf16 %v11746_v2, %v11739_v54  ;;  %v14420_v54 = vpack.c.bf16 %v11813_v12, %v11810_v38  ;;  %v14421_v2 = vpack.c.bf16 %v11823_v27, %v11820_v57 }
 0x867   : > { %v9596_v19 = vpop.eup %9595  ;;  %8602 = vmatpush3.bf16.xpose.msra.mxu0 %v14394_v6 }
 0x868   : > { %v2963_v14 = vpack.c.bf16 %v2954_v44, %v2953_v16  ;;  %8603 = vmatprep.subr.bf16.mxu0 %v14395_v33  ;;  %v2955_v11 = vmul.f32 %v9596_v19, %v11776_v10  ;;  %v14416_v10 = vpack.c.bf16 %v11761_v41, %v11757_v52  ;;  %v14429_v16 = vld [vmem:[#allocation41_spill] sm:$0xff]  ;;  %v14430_v19 = vld [vmem:[#allocation42_spill] sm:$0xff] }
 0x869   : > { %v9598_v60 = vpop.eup %9597 }
 0x86a   : > { %8587 = vmatprep.mubr.bf16.mxu0 %v2963_v14  ;;  %v2956_v42 = vmul.f32 %v9598_v60, %v11782_v61 }
 0x86c   : > { %v2964_v39 = vpack.c.bf16 %v2956_v42, %v2955_v11  ;;  %v14431_v42 = vld [vmem:[#allocation47_spill] sm:$0xff] }
 0x86e   : > { %8588 = vmatmul.mubr.bf16.gmra.mrb[44].mxu0 %v2964_v39 }
 0x86f   : > { %8604 = vmatpush3.bf16.xpose.msra.mxu0 %v14395_v33  ;;  %8607 = vmatprep.mubr.bf16.mxu0 %v14414_v40 }
 0x870   : > { %8605 = vmatprep.subr.bf16.mxu0 %v14396_v20 }
 0x877   : > { %8606 = vmatpush3.bf16.xpose.msra.mxu0 %v14396_v20 }
 0x878   : > { %8623 = vmatprep.subr.bf16.mxu0 %v11727_v53 }
 0x87e   : > { %8608 = vmatmul.mubr.bf16.vlgmr.msra.gmra.mrb[80].mxu0 %v14415_v1 }
 0x87f   : > { %8611 = vmatprep.mubr.bf16.mxu0 %v14416_v10  ;;  %8624 = vmatpush3.bf16.msra.mxu0 %v11727_v53  ;;  %v14419_v53 = vpack.c.bf16 %v11803_v59, %v11800_v21  ;;  %v14422_v21 = vld [vmem:[#allocation40_spill] sm:$0xff] }
 0x880   : > { %8625 = vmatprep.subr.bf16.mxu0 %v11751_v62  ;;  %v14432_v10 = vld [vmem:[#allocation48_spill] sm:$0xff] }
 0x883   : > { %8626 = vmatpush3.bf16.msra.mxu0 %v11751_v62 }
 0x884   : > { %8627 = vmatprep.subr.bf16.mxu0 %v11765_v24 }
 0x886   : > { %8612 = vmatmul.mubr.bf16.gmra.mrb[84].mxu0 %v14417_v8 }
 0x887   : > { %8615 = vmatprep.mubr.bf16.mxu0 %v14418_v26  ;;  %8628 = vmatpush3.bf16.msra.mxu0 %v11765_v24  ;;  %v14433_v26 = vld [vmem:[#allocation45_spill] sm:$0xff] }
 0x888   : > { %8629 = vmatprep.subr.bf16.mxu0 %v11784_v7 }
 0x88b   : > { %8630 = vmatpush3.bf16.msra.mxu0 %v11784_v7 }
 0x88c   : > { %8631 = vmatprep.subr.bf16.mxu0 %v11797_v15 }
 0x88e   : > { %8616 = vmatmul.mubr.bf16.gmra.mrb[88].mxu0 %v14419_v53 }
 0x88f   : > { %8619 = vmatprep.mubr.bf16.mxu0 %v14420_v54  ;;  %8632 = vmatpush3.bf16.msra.mxu0 %v11797_v15  ;;  %v14434_v54 = vld [vmem:[#allocation46_spill] sm:$0xff] }
 0x890   : > { %8633 = vmatprep.subr.bf16.mxu0 %v11805_v47 }
 0x893   : > { %8634 = vmatpush3.bf16.msra.mxu0 %v11805_v47 }
 0x894   : > { %8635 = vmatprep.subr.bf16.mxu0 %v11817_v0 }
 0x896   : > { %8620 = vmatmul.mubr.bf16.gmra.mrb[92].mxu0 %v14421_v2 }
 0x897   : > { %8636 = vmatpush3.bf16.msra.mxu0 %v11817_v0 }
 0x898   : > { %8637 = vmatprep.subr.bf16.mxu0 %v14422_v21 }
 0x89b   : > { %8638 = vmatpush3.bf16.msra.mxu0 %v14422_v21 }
 0x89c   : > { %8687 = vmatprep.subr.bf16.mxu0 %v11836_v28 }
 0x8b3   : > { %v11953_v62 = vpop.f32.mrb[192].mxu1 }
 0x8b4   : > { %v3974_v5 = vpop.f32.mrb[193].mxu1 }
 0x8b5   : > { %v11955_v52 = vpop.f32.mrb[194].mxu1 }
 0x8b6   : > { %v3977_v47 = vpop.f32.mrb[195].mxu1 }
 0x8bb   : > { %v11957_v41 = vpop.f32.mrb[196].mxu1 }
 0x8bc   : > { %v11959_v24 = vpop.f32.mrb[197].mxu1 }
 0x8bd   : > { %v11961_v57 = vpop.f32.mrb[198].mxu1 }
 0x8be   : > { %v11963_v32 = vpop.f32.mrb[199].mxu1 }
 0x8c3   : > { %v11965_v0 = vpop.f32.mrb[200].mxu1 }
 0x8c4   : > { %v11967_v31 = vpop.f32.mrb[201].mxu1 }
 0x8c5   : > { %v11969_v61 = vpop.f32.mrb[202].mxu1 }
 0x8c6   : > { %v11971_v7 = vpop.f32.mrb[203].mxu1 }
 0x8fe   : > { %v11973_v13 = vpop.f32.mrb[204].mxu1 }
 0x8ff   : > { %v11975_v38 = vpop.f32.mrb[205].mxu1 }
 0x900   : > { %v11977_v15 = vpop.f32.mrb[206].mxu1 }
 0x901   : > { %v11979_v59 = vpop.f32.mrb[207].mxu1 }
 0x951   : > { %v8609_v12 = vpop.f32.mrb[80].mxu0 }
 0x952   : > { %v3362_v27 = vpop.f32.mrb[81].mxu0  ;;  %v11989_v50 = vadd.f32 %v8609_v12, %v14425_v36 }
 0x953   : > { %v11982_v43 = vadd.f32 %v3362_v27, %v14423_v56  ;;  %v8610_v48 = vpop.f32.mrb[82].mxu0  ;;  %v14435_v27 = vld [vmem:[#allocation51_spill] sm:$0xff] }
 0x954   : > { %v3365_v55 = vpop.f32.mrb[83].mxu0  ;;  %v11993_v22 = vadd.f32 %v8610_v48, %v14426_v17 }
 0x955   : > { %v11985_v18 = vadd.f32 %v3365_v55, %v14424_v63  ;;  %3425 = vmax.xlane.f32.xlu0 %v11982_v43 }
 0x957   : > { %3427 = vmax.xlane.f32.xlu1 %v11985_v18 }
 0x959   : > { %v8613_v45 = vpop.f32.mrb[84].mxu0  ;;  %3429 = vmax.xlane.f32.xlu0 %v11989_v50 }
 0x95a   : > { %v3378_v37 = vpop.f32.mrb[85].mxu0  ;;  %v12005_v44 = vadd.f32 %v8613_v45, %v14429_v16 }
 0x95b   : > { %v11997_v58 = vadd.f32 %v3378_v37, %v14427_v23  ;;  %v8614_v4 = vpop.f32.mrb[86].mxu0  ;;  %3431 = vmax.xlane.f32.xlu1 %v11993_v22  ;;  %v14436_v37 = vld [vmem:[#allocation52_spill] sm:$0xff] }
 0x95c   : > { %v3381_v30 = vpop.f32.mrb[87].mxu0  ;;  %v12009_v14 = vadd.f32 %v8614_v4, %v14430_v19 }
 0x95d   : > { %v12001_v46 = vadd.f32 %v3381_v30, %v14428_v9  ;;  %3433 = vmax.xlane.f32.xlu0 %v11997_v58  ;;  %v14437_v30 = vld [vmem:[#allocation49_spill] sm:$0xff] }
 0x95f   : > { %3435 = vmax.xlane.f32.xlu1 %v12001_v46 }
 0x961   : > { %v8617_v60 = vpop.f32.mrb[88].mxu0  ;;  %3437 = vmax.xlane.f32.xlu0 %v12005_v44 }
 0x962   : > { %v3394_v11 = vpop.f32.mrb[89].mxu0  ;;  %v12021_v53 = vadd.f32 %v8617_v60, %v14433_v26 }
 0x963   : > { %v12013_v39 = vadd.f32 %v3394_v11, %v14431_v42  ;;  %v8618_v40 = vpop.f32.mrb[90].mxu0  ;;  %3439 = vmax.xlane.f32.xlu1 %v12009_v14  ;;  %v14438_v11 = vld [vmem:[#allocation50_spill] sm:$0xff] }
 0x964   : > { %v3397_v1 = vpop.f32.mrb[91].mxu0  ;;  %v12025_v2 = vadd.f32 %v8618_v40, %v14434_v54 }
 0x965   : > { %v12017_v8 = vadd.f32 %v3397_v1, %v14432_v10  ;;  %3441 = vmax.xlane.f32.xlu0 %v12013_v39  ;;  %v12045_v1 = vadd.f32 %v3974_v5, %v14423_v56  ;;  %v12064_v5 = vadd.f32 %v11959_v24, %v14427_v23  ;;  %v12084_v24 = vadd.f32 %v11967_v31, %v14431_v42 }
 0x966   : > { %v12104_v31 = vadd.f32 %v11975_v38, %v14435_v27 }
 0x967   : > { %3443 = vmax.xlane.f32.xlu1 %v12017_v8 }
 0x969   : > { %v8621_v21 = vpop.f32.mrb[92].mxu0  ;;  %3445 = vmax.xlane.f32.xlu0 %v12021_v53 }
 0x96a   : > { %v3410_v12 = vpop.f32.mrb[93].mxu0  ;;  %v12037_v60 = vadd.f32 %v8621_v21, %v14437_v30  ;;  %v12054_v21 = vadd.f32 %v11953_v62, %v14425_v36  ;;  %v12074_v62 = vadd.f32 %v11957_v41, %v14429_v16  ;;  %v12094_v41 = vadd.f32 %v11965_v0, %v14433_v26 }
 0x96b   : > { %v12029_v48 = vadd.f32 %v3410_v12, %v14435_v27  ;;  %v8622_v55 = vpop.f32.mrb[94].mxu0  ;;  %3447 = vmax.xlane.f32.xlu1 %v12025_v2  ;;  %v12049_v12 = vadd.f32 %v3977_v47, %v14424_v63  ;;  %v12069_v47 = vadd.f32 %v11963_v32, %v14428_v9  ;;  %v12089_v32 = vadd.f32 %v11971_v7, %v14432_v10 }
 0x96c   : > { %v3413_v45 = vpop.f32.mrb[95].mxu0  ;;  %v12041_v40 = vadd.f32 %v8622_v55, %v14438_v11  ;;  %v12059_v55 = vadd.f32 %v11955_v52, %v14426_v17  ;;  %v12079_v52 = vadd.f32 %v11961_v57, %v14430_v19  ;;  %v12099_v57 = vadd.f32 %v11969_v61, %v14434_v54 }
 0x96d   : > { %v12033_v4 = vadd.f32 %v3413_v45, %v14436_v37  ;;  %3449 = vmax.xlane.f32.xlu0 %v12029_v48  ;;  %v12109_v7 = vadd.f32 %v11979_v59, %v14436_v37  ;;  %v12114_v0 = vadd.f32 %v11973_v13, %v14437_v30  ;;  %v12119_v61 = vadd.f32 %v11977_v15, %v14438_v11 }
 0x96f   : > { %3451 = vmax.xlane.f32.xlu1 %v12033_v4 }
 0x971   : > { %3453 = vmax.xlane.f32.xlu0 %v12037_v60 }
 0x973   : > { %3455 = vmax.xlane.f32.xlu1 %v12041_v40 }
 0x975   : > { %4037 = vmax.xlane.f32.xlu0 %v12045_v1 }
 0x977   : > { %4039 = vmax.xlane.f32.xlu1 %v12049_v12 }
 0x979   : > { %4041 = vmax.xlane.f32.xlu0 %v12054_v21 }
 0x97b   : > { %4043 = vmax.xlane.f32.xlu1 %v12059_v55 }
 0x97d   : > { %4045 = vmax.xlane.f32.xlu0 %v12064_v5 }
 0x97f   : > { %4047 = vmax.xlane.f32.xlu1 %v12069_v47 }
 0x981   : > { %4049 = vmax.xlane.f32.xlu0 %v12074_v62 }
 0x983   : > { %4051 = vmax.xlane.f32.xlu1 %v12079_v52 }
 0x985   : > { %4053 = vmax.xlane.f32.xlu0 %v12084_v24 }
 0x987   : > { %4055 = vmax.xlane.f32.xlu1 %v12089_v32 }
 0x989   : > { %4057 = vmax.xlane.f32.xlu0 %v12094_v41 }
 0x98b   : > { %4059 = vmax.xlane.f32.xlu1 %v12099_v57 }
 0x98d   : > { %4061 = vmax.xlane.f32.xlu0 %v12104_v31 }
 0x98f   : > { %4063 = vmax.xlane.f32.xlu1 %v12109_v7 }
 0x991   : > { %4065 = vmax.xlane.f32.xlu0 %v12114_v0 }
 0x993   : > { %4067 = vmax.xlane.f32.xlu1 %v12119_v61 }
 0x9e2   : > { %v3426_v38 = vpop.xlane.xlu0 %3425 }
 0x9e3   : > { %v3457_v59 = vsub.f32 %v11982_v43, %v3426_v38 }
 0x9e4   : > { %v3428_v45 = vpop.xlane.xlu1 %3427 }
 0x9e5   : > { %v3473_v37 = vmul.f32 1.442695, %v3457_v59  ;;  %v3458_v27 = vsub.f32 %v11985_v18, %v3428_v45 }
 0x9e6   : > { %v3430_v54 = vpop.xlane.xlu0 %3429 }
 0x9e7   : > { %9599 = vpow2.f32 %v3473_v37  ;;  %v3475_v13 = vmul.f32 1.442695, %v3458_v27  ;;  %v3459_v30 = vsub.f32 %v11989_v50, %v3430_v54 }
 0x9e8   : > { %v3432_v10 = vpop.xlane.xlu1 %3431 }
 0x9e9   : > { %9601 = vpow2.f32 %v3475_v13  ;;  %v3477_v15 = vmul.f32 1.442695, %v3459_v30  ;;  %v3460_v11 = vsub.f32 %v11993_v22, %v3432_v10 }
 0x9ea   : > { %v3434_v26 = vpop.xlane.xlu0 %3433 }
 0x9eb   : > { %9603 = vpow2.f32 %v3477_v15  ;;  %v3479_v42 = vmul.f32 1.442695, %v3460_v11  ;;  %v3461_v19 = vsub.f32 %v11997_v58, %v3434_v26 }
 0x9ec   : > { %v3436_v43 = vpop.xlane.xlu1 %3435 }
 0x9ed   : > { %9605 = vpow2.f32 %v3479_v42  ;;  %v3481_v38 = vmul.f32 1.442695, %v3461_v19  ;;  %v3462_v18 = vsub.f32 %v12001_v46, %v3436_v43 }
 0x9ee   : > { %v3438_v59 = vpop.xlane.xlu0 %3437 }
 0x9ef   : > { %9607 = vpow2.f32 %v3481_v38  ;;  %v3483_v27 = vmul.f32 1.442695, %v3462_v18  ;;  %v3463_v50 = vsub.f32 %v12005_v44, %v3438_v59 }
 0x9f0   : > { %v3440_v54 = vpop.xlane.xlu1 %3439 }
 0x9f1   : > { %v12130_v37 = vpop.eup %9599  ;;  %9609 = vpow2.f32 %v3483_v27  ;;  %v3485_v22 = vmul.f32 1.442695, %v3463_v50  ;;  %v3464_v10 = vsub.f32 %v12009_v14, %v3440_v54 }
 0x9f2   : > { %3505 = vadd.xlane.f32.xlu0 %v12130_v37  ;;  %v3442_v58 = vpop.xlane.xlu0 %3441 }
 0x9f3   : > { %v12134_v26 = vpop.eup %9601  ;;  %9611 = vpow2.f32 %v3485_v22  ;;  %v3487_v19 = vmul.f32 1.442695, %v3464_v10  ;;  %v3465_v46 = vsub.f32 %v12013_v39, %v3442_v58 }
 0x9f4   : > { %3507 = vadd.xlane.f32.xlu1 %v12134_v26  ;;  %v3444_v42 = vpop.xlane.xlu1 %3443 }
 0x9f5   : > { %v12138_v44 = vpop.eup %9603  ;;  %9613 = vpow2.f32 %v3487_v19  ;;  %v3489_v30 = vmul.f32 1.442695, %v3465_v46  ;;  %v3466_v11 = vsub.f32 %v12017_v8, %v3444_v42 }
 0x9f6   : > { %3509 = vadd.xlane.f32.xlu0 %v12138_v44  ;;  %v3446_v14 = vpop.xlane.xlu0 %3445 }
 0x9f7   : > { %v12142_v45 = vpop.eup %9605  ;;  %9615 = vpow2.f32 %v3489_v30  ;;  %v3491_v13 = vmul.f32 1.442695, %v3466_v11  ;;  %v3467_v15 = vsub.f32 %v12021_v53, %v3446_v14 }
 0x9f8   : > { %3511 = vadd.xlane.f32.xlu1 %v12142_v45  ;;  %v3448_v39 = vpop.xlane.xlu1 %3447 }
 0x9f9   : > { %v12146_v43 = vpop.eup %9607  ;;  %9617 = vpow2.f32 %v3491_v13  ;;  %v3493_v38 = vmul.f32 1.442695, %v3467_v15  ;;  %v3468_v18 = vsub.f32 %v12025_v2, %v3448_v39 }
 0x9fa   : > { %3513 = vadd.xlane.f32.xlu0 %v12146_v43  ;;  %v3450_v8 = vpop.xlane.xlu0 %3449 }
 0x9fb   : > { %v12150_v59 = vpop.eup %9609  ;;  %9619 = vpow2.f32 %v3493_v38  ;;  %v3495_v27 = vmul.f32 1.442695, %v3468_v18  ;;  %v3469_v50 = vsub.f32 %v12029_v48, %v3450_v8 }
 0x9fc   : > { %3515 = vadd.xlane.f32.xlu1 %v12150_v59  ;;  %v3452_v53 = vpop.xlane.xlu1 %3451 }
 0x9fd   : > { %v12154_v54 = vpop.eup %9611  ;;  %9621 = vpow2.f32 %v3495_v27  ;;  %v3497_v22 = vmul.f32 1.442695, %v3469_v50  ;;  %v3470_v10 = vsub.f32 %v12033_v4, %v3452_v53 }
 0x9fe   : > { %3517 = vadd.xlane.f32.xlu0 %v12154_v54  ;;  %v3454_v2 = vpop.xlane.xlu0 %3453 }
 0x9ff   : > { %v12158_v58 = vpop.eup %9613  ;;  %9623 = vpow2.f32 %v3497_v22  ;;  %v3499_v19 = vmul.f32 1.442695, %v3470_v10  ;;  %v3471_v46 = vsub.f32 %v12037_v60, %v3454_v2 }
 0xa00   : > { %3519 = vadd.xlane.f32.xlu1 %v12158_v58  ;;  %v3456_v48 = vpop.xlane.xlu1 %3455 }
 0xa01   : > { %v12162_v42 = vpop.eup %9615  ;;  %9625 = vpow2.f32 %v3499_v19  ;;  %v3501_v30 = vmul.f32 1.442695, %v3471_v46  ;;  %v3472_v11 = vsub.f32 %v12041_v40, %v3456_v48 }
 0xa02   : > { %3521 = vadd.xlane.f32.xlu0 %v12162_v42  ;;  %v4038_v4 = vpop.xlane.xlu0 %4037 }
 0xa03   : > { %v12166_v14 = vpop.eup %9617  ;;  %9627 = vpow2.f32 %v3501_v30  ;;  %v3503_v13 = vmul.f32 1.442695, %v3472_v11  ;;  %v4069_v15 = vsub.f32 %v12045_v1, %v4038_v4 }
 0xa04   : > { %3523 = vadd.xlane.f32.xlu1 %v12166_v14  ;;  %v4040_v60 = vpop.xlane.xlu1 %4039 }
 0xa05   : > { %v12170_v39 = vpop.eup %9619  ;;  %9629 = vpow2.f32 %v3503_v13  ;;  %v4085_v38 = vmul.f32 1.442695, %v4069_v15  ;;  %v4070_v18 = vsub.f32 %v12049_v12, %v4040_v60 }
 0xa06   : > { %3525 = vadd.xlane.f32.xlu0 %v12170_v39  ;;  %v4042_v40 = vpop.xlane.xlu0 %4041 }
 0xa07   : > { %v12174_v8 = vpop.eup %9621  ;;  %9631 = vpow2.f32 %v4085_v38  ;;  %v4087_v27 = vmul.f32 1.442695, %v4070_v18  ;;  %v4071_v50 = vsub.f32 %v12054_v21, %v4042_v40 }
 0xa08   : > { %3527 = vadd.xlane.f32.xlu1 %v12174_v8  ;;  %v4044_v1 = vpop.xlane.xlu1 %4043 }
 0xa09   : > { %v12178_v53 = vpop.eup %9623  ;;  %9633 = vpow2.f32 %v4087_v27  ;;  %v4089_v22 = vmul.f32 1.442695, %v4071_v50  ;;  %v4072_v10 = vsub.f32 %v12059_v55, %v4044_v1 }
 0xa0a   : > { %3529 = vadd.xlane.f32.xlu0 %v12178_v53  ;;  %v4046_v12 = vpop.xlane.xlu0 %4045 }
 0xa0b   : > { %v12182_v2 = vpop.eup %9625  ;;  %9635 = vpow2.f32 %v4089_v22  ;;  %v4091_v19 = vmul.f32 1.442695, %v4072_v10  ;;  %v4073_v46 = vsub.f32 %v12064_v5, %v4046_v12 }
 0xa0c   : > { %3531 = vadd.xlane.f32.xlu1 %v12182_v2  ;;  %v4048_v21 = vpop.xlane.xlu1 %4047 }
 0xa0d   : > { %v12186_v48 = vpop.eup %9627  ;;  %9637 = vpow2.f32 %v4091_v19  ;;  %v4093_v30 = vmul.f32 1.442695, %v4073_v46  ;;  %v4074_v11 = vsub.f32 %v12069_v47, %v4048_v21 }
 0xa0e   : > { %3533 = vadd.xlane.f32.xlu0 %v12186_v48  ;;  %v4050_v55 = vpop.xlane.xlu0 %4049 }
 0xa0f   : > { %v12190_v4 = vpop.eup %9629  ;;  %9639 = vpow2.f32 %v4093_v30  ;;  %v4095_v13 = vmul.f32 1.442695, %v4074_v11  ;;  %v4075_v15 = vsub.f32 %v12074_v62, %v4050_v55 }
 0xa10   : > { %3535 = vadd.xlane.f32.xlu1 %v12190_v4  ;;  %v4052_v5 = vpop.xlane.xlu1 %4051 }
 0xa11   : > { %v12194_v60 = vpop.eup %9631  ;;  %9641 = vpow2.f32 %v4095_v13  ;;  %v4097_v38 = vmul.f32 1.442695, %v4075_v15  ;;  %v4076_v18 = vsub.f32 %v12079_v52, %v4052_v5 }
 0xa12   : > { %4117 = vadd.xlane.f32.xlu0 %v12194_v60  ;;  %v4054_v47 = vpop.xlane.xlu0 %4053 }
 0xa13   : > { %v12198_v40 = vpop.eup %9633  ;;  %9643 = vpow2.f32 %v4097_v38  ;;  %v4099_v27 = vmul.f32 1.442695, %v4076_v18  ;;  %v4077_v50 = vsub.f32 %v12084_v24, %v4054_v47 }
 0xa14   : > { %4119 = vadd.xlane.f32.xlu1 %v12198_v40  ;;  %v4056_v62 = vpop.xlane.xlu1 %4055 }
 0xa15   : > { %v12202_v1 = vpop.eup %9635  ;;  %9645 = vpow2.f32 %v4099_v27  ;;  %v4101_v22 = vmul.f32 1.442695, %v4077_v50  ;;  %v4078_v10 = vsub.f32 %v12089_v32, %v4056_v62 }
 0xa16   : > { %4121 = vadd.xlane.f32.xlu0 %v12202_v1  ;;  %v4058_v52 = vpop.xlane.xlu0 %4057 }
 0xa17   : > { %v12206_v12 = vpop.eup %9637  ;;  %9647 = vpow2.f32 %v4101_v22  ;;  %v4103_v19 = vmul.f32 1.442695, %v4078_v10  ;;  %v4079_v46 = vsub.f32 %v12094_v41, %v4058_v52 }
 0xa18   : > { %4123 = vadd.xlane.f32.xlu1 %v12206_v12  ;;  %v4060_v24 = vpop.xlane.xlu1 %4059 }
 0xa19   : > { %v12210_v21 = vpop.eup %9639  ;;  %9649 = vpow2.f32 %v4103_v19  ;;  %v4105_v30 = vmul.f32 1.442695, %v4079_v46  ;;  %v4080_v11 = vsub.f32 %v12099_v57, %v4060_v24 }
 0xa1a   : > { %4125 = vadd.xlane.f32.xlu0 %v12210_v21  ;;  %v4062_v32 = vpop.xlane.xlu0 %4061 }
 0xa1b   : > { %v12214_v55 = vpop.eup %9641  ;;  %9651 = vpow2.f32 %v4105_v30  ;;  %v4107_v13 = vmul.f32 1.442695, %v4080_v11  ;;  %v4081_v15 = vsub.f32 %v12104_v31, %v4062_v32 }
 0xa1c   : > { %4127 = vadd.xlane.f32.xlu1 %v12214_v55  ;;  %v4064_v41 = vpop.xlane.xlu1 %4063 }
 0xa1d   : > { %v12218_v5 = vpop.eup %9643  ;;  %9653 = vpow2.f32 %v4107_v13  ;;  %v4109_v38 = vmul.f32 1.442695, %v4081_v15  ;;  %v4082_v18 = vsub.f32 %v12109_v7, %v4064_v41 }
 0xa1e   : > { %4129 = vadd.xlane.f32.xlu0 %v12218_v5  ;;  %v4066_v57 = vpop.xlane.xlu0 %4065 }
 0xa1f   : > { %v12222_v47 = vpop.eup %9645  ;;  %9655 = vpow2.f32 %v4109_v38  ;;  %v4111_v27 = vmul.f32 1.442695, %v4082_v18  ;;  %v4083_v50 = vsub.f32 %v12114_v0, %v4066_v57 }
 0xa20   : > { %4131 = vadd.xlane.f32.xlu1 %v12222_v47  ;;  %v4068_v31 = vpop.xlane.xlu1 %4067 }
 0xa21   : > { %v12226_v62 = vpop.eup %9647  ;;  %9657 = vpow2.f32 %v4111_v27  ;;  %v4113_v22 = vmul.f32 1.442695, %v4083_v50  ;;  %v4084_v10 = vsub.f32 %v12119_v61, %v4068_v31 }
 0xa22   : > { %4133 = vadd.xlane.f32.xlu0 %v12226_v62 }
 0xa23   : > { %v12230_v7 = vpop.eup %9649  ;;  %9659 = vpow2.f32 %v4113_v22  ;;  %v4115_v52 = vmul.f32 1.442695, %v4084_v10 }
 0xa24   : > { %4135 = vadd.xlane.f32.xlu1 %v12230_v7 }
 0xa25   : > { %v12233_v19 = vpop.eup %9651  ;;  %9661 = vpow2.f32 %v4115_v52 }
 0xa26   : > { %4137 = vadd.xlane.f32.xlu0 %v12233_v19 }
 0xa27   : > { %v12236_v0 = vpop.eup %9653 }
 0xa28   : > { %4139 = vadd.xlane.f32.xlu1 %v12236_v0 }
 0xa29   : > { %v12239_v46 = vpop.eup %9655 }
 0xa2a   : > { %4141 = vadd.xlane.f32.xlu0 %v12239_v46 }
 0xa2b   : > { %v12242_v61 = vpop.eup %9657 }
 0xa2c   : > { %4143 = vadd.xlane.f32.xlu1 %v12242_v61 }
 0xa2d   : > { %v12245_v24 = vpop.eup %9659 }
 0xa2e   : > { %4145 = vadd.xlane.f32.xlu0 %v12245_v24 }
 0xa2f   : > { %v12248_v30 = vpop.eup %9661 }
 0xa30   : > { %4147 = vadd.xlane.f32.xlu1 %v12248_v30 }
 0xa7f   : > { %v3506_v11 = vpop.xlane.xlu0 %3505 }
 0xa80   : > { %9663 = vrcp.f32 %v3506_v11 }
 0xa81   : > { %v3508_v32 = vpop.xlane.xlu1 %3507 }
 0xa82   : > { %9665 = vrcp.f32 %v3508_v32 }
 0xa83   : > { %v3510_v13 = vpop.xlane.xlu0 %3509 }
 0xa84   : > { %9667 = vrcp.f32 %v3510_v13 }
 0xa85   : > { %v3512_v15 = vpop.xlane.xlu1 %3511 }
 0xa86   : > { %9669 = vrcp.f32 %v3512_v15 }
 0xa87   : > { %v3514_v41 = vpop.xlane.xlu0 %3513 }
 0xa88   : > { %9671 = vrcp.f32 %v3514_v41 }
 0xa89   : > { %v3516_v38 = vpop.xlane.xlu1 %3515 }
 0xa8a   : > { %v9664_v18 = vpop.eup %9663  ;;  %9673 = vrcp.f32 %v3516_v38 }
 0xa8b   : > { %v3518_v57 = vpop.xlane.xlu0 %3517  ;;  %v3553_v31 = vmul.f32 %v9664_v18, %v12130_v37 }
 0xa8c   : > { %v9666_v27 = vpop.eup %9665  ;;  %9675 = vrcp.f32 %v3518_v57 }
 0xa8d   : > { %v3520_v50 = vpop.xlane.xlu1 %3519  ;;  %v3554_v22 = vmul.f32 %v9666_v27, %v12134_v26 }
 0xa8e   : > { %v9668_v10 = vpop.eup %9667  ;;  %9677 = vrcp.f32 %v3520_v50 }
 0xa8f   : > { %v3522_v52 = vpop.xlane.xlu0 %3521  ;;  %v3569_v11 = vpack.c.bf16 %v3554_v22, %v3553_v31  ;;  %v3555_v13 = vmul.f32 %v9668_v10, %v12138_v44  ;;  %v14439_v44 = vld [vmem:[#allocation36_spill] sm:$0xff] }
 0xa90   : > { %v9670_v32 = vpop.eup %9669  ;;  %9679 = vrcp.f32 %v3522_v52 }
 0xa91   : > { %v3556_v15 = vmul.f32 %v9670_v32, %v12142_v45  ;;  %v3524_v41 = vpop.xlane.xlu1 %3523  ;;  %8639 = vmatprep.mubr.bf16.mxu0 %v3569_v11 }
 0xa92   : > { %v9672_v38 = vpop.eup %9671  ;;  %9681 = vrcp.f32 %v3524_v41 }
 0xa93   : > { %v3526_v57 = vpop.xlane.xlu0 %3525  ;;  %v3570_v9 = vpack.c.bf16 %v3556_v15, %v3555_v13  ;;  %v3557_v26 = vmul.f32 %v9672_v38, %v12146_v43 }
 0xa94   : > { %v9674_v16 = vpop.eup %9673  ;;  %9683 = vrcp.f32 %v3526_v57 }
 0xa95   : > { %v3528_v37 = vpop.xlane.xlu1 %3527  ;;  %8640 = vmatmul.mubr.bf16.vlgmr.msra.gmra.mrb[32].mxu0 %v3570_v9  ;;  %v3558_v18 = vmul.f32 %v9674_v16, %v12150_v59  ;;  %v14440_v16 = vld [vmem:[#allocation26_spill] sm:$0xff] }
 0xa96   : > { %v9676_v27 = vpop.eup %9675  ;;  %9685 = vrcp.f32 %v3528_v37  ;;  %8688 = vmatpush3.bf16.msra.mxu0 %v11836_v28 }
 0xa97   : > { %8689 = vmatprep.subr.bf16.mxu0 %v14439_v44  ;;  %v3530_v45 = vpop.xlane.xlu0 %3529  ;;  %v3571_v50 = vpack.c.bf16 %v3558_v18, %v3557_v26  ;;  %v3559_v10 = vmul.f32 %v9676_v27, %v12154_v54  ;;  %v14441_v54 = vld [vmem:[#allocation38_spill] sm:$0xff] }
 0xa98   : > { %v9678_v31 = vpop.eup %9677  ;;  %9687 = vrcp.f32 %v3530_v45 }
 0xa99   : > { %v3532_v22 = vpop.xlane.xlu1 %3531  ;;  %8643 = vmatprep.mubr.bf16.mxu0 %v3571_v50  ;;  %v3560_v9 = vmul.f32 %v9678_v31, %v12158_v58 }
 0xa9a   : > { %v9680_v52 = vpop.eup %9679  ;;  %9689 = vrcp.f32 %v3532_v22  ;;  %8690 = vmatpush3.bf16.msra.mxu0 %v14439_v44 }
 0xa9b   : > { %8691 = vmatprep.subr.bf16.mxu0 %v14440_v16  ;;  %v3534_v43 = vpop.xlane.xlu0 %3533  ;;  %v3572_v28 = vpack.c.bf16 %v3560_v9, %v3559_v10  ;;  %v3561_v32 = vmul.f32 %v9680_v52, %v12162_v42  ;;  %v14442_v42 = vld [vmem:[#allocation27_spill] sm:$0xff] }
 0xa9c   : > { %v9682_v59 = vpop.eup %9681  ;;  %9691 = vrcp.f32 %v3534_v43 }
 0xa9d   : > { %v3536_v11 = vpop.xlane.xlu1 %3535  ;;  %8644 = vmatmul.mubr.bf16.gmra.mrb[36].mxu0 %v3572_v28  ;;  %v3562_v13 = vmul.f32 %v9682_v59, %v12166_v14 }
 0xa9e   : > { %v9684_v15 = vpop.eup %9683  ;;  %9693 = vrcp.f32 %v3536_v11  ;;  %8692 = vmatpush3.bf16.msra.mxu0 %v14440_v16 }
 0xa9f   : > { %8693 = vmatprep.subr.bf16.mxu0 %v14441_v54  ;;  %v4118_v58 = vpop.xlane.xlu0 %4117  ;;  %v3573_v41 = vpack.c.bf16 %v3562_v13, %v3561_v32  ;;  %v3563_v37 = vmul.f32 %v9684_v15, %v12170_v39 }
 0xaa0   : > { %v9686_v38 = vpop.eup %9685  ;;  %9695 = vrcp.f32 %v4118_v58 }
 0xaa1   : > { %v4120_v57 = vpop.xlane.xlu1 %4119  ;;  %8647 = vmatprep.mubr.bf16.mxu0 %v3573_v41  ;;  %v3564_v26 = vmul.f32 %v9686_v38, %v12174_v8 }
 0xaa2   : > { %v9688_v18 = vpop.eup %9687  ;;  %9697 = vrcp.f32 %v4120_v57  ;;  %8694 = vmatpush3.bf16.msra.mxu0 %v14441_v54 }
 0xaa3   : > { %8695 = vmatprep.subr.bf16.mxu0 %v14442_v42  ;;  %v4122_v14 = vpop.xlane.xlu0 %4121  ;;  %v3574_v27 = vpack.c.bf16 %v3564_v26, %v3563_v37  ;;  %v3565_v50 = vmul.f32 %v9688_v18, %v12178_v53  ;;  %v14443_v53 = vld [vmem:[#allocation28_spill] sm:$0xff] }
 0xaa4   : > { %v9690_v44 = vpop.eup %9689  ;;  %9699 = vrcp.f32 %v4122_v14  ;;  %v9212_v26 = vld [vmem:[#allocation7 + $0x314] ss:$8 sps:$4 sm:$0xff]  }
 0xaa5   : > { %v4124_v45 = vpop.xlane.xlu1 %4123  ;;  %8648 = vmatmul.mubr.bf16.gmra.mrb[40].mxu0 %v3574_v27  ;;  %v3566_v31 = vmul.f32 %v9690_v44, %v12182_v2  ;;  %v9210_v27 = vld [vmem:[#allocation7 + $0x310] ss:$8 sps:$4 sm:$0xff]  }
 0xaa6   : > { %v9692_v22 = vpop.eup %9691  ;;  %9701 = vrcp.f32 %v4124_v45  ;;  %8696 = vmatpush3.bf16.msra.mxu0 %v14442_v42 }
 0xaa7   : > { %8697 = vmatprep.subr.bf16.mxu0 %v11864_v3  ;;  %v4126_v39 = vpop.xlane.xlu0 %4125  ;;  %v3575_v8 = vpack.c.bf16 %v3566_v31, %v3565_v50  ;;  %v3567_v52 = vmul.f32 %v9692_v22, %v12186_v48 }
 0xaa8   : > { %v9694_v10 = vpop.eup %9693  ;;  %9703 = vrcp.f32 %v4126_v39 }
 0xaa9   : > { %v4128_v9 = vpop.xlane.xlu1 %4127  ;;  %8651 = vmatprep.mubr.bf16.mxu0 %v3575_v8  ;;  %v3568_v16 = vmul.f32 %v9694_v10, %v12190_v4  ;;  %v9209_v4 = vld [vmem:[#allocation7 + $0x304] ss:$8 sps:$4 sm:$0xff]  }
 0xaaa   : > { %v9696_v43 = vpop.eup %9695  ;;  %9705 = vrcp.f32 %v4128_v9  ;;  %8698 = vmatpush3.bf16.msra.mxu0 %v11864_v3  ;;  %v9218_v9 = vld [vmem:[#allocation7 + $0x334] ss:$8 sps:$4 sm:$0xff]  }
 0xaab   : > { %8699 = vmatprep.subr.bf16.mxu0 %v14443_v53  ;;  %v4130_v2 = vpop.xlane.xlu0 %4129  ;;  %v3576_v28 = vpack.c.bf16 %v3568_v16, %v3567_v52  ;;  %v4165_v32 = vmul.f32 %v9696_v43, %v12194_v60 }
 0xaac   : > { %v9698_v59 = vpop.eup %9697  ;;  %9707 = vrcp.f32 %v4130_v2 }
 0xaad   : > { %v4132_v11 = vpop.xlane.xlu1 %4131  ;;  %8652 = vmatmul.mubr.bf16.gmra.mrb[44].mxu0 %v3576_v28  ;;  %v4166_v13 = vmul.f32 %v9698_v59, %v12198_v40  ;;  %v9207_v40 = vld [vmem:[#allocation7 + $0x300] ss:$8 sps:$4 sm:$0xff]   ;;  %v9221_v28 = vld [vmem:[#allocation7 + $0x344] ss:$8 sps:$4 sm:$0xff]  }
 0xaae   : > { %v9700_v15 = vpop.eup %9699  ;;  %9709 = vrcp.f32 %v4132_v11  ;;  %8700 = vmatpush3.bf16.msra.mxu0 %v14443_v53 }
 0xaaf   : > { %8701 = vmatprep.subr.bf16.mxu0 %v11876_v29  ;;  %v4134_v48 = vpop.xlane.xlu0 %4133  ;;  %v4181_v3 = vpack.c.bf16 %v4166_v13, %v4165_v32  ;;  %v4167_v58 = vmul.f32 %v9700_v15, %v12202_v1  ;;  %v9219_v15 = vld [vmem:[#allocation7 + $0x340] ss:$8 sps:$4 sm:$0xff]  }
 0xab0   : > { %v9702_v54 = vpop.eup %9701  ;;  %9711 = vrcp.f32 %v4134_v48 }
 0xab1   : > { %v4168_v41 = vmul.f32 %v9702_v54, %v12206_v12  ;;  %v4136_v38 = vpop.xlane.xlu1 %4135  ;;  %8703 = vmatprep.mubr.bf16.mxu0 %v4181_v3 }
 0xab2   : > { %v9704_v60 = vpop.eup %9703  ;;  %9713 = vrcp.f32 %v4136_v38  ;;  %8702 = vmatpush3.bf16.msra.mxu0 %v11876_v29  ;;  %v9215_v29 = vld [vmem:[#allocation7 + $0x324] ss:$8 sps:$4 sm:$0xff]  }
 0xab3   : > { %v4138_v57 = vpop.xlane.xlu0 %4137  ;;  %v4182_v37 = vpack.c.bf16 %v4168_v41, %v4167_v58  ;;  %4399 = vmatprep.subr.bf16.mxu0 %v9209_v4  ;;  %v4169_v14 = vmul.f32 %v9704_v60, %v12210_v21  ;;  %v9213_v21 = vld [vmem:[#allocation7 + $0x320] ss:$8 sps:$4 sm:$0xff]   ;;  %v9222_v58 = vld [vmem:[#allocation7 + $0x350] ss:$8 sps:$4 sm:$0xff]  }
 0xab4   : > { %v9706_v18 = vpop.eup %9705  ;;  %9715 = vrcp.f32 %v4138_v57 }
 0xab5   : > { %v4140_v42 = vpop.xlane.xlu1 %4139  ;;  %8704 = vmatmul.mubr.bf16.vlgmr.msra.gmra.mrb[32].mxu0 %v4182_v37  ;;  %v4170_v1 = vmul.f32 %v9706_v18, %v12214_v55  ;;  %v9230_v37 = vld [vmem:[#allocation7 + $0x374] ss:$8 sps:$4 sm:$0xff]  }
 0xab6   : > { %v9708_v12 = vpop.eup %9707  ;;  %9717 = vrcp.f32 %v4140_v42  ;;  %4400 = vmatpush1.bf16.msra.mxu0 %v9207_v40  ;;  %v9225_v40 = vld [vmem:[#allocation7 + $0x360] ss:$8 sps:$4 sm:$0xff]  }
 0xab7   : > { %v4142_v44 = vpop.xlane.xlu0 %4141  ;;  %v4183_v45 = vpack.c.bf16 %v4170_v1, %v4169_v14  ;;  %4401 = vmatprep.subr.bf16.mxu0 %v9212_v26  ;;  %v4171_v22 = vmul.f32 %v9708_v12, %v12218_v5  ;;  %v9216_v5 = vld [vmem:[#allocation7 + $0x330] ss:$8 sps:$4 sm:$0xff]  }
 0xab8   : > { %v9710_v50 = vpop.eup %9709  ;;  %9719 = vrcp.f32 %v4142_v44 }
 0xab9   : > { %v4144_v31 = vpop.xlane.xlu1 %4143  ;;  %8707 = vmatprep.mubr.bf16.mxu0 %v4183_v45  ;;  %v4172_v39 = vmul.f32 %v9710_v50, %v12222_v47 }
 0xaba   : > { %v9712_v8 = vpop.eup %9711  ;;  %9721 = vrcp.f32 %v4144_v31  ;;  %4402 = vmatpush1.bf16.msra.mxu0 %v9210_v27 }
 0xabb   : > { %v4146_v55 = vpop.xlane.xlu0 %4145  ;;  %v4184_v10 = vpack.c.bf16 %v4172_v39, %v4171_v22  ;;  %4403 = vmatprep.subr.bf16.mxu0 %v9215_v29  ;;  %v4173_v43 = vmul.f32 %v9712_v8, %v12226_v62  ;;  %v9224_v62 = vld [vmem:[#allocation7 + $0x354] ss:$8 sps:$4 sm:$0xff]  }
 0xabc   : > { %v9714_v52 = vpop.eup %9713  ;;  %9723 = vrcp.f32 %v4146_v55 }
 0xabd   : > { %v4148_v16 = vpop.xlane.xlu1 %4147  ;;  %8708 = vmatmul.mubr.bf16.gmra.mrb[36].mxu0 %v4184_v10  ;;  %v4174_v53 = vmul.f32 %v9714_v52, %v12230_v7 }
 0xabe   : > { %v9716_v2 = vpop.eup %9715  ;;  %9725 = vrcp.f32 %v4148_v16  ;;  %4404 = vmatpush1.bf16.msra.mxu0 %v9213_v21 }
 0xabf   : > { %v4185_v47 = vpack.c.bf16 %v4174_v53, %v4173_v43  ;;  %4405 = vmatprep.subr.bf16.mxu0 %v9218_v9  ;;  %v4175_v11 = vmul.f32 %v9716_v2, %v12233_v19  ;;  %v9227_v19 = vld [vmem:[#allocation7 + $0x364] ss:$8 sps:$4 sm:$0xff]  }
 0xac0   : > { %v9718_v59 = vpop.eup %9717 }
 0xac1   : > { %8711 = vmatprep.mubr.bf16.mxu0 %v4185_v47  ;;  %v4176_v32 = vmul.f32 %v9718_v59, %v12236_v0 }
 0xac2   : > { %v9720_v13 = vpop.eup %9719  ;;  %4406 = vmatpush1.bf16.msra.mxu0 %v9216_v5 }
 0xac3   : > { %v4186_v48 = vpack.c.bf16 %v4176_v32, %v4175_v11  ;;  %4407 = vmatprep.subr.bf16.mxu0 %v9221_v28  ;;  %v4177_v3 = vmul.f32 %v9720_v13, %v12239_v46  ;;  %v9228_v46 = vld [vmem:[#allocation7 + $0x370] ss:$8 sps:$4 sm:$0xff]  }
 0xac4   : > { %v9722_v7 = vpop.eup %9721 }
 0xac5   : > { %8712 = vmatmul.mubr.bf16.gmra.mrb[40].mxu0 %v4186_v48  ;;  %v4178_v4 = vmul.f32 %v9722_v7, %v12242_v61  ;;  %v14444_v61 = vmov 0  }
 0xac6   : > { %v9724_v54 = vpop.eup %9723  ;;  %4408 = vmatpush1.bf16.msra.mxu0 %v9219_v15 }
 0xac7   : > { %v4187_v41 = vpack.c.bf16 %v4178_v4, %v4177_v3  ;;  %4409 = vmatprep.subr.bf16.mxu0 %v9224_v62  ;;  %v4179_v0 = vmul.f32 %v9724_v54, %v12245_v24 }
 0xac8   : > { %v9726_v38 = vpop.eup %9725 }
 0xac9   : > { %8715 = vmatprep.mubr.bf16.mxu0 %v4187_v41  ;;  %v4180_v60 = vmul.f32 %v9726_v38, %v12248_v30  ;;  %v12317_v30 = vld [vmem:[%s14072_s4 + $0x6] ss:$0 sm:$0xff] }
 0xaca   : > { %4410 = vmatpush1.bf16.msra.mxu0 %v9222_v58 }
 0xacb   : > { %v4188_v57 = vpack.c.bf16 %v4180_v60, %v4179_v0  ;;  %4411 = vmatprep.subr.bf16.mxu0 %v9227_v19 }
 0xacd   : > { %8716 = vmatmul.mubr.bf16.gmra.mrb[44].mxu0 %v4188_v57 }
 0xace   : > { %4412 = vmatpush1.bf16.msra.mxu0 %v9225_v40  ;;  %4431 = vmatprep.mubr.bf16.mxu0 %v14444_v61 }
 0xacf   : > { %4413 = vmatprep.subr.bf16.mxu0 %v9230_v37 }
 0xad2   : > { %4414 = vmatpush1.bf16.msra.mxu0 %v9228_v46 }
 0xad5   : > { %4432 = vmatmul.mubr.bf16.vlgmr.msra.gmra.mrb[96].mxu0 %v14389_v25 }
 0xad6   : > { %4441 = vmatprep.mubr.bf16.mxu0 %v14444_v61 }
 0xadd   : > { %4442 = vmatmul.mubr.bf16.gmra.mrb[100].mxu0 %v14390_v51 }
 0xade   : > { %4451 = vmatprep.mubr.bf16.mxu0 %v14444_v61 }
 0xae5   : > { %4452 = vmatmul.mubr.bf16.gmra.mrb[104].mxu0 %v14391_v35 }
 0xae6   : > { %4461 = vmatprep.mubr.bf16.mxu0 %v14444_v61 }
 0xaed   : > { %4462 = vmatmul.mubr.bf16.gmra.mrb[108].mxu0 %v14392_v49 }
 0xaee   : > { %4471 = vmatprep.mubr.bf16.mxu0 %v14444_v61 }
 0xaf5   : > { %4472 = vmatmul.mubr.bf16.gmra.mrb[112].mxu0 %v14393_v34 }
 0xaf6   : > { %4481 = vmatprep.mubr.bf16.mxu0 %v14444_v61 }
 0xafd   : > { %4482 = vmatmul.mubr.bf16.gmra.mrb[116].mxu0 %v14394_v6 }
 0xafe   : > { %4491 = vmatprep.mubr.bf16.mxu0 %v14444_v61 }
 0xb05   : > { %4492 = vmatmul.mubr.bf16.gmra.mrb[120].mxu0 %v14395_v33 }
 0xb06   : > { %4501 = vmatprep.mubr.bf16.mxu0 %v14444_v61 }
 0xb0d   : > { %4502 = vmatmul.mubr.bf16.gmra.mrb[124].mxu0 %v14396_v20 }
 0xba8   : > { %v4433_v24 = vpop.f32.mrb[96].mxu0 }
 0xba9   : > { %v4435_v26 = vpop.f32.mrb[97].mxu0  ;;  %v4520_v42 = vadd.f32 %v12317_v30, %v4433_v24 }
 0xbaa   : > { %v4437_v18 = vpop.f32.mrb[98].mxu0 }
 0xbab   : > { %v4521_v14 = vadd.f32 %v12317_v30, %v4437_v18  ;;  %v4439_v1 = vpop.f32.mrb[99].mxu0 }
 0xbac   : > { %v4544_v12 = vpack.c.bf16 %v4439_v1, %v4435_v26 }
 0xbad   : > { %v4536_v27 = vpack.c.bf16 %v4521_v14, %v4520_v42 }
 0xbae   : > { %8751 = vmatprep.subr.bf16.mxu0 %v4544_v12 }
 0xbaf   : > { %8735 = vmatprep.mubr.bf16.mxu1 %v4536_v27  ;;  %8752 = vmatpush3.bf16.msra.mxu0 %v4544_v12 }
 0xbb0   : > { %v4443_v44 = vpop.f32.mrb[100].mxu0 }
 0xbb1   : > { %v4445_v45 = vpop.f32.mrb[101].mxu0  ;;  %v4522_v50 = vadd.f32 %v12317_v30, %v4443_v44 }
 0xbb2   : > { %v4447_v29 = vpop.f32.mrb[102].mxu0 }
 0xbb3   : > { %v4523_v31 = vadd.f32 %v12317_v30, %v4447_v29  ;;  %v4449_v22 = vpop.f32.mrb[103].mxu0 }
 0xbb4   : > { %v4545_v39 = vpack.c.bf16 %v4449_v22, %v4445_v45 }
 0xbb5   : > { %v4537_v8 = vpack.c.bf16 %v4523_v31, %v4522_v50 }
 0xbb6   : > { %8753 = vmatprep.subr.bf16.mxu0 %v4545_v39 }
 0xbb7   : > { %8736 = vmatmul.mubr.bf16.vlgmr.msra.gmra.mrb[208].mxu1 %v4537_v8  ;;  %8754 = vmatpush3.bf16.msra.mxu0 %v4545_v39  ;;  %v9231_v8 = vld [vmem:[#allocation7 + $0x380] ss:$8 sps:$4 sm:$0xff]  }
 0xbb8   : > { %v4453_v21 = vpop.f32.mrb[104].mxu0 }
 0xbb9   : > { %v4524_v55 = vadd.f32 %v12317_v30, %v4453_v21  ;;  %v4455_v10 = vpop.f32.mrb[105].mxu0  ;;  %v9233_v21 = vld [vmem:[#allocation7 + $0x384] ss:$8 sps:$4 sm:$0xff]  }
 0xbba   : > { %v4457_v9 = vpop.f32.mrb[106].mxu0  ;;  %5011 = vmatprep.subr.bf16.mxu1 %v9233_v21 }
 0xbbb   : > { %v4525_v52 = vadd.f32 %v12317_v30, %v4457_v9  ;;  %v4459_v16 = vpop.f32.mrb[107].mxu0  ;;  %5012 = vmatpush1.bf16.msra.mxu1 %v9231_v8  ;;  %v9239_v9 = vld [vmem:[#allocation7 + $0x3a4] ss:$8 sps:$4 sm:$0xff]  }
 0xbbc   : > { %v4546_v43 = vpack.c.bf16 %v4459_v16, %v4455_v10  ;;  %v9234_v10 = vld [vmem:[#allocation7 + $0x390] ss:$8 sps:$4 sm:$0xff]  }
 0xbbd   : > { %v4538_v53 = vpack.c.bf16 %v4525_v52, %v4524_v55  ;;  %v9236_v55 = vld [vmem:[#allocation7 + $0x394] ss:$8 sps:$4 sm:$0xff]   ;;  %v9240_v16 = vld [vmem:[#allocation7 + $0x3b0] ss:$8 sps:$4 sm:$0xff]  }
 0xbbe   : > { %8755 = vmatprep.subr.bf16.mxu0 %v4546_v43  ;;  %5013 = vmatprep.subr.bf16.mxu1 %v9236_v55  ;;  %v9242_v52 = vld [vmem:[#allocation7 + $0x3b4] ss:$8 sps:$4 sm:$0xff]  }
 0xbbf   : > { %8756 = vmatpush3.bf16.msra.mxu0 %v4546_v43  ;;  %8739 = vmatprep.mubr.bf16.mxu1 %v4538_v53  ;;  %v9245_v43 = vld [vmem:[#allocation7 + $0x3c4] ss:$8 sps:$4 sm:$0xff]   ;;  %v9243_v53 = vld [vmem:[#allocation7 + $0x3c0] ss:$8 sps:$4 sm:$0xff]  }
 0xbc0   : > { %v4463_v2 = vpop.f32.mrb[108].mxu0  ;;  %5014 = vmatpush1.bf16.msra.mxu1 %v9234_v10  ;;  %v14453_v10 = vld [vmem:[#allocation49_spill] sm:$0xff] }
 0xbc1   : > { %v4526_v5 = vadd.f32 %v12317_v30, %v4463_v2  ;;  %v4465_v47 = vpop.f32.mrb[109].mxu0  ;;  %5015 = vmatprep.subr.bf16.mxu1 %v9239_v9  ;;  %v9248_v2 = vld [vmem:[#allocation7 + $0x3d4] ss:$8 sps:$4 sm:$0xff]  }
 0xbc2   : > { %v4467_v28 = vpop.f32.mrb[110].mxu0 }
 0xbc3   : > { %v4527_v59 = vadd.f32 %v12317_v30, %v4467_v28  ;;  %v4469_v11 = vpop.f32.mrb[111].mxu0  ;;  %v9249_v28 = vld [vmem:[#allocation7 + $0x3e0] ss:$8 sps:$4 sm:$0xff]  }
 0xbc4   : > { %v4547_v32 = vpack.c.bf16 %v4469_v11, %v4465_v47  ;;  %v9251_v47 = vld [vmem:[#allocation7 + $0x3e4] ss:$8 sps:$4 sm:$0xff]   ;;  %v9252_v11 = vld [vmem:[#allocation7 + $0x3f0] ss:$8 sps:$4 sm:$0xff]  }
 0xbc5   : > { %v4539_v13 = vpack.c.bf16 %v4527_v59, %v4526_v5  ;;  %v9246_v5 = vld [vmem:[#allocation7 + $0x3d0] ss:$8 sps:$4 sm:$0xff]   ;;  %v9254_v59 = vld [vmem:[#allocation7 + $0x3f4] ss:$8 sps:$4 sm:$0xff]  }
 0xbc6   : > { %8757 = vmatprep.subr.bf16.mxu0 %v4547_v32 }
 0xbc7   : > { %8740 = vmatmul.mubr.bf16.gmra.mrb[212].mxu1 %v4539_v13  ;;  %8758 = vmatpush3.bf16.msra.mxu0 %v4547_v32 }
 0xbc8   : > { %v4473_v15 = vpop.f32.mrb[112].mxu0 }
 0xbc9   : > { %v4528_v48 = vadd.f32 %v12317_v30, %v4473_v15  ;;  %v4475_v62 = vpop.f32.mrb[113].mxu0 }
 0xbca   : > { %v4477_v7 = vpop.f32.mrb[114].mxu0 }
 0xbcb   : > { %v4529_v3 = vadd.f32 %v12317_v30, %v4477_v7  ;;  %v4479_v4 = vpop.f32.mrb[115].mxu0 }
 0xbcc   : > { %v4548_v54 = vpack.c.bf16 %v4479_v4, %v4475_v62 }
 0xbcd   : > { %v4540_v58 = vpack.c.bf16 %v4529_v3, %v4528_v48 }
 0xbce   : > { %8759 = vmatprep.subr.bf16.mxu0 %v4548_v54 }
 0xbcf   : > { %8760 = vmatpush3.bf16.msra.mxu0 %v4548_v54  ;;  %8743 = vmatprep.mubr.bf16.mxu1 %v4540_v58 }
 0xbd0   : > { %v4483_v41 = vpop.f32.mrb[116].mxu0 }
 0xbd1   : > { %v4530_v19 = vadd.f32 %v12317_v30, %v4483_v41  ;;  %v4485_v38 = vpop.f32.mrb[117].mxu0 }
 0xbd2   : > { %v4487_v0 = vpop.f32.mrb[118].mxu0 }
 0xbd3   : > { %v4531_v60 = vadd.f32 %v12317_v30, %v4487_v0  ;;  %v4489_v40 = vpop.f32.mrb[119].mxu0  ;;  %v14445_v0 = vld [vmem:[#allocation41_spill] sm:$0xff] }
 0xbd4   : > { %v4549_v57 = vpack.c.bf16 %v4489_v40, %v4485_v38  ;;  %v14446_v40 = vld [vmem:[#allocation44_spill] sm:$0xff] }
 0xbd5   : > { %v4541_v37 = vpack.c.bf16 %v4531_v60, %v4530_v19 }
 0xbd6   : > { %8761 = vmatprep.subr.bf16.mxu0 %v4549_v57 }
 0xbd7   : > { %8744 = vmatmul.mubr.bf16.gmra.mrb[216].mxu1 %v4541_v37  ;;  %8762 = vmatpush3.bf16.msra.mxu0 %v4549_v57  ;;  %v14447_v37 = vld [vmem:[#allocation42_spill] sm:$0xff] }
 0xbd8   : > { %v4493_v46 = vpop.f32.mrb[120].mxu0 }
 0xbd9   : > { %v4532_v24 = vadd.f32 %v12317_v30, %v4493_v46  ;;  %v4495_v26 = vpop.f32.mrb[121].mxu0 }
 0xbda   : > { %v4497_v18 = vpop.f32.mrb[122].mxu0 }
 0xbdb   : > { %v4533_v42 = vadd.f32 %v12317_v30, %v4497_v18  ;;  %v4499_v14 = vpop.f32.mrb[123].mxu0  ;;  %v14448_v18 = vld [vmem:[#allocation47_spill] sm:$0xff] }
 0xbdc   : > { %v4550_v1 = vpack.c.bf16 %v4499_v14, %v4495_v26 }
 0xbdd   : > { %v4542_v12 = vpack.c.bf16 %v4533_v42, %v4532_v24 }
 0xbde   : > { %8763 = vmatprep.subr.bf16.mxu0 %v4550_v1 }
 0xbdf   : > { %8764 = vmatpush3.bf16.msra.mxu0 %v4550_v1  ;;  %8747 = vmatprep.mubr.bf16.mxu1 %v4542_v12  ;;  %v14449_v12 = vld [vmem:[#allocation45_spill] sm:$0xff] }
 0xbe0   : > { %v4503_v27 = vpop.f32.mrb[124].mxu0 }
 0xbe1   : > { %v4534_v44 = vadd.f32 %v12317_v30, %v4503_v27  ;;  %v4505_v45 = vpop.f32.mrb[125].mxu0 }
 0xbe2   : > { %v4507_v29 = vpop.f32.mrb[126].mxu0 }
 0xbe3   : > { %v4535_v50 = vadd.f32 %v12317_v30, %v4507_v29  ;;  %v4509_v31 = vpop.f32.mrb[127].mxu0  ;;  %v9237_v30 = vld [vmem:[#allocation7 + $0x3a0] ss:$8 sps:$4 sm:$0xff]  }
 0xbe4   : > { %v4551_v22 = vpack.c.bf16 %v4509_v31, %v4505_v45  ;;  %5016 = vmatpush1.bf16.msra.mxu1 %v9237_v30  ;;  %v14451_v29 = vld [vmem:[#allocation46_spill] sm:$0xff]  ;;  %v14454_v30 = vld [vmem:[#allocation52_spill] sm:$0xff] }
 0xbe5   : > { %v4543_v39 = vpack.c.bf16 %v4535_v50, %v4534_v44  ;;  %5017 = vmatprep.subr.bf16.mxu1 %v9242_v52  ;;  %v14450_v44 = vld [vmem:[#allocation48_spill] sm:$0xff] }
 0xbe6   : > { %8765 = vmatprep.subr.bf16.mxu0 %v4551_v22 }
 0xbe7   : > { %8748 = vmatmul.mubr.bf16.gmra.mrb[220].mxu1 %v4543_v39  ;;  %8766 = vmatpush3.bf16.msra.mxu0 %v4551_v22  ;;  %v14452_v39 = vld [vmem:[#allocation51_spill] sm:$0xff] }
 0xbe8   : > { %5043 = vmatprep.mubr.bf16.mxu1 %v14444_v61  ;;  %8783 = vmatprep.subr.bf16.mxu0 %v14389_v25 }
 0xbe9   : > { %5018 = vmatpush1.bf16.msra.mxu1 %v9240_v16  ;;  %v14455_v16 = vld [vmem:[#allocation50_spill] sm:$0xff] }
 0xbea   : > { %5019 = vmatprep.subr.bf16.mxu1 %v9245_v43 }
 0xbed   : > { %5020 = vmatpush1.bf16.msra.mxu1 %v9243_v53 }
 0xbee   : > { %5021 = vmatprep.subr.bf16.mxu1 %v9248_v2 }
 0xbf1   : > { %5022 = vmatpush1.bf16.msra.mxu1 %v9246_v5 }
 0xbf2   : > { %5023 = vmatprep.subr.bf16.mxu1 %v9251_v47 }
 0xbf5   : > { %5024 = vmatpush1.bf16.msra.mxu1 %v9249_v28 }
 0xbf6   : > { %5025 = vmatprep.subr.bf16.mxu1 %v9254_v59 }
 0xbf9   : > { %5026 = vmatpush1.bf16.msra.mxu1 %v9252_v11 }
 0xbfc   : > { %5044 = vmatmul.mubr.bf16.vlgmr.msra.gmra.mrb[224].mxu1 %v14389_v25 }
 0xbfd   : > { %5053 = vmatprep.mubr.bf16.mxu1 %v14444_v61 }
 0xc04   : > { %5054 = vmatmul.mubr.bf16.gmra.mrb[228].mxu1 %v14390_v51 }
 0xc05   : > { %5063 = vmatprep.mubr.bf16.mxu1 %v14444_v61 }
 0xc0c   : > { %5064 = vmatmul.mubr.bf16.gmra.mrb[232].mxu1 %v14391_v35 }
 0xc0d   : > { %5073 = vmatprep.mubr.bf16.mxu1 %v14444_v61 }
 0xc14   : > { %5074 = vmatmul.mubr.bf16.gmra.mrb[236].mxu1 %v14392_v49 }
 0xc15   : > { %5083 = vmatprep.mubr.bf16.mxu1 %v14444_v61 }
 0xc1c   : > { %5084 = vmatmul.mubr.bf16.gmra.mrb[240].mxu1 %v14393_v34 }
 0xc1d   : > { %5093 = vmatprep.mubr.bf16.mxu1 %v14444_v61 }
 0xc24   : > { %5094 = vmatmul.mubr.bf16.gmra.mrb[244].mxu1 %v14394_v6 }
 0xc25   : > { %5103 = vmatprep.mubr.bf16.mxu1 %v14444_v61 }
 0xc2c   : > { %5104 = vmatmul.mubr.bf16.gmra.mrb[248].mxu1 %v14395_v33 }
 0xc2d   : > { %5113 = vmatprep.mubr.bf16.mxu1 %v14444_v61 }
 0xc34   : > { %5114 = vmatmul.mubr.bf16.gmra.mrb[252].mxu1 %v14396_v20 }
 0xc35   : > { %6058 = vmatprep.mubr.bf16.mxu1 %v14444_v61 }
 0xc8a   : > { %v8737_v32 = vpop.f32.mrb[208].mxu1 }
 0xc8b   : > { %v4586_v13 = vpop.f32.mrb[209].mxu1  ;;  %v4595_v3 = vadd.f32 %v8737_v32, %v14425_v36 }
 0xc8c   : > { %v4587_v15 = vadd.f32 %v4586_v13, %v14423_v56  ;;  %v8738_v48 = vpop.f32.mrb[210].mxu1 }
 0xc8d   : > { %v4589_v62 = vpop.f32.mrb[211].mxu1  ;;  %v4598_v4 = vadd.f32 %v8738_v48, %v14426_v17 }
 0xc8e   : > { %v4590_v7 = vadd.f32 %v4589_v62, %v14424_v63  ;;  %4649 = vmax.xlane.f32.xlu0 %v4587_v15 }
 0xc90   : > { %4651 = vmax.xlane.f32.xlu1 %v4590_v7 }
 0xc92   : > { %4653 = vmax.xlane.f32.xlu0 %v4595_v3 }
 0xc94   : > { %4655 = vmax.xlane.f32.xlu1 %v4598_v4 }
 0xc9a   : > { %v8741_v54 = vpop.f32.mrb[212].mxu1 }
 0xc9b   : > { %v4602_v58 = vpop.f32.mrb[213].mxu1  ;;  %v12357_v60 = vadd.f32 %v8741_v54, %v14445_v0 }
 0xc9c   : > { %v4603_v41 = vadd.f32 %v4602_v58, %v14427_v23  ;;  %v8742_v19 = vpop.f32.mrb[214].mxu1 }
 0xc9d   : > { %v4605_v38 = vpop.f32.mrb[215].mxu1  ;;  %v12363_v46 = vadd.f32 %v8742_v19, %v14447_v37 }
 0xc9e   : > { %v4606_v57 = vadd.f32 %v4605_v38, %v14446_v40  ;;  %4657 = vmax.xlane.f32.xlu0 %v4603_v41 }
 0xca0   : > { %4659 = vmax.xlane.f32.xlu1 %v4606_v57 }
 0xca2   : > { %4661 = vmax.xlane.f32.xlu0 %v12357_v60 }
 0xca4   : > { %4663 = vmax.xlane.f32.xlu1 %v12363_v46 }
 0xcaa   : > { %v8745_v24 = vpop.f32.mrb[216].mxu1 }
 0xcab   : > { %v4618_v26 = vpop.f32.mrb[217].mxu1  ;;  %v12371_v27 = vadd.f32 %v8745_v24, %v14449_v12 }
 0xcac   : > { %v12368_v42 = vadd.f32 %v4618_v26, %v14448_v18  ;;  %v8746_v14 = vpop.f32.mrb[218].mxu1 }
 0xcad   : > { %v4621_v1 = vpop.f32.mrb[219].mxu1  ;;  %v12379_v50 = vadd.f32 %v8746_v14, %v14451_v29 }
 0xcae   : > { %v12374_v45 = vadd.f32 %v4621_v1, %v14450_v44  ;;  %4665 = vmax.xlane.f32.xlu0 %v12368_v42 }
 0xcb0   : > { %4667 = vmax.xlane.f32.xlu1 %v12374_v45 }
 0xcb2   : > { %4669 = vmax.xlane.f32.xlu0 %v12371_v27 }
 0xcb4   : > { %4671 = vmax.xlane.f32.xlu1 %v12379_v50 }
 0xcba   : > { %v8749_v31 = vpop.f32.mrb[220].mxu1 }
 0xcbb   : > { %v4634_v22 = vpop.f32.mrb[221].mxu1  ;;  %v12387_v9 = vadd.f32 %v8749_v31, %v14453_v10 }
 0xcbc   : > { %v12384_v8 = vadd.f32 %v4634_v22, %v14452_v39  ;;  %v8750_v21 = vpop.f32.mrb[222].mxu1 }
 0xcbd   : > { %v4637_v55 = vpop.f32.mrb[223].mxu1  ;;  %v12395_v43 = vadd.f32 %v8750_v21, %v14455_v16 }
 0xcbe   : > { %v12390_v52 = vadd.f32 %v4637_v55, %v14454_v30  ;;  %4673 = vmax.xlane.f32.xlu0 %v12384_v8 }
 0xcc0   : > { %4675 = vmax.xlane.f32.xlu1 %v12390_v52 }
 0xcc2   : > { %4677 = vmax.xlane.f32.xlu0 %v12387_v9 }
 0xcc4   : > { %4679 = vmax.xlane.f32.xlu1 %v12395_v43 }
 0xd1b   : > { %v4650_v53 = vpop.xlane.xlu0 %4649 }
 0xd1c   : > { %v4681_v2 = vsub.f32 %v4587_v15, %v4650_v53 }
 0xd1d   : > { %v4652_v5 = vpop.xlane.xlu1 %4651 }
 0xd1e   : > { %v4697_v47 = vmul.f32 1.442695, %v4681_v2  ;;  %v4682_v28 = vsub.f32 %v4590_v7, %v4652_v5 }
 0xd1f   : > { %v4654_v59 = vpop.xlane.xlu0 %4653 }
 0xd20   : > { %9727 = vpow2.f32 %v4697_v47  ;;  %v4699_v11 = vmul.f32 1.442695, %v4682_v28  ;;  %v4683_v32 = vsub.f32 %v4595_v3, %v4654_v59 }
 0xd21   : > { %v4656_v13 = vpop.xlane.xlu1 %4655 }
 0xd22   : > { %9729 = vpow2.f32 %v4699_v11  ;;  %v4701_v48 = vmul.f32 1.442695, %v4683_v32  ;;  %v4684_v62 = vsub.f32 %v4598_v4, %v4656_v13 }
 0xd24   : > { %9731 = vpow2.f32 %v4701_v48  ;;  %v4703_v54 = vmul.f32 1.442695, %v4684_v62 }
 0xd26   : > { %9733 = vpow2.f32 %v4703_v54 }
 0xd2a   : > { %v12399_v58 = vpop.eup %9727 }
 0xd2b   : > { %v4658_v19 = vpop.xlane.xlu0 %4657  ;;  %4729 = vadd.xlane.f32.xlu0 %v12399_v58 }
 0xd2c   : > { %v12402_v15 = vpop.eup %9729  ;;  %v4685_v38 = vsub.f32 %v4603_v41, %v4658_v19 }
 0xd2d   : > { %v4660_v7 = vpop.xlane.xlu1 %4659  ;;  %4731 = vadd.xlane.f32.xlu1 %v12402_v15 }
 0xd2e   : > { %v12405_v24 = vpop.eup %9731  ;;  %v4705_v3 = vmul.f32 1.442695, %v4685_v38  ;;  %v4686_v26 = vsub.f32 %v4606_v57, %v4660_v7 }
 0xd2f   : > { %v4662_v14 = vpop.xlane.xlu0 %4661  ;;  %4733 = vadd.xlane.f32.xlu0 %v12405_v24 }
 0xd30   : > { %v12408_v4 = vpop.eup %9733  ;;  %9735 = vpow2.f32 %v4705_v3  ;;  %v4707_v1 = vmul.f32 1.442695, %v4686_v26  ;;  %v4687_v31 = vsub.f32 %v12357_v60, %v4662_v14 }
 0xd31   : > { %v4664_v22 = vpop.xlane.xlu1 %4663  ;;  %4735 = vadd.xlane.f32.xlu1 %v12408_v4 }
 0xd32   : > { %9737 = vpow2.f32 %v4707_v1  ;;  %v4709_v41 = vmul.f32 1.442695, %v4687_v31  ;;  %v4688_v21 = vsub.f32 %v12363_v46, %v4664_v22 }
 0xd34   : > { %9739 = vpow2.f32 %v4709_v41  ;;  %v4711_v55 = vmul.f32 1.442695, %v4688_v21 }
 0xd36   : > { %9741 = vpow2.f32 %v4711_v55 }
 0xd3a   : > { %v12413_v57 = vpop.eup %9735 }
 0xd3b   : > { %v4666_v53 = vpop.xlane.xlu0 %4665  ;;  %4737 = vadd.xlane.f32.xlu0 %v12413_v57 }
 0xd3c   : > { %v12416_v2 = vpop.eup %9737  ;;  %v4689_v5 = vsub.f32 %v12368_v42, %v4666_v53 }
 0xd3d   : > { %v4668_v60 = vpop.xlane.xlu1 %4667  ;;  %4739 = vadd.xlane.f32.xlu1 %v12416_v2 }
 0xd3e   : > { %v12420_v47 = vpop.eup %9739  ;;  %v4713_v28 = vmul.f32 1.442695, %v4689_v5  ;;  %v4690_v46 = vsub.f32 %v12374_v45, %v4668_v60  ;;  %v7873_v60 = vld [vmem:[%s14072_s4 + $0x7] ss:$0 sm:$0xff] }
 0xd3f   : > { %v4670_v59 = vpop.xlane.xlu0 %4669  ;;  %4741 = vadd.xlane.f32.xlu0 %v12420_v47 }
 0xd40   : > { %v12424_v11 = vpop.eup %9741  ;;  %9743 = vpow2.f32 %v4713_v28  ;;  %v4715_v32 = vmul.f32 1.442695, %v4690_v46  ;;  %v4691_v13 = vsub.f32 %v12371_v27, %v4670_v59 }
 0xd41   : > { %v4672_v48 = vpop.xlane.xlu1 %4671  ;;  %4743 = vadd.xlane.f32.xlu1 %v12424_v11 }
 0xd42   : > { %9745 = vpow2.f32 %v4715_v32  ;;  %v4717_v42 = vmul.f32 1.442695, %v4691_v13  ;;  %v4692_v62 = vsub.f32 %v12379_v50, %v4672_v48 }
 0xd44   : > { %9747 = vpow2.f32 %v4717_v42  ;;  %v4719_v54 = vmul.f32 1.442695, %v4692_v62 }
 0xd46   : > { %9749 = vpow2.f32 %v4719_v54 }
 0xd4a   : > { %v12429_v45 = vpop.eup %9743 }
 0xd4b   : > { %4745 = vadd.xlane.f32.xlu0 %v12429_v45  ;;  %v4674_v19 = vpop.xlane.xlu0 %4673 }
 0xd4c   : > { %v12432_v38 = vpop.eup %9745  ;;  %v4693_v7 = vsub.f32 %v12384_v8, %v4674_v19 }
 0xd4d   : > { %4747 = vadd.xlane.f32.xlu1 %v12432_v38  ;;  %v4676_v27 = vpop.xlane.xlu1 %4675 }
 0xd4e   : > { %v12436_v3 = vpop.eup %9747  ;;  %v4721_v26 = vmul.f32 1.442695, %v4693_v7  ;;  %v4694_v50 = vsub.f32 %v12390_v52, %v4676_v27 }
 0xd4f   : > { %4749 = vadd.xlane.f32.xlu0 %v12436_v3  ;;  %v4678_v14 = vpop.xlane.xlu0 %4677 }
 0xd50   : > { %v12440_v1 = vpop.eup %9749  ;;  %9751 = vpow2.f32 %v4721_v26  ;;  %v4723_v31 = vmul.f32 1.442695, %v4694_v50  ;;  %v4695_v22 = vsub.f32 %v12387_v9, %v4678_v14 }
 0xd51   : > { %4751 = vadd.xlane.f32.xlu1 %v12440_v1  ;;  %v4680_v8 = vpop.xlane.xlu1 %4679 }
 0xd52   : > { %9753 = vpow2.f32 %v4723_v31  ;;  %v4725_v41 = vmul.f32 1.442695, %v4695_v22  ;;  %v4696_v21 = vsub.f32 %v12395_v43, %v4680_v8  ;;  %v5045_v43 = vpop.f32.mrb[224].mxu1 }
 0xd53   : > { %v5047_v28 = vpop.f32.mrb[225].mxu1  ;;  %v12460_v46 = vadd.f32 %v7873_v60, %v5045_v43 }
 0xd54   : > { %9755 = vpow2.f32 %v4725_v41  ;;  %v4727_v55 = vmul.f32 1.442695, %v4696_v21  ;;  %v5049_v59 = vpop.f32.mrb[226].mxu1 }
 0xd55   : > { %v12462_v32 = vadd.f32 %v7873_v60, %v5049_v59  ;;  %v5051_v13 = vpop.f32.mrb[227].mxu1 }
 0xd56   : > { %9757 = vpow2.f32 %v4727_v55  ;;  %v12464_v48 = vpack.c.bf16 %v5051_v13, %v5047_v28  ;;  %v5055_v42 = vpop.f32.mrb[228].mxu1 }
 0xd57   : > { %v12468_v54 = vadd.f32 %v7873_v60, %v5055_v42  ;;  %v5057_v19 = vpop.f32.mrb[229].mxu1 }
 0xd58   : > { %v5059_v7 = vpop.f32.mrb[230].mxu1 }
 0xd59   : > { %v12470_v27 = vadd.f32 %v7873_v60, %v5059_v7  ;;  %v5061_v50 = vpop.f32.mrb[231].mxu1 }
 0xd5a   : > { %v12445_v52 = vpop.eup %9751  ;;  %v12474_v14 = vpack.c.bf16 %v5061_v50, %v5057_v19  ;;  %v5065_v31 = vpop.f32.mrb[232].mxu1 }
 0xd5b   : > { %4753 = vadd.xlane.f32.xlu0 %v12445_v52  ;;  %v12476_v22 = vadd.f32 %v7873_v60, %v5065_v31  ;;  %v5067_v8 = vpop.f32.mrb[233].mxu1 }
 0xd5c   : > { %v12448_v53 = vpop.eup %9753  ;;  %v5069_v41 = vpop.f32.mrb[234].mxu1 }
 0xd5d   : > { %4755 = vadd.xlane.f32.xlu1 %v12448_v53  ;;  %v12478_v21 = vadd.f32 %v7873_v60, %v5069_v41  ;;  %v5071_v55 = vpop.f32.mrb[235].mxu1 }
 0xd5e   : > { %v12451_v5 = vpop.eup %9755  ;;  %v12480_v43 = vpack.c.bf16 %v5071_v55, %v5067_v8  ;;  %v5075_v59 = vpop.f32.mrb[236].mxu1 }
 0xd5f   : > { %4757 = vadd.xlane.f32.xlu0 %v12451_v5  ;;  %v12484_v13 = vadd.f32 %v7873_v60, %v5075_v59  ;;  %v5077_v42 = vpop.f32.mrb[237].mxu1 }
 0xd60   : > { %v12454_v9 = vpop.eup %9757  ;;  %v5079_v7 = vpop.f32.mrb[238].mxu1 }
 0xd61   : > { %4759 = vadd.xlane.f32.xlu1 %v12454_v9  ;;  %v12486_v19 = vadd.f32 %v7873_v60, %v5079_v7  ;;  %v5081_v50 = vpop.f32.mrb[239].mxu1 }
 0xd62   : > { %v12488_v31 = vpack.c.bf16 %v5081_v50, %v5077_v42  ;;  %v5085_v26 = vpop.f32.mrb[240].mxu1 }
 0xd63   : > { %v12492_v62 = vadd.f32 %v7873_v60, %v5085_v26  ;;  %v5087_v8 = vpop.f32.mrb[241].mxu1 }
 0xd64   : > { %v5089_v55 = vpop.f32.mrb[242].mxu1 }
 0xd65   : > { %v12494_v61 = vadd.f32 %v7873_v60, %v5089_v55  ;;  %v5091_v28 = vpop.f32.mrb[243].mxu1 }
 0xd66   : > { %v12496_v59 = vpack.c.bf16 %v5091_v28, %v5087_v8  ;;  %v5095_v16 = vpop.f32.mrb[244].mxu1 }
 0xd67   : > { %v12500_v30 = vadd.f32 %v7873_v60, %v5095_v16  ;;  %v5097_v42 = vpop.f32.mrb[245].mxu1 }
 0xd68   : > { %v5099_v50 = vpop.f32.mrb[246].mxu1 }
 0xd69   : > { %v12502_v10 = vadd.f32 %v7873_v60, %v5099_v50  ;;  %v5101_v41 = vpop.f32.mrb[247].mxu1 }
 0xd6a   : > { %v12504_v26 = vpack.c.bf16 %v5101_v41, %v5097_v42  ;;  %v5105_v39 = vpop.f32.mrb[248].mxu1 }
 0xd6b   : > { %v12508_v29 = vadd.f32 %v7873_v60, %v5105_v39  ;;  %v5107_v28 = vpop.f32.mrb[249].mxu1 }
 0xd6c   : > { %v5109_v8 = vpop.f32.mrb[250].mxu1 }
 0xd6d   : > { %v12510_v44 = vadd.f32 %v7873_v60, %v5109_v8  ;;  %v5111_v7 = vpop.f32.mrb[251].mxu1 }
 0xd6e   : > { %v12512_v16 = vpack.c.bf16 %v5111_v7, %v5107_v28  ;;  %v5115_v12 = vpop.f32.mrb[252].mxu1 }
 0xd6f   : > { %v12516_v18 = vadd.f32 %v7873_v60, %v5115_v12  ;;  %v5117_v41 = vpop.f32.mrb[253].mxu1 }
 0xd70   : > { %v5119_v42 = vpop.f32.mrb[254].mxu1 }
 0xd71   : > { %v12518_v37 = vadd.f32 %v7873_v60, %v5119_v42  ;;  %v5121_v55 = vpop.f32.mrb[255].mxu1 }
 0xd72   : > { %v12522_v40 = vpack.c.bf16 %v5121_v55, %v5117_v41 }
 0xdb8   : > { %v4730_v8 = vpop.xlane.xlu0 %4729 }
 0xdb9   : > { %9759 = vrcp.f32 %v4730_v8 }
 0xdba   : > { %v4732_v7 = vpop.xlane.xlu1 %4731 }
 0xdbb   : > { %9761 = vrcp.f32 %v4732_v7 }
 0xdbc   : > { %v4734_v28 = vpop.xlane.xlu0 %4733 }
 0xdbd   : > { %9763 = vrcp.f32 %v4734_v28 }
 0xdbe   : > { %v4736_v0 = vpop.xlane.xlu1 %4735 }
 0xdbf   : > { %9765 = vrcp.f32 %v4736_v0 }
 0xdc3   : > { %v9760_v12 = vpop.eup %9759 }
 0xdc4   : > { %v4777_v23 = vmul.f32 %v9760_v12, %v12399_v58 }
 0xdc5   : > { %v9762_v50 = vpop.eup %9761 }
 0xdc6   : > { %v4778_v60 = vmul.f32 %v9762_v50, %v12402_v15 }
 0xdc7   : > { %v9764_v42 = vpop.eup %9763 }
 0xdc8   : > { %v4738_v17 = vpop.xlane.xlu0 %4737  ;;  %v4793_v39 = vpack.c.bf16 %v4778_v60, %v4777_v23  ;;  %v4779_v55 = vmul.f32 %v9764_v42, %v12405_v24 }
 0xdc9   : > { %v9766_v36 = vpop.eup %9765  ;;  %9767 = vrcp.f32 %v4738_v17 }
 0xdca   : > { %v4780_v41 = vmul.f32 %v9766_v36, %v12408_v4  ;;  %v4740_v8 = vpop.xlane.xlu1 %4739  ;;  %8767 = vmatprep.mubr.bf16.mxu0 %v4793_v39 }
 0xdcb   : > { %9769 = vrcp.f32 %v4740_v8 }
 0xdcc   : > { %v4742_v7 = vpop.xlane.xlu0 %4741  ;;  %v4794_v0 = vpack.c.bf16 %v4780_v41, %v4779_v55 }
 0xdcd   : > { %9771 = vrcp.f32 %v4742_v7 }
 0xdce   : > { %v4744_v28 = vpop.xlane.xlu1 %4743  ;;  %8768 = vmatmul.mubr.bf16.vlgmr.msra.gmra.mrb[32].mxu0 %v4794_v0 }
 0xdcf   : > { %9773 = vrcp.f32 %v4744_v28  ;;  %8784 = vmatpush3.bf16.xpose.msra.mxu0 %v14389_v25 }
 0xdd0   : > { %8785 = vmatprep.subr.bf16.mxu0 %v14390_v51 }
 0xdd3   : > { %v9768_v23 = vpop.eup %9767 }
 0xdd4   : > { %v4781_v17 = vmul.f32 %v9768_v23, %v12413_v57 }
 0xdd5   : > { %v9770_v58 = vpop.eup %9769 }
 0xdd6   : > { %v4782_v15 = vmul.f32 %v9770_v58, %v12416_v2 }
 0xdd7   : > { %v9772_v36 = vpop.eup %9771  ;;  %8786 = vmatpush3.bf16.xpose.msra.mxu0 %v14390_v51 }
 0xdd8   : > { %v4746_v24 = vpop.xlane.xlu0 %4745  ;;  %v4795_v4 = vpack.c.bf16 %v4782_v15, %v4781_v17  ;;  %8787 = vmatprep.subr.bf16.mxu0 %v14391_v35  ;;  %v4783_v25 = vmul.f32 %v9772_v36, %v12420_v47 }
 0xdd9   : > { %v9774_v50 = vpop.eup %9773  ;;  %9775 = vrcp.f32 %v4746_v24 }
 0xdda   : > { %v4748_v39 = vpop.xlane.xlu1 %4747  ;;  %8771 = vmatprep.mubr.bf16.mxu0 %v4795_v4  ;;  %v4784_v12 = vmul.f32 %v9774_v50, %v12424_v11 }
 0xddb   : > { %9777 = vrcp.f32 %v4748_v39 }
 0xddc   : > { %v4750_v60 = vpop.xlane.xlu0 %4749  ;;  %v4796_v57 = vpack.c.bf16 %v4784_v12, %v4783_v25  ;;  %v14471_v12 = vld [vmem:[#allocation45_spill] sm:$0xff] }
 0xddd   : > { %9779 = vrcp.f32 %v4750_v60 }
 0xdde   : > { %v4752_v2 = vpop.xlane.xlu1 %4751  ;;  %8772 = vmatmul.mubr.bf16.gmra.mrb[36].mxu0 %v4796_v57  ;;  %v14472_v57 = vld [vmem:[#allocation48_spill] sm:$0xff] }
 0xddf   : > { %9781 = vrcp.f32 %v4752_v2  ;;  %8788 = vmatpush3.bf16.xpose.msra.mxu0 %v14391_v35 }
 0xde0   : > { %8789 = vmatprep.subr.bf16.mxu0 %v14392_v49 }
 0xde3   : > { %v9776_v51 = vpop.eup %9775 }
 0xde4   : > { %v4785_v55 = vmul.f32 %v9776_v51, %v12429_v45  ;;  %v14473_v51 = vld [vmem:[#allocation46_spill] sm:$0xff] }
 0xde5   : > { %v9778_v42 = vpop.eup %9777 }
 0xde6   : > { %v4786_v41 = vmul.f32 %v9778_v42, %v12432_v38 }
 0xde7   : > { %v9780_v47 = vpop.eup %9779  ;;  %8790 = vmatpush3.bf16.xpose.msra.mxu0 %v14392_v49 }
 0xde8   : > { %v4754_v11 = vpop.xlane.xlu0 %4753  ;;  %v4797_v8 = vpack.c.bf16 %v4786_v41, %v4785_v55  ;;  %8791 = vmatprep.subr.bf16.mxu0 %v14393_v34  ;;  %v4787_v35 = vmul.f32 %v9780_v47, %v12436_v3  ;;  %v14474_v47 = vld [vmem:[#allocation51_spill] sm:$0xff] }
 0xde9   : > { %v9782_v7 = vpop.eup %9781  ;;  %9783 = vrcp.f32 %v4754_v11 }
 0xdea   : > { %v4756_v0 = vpop.xlane.xlu1 %4755  ;;  %8775 = vmatprep.mubr.bf16.mxu0 %v4797_v8  ;;  %v4788_v28 = vmul.f32 %v9782_v7, %v12440_v1 }
 0xdeb   : > { %9785 = vrcp.f32 %v4756_v0  ;;  %v14475_v0 = vld [vmem:[#allocation49_spill] sm:$0xff] }
 0xdec   : > { %v4758_v23 = vpop.xlane.xlu0 %4757  ;;  %v4798_v45 = vpack.c.bf16 %v4788_v28, %v4787_v35  ;;  %v14476_v28 = vld [vmem:[#allocation52_spill] sm:$0xff] }
 0xded   : > { %9787 = vrcp.f32 %v4758_v23 }
 0xdee   : > { %v4760_v38 = vpop.xlane.xlu1 %4759  ;;  %8776 = vmatmul.mubr.bf16.gmra.mrb[40].mxu0 %v4798_v45  ;;  %v14477_v45 = vld [vmem:[#allocation50_spill] sm:$0xff] }
 0xdef   : > { %9789 = vrcp.f32 %v4760_v38  ;;  %8792 = vmatpush3.bf16.xpose.msra.mxu0 %v14393_v34 }
 0xdf0   : > { %8793 = vmatprep.subr.bf16.mxu0 %v14394_v6 }
 0xdf3   : > { %v9784_v49 = vpop.eup %9783 }
 0xdf4   : > { %v4789_v17 = vmul.f32 %v9784_v49, %v12445_v52  ;;  %v14456_v52 = vpack.c.bf16 %v12462_v32, %v12460_v46 }
 0xdf5   : > { %v9786_v58 = vpop.eup %9785 }
 0xdf6   : > { %v4790_v15 = vmul.f32 %v9786_v58, %v12448_v53  ;;  %v14458_v53 = vpack.c.bf16 %v12478_v21, %v12476_v22 }
 0xdf7   : > { %v9788_v3 = vpop.eup %9787  ;;  %8794 = vmatpush3.bf16.xpose.msra.mxu0 %v14394_v6  ;;  %v14457_v6 = vpack.c.bf16 %v12470_v27, %v12468_v54 }
 0xdf8   : > { %v4799_v1 = vpack.c.bf16 %v4790_v15, %v4789_v17  ;;  %8795 = vmatprep.subr.bf16.mxu0 %v14395_v33  ;;  %v4791_v24 = vmul.f32 %v9788_v3, %v12451_v5  ;;  %v14461_v5 = vpack.c.bf16 %v12502_v10, %v12500_v30 }
 0xdf9   : > { %v9790_v36 = vpop.eup %9789 }
 0xdfa   : > { %8779 = vmatprep.mubr.bf16.mxu0 %v4799_v1  ;;  %v4792_v34 = vmul.f32 %v9790_v36, %v12454_v9  ;;  %v14462_v9 = vpack.c.bf16 %v12510_v44, %v12508_v29 }
 0xdfc   : > { %v4800_v4 = vpack.c.bf16 %v4792_v34, %v4791_v24 }
 0xdfe   : > { %8780 = vmatmul.mubr.bf16.gmra.mrb[44].mxu0 %v4800_v4 }
 0xdff   : > { %8796 = vmatpush3.bf16.xpose.msra.mxu0 %v14395_v33  ;;  %8799 = vmatprep.mubr.bf16.mxu0 %v14456_v52  ;;  %v14459_v33 = vpack.c.bf16 %v12486_v19, %v12484_v13  ;;  %v14468_v13 = vld [vmem:[#allocation44_spill] sm:$0xff] }
 0xe00   : > { %8797 = vmatprep.subr.bf16.mxu0 %v14396_v20 }
 0xe07   : > { %8798 = vmatpush3.bf16.xpose.msra.mxu0 %v14396_v20  ;;  %v14460_v20 = vpack.c.bf16 %v12494_v61, %v12492_v62  ;;  %v14463_v61 = vpack.c.bf16 %v12518_v37, %v12516_v18  ;;  %v14465_v37 = vld [vmem:[#allocation35_spill] sm:$0xff] }
 0xe08   : > { %8815 = vmatprep.subr.bf16.mxu0 %v12464_v48 }
 0xe0e   : > { %8800 = vmatmul.mubr.bf16.vlgmr.msra.gmra.mrb[128].mxu0 %v14457_v6 }
 0xe0f   : > { %8816 = vmatpush3.bf16.msra.mxu0 %v12464_v48  ;;  %8803 = vmatprep.mubr.bf16.mxu0 %v14458_v53  ;;  %v14464_v48 = vld [vmem:[#allocation34_spill] sm:$0xff] }
 0xe10   : > { %8817 = vmatprep.subr.bf16.mxu0 %v12474_v14 }
 0xe13   : > { %8818 = vmatpush3.bf16.msra.mxu0 %v12474_v14  ;;  %v14466_v14 = vld [vmem:[#allocation43_spill] sm:$0xff] }
 0xe14   : > { %8819 = vmatprep.subr.bf16.mxu0 %v12480_v43 }
 0xe16   : > { %8804 = vmatmul.mubr.bf16.gmra.mrb[132].mxu0 %v14459_v33 }
 0xe17   : > { %8820 = vmatpush3.bf16.msra.mxu0 %v12480_v43  ;;  %8807 = vmatprep.mubr.bf16.mxu0 %v14460_v20  ;;  %v14467_v43 = vld [vmem:[#allocation41_spill] sm:$0xff] }
 0xe18   : > { %8821 = vmatprep.subr.bf16.mxu0 %v12488_v31 }
 0xe1b   : > { %8822 = vmatpush3.bf16.msra.mxu0 %v12488_v31 }
 0xe1c   : > { %8823 = vmatprep.subr.bf16.mxu0 %v12496_v59 }
 0xe1e   : > { %8808 = vmatmul.mubr.bf16.gmra.mrb[136].mxu0 %v14461_v5 }
 0xe1f   : > { %8824 = vmatpush3.bf16.msra.mxu0 %v12496_v59  ;;  %8811 = vmatprep.mubr.bf16.mxu0 %v14462_v9 }
 0xe20   : > { %8825 = vmatprep.subr.bf16.mxu0 %v12504_v26 }
 0xe23   : > { %8826 = vmatpush3.bf16.msra.mxu0 %v12504_v26 }
 0xe24   : > { %8827 = vmatprep.subr.bf16.mxu0 %v12512_v16 }
 0xe26   : > { %8812 = vmatmul.mubr.bf16.gmra.mrb[140].mxu0 %v14463_v61 }
 0xe27   : > { %8828 = vmatpush3.bf16.msra.mxu0 %v12512_v16  ;;  %v14470_v16 = vld [vmem:[#allocation47_spill] sm:$0xff] }
 0xe28   : > { %8829 = vmatprep.subr.bf16.mxu0 %v12522_v40 }
 0xe2b   : > { %8830 = vmatpush3.bf16.msra.mxu0 %v12522_v40 }
 0xee1   : > { %v8801_v10 = vpop.f32.mrb[128].mxu0 }
 0xee2   : > { %v5198_v30 = vpop.f32.mrb[129].mxu0  ;;  %v5207_v62 = vadd.f32 %v8801_v10, %v14464_v48 }
 0xee3   : > { %v5199_v44 = vadd.f32 %v5198_v30, %v14423_v56  ;;  %v8802_v29 = vpop.f32.mrb[130].mxu0 }
 0xee4   : > { %v5201_v46 = vpop.f32.mrb[131].mxu0  ;;  %v5210_v18 = vadd.f32 %v8802_v29, %v14465_v37 }
 0xee5   : > { %v5202_v32 = vadd.f32 %v5201_v46, %v14424_v63  ;;  %5261 = vmax.xlane.f32.xlu0 %v5199_v44  ;;  %v14469_v63 = vld [vmem:[#allocation42_spill] sm:$0xff] }
 0xee7   : > { %5263 = vmax.xlane.f32.xlu1 %v5202_v32 }
 0xee9   : > { %v8805_v54 = vpop.f32.mrb[132].mxu0  ;;  %5265 = vmax.xlane.f32.xlu0 %v5207_v62 }
 0xeea   : > { %v5214_v27 = vpop.f32.mrb[133].mxu0  ;;  %v5223_v56 = vadd.f32 %v8805_v54, %v14467_v43 }
 0xeeb   : > { %v5215_v22 = vadd.f32 %v5214_v27, %v14466_v14  ;;  %v8806_v40 = vpop.f32.mrb[134].mxu0  ;;  %5267 = vmax.xlane.f32.xlu1 %v5210_v18 }
 0xeec   : > { %v5217_v21 = vpop.f32.mrb[135].mxu0  ;;  %v5226_v31 = vadd.f32 %v8806_v40, %v14469_v63 }
 0xeed   : > { %v5218_v19 = vadd.f32 %v5217_v21, %v14468_v13  ;;  %5269 = vmax.xlane.f32.xlu0 %v5215_v22 }
 0xeef   : > { %5271 = vmax.xlane.f32.xlu1 %v5218_v19 }
 0xef1   : > { %v8809_v59 = vpop.f32.mrb[136].mxu0  ;;  %5273 = vmax.xlane.f32.xlu0 %v5223_v56 }
 0xef2   : > { %v5230_v26 = vpop.f32.mrb[137].mxu0  ;;  %v12607_v60 = vadd.f32 %v8809_v59, %v14471_v12 }
 0xef3   : > { %v12604_v50 = vadd.f32 %v5230_v26, %v14470_v16  ;;  %v8810_v39 = vpop.f32.mrb[138].mxu0  ;;  %5275 = vmax.xlane.f32.xlu1 %v5226_v31 }
 0xef4   : > { %v5233_v25 = vpop.f32.mrb[139].mxu0  ;;  %v12614_v42 = vadd.f32 %v8810_v39, %v14473_v51 }
 0xef5   : > { %v12610_v2 = vadd.f32 %v5233_v25, %v14472_v57  ;;  %5277 = vmax.xlane.f32.xlu0 %v12604_v50 }
 0xef7   : > { %5279 = vmax.xlane.f32.xlu1 %v12610_v2 }
 0xef9   : > { %v8813_v55 = vpop.f32.mrb[140].mxu0  ;;  %5281 = vmax.xlane.f32.xlu0 %v12607_v60 }
 0xefa   : > { %v5246_v41 = vpop.f32.mrb[141].mxu0  ;;  %v12623_v35 = vadd.f32 %v8813_v55, %v14475_v0 }
 0xefb   : > { %v12619_v11 = vadd.f32 %v5246_v41, %v14474_v47  ;;  %v8814_v8 = vpop.f32.mrb[142].mxu0  ;;  %5283 = vmax.xlane.f32.xlu1 %v12614_v42 }
 0xefc   : > { %v5249_v7 = vpop.f32.mrb[143].mxu0  ;;  %v12630_v38 = vadd.f32 %v8814_v8, %v14477_v45 }
 0xefd   : > { %v12626_v23 = vadd.f32 %v5249_v7, %v14476_v28  ;;  %5285 = vmax.xlane.f32.xlu0 %v12619_v11 }
 0xeff   : > { %5287 = vmax.xlane.f32.xlu1 %v12626_v23 }
 0xf01   : > { %5289 = vmax.xlane.f32.xlu0 %v12623_v35 }
 0xf03   : > { %5291 = vmax.xlane.f32.xlu1 %v12630_v38 }
 0xf72   : > { %v5262_v49 = vpop.xlane.xlu0 %5261 }
 0xf73   : > { %v5293_v58 = vsub.f32 %v5199_v44, %v5262_v49 }
 0xf74   : > { %v5264_v17 = vpop.xlane.xlu1 %5263 }
 0xf75   : > { %v5309_v15 = vmul.f32 1.442695, %v5293_v58  ;;  %v5294_v3 = vsub.f32 %v5202_v32, %v5264_v17 }
 0xf76   : > { %v5266_v1 = vpop.xlane.xlu0 %5265 }
 0xf77   : > { %9791 = vpow2.f32 %v5309_v15  ;;  %v5311_v36 = vmul.f32 1.442695, %v5294_v3  ;;  %v5295_v24 = vsub.f32 %v5207_v62, %v5266_v1 }
 0xf78   : > { %v5268_v34 = vpop.xlane.xlu1 %5267 }
 0xf79   : > { %9793 = vpow2.f32 %v5311_v36  ;;  %v5313_v4 = vmul.f32 1.442695, %v5295_v24  ;;  %v5296_v52 = vsub.f32 %v5210_v18, %v5268_v34 }
 0xf7a   : > { %v5270_v6 = vpop.xlane.xlu0 %5269 }
 0xf7b   : > { %9795 = vpow2.f32 %v5313_v4  ;;  %v5315_v53 = vmul.f32 1.442695, %v5296_v52  ;;  %v5297_v33 = vsub.f32 %v5215_v22, %v5270_v6 }
 0xf7c   : > { %v5272_v20 = vpop.xlane.xlu1 %5271 }
 0xf7d   : > { %9797 = vpow2.f32 %v5315_v53  ;;  %v5317_v5 = vmul.f32 1.442695, %v5297_v33  ;;  %v5298_v9 = vsub.f32 %v5218_v19, %v5272_v20 }
 0xf7e   : > { %v5274_v61 = vpop.xlane.xlu0 %5273 }
 0xf7f   : > { %9799 = vpow2.f32 %v5317_v5  ;;  %v5319_v10 = vmul.f32 1.442695, %v5298_v9  ;;  %v5299_v30 = vsub.f32 %v5223_v56, %v5274_v61 }
 0xf80   : > { %v5276_v44 = vpop.xlane.xlu1 %5275 }
 0xf81   : > { %v12635_v29 = vpop.eup %9791  ;;  %9801 = vpow2.f32 %v5319_v10  ;;  %v5321_v46 = vmul.f32 1.442695, %v5299_v30  ;;  %v5300_v32 = vsub.f32 %v5226_v31, %v5276_v44 }
 0xf82   : > { %5341 = vadd.xlane.f32.xlu0 %v12635_v29  ;;  %v5278_v48 = vpop.xlane.xlu0 %5277 }
 0xf83   : > { %v12638_v62 = vpop.eup %9793  ;;  %9803 = vpow2.f32 %v5321_v46  ;;  %v5323_v37 = vmul.f32 1.442695, %v5300_v32  ;;  %v5301_v18 = vsub.f32 %v12604_v50, %v5278_v48 }
 0xf84   : > { %5343 = vadd.xlane.f32.xlu1 %v12638_v62  ;;  %v5280_v54 = vpop.xlane.xlu1 %5279 }
 0xf85   : > { %v12642_v27 = vpop.eup %9795  ;;  %9805 = vpow2.f32 %v5323_v37  ;;  %v5325_v14 = vmul.f32 1.442695, %v5301_v18  ;;  %v5302_v22 = vsub.f32 %v12610_v2, %v5280_v54 }
 0xf86   : > { %5345 = vadd.xlane.f32.xlu0 %v12642_v27  ;;  %v5282_v40 = vpop.xlane.xlu0 %5281 }
 0xf87   : > { %v12646_v21 = vpop.eup %9797  ;;  %9807 = vpow2.f32 %v5325_v14  ;;  %v5327_v43 = vmul.f32 1.442695, %v5302_v22  ;;  %v5303_v56 = vsub.f32 %v12607_v60, %v5282_v40 }
 0xf88   : > { %5347 = vadd.xlane.f32.xlu1 %v12646_v21  ;;  %v5284_v13 = vpop.xlane.xlu1 %5283 }
 0xf89   : > { %v12650_v19 = vpop.eup %9799  ;;  %9809 = vpow2.f32 %v5327_v43  ;;  %v5329_v63 = vmul.f32 1.442695, %v5303_v56  ;;  %v5304_v31 = vsub.f32 %v12614_v42, %v5284_v13 }
 0xf8a   : > { %5349 = vadd.xlane.f32.xlu0 %v12650_v19  ;;  %v5286_v59 = vpop.xlane.xlu0 %5285 }
 0xf8b   : > { %v12654_v26 = vpop.eup %9801  ;;  %9811 = vpow2.f32 %v5329_v63  ;;  %v5331_v16 = vmul.f32 1.442695, %v5304_v31  ;;  %v5305_v50 = vsub.f32 %v12619_v11, %v5286_v59 }
 0xf8c   : > { %5351 = vadd.xlane.f32.xlu1 %v12654_v26  ;;  %v5288_v39 = vpop.xlane.xlu1 %5287 }
 0xf8d   : > { %v12658_v25 = vpop.eup %9803  ;;  %9813 = vpow2.f32 %v5331_v16  ;;  %v5333_v12 = vmul.f32 1.442695, %v5305_v50  ;;  %v5306_v60 = vsub.f32 %v12626_v23, %v5288_v39 }
 0xf8e   : > { %5353 = vadd.xlane.f32.xlu0 %v12658_v25  ;;  %v5290_v57 = vpop.xlane.xlu0 %5289 }
 0xf8f   : > { %v12662_v2 = vpop.eup %9805  ;;  %9815 = vpow2.f32 %v5333_v12  ;;  %v5335_v51 = vmul.f32 1.442695, %v5306_v60  ;;  %v5307_v42 = vsub.f32 %v12623_v35, %v5290_v57 }
 0xf90   : > { %5355 = vadd.xlane.f32.xlu1 %v12662_v2  ;;  %v5292_v55 = vpop.xlane.xlu1 %5291 }
 0xf91   : > { %v12666_v41 = vpop.eup %9807  ;;  %9817 = vpow2.f32 %v5335_v51  ;;  %v5337_v47 = vmul.f32 1.442695, %v5307_v42  ;;  %v5308_v11 = vsub.f32 %v12630_v38, %v5292_v55 }
 0xf92   : > { %5357 = vadd.xlane.f32.xlu0 %v12666_v41 }
 0xf93   : > { %v12670_v8 = vpop.eup %9809  ;;  %9819 = vpow2.f32 %v5337_v47  ;;  %v5339_v7 = vmul.f32 1.442695, %v5308_v11 }
 0xf94   : > { %5359 = vadd.xlane.f32.xlu1 %v12670_v8 }
 0xf95   : > { %v12673_v0 = vpop.eup %9811  ;;  %9821 = vpow2.f32 %v5339_v7  ;;  %v12711_v7 = vld [vmem:[%s14073_s5] ss:$0 sm:$0xff] }
 0xf96   : > { %5361 = vadd.xlane.f32.xlu0 %v12673_v0 }
 0xf97   : > { %v12676_v35 = vpop.eup %9813 }
 0xf98   : > { %5363 = vadd.xlane.f32.xlu1 %v12676_v35 }
 0xf99   : > { %v12679_v28 = vpop.eup %9815 }
 0xf9a   : > { %5365 = vadd.xlane.f32.xlu0 %v12679_v28 }
 0xf9b   : > { %v12682_v23 = vpop.eup %9817 }
 0xf9c   : > { %5367 = vadd.xlane.f32.xlu1 %v12682_v23 }
 0xf9d   : > { %v12685_v45 = vpop.eup %9819 }
 0xf9e   : > { %5369 = vadd.xlane.f32.xlu0 %v12685_v45 }
 0xf9f   : > { %v12688_v38 = vpop.eup %9821 }
 0xfa0   : > { %5371 = vadd.xlane.f32.xlu1 %v12688_v38 }
0x100f   : > { %v5342_v49 = vpop.xlane.xlu0 %5341 }
0x1010   : > { %9823 = vrcp.f32 %v5342_v49 }
0x1011   : > { %v5344_v58 = vpop.xlane.xlu1 %5343 }
0x1012   : > { %9825 = vrcp.f32 %v5344_v58 }
0x1013   : > { %v5346_v17 = vpop.xlane.xlu0 %5345 }
0x1014   : > { %9827 = vrcp.f32 %v5346_v17 }
0x1015   : > { %v5348_v15 = vpop.xlane.xlu1 %5347 }
0x1016   : > { %9829 = vrcp.f32 %v5348_v15 }
0x1017   : > { %v5350_v3 = vpop.xlane.xlu0 %5349 }
0x1018   : > { %9831 = vrcp.f32 %v5350_v3 }
0x1019   : > { %v5352_v1 = vpop.xlane.xlu1 %5351 }
0x101a   : > { %v9824_v36 = vpop.eup %9823  ;;  %9833 = vrcp.f32 %v5352_v1 }
0x101b   : > { %v5354_v24 = vpop.xlane.xlu0 %5353  ;;  %v5389_v52 = vmul.f32 %v9824_v36, %v12635_v29 }
0x101c   : > { %v9826_v34 = vpop.eup %9825  ;;  %9835 = vrcp.f32 %v5354_v24 }
0x101d   : > { %v5356_v4 = vpop.xlane.xlu1 %5355  ;;  %v5390_v6 = vmul.f32 %v9826_v34, %v12638_v62 }
0x101e   : > { %v9828_v53 = vpop.eup %9827  ;;  %9837 = vrcp.f32 %v5356_v4 }
0x101f   : > { %v5358_v33 = vpop.xlane.xlu0 %5357  ;;  %v5405_v20 = vpack.c.bf16 %v5390_v6, %v5389_v52  ;;  %v5391_v9 = vmul.f32 %v9828_v53, %v12642_v27  ;;  %v10049_v53 = vld [vmem:[%s10594_s22 + $0x10] sm:$0xff]  }
0x1020   : > { %v9830_v5 = vpop.eup %9829  ;;  %9839 = vrcp.f32 %v5358_v33  ;;  %v5530_v33 = vunpack.c.l.bf16 %v10049_v53 }
0x1021   : > { %v5392_v61 = vmul.f32 %v9830_v5, %v12646_v21  ;;  %v5360_v10 = vpop.xlane.xlu1 %5359  ;;  %8831 = vmatprep.mubr.bf16.mxu0 %v5405_v20 }
0x1022   : > { %v9832_v30 = vpop.eup %9831  ;;  %9841 = vrcp.f32 %v5360_v10  ;;  %v5531_v10 = vunpack.c.h.bf16 %v10049_v53  ;;  %v9263_v53 = vld [vmem:[#allocation8 + $0x44] ss:$16 sps:$4 sm:$0xff]  }
0x1023   : > { %v5362_v44 = vpop.xlane.xlu0 %5361  ;;  %v5406_v46 = vpack.c.bf16 %v5392_v61, %v5391_v9  ;;  %v5393_v48 = vmul.f32 %v9832_v30, %v12650_v19 }
0x1024   : > { %v9834_v32 = vpop.eup %9833  ;;  %9843 = vrcp.f32 %v5362_v44  ;;  %v10050_v44 = vld [vmem:[%s10594_s22 + $0x18] sm:$0xff]  }
0x1025   : > { %v5364_v29 = vpop.xlane.xlu1 %5363  ;;  %8832 = vmatmul.mubr.bf16.vlgmr.msra.gmra.mrb[32].mxu0 %v5406_v46  ;;  %v5394_v62 = vmul.f32 %v9834_v32, %v12654_v26  ;;  %v5532_v46 = vunpack.c.l.bf16 %v10050_v44 }
0x1026   : > { %v9836_v37 = vpop.eup %9835  ;;  %9845 = vrcp.f32 %v5364_v29 }
0x1027   : > { %v5366_v18 = vpop.xlane.xlu0 %5365  ;;  %v5407_v54 = vpack.c.bf16 %v5394_v62, %v5393_v48  ;;  %v5395_v22 = vmul.f32 %v9836_v37, %v12658_v25  ;;  %v5533_v62 = vunpack.c.h.bf16 %v10050_v44  ;;  %v9267_v44 = vld [vmem:[#allocation8 + $0x80] ss:$16 sps:$4 sm:$0xff]  }
0x1028   : > { %v9838_v27 = vpop.eup %9837  ;;  %9847 = vrcp.f32 %v5366_v18 }
0x1029   : > { %v5368_v14 = vpop.xlane.xlu1 %5367  ;;  %8835 = vmatprep.mubr.bf16.mxu0 %v5407_v54  ;;  %v5396_v40 = vmul.f32 %v9838_v27, %v12662_v2 }
0x102a   : > { %v9840_v21 = vpop.eup %9839  ;;  %9849 = vrcp.f32 %v5368_v14  ;;  %v10051_v14 = vld [vmem:[%s10594_s22 + $0x20] sm:$0xff]  }
0x102b   : > { %v5370_v43 = vpop.xlane.xlu0 %5369  ;;  %v5408_v56 = vpack.c.bf16 %v5396_v40, %v5395_v22  ;;  %v5397_v63 = vmul.f32 %v9840_v21, %v12666_v41  ;;  %v5534_v22 = vunpack.c.l.bf16 %v10051_v14 }
0x102c   : > { %v9842_v13 = vpop.eup %9841  ;;  %9851 = vrcp.f32 %v5370_v43 }
0x102d   : > { %v5372_v19 = vpop.xlane.xlu1 %5371  ;;  %8836 = vmatmul.mubr.bf16.gmra.mrb[36].mxu0 %v5408_v56  ;;  %v5398_v31 = vmul.f32 %v9842_v13, %v12670_v8  ;;  %v14478_v8 = vmov 0   ;;  %v5535_v13 = vunpack.c.h.bf16 %v10051_v14 }
0x102e   : > { %v9844_v59 = vpop.eup %9843  ;;  %9853 = vrcp.f32 %v5372_v19 }
0x102f   : > { %v5409_v26 = vpack.c.bf16 %v5398_v31, %v5397_v63  ;;  %v5399_v50 = vmul.f32 %v9844_v59, %v12673_v0  ;;  %v10052_v63 = vld [vmem:[%s10594_s22 + $0x28] sm:$0xff]  }
0x1030   : > { %v9846_v16 = vpop.eup %9845  ;;  %v5536_v31 = vunpack.c.l.bf16 %v10052_v63 }
0x1031   : > { %8839 = vmatprep.mubr.bf16.mxu0 %v5409_v26  ;;  %v5400_v39 = vmul.f32 %v9846_v16, %v12676_v35  ;;  %v10047_v35 = vld [vmem:[%s10594_s22] sm:$0xff]  }
0x1032   : > { %v9848_v25 = vpop.eup %9847 }
0x1033   : > { %v5410_v12 = vpack.c.bf16 %v5400_v39, %v5399_v50  ;;  %v5401_v57 = vmul.f32 %v9848_v25, %v12679_v28  ;;  %v5526_v28 = vunpack.c.l.bf16 %v10047_v35  ;;  %v5537_v50 = vunpack.c.h.bf16 %v10052_v63 }
0x1034   : > { %v9850_v60 = vpop.eup %9849 }
0x1035   : > { %8840 = vmatmul.mubr.bf16.gmra.mrb[40].mxu0 %v5410_v12  ;;  %v5402_v2 = vmul.f32 %v9850_v60, %v12682_v23 }
0x1036   : > { %v9852_v51 = vpop.eup %9851 }
0x1037   : > { %v5411_v42 = vpack.c.bf16 %v5402_v2, %v5401_v57  ;;  %v5403_v41 = vmul.f32 %v9852_v51, %v12685_v45  ;;  %v5527_v45 = vunpack.c.h.bf16 %v10047_v35  ;;  %v10053_v57 = vld [vmem:[%s10594_s22 + $0x30] sm:$0xff]  }
0x1038   : > { %v9854_v55 = vpop.eup %9853  ;;  %v5538_v2 = vunpack.c.l.bf16 %v10053_v57 }
0x1039   : > { %8843 = vmatprep.mubr.bf16.mxu0 %v5411_v42  ;;  %v5404_v47 = vmul.f32 %v9854_v55, %v12688_v38  ;;  %v10048_v38 = vld [vmem:[%s10594_s22 + $0x8] sm:$0xff]  }
0x103a   : > { %v5528_v15 = vunpack.c.l.bf16 %v10048_v38  ;;  %v5529_v24 = vunpack.c.h.bf16 %v10048_v38 }
0x103b   : > { %v5412_v11 = vpack.c.bf16 %v5404_v47, %v5403_v41  ;;  %v5539_v47 = vunpack.c.h.bf16 %v10053_v57 }
0x103d   : > { %8844 = vmatmul.mubr.bf16.gmra.mrb[44].mxu0 %v5412_v11 }
0x103e   : > { %6171 = vmatprep.mubr.bf16.mxu0 %v14478_v8 }
0x10f8   : > { %v8833_v0 = vpop.f32.mrb[32].mxu0 }
0x10f9   : > { %v5447_v23 = vpop.f32.mrb[33].mxu0  ;;  %v5551_v3 = vadd.f32 %v8833_v0, %v12711_v7  ;;  %v10054_v0 = vld [vmem:[%s10594_s22 + $0x38] sm:$0xff]  }
0x10fa   : > { %v5549_v49 = vadd.f32 %v12711_v7, %v5447_v23  ;;  %v8834_v58 = vpop.f32.mrb[34].mxu0  ;;  %v5540_v35 = vunpack.c.l.bf16 %v10054_v0 }
0x10fb   : > { %v5450_v17 = vpop.f32.mrb[35].mxu0  ;;  %v5552_v34 = vadd.f32 %v8834_v58, %v12711_v7  ;;  %v12724_v52 = vadd.f32 %v5551_v3, %v5528_v15  ;;  %v5541_v58 = vunpack.c.h.bf16 %v10054_v0  ;;  %v9255_v3 = vld [vmem:[#allocation8] ss:$16 sps:$4 sm:$0xff]  }
0x10fc   : > { %v12717_v1 = vadd.f32 %v5549_v49, %v5526_v28  ;;  %v5550_v36 = vadd.f32 %v12711_v7, %v5450_v17 }
0x10fd   : > { %v12728_v5 = vadd.f32 %v5552_v34, %v5529_v24  ;;  %v9260_v24 = vld [vmem:[#allocation8 + $0x24] ss:$16 sps:$4 sm:$0xff]   ;;  %v9270_v34 = vld [vmem:[#allocation8 + $0x8] ss:$16 sps:$4 sm:$0xff]  }
0x10fe   : > { %v12721_v4 = vadd.f32 %v5550_v36, %v5527_v45  ;;  %5583 = vadd.xlane.f32.xlu0 %v12717_v1  ;;  %v9257_v36 = vld [vmem:[#allocation8 + $0x4] ss:$16 sps:$4 sm:$0xff]  }
0x10ff   : > { %6026 = vmatprep.subr.bf16.mxu1 %v9257_v36  ;;  %v9279_v36 = vld [vmem:[#allocation8 + $0x48] ss:$16 sps:$4 sm:$0xff]  }
0x1100   : > { %5585 = vadd.xlane.f32.xlu1 %v12721_v4  ;;  %v8837_v6 = vpop.f32.mrb[36].mxu0  ;;  %6027 = vmatpush1.bf16.msra.mxu1 %v9255_v3 }
0x1101   : > { %v5463_v20 = vpop.f32.mrb[37].mxu0  ;;  %v5555_v32 = vadd.f32 %v8837_v6, %v12711_v7  ;;  %v9272_v6 = vld [vmem:[#allocation8 + $0xc] ss:$16 sps:$4 sm:$0xff]   ;;  %6028 = vmatprep.subr.bf16.mxu1 %v9260_v24 }
0x1102   : > { %v5553_v9 = vadd.f32 %v12711_v7, %v5463_v20  ;;  %5587 = vadd.xlane.f32.xlu0 %v12724_v52  ;;  %v8838_v61 = vpop.f32.mrb[38].mxu0  ;;  %6139 = vmatprep.subr.bf16.mxu0 %v9272_v6  ;;  %v9273_v20 = vld [vmem:[#allocation8 + $0x28] ss:$16 sps:$4 sm:$0xff]  }
0x1103   : > { %v5466_v30 = vpop.f32.mrb[39].mxu0  ;;  %v5556_v37 = vadd.f32 %v8838_v61, %v12711_v7  ;;  %v12742_v54 = vadd.f32 %v5555_v32, %v5532_v46  ;;  %6140 = vmatpush1.bf16.msra.mxu0 %v9270_v34  ;;  %v9266_v61 = vld [vmem:[#allocation8 + $0x64] ss:$16 sps:$4 sm:$0xff]  }
0x1104   : > { %v12734_v29 = vadd.f32 %v5553_v9, %v5530_v33  ;;  %v5554_v48 = vadd.f32 %v12711_v7, %v5466_v30  ;;  %5589 = vadd.xlane.f32.xlu1 %v12728_v5  ;;  %v9275_v33 = vld [vmem:[#allocation8 + $0x2c] ss:$16 sps:$4 sm:$0xff]   ;;  %v9261_v9 = vld [vmem:[#allocation8 + $0x40] ss:$16 sps:$4 sm:$0xff]   ;;  %v9269_v30 = vld [vmem:[#allocation8 + $0x84] ss:$16 sps:$4 sm:$0xff]  }
0x1105   : > { %v12746_v21 = vadd.f32 %v5556_v37, %v5533_v62  ;;  %6141 = vmatprep.subr.bf16.mxu0 %v9275_v33 }
0x1106   : > { %v12739_v18 = vadd.f32 %v5554_v48, %v5531_v10  ;;  %5591 = vadd.xlane.f32.xlu0 %v12734_v29  ;;  %v9264_v10 = vld [vmem:[#allocation8 + $0x60] ss:$16 sps:$4 sm:$0xff]  }
0x1107   : > { %6142 = vmatpush1.bf16.msra.mxu0 %v9273_v20 }
0x1108   : > { %5593 = vadd.xlane.f32.xlu1 %v12739_v18  ;;  %v8841_v27 = vpop.f32.mrb[40].mxu0 }
0x1109   : > { %v5479_v40 = vpop.f32.mrb[41].mxu0  ;;  %v5559_v59 = vadd.f32 %v8841_v27, %v12711_v7 }
0x110a   : > { %v5557_v43 = vadd.f32 %v12711_v7, %v5479_v40  ;;  %5595 = vadd.xlane.f32.xlu0 %v12742_v54  ;;  %v8842_v56 = vpop.f32.mrb[42].mxu0 }
0x110b   : > { %v5482_v19 = vpop.f32.mrb[43].mxu0  ;;  %v5560_v39 = vadd.f32 %v8842_v56, %v12711_v7  ;;  %v12760_v12 = vadd.f32 %v5559_v59, %v5536_v31 }
0x110c   : > { %v12752_v26 = vadd.f32 %v5557_v43, %v5534_v22  ;;  %v5558_v16 = vadd.f32 %v12711_v7, %v5482_v19  ;;  %5597 = vadd.xlane.f32.xlu1 %v12746_v21 }
0x110d   : > { %v12764_v42 = vadd.f32 %v5560_v39, %v5537_v50 }
0x110e   : > { %v12757_v25 = vadd.f32 %v5558_v16, %v5535_v13  ;;  %5599 = vadd.xlane.f32.xlu0 %v12752_v26 }
0x1110   : > { %5601 = vadd.xlane.f32.xlu1 %v12757_v25  ;;  %v8845_v60 = vpop.f32.mrb[44].mxu0 }
0x1111   : > { %v5495_v51 = vpop.f32.mrb[45].mxu0  ;;  %v5563_v28 = vadd.f32 %v8845_v60, %v12711_v7 }
0x1112   : > { %v5561_v55 = vadd.f32 %v12711_v7, %v5495_v51  ;;  %5603 = vadd.xlane.f32.xlu0 %v12760_v12  ;;  %v8846_v41 = vpop.f32.mrb[46].mxu0 }
0x1113   : > { %v5498_v11 = vpop.f32.mrb[47].mxu0  ;;  %v5564_v45 = vadd.f32 %v8846_v41, %v12711_v7  ;;  %v12778_v38 = vadd.f32 %v5563_v28, %v5540_v35 }
0x1114   : > { %v12770_v23 = vadd.f32 %v5561_v55, %v5538_v2  ;;  %v5562_v49 = vadd.f32 %v12711_v7, %v5498_v11  ;;  %5605 = vadd.xlane.f32.xlu1 %v12764_v42  ;;  %v9258_v7 = vld [vmem:[#allocation8 + $0x20] ss:$16 sps:$4 sm:$0xff]  }
0x1115   : > { %v12781_v15 = vadd.f32 %v5564_v45, %v5541_v58  ;;  %6029 = vmatpush1.bf16.msra.mxu1 %v9258_v7  ;;  %v9281_v58 = vld [vmem:[#allocation8 + $0x4c] ss:$16 sps:$4 sm:$0xff]  }
0x1116   : > { %v12775_v17 = vadd.f32 %v5562_v49, %v5539_v47  ;;  %5607 = vadd.xlane.f32.xlu0 %v12770_v23  ;;  %6030 = vmatprep.subr.bf16.mxu1 %v9263_v53 }
0x1117   : > { %6143 = vmatprep.subr.bf16.mxu0 %v9281_v58 }
0x1118   : > { %5609 = vadd.xlane.f32.xlu1 %v12775_v17  ;;  %6144 = vmatpush1.bf16.msra.mxu0 %v9279_v36 }
0x1119   : > { %6031 = vmatpush1.bf16.msra.mxu1 %v9261_v9  ;;  %v9282_v9 = vld [vmem:[#allocation8 + $0x68] ss:$16 sps:$4 sm:$0xff]  }
0x111a   : > { %5611 = vadd.xlane.f32.xlu0 %v12778_v38  ;;  %6032 = vmatprep.subr.bf16.mxu1 %v9266_v61 }
0x111c   : > { %5613 = vadd.xlane.f32.xlu1 %v12781_v15 }
0x111d   : > { %6033 = vmatpush1.bf16.msra.mxu1 %v9264_v10 }
0x111e   : > { %6034 = vmatprep.subr.bf16.mxu1 %v9269_v30 }
0x1121   : > { %6035 = vmatpush1.bf16.msra.mxu1 %v9267_v44 }
0x118b   : > { %v5584_v46 = vpop.xlane.xlu0 %5583 }
0x118c   : > { %v5616_v32 = vmul.f32 0.0078125, %v5584_v46 }
0x118d   : > { %v5586_v48 = vpop.xlane.xlu1 %5585 }
0x118e   : > { %v12786_v62 = vsub.f32 %v12717_v1, %v5616_v32  ;;  %v5617_v37 = vmul.f32 0.0078125, %v5586_v48 }
0x118f   : > { %v5588_v27 = vpop.xlane.xlu0 %5587 }
0x1190   : > { %v12789_v14 = vsub.f32 %v12721_v4, %v5617_v37  ;;  %v5618_v22 = vmul.f32 0.0078125, %v5588_v27  ;;  %v5648_v40 = vmul.f32 %v12786_v62, %v12786_v62  ;;  %v9288_v37 = vld [vmem:[#allocation8 + $0x88] ss:$16 sps:$4 sm:$0xff]  }
0x1191   : > { %v5590_v43 = vpop.xlane.xlu1 %5589 }
0x1192   : > { %v12794_v56 = vsub.f32 %v12724_v52, %v5618_v22  ;;  %v5619_v13 = vmul.f32 0.0078125, %v5590_v43  ;;  %5664 = vadd.xlane.f32.xlu0 %v5648_v40  ;;  %v5649_v19 = vmul.f32 %v12789_v14, %v12789_v14  ;;  %v9278_v43 = vld [vmem:[#allocation8 + $0xa4] ss:$16 sps:$4 sm:$0xff]  }
0x1193   : > { %v5592_v1 = vpop.xlane.xlu0 %5591  ;;  %6036 = vmatprep.subr.bf16.mxu1 %v9278_v43 }
0x1194   : > { %v12799_v63 = vsub.f32 %v12728_v5, %v5619_v13  ;;  %v5620_v31 = vmul.f32 0.0078125, %v5592_v1  ;;  %5666 = vadd.xlane.f32.xlu1 %v5649_v19  ;;  %v5650_v4 = vmul.f32 %v12794_v56, %v12794_v56  ;;  %v9276_v1 = vld [vmem:[#allocation8 + $0xa0] ss:$16 sps:$4 sm:$0xff]  }
0x1195   : > { %v5594_v59 = vpop.xlane.xlu1 %5593  ;;  %6037 = vmatpush1.bf16.msra.mxu1 %v9276_v1 }
0x1196   : > { %v12804_v16 = vsub.f32 %v12734_v29, %v5620_v31  ;;  %v5621_v52 = vmul.f32 0.0078125, %v5594_v59  ;;  %5668 = vadd.xlane.f32.xlu0 %v5650_v4  ;;  %v5651_v50 = vmul.f32 %v12799_v63, %v12799_v63  ;;  %v9291_v31 = vld [vmem:[#allocation8 + $0xa8] ss:$16 sps:$4 sm:$0xff]   ;;  %v9287_v4 = vld [vmem:[#allocation8 + $0xc4] ss:$16 sps:$4 sm:$0xff]  }
0x1197   : > { %v5596_v39 = vpop.xlane.xlu0 %5595  ;;  %v9299_v59 = vld [vmem:[#allocation8 + $0xcc] ss:$16 sps:$4 sm:$0xff]   ;;  %6038 = vmatprep.subr.bf16.mxu1 %v9287_v4 }
0x1198   : > { %v12809_v60 = vsub.f32 %v12739_v18, %v5621_v52  ;;  %v5622_v5 = vmul.f32 0.0078125, %v5596_v39  ;;  %5670 = vadd.xlane.f32.xlu1 %v5651_v50  ;;  %v5652_v57 = vmul.f32 %v12804_v16, %v12804_v16  ;;  %v9285_v52 = vld [vmem:[#allocation8 + $0xc0] ss:$16 sps:$4 sm:$0xff]   ;;  %v9296_v50 = vld [vmem:[#allocation8 + $0xe4] ss:$16 sps:$4 sm:$0xff]  }
0x1199   : > { %v5598_v2 = vpop.xlane.xlu1 %5597  ;;  %6039 = vmatpush1.bf16.msra.mxu1 %v9285_v52  ;;  %v9302_v39 = vld [vmem:[#allocation8 + $0xec] ss:$16 sps:$4 sm:$0xff]  }
0x119a   : > { %v12814_v51 = vsub.f32 %v12742_v54, %v5622_v5  ;;  %v5623_v29 = vmul.f32 0.0078125, %v5598_v2  ;;  %5672 = vadd.xlane.f32.xlu0 %v5652_v57  ;;  %v5653_v55 = vmul.f32 %v12809_v60, %v12809_v60  ;;  %v9294_v5 = vld [vmem:[#allocation8 + $0xe0] ss:$16 sps:$4 sm:$0xff]   ;;  %v9300_v57 = vld [vmem:[#allocation8 + $0xe8] ss:$16 sps:$4 sm:$0xff]   ;;  %6040 = vmatprep.subr.bf16.mxu1 %v9296_v50 }
0x119b   : > { %v5600_v41 = vpop.xlane.xlu0 %5599  ;;  %v9303_v2 = vld [vmem:[#allocation10 + $0x40] sm:$0xff]  }
0x119c   : > { %v12819_v47 = vsub.f32 %v12746_v21, %v5623_v29  ;;  %v5624_v18 = vmul.f32 0.0078125, %v5600_v41  ;;  %5674 = vadd.xlane.f32.xlu1 %v5653_v55  ;;  %v5654_v11 = vmul.f32 %v12814_v51, %v12814_v51  ;;  %v9305_v29 = vld [vmem:[#allocation10 + $0xc0] sm:$0xff]  }
0x119d   : > { %v5602_v0 = vpop.xlane.xlu1 %5601  ;;  %6041 = vmatpush1.bf16.msra.mxu1 %v9294_v5  ;;  %v9304_v50 = vld [vmem:[#allocation10] sm:$0xff]  }
0x119e   : > { %v12824_v35 = vsub.f32 %v12752_v26, %v5624_v18  ;;  %v5625_v54 = vmul.f32 0.0078125, %v5602_v0  ;;  %5676 = vadd.xlane.f32.xlu0 %v5654_v11  ;;  %v5655_v28 = vmul.f32 %v12819_v47, %v12819_v47  ;;  %8207 = vmatprep.subr.bf16.mxu1 %v9303_v2  ;;  %v9307_v2 = vld [vmem:[#allocation10 + $0x48] sm:$0xff]  }
0x119f   : > { %v5604_v49 = vpop.xlane.xlu0 %5603 }
0x11a0   : > { %v12829_v45 = vsub.f32 %v12757_v25, %v5625_v54  ;;  %v5626_v21 = vmul.f32 0.0078125, %v5604_v49  ;;  %5678 = vadd.xlane.f32.xlu1 %v5655_v28  ;;  %v5656_v3 = vmul.f32 %v12824_v35, %v12824_v35  ;;  %v9284_v25 = vld [vmem:[#allocation8 + $0x6c] ss:$16 sps:$4 sm:$0xff]  }
0x11a1   : > { %v5606_v24 = vpop.xlane.xlu1 %5605  ;;  %6145 = vmatprep.subr.bf16.mxu0 %v9284_v25 }
0x11a2   : > { %v12834_v26 = vsub.f32 %v12760_v12, %v5626_v21  ;;  %v5627_v7 = vmul.f32 0.0078125, %v5606_v24  ;;  %5680 = vadd.xlane.f32.xlu0 %v5656_v3  ;;  %v5657_v34 = vmul.f32 %v12829_v45, %v12829_v45  ;;  %6146 = vmatpush1.bf16.msra.mxu0 %v9282_v9 }
0x11a3   : > { %v5608_v6 = vpop.xlane.xlu0 %5607 }
0x11a4   : > { %v12839_v53 = vsub.f32 %v12764_v42, %v5627_v7  ;;  %v5628_v33 = vmul.f32 0.0078125, %v5608_v6  ;;  %5682 = vadd.xlane.f32.xlu1 %v5657_v34  ;;  %v5658_v20 = vmul.f32 %v12834_v26, %v12834_v26  ;;  %v9290_v42 = vld [vmem:[#allocation8 + $0x8c] ss:$16 sps:$4 sm:$0xff]  }
0x11a5   : > { %v5610_v61 = vpop.xlane.xlu1 %5609  ;;  %6147 = vmatprep.subr.bf16.mxu0 %v9290_v42 }
0x11a6   : > { %v12844_v12 = vsub.f32 %v12770_v23, %v5628_v33  ;;  %v5629_v10 = vmul.f32 0.0078125, %v5610_v61  ;;  %5684 = vadd.xlane.f32.xlu0 %v5658_v20  ;;  %v5659_v30 = vmul.f32 %v12839_v53, %v12839_v53  ;;  %6148 = vmatpush1.bf16.msra.mxu0 %v9288_v37 }
0x11a7   : > { %v5612_v44 = vpop.xlane.xlu0 %5611 }
0x11a8   : > { %v12849_v46 = vsub.f32 %v12775_v17, %v5629_v10  ;;  %v5630_v32 = vmul.f32 0.0078125, %v5612_v44  ;;  %5686 = vadd.xlane.f32.xlu1 %v5659_v30  ;;  %v5660_v48 = vmul.f32 %v12844_v12, %v12844_v12  ;;  %v9293_v17 = vld [vmem:[#allocation8 + $0xac] ss:$16 sps:$4 sm:$0xff]   ;;  %v12868_v10 = vld [vmem:[%s14074_s6] ss:$0 sm:$0xff] }
0x11a9   : > { %v5614_v27 = vpop.xlane.xlu1 %5613  ;;  %6149 = vmatprep.subr.bf16.mxu0 %v9293_v17 }
0x11aa   : > { %v12854_v23 = vsub.f32 %v12778_v38, %v5630_v32  ;;  %v5631_v22 = vmul.f32 0.0078125, %v5614_v27  ;;  %5688 = vadd.xlane.f32.xlu0 %v5660_v48  ;;  %v5661_v40 = vmul.f32 %v12849_v46, %v12849_v46  ;;  %6150 = vmatpush1.bf16.msra.mxu0 %v9291_v31 }
0x11ab   : > { %6151 = vmatprep.subr.bf16.mxu0 %v9299_v59 }
0x11ac   : > { %v12859_v13 = vsub.f32 %v12781_v15, %v5631_v22  ;;  %5690 = vadd.xlane.f32.xlu1 %v5661_v40  ;;  %v5662_v19 = vmul.f32 %v12854_v23, %v12854_v23  ;;  %v9297_v15 = vld [vmem:[#allocation8 + $0xc8] ss:$16 sps:$4 sm:$0xff]   ;;  %v12876_v22 = vld [vmem:[%s14075_s7] ss:$0 sm:$0xff] }
0x11ae   : > { %5692 = vadd.xlane.f32.xlu0 %v5662_v19  ;;  %v5663_v38 = vmul.f32 %v12859_v13, %v12859_v13  ;;  %6152 = vmatpush1.bf16.msra.mxu0 %v9297_v15 }
0x11af   : > { %6153 = vmatprep.subr.bf16.mxu0 %v9302_v39 }
0x11b0   : > { %5694 = vadd.xlane.f32.xlu1 %v5663_v38 }
0x11b2   : > { %6154 = vmatpush1.bf16.msra.mxu0 %v9300_v57  ;;  %v9306_v57 = vld [vmem:[#allocation10 + $0x80] sm:$0xff]  }
0x11b3   : > { %8271 = vmatprep.subr.bf16.mxu0 %v9305_v29 }
0x121f   : > { %v5665_v55 = vpop.xlane.xlu0 %5664 }
0x1220   : > { %v5696_v41 = vmul.f32 0.0078125, %v5665_v55 }
0x1221   : > { %v5667_v18 = vpop.xlane.xlu1 %5666 }
0x1222   : > { %v5712_v11 = vadd.f32 1e-12, %v5696_v41  ;;  %v5697_v0 = vmul.f32 0.0078125, %v5667_v18 }
0x1223   : > { %v5669_v54 = vpop.xlane.xlu0 %5668 }
0x1224   : > { %9855 = vrsqrt.f32 %v5712_v11  ;;  %v5713_v28 = vadd.f32 1e-12, %v5697_v0  ;;  %v5698_v49 = vmul.f32 0.0078125, %v5669_v54  ;;  %v9308_v0 = vld [vmem:[#allocation10 + $0x8] sm:$0xff]  }
0x1225   : > { %v5671_v58 = vpop.xlane.xlu1 %5670 }
0x1226   : > { %9857 = vrsqrt.f32 %v5713_v28  ;;  %v5714_v21 = vadd.f32 1e-12, %v5698_v49  ;;  %v5699_v3 = vmul.f32 0.0078125, %v5671_v58  ;;  %v9310_v28 = vld [vmem:[#allocation10 + $0x88] sm:$0xff]   ;;  %v9311_v49 = vld [vmem:[#allocation10 + $0x50] sm:$0xff]  }
0x1227   : > { %v5673_v36 = vpop.xlane.xlu0 %5672 }
0x1228   : > { %9859 = vrsqrt.f32 %v5714_v21  ;;  %v5715_v24 = vadd.f32 1e-12, %v5699_v3  ;;  %v5700_v7 = vmul.f32 0.0078125, %v5673_v36 }
0x1229   : > { %v5675_v34 = vpop.xlane.xlu1 %5674 }
0x122a   : > { %9861 = vrsqrt.f32 %v5715_v24  ;;  %v5701_v6 = vmul.f32 0.0078125, %v5675_v34  ;;  %v5716_v25 = vadd.f32 1e-12, %v5700_v7  ;;  %v9312_v7 = vld [vmem:[#allocation10 + $0x10] sm:$0xff]  }
0x122b   : > { %v5677_v20 = vpop.xlane.xlu0 %5676 }
0x122c   : > { %v5717_v33 = vadd.f32 1e-12, %v5701_v6  ;;  %v5702_v32 = vmul.f32 0.0078125, %v5677_v20  ;;  %v9314_v20 = vld [vmem:[#allocation10 + $0x90] sm:$0xff]  }
0x122d   : > { %v5679_v9 = vpop.xlane.xlu1 %5678 }
0x122e   : > { %v9856_v61 = vpop.eup %9855  ;;  %9863 = vrsqrt.f32 %v5717_v33  ;;  %v5703_v30 = vmul.f32 0.0078125, %v5679_v9  ;;  %v5718_v1 = vadd.f32 1e-12, %v5702_v32  ;;  %v9315_v33 = vld [vmem:[#allocation10 + $0x58] sm:$0xff]  }
0x122f   : > { %v5744_v44 = vmul.f32 %v9856_v61, %v12786_v62  ;;  %9865 = vrsqrt.f32 %v5716_v25  ;;  %v5681_v4 = vpop.xlane.xlu0 %5680  ;;  %v9313_v25 = vld [vmem:[#allocation10 + $0xd0] sm:$0xff]  }
0x1230   : > { %v9858_v42 = vpop.eup %9857  ;;  %v5719_v40 = vadd.f32 1e-12, %v5703_v30  ;;  %v5704_v5 = vmul.f32 0.0078125, %v5681_v4  ;;  %v9317_v30 = vld [vmem:[#allocation10 + $0xd8] sm:$0xff]  }
0x1231   : > { %v5766_v48 = vmul.f32 %v12868_v10, %v5744_v44  ;;  %v5745_v37 = vmul.f32 %v9858_v42, %v12789_v14  ;;  %v5683_v17 = vpop.xlane.xlu1 %5682 }
0x1232   : > { %v9860_v27 = vpop.eup %9859  ;;  %9867 = vrsqrt.f32 %v5719_v40  ;;  %v5705_v59 = vmul.f32 0.0078125, %v5683_v17  ;;  %v5720_v54 = vadd.f32 1e-12, %v5704_v5 }
0x1233   : > { %v5767_v43 = vmul.f32 %v12868_v10, %v5745_v37  ;;  %v12880_v62 = vadd.f32 %v12876_v22, %v5766_v48  ;;  %v5746_v14 = vmul.f32 %v9860_v27, %v12794_v56  ;;  %9869 = vrsqrt.f32 %v5718_v1  ;;  %v9309_v56 = vld [vmem:[#allocation10 + $0xc8] sm:$0xff]   ;;  %v5685_v3 = vpop.xlane.xlu0 %5684  ;;  %v9316_v48 = vld [vmem:[#allocation10 + $0x18] sm:$0xff]  }
0x1234   : > { %v9862_v19 = vpop.eup %9861  ;;  %v5721_v55 = vadd.f32 1e-12, %v5705_v59  ;;  %v5706_v6 = vmul.f32 0.0078125, %v5685_v3  ;;  %v9318_v1 = vld [vmem:[#allocation10 + $0x98] sm:$0xff]  }
0x1235   : > { %14479 = vst [vmem:[#allocation29_spill] sm:$0xff] %v12880_v62  ;;  %v12883_v31 = vadd.f32 %v12876_v22, %v5767_v43  ;;  %v5747_v38 = vmul.f32 %v9862_v19, %v12799_v63  ;;  %v5768_v29 = vmul.f32 %v12868_v10, %v5746_v14  ;;  %v5687_v11 = vpop.xlane.xlu1 %5686 }
0x1236   : > { %9871 = vrsqrt.f32 %v5721_v55  ;;  %v5707_v36 = vmul.f32 0.0078125, %v5687_v11  ;;  %v5722_v37 = vadd.f32 1e-12, %v5706_v6 }
0x1237   : > { %14480 = vst [vmem:[#allocation30_spill] sm:$0xff] %v12883_v31  ;;  %v5804_v52 = vpack.c.bf16 %v12883_v31, %v12880_v62  ;;  %v5769_v15 = vmul.f32 %v12868_v10, %v5747_v38  ;;  %v12898_v58 = vadd.f32 %v12876_v22, %v5768_v29  ;;  %9873 = vrsqrt.f32 %v5720_v54  ;;  %v5689_v43 = vpop.xlane.xlu0 %5688 }
0x1238   : > { %v9864_v39 = vpop.eup %9863  ;;  %v5723_v61 = vadd.f32 1e-12, %v5707_v36  ;;  %v5708_v38 = vmul.f32 0.0078125, %v5689_v43  ;;  %v9321_v43 = vld [vmem:[#allocation10 + $0xe0] sm:$0xff]  }
0x1239   : > { %6059 = vmatmul.mubr.bf16.vlgmr.msra.gmra.mrb[0].mxu1 %v5804_v52  ;;  %6172 = vmatmul.mubr.bf16.vlgmr.msra.gmra.mrb[144].mxu0 %v5804_v52  ;;  %v9866_v63 = vpop.eup %9865  ;;  %v12894_v41 = vadd.f32 %v12876_v22, %v5769_v15  ;;  %v5749_v18 = vmul.f32 %v9864_v39, %v12809_v60  ;;  %14482 = vst [vmem:[#allocation75_spill] sm:$0xff] %v12898_v58  ;;  %v5691_v32 = vpop.xlane.xlu1 %5690 }
0x123a   : > { %6068 = vmatprep.mubr.bf16.mxu1 %v14478_v8  ;;  %6181 = vmatprep.mubr.bf16.mxu0 %v14478_v8  ;;  %v5748_v21 = vmul.f32 %v9866_v63, %v12804_v16  ;;  %9875 = vrsqrt.f32 %v5723_v61  ;;  %v5709_v17 = vmul.f32 0.0078125, %v5691_v32  ;;  %v5724_v39 = vadd.f32 1e-12, %v5708_v38  ;;  %v9328_v38 = vld [vmem:[#allocation10 + $0x30] sm:$0xff]  }
0x123b   : > { %14481 = vst [vmem:[#allocation55_spill] sm:$0xff] %v12894_v41  ;;  %8208 = vmatpush3.bf16.msra.mxu1 %v9304_v50  ;;  %8272 = vmatpush3.bf16.msra.mxu0 %v9306_v57  ;;  %v5805_v60 = vpack.c.bf16 %v12894_v41, %v12898_v58  ;;  %v5771_v24 = vmul.f32 %v12868_v10, %v5749_v18  ;;  %9877 = vrsqrt.f32 %v5722_v37 }
0x123c   : > { %8209 = vmatprep.subr.bf16.mxu1 %v9307_v2  ;;  %8273 = vmatprep.subr.bf16.mxu0 %v9309_v56  ;;  %v9868_v34 = vpop.eup %9867  ;;  %v5770_v16 = vmul.f32 %v12868_v10, %v5748_v21  ;;  %v5725_v59 = vadd.f32 1e-12, %v5709_v17  ;;  %v5693_v2 = vpop.xlane.xlu0 %5692  ;;  %v9322_v17 = vld [vmem:[#allocation10 + $0xa0] sm:$0xff]  }
0x123d   : > { %v9870_v9 = vpop.eup %9869  ;;  %v12908_v44 = vadd.f32 %v12876_v22, %v5771_v24  ;;  %v5751_v42 = vmul.f32 %v9868_v34, %v12819_v47  ;;  %v5695_v50 = vpop.xlane.xlu1 %5694  ;;  %v5710_v18 = vmul.f32 0.0078125, %v5693_v2 }
0x123e   : > { %v12912_v27 = vadd.f32 %v12876_v22, %v5770_v16  ;;  %v5750_v40 = vmul.f32 %v9870_v9, %v12814_v51  ;;  %9879 = vrsqrt.f32 %v5725_v59  ;;  %v5711_v29 = vmul.f32 0.0078125, %v5695_v50  ;;  %v9333_v59 = vld [vmem:[#allocation10 + $0xf8] sm:$0xff]  }
0x123f   : > { %8210 = vmatpush3.bf16.msra.mxu1 %v9308_v0  ;;  %8274 = vmatpush3.bf16.msra.mxu0 %v9310_v28  ;;  %14483 = vst [vmem:[#allocation56_spill] sm:$0xff] %v12908_v44  ;;  %v5773_v47 = vmul.f32 %v12868_v10, %v5751_v42  ;;  %9881 = vrsqrt.f32 %v5724_v39  ;;  %v5726_v28 = vadd.f32 1e-12, %v5710_v18  ;;  %v9334_v50 = vld [vmem:[#allocation10 + $0xb8] sm:$0xff]   ;;  %v5846_v39 = vlaneseq }
0x1240   : > { %8211 = vmatprep.subr.bf16.mxu1 %v9311_v49  ;;  %8275 = vmatprep.subr.bf16.mxu0 %v9313_v25  ;;  %14484 = vst [vmem:[#allocation31_spill] sm:$0xff] %v12912_v27  ;;  %v5806_v19 = vpack.c.bf16 %v12908_v44, %v12912_v27  ;;  %v9872_v14 = vpop.eup %9871  ;;  %v5772_v4 = vmul.f32 %v12868_v10, %v5750_v40  ;;  %v5727_v0 = vadd.f32 1e-12, %v5711_v29  ;;  %v9319_v40 = vld [vmem:[#allocation10 + $0x60] sm:$0xff]  }
0x1241   : > { %6069 = vmatmul.mubr.bf16.gmra.mrb[4].mxu1 %v5805_v60  ;;  %6182 = vmatmul.mubr.bf16.gmra.mrb[148].mxu0 %v5805_v60  ;;  %v9874_v51 = vpop.eup %9873  ;;  %v12922_v52 = vadd.f32 %v12876_v22, %v5773_v47  ;;  %v5753_v15 = vmul.f32 %v9872_v14, %v12829_v45  ;;  %v9324_v47 = vld [vmem:[#allocation10 + $0x28] sm:$0xff]   ;;  %v9329_v14 = vld [vmem:[#allocation10 + $0xf0] sm:$0xff]  }
0x1242   : > { %6078 = vmatprep.mubr.bf16.mxu1 %v14478_v8  ;;  %6191 = vmatprep.mubr.bf16.mxu0 %v14478_v8  ;;  %v12926_v5 = vadd.f32 %v12876_v22, %v5772_v4  ;;  %v5752_v57 = vmul.f32 %v9874_v51, %v12824_v35  ;;  %9883 = vrsqrt.f32 %v5727_v0  ;;  %v9330_v4 = vld [vmem:[#allocation10 + $0xb0] sm:$0xff]   ;;  %v9331_v51 = vld [vmem:[#allocation10 + $0x78] sm:$0xff]  }
0x1243   : > { %8212 = vmatpush3.bf16.msra.mxu1 %v9312_v7  ;;  %8276 = vmatpush3.bf16.msra.mxu0 %v9314_v20  ;;  %14485 = vst [vmem:[#allocation76_spill] sm:$0xff] %v12922_v52  ;;  %v5775_v63 = vmul.f32 %v12868_v10, %v5753_v15  ;;  %9885 = vrsqrt.f32 %v5726_v28  ;;  %v9332_v15 = vld [vmem:[#allocation10 + $0x38] sm:$0xff]  }
0x1244   : > { %8213 = vmatprep.subr.bf16.mxu1 %v9315_v33  ;;  %8277 = vmatprep.subr.bf16.mxu0 %v9317_v30  ;;  %14486 = vst [vmem:[#allocation57_spill] sm:$0xff] %v12926_v5  ;;  %v5807_v56 = vpack.c.bf16 %v12922_v52, %v12926_v5  ;;  %v9876_v55 = vpop.eup %9875  ;;  %v5774_v45 = vmul.f32 %v12868_v10, %v5752_v57  ;;  %v5847_v57 = vshrl.u32 %v5846_v39, 7 }
0x1245   : > { %v9878_v11 = vpop.eup %9877  ;;  %v12936_v35 = vadd.f32 %v12876_v22, %v5775_v63  ;;  %v5755_v54 = vmul.f32 %v9876_v55, %v12839_v53 }
0x1246   : > { %v12940_v49 = vadd.f32 %v12876_v22, %v5774_v45  ;;  %v5754_v21 = vmul.f32 %v9878_v11, %v12834_v26  ;;  %v5848_v2 = vsub.s32 0, %v5847_v57  ;;  %v5856_v29 = vsub.s32 2, %v5847_v57 }
0x1247   : > { %8214 = vmatpush3.bf16.msra.mxu1 %v9316_v48  ;;  %8278 = vmatpush3.bf16.msra.mxu0 %v9318_v1  ;;  %14487 = vst [vmem:[#allocation58_spill] sm:$0xff] %v12936_v35  ;;  %v5777_v36 = vmul.f32 %v12868_v10, %v5755_v54  ;;  %v9326_v1 = vld [vmem:[#allocation10 + $0xa8] sm:$0xff]   ;;  %v5852_v63 = vsub.s32 1, %v5847_v57  ;;  %v5860_v55 = vsub.s32 3, %v5847_v57 }
0x1248   : > { %14488 = vst [vmem:[#allocation32_spill] sm:$0xff] %v12940_v49  ;;  %v5808_v3 = vpack.c.bf16 %v12936_v35, %v12940_v49  ;;  %v9880_v60 = vpop.eup %9879  ;;  %v5776_v24 = vmul.f32 %v12868_v10, %v5754_v21  ;;  %8215 = vmatprep.subr.bf16.mxu1 %v9319_v40  ;;  %8279 = vmatprep.subr.bf16.mxu0 %v9321_v43 }
0x1249   : > { %6079 = vmatmul.mubr.bf16.gmra.mrb[8].mxu1 %v5806_v19  ;;  %6192 = vmatmul.mubr.bf16.gmra.mrb[152].mxu0 %v5806_v19  ;;  %v9882_v7 = vpop.eup %9881  ;;  %v12950_v53 = vadd.f32 %v12876_v22, %v5777_v36  ;;  %v5757_v26 = vmul.f32 %v9880_v60, %v12849_v46  ;;  %v9325_v19 = vld [vmem:[#allocation10 + $0xe8] sm:$0xff]  }
0x124a   : > { %6088 = vmatprep.mubr.bf16.mxu1 %v14478_v8  ;;  %6201 = vmatprep.mubr.bf16.mxu0 %v14478_v8  ;;  %v12954_v34 = vadd.f32 %v12876_v22, %v5776_v24  ;;  %v5756_v6 = vmul.f32 %v9882_v7, %v12844_v12 }
0x124b   : > { %14489 = vst [vmem:[#allocation60_spill] sm:$0xff] %v12950_v53  ;;  %v5779_v33 = vmul.f32 %v12868_v10, %v5757_v26  ;;  %8280 = vmatpush3.bf16.msra.mxu0 %v9322_v17 }
0x124c   : > { %14490 = vst [vmem:[#allocation61_spill] sm:$0xff] %v12954_v34  ;;  %v5809_v25 = vpack.c.bf16 %v12950_v53, %v12954_v34  ;;  %v9884_v16 = vpop.eup %9883  ;;  %v5778_v20 = vmul.f32 %v12868_v10, %v5756_v6  ;;  %8281 = vmatprep.subr.bf16.mxu0 %v9325_v19 }
0x124d   : > { %v9886_v9 = vpop.eup %9885  ;;  %v12964_v46 = vadd.f32 %v12876_v22, %v5779_v33  ;;  %v5759_v12 = vmul.f32 %v9884_v16, %v12859_v13 }
0x124e   : > { %v12968_v61 = vadd.f32 %v12876_v22, %v5778_v20  ;;  %v5758_v30 = vmul.f32 %v9886_v9, %v12854_v23 }
0x124f   : > { %14491 = vst [vmem:[#allocation33_spill] sm:$0xff] %v12964_v46  ;;  %v5781_v32 = vmul.f32 %v12868_v10, %v5759_v12  ;;  %8282 = vmatpush3.bf16.msra.mxu0 %v9326_v1 }
0x1250   : > { %14492 = vst [vmem:[#allocation53_spill] sm:$0xff] %v12968_v61  ;;  %v5810_v42 = vpack.c.bf16 %v12964_v46, %v12968_v61  ;;  %v5780_v48 = vmul.f32 %v12868_v10, %v5758_v30  ;;  %v9320_v10 = vld [vmem:[#allocation10 + $0x20] sm:$0xff]   ;;  %8283 = vmatprep.subr.bf16.mxu0 %v9329_v14 }
0x1251   : > { %6089 = vmatmul.mubr.bf16.gmra.mrb[12].mxu1 %v5807_v56  ;;  %6202 = vmatmul.mubr.bf16.gmra.mrb[156].mxu0 %v5807_v56  ;;  %v12978_v13 = vadd.f32 %v12876_v22, %v5781_v32  ;;  %v5844_v56 = vld [vmem:[%s14495_s21] sm:$0xf] }
0x1252   : > { %6098 = vmatprep.mubr.bf16.mxu1 %v14478_v8  ;;  %6211 = vmatprep.mubr.bf16.mxu0 %v14478_v8  ;;  %v12981_v37 = vadd.f32 %v12876_v22, %v5780_v48  ;;  %v9327_v22 = vld [vmem:[#allocation10 + $0x70] sm:$0xff]   ;;  %v12988_v18 = vrot.slane %v5844_v56, %v5848_v2  ;;  %v12990_v45 = vrot.slane %v5844_v56, %v5856_v29 }
0x1253   : > { %14493 = vst [vmem:[#allocation67_spill] sm:$0xff] %v12978_v13  ;;  %8216 = vmatpush3.bf16.msra.mxu1 %v9320_v10  ;;  %8284 = vmatpush3.bf16.msra.mxu0 %v9330_v4  ;;  %v12992_v11 = vrot.slane %v5844_v56, %v5852_v63  ;;  %v12994_v28 = vrot.slane %v5844_v56, %v5860_v55 }
0x1254   : > { %14494 = vst [vmem:[#allocation69_spill] sm:$0xff] %v12981_v37  ;;  %v5811_v23 = vpack.c.bf16 %v12978_v13, %v12981_v37  ;;  %8285 = vmatprep.subr.bf16.mxu0 %v9333_v59 }
0x1257   : > { %8286 = vmatpush3.bf16.msra.mxu0 %v9334_v50 }
0x1259   : > { %6099 = vmatmul.mubr.bf16.gmra.mrb[16].mxu1 %v5808_v3  ;;  %6212 = vmatmul.mubr.bf16.gmra.mrb[160].mxu0 %v5808_v3 }
0x125a   : > { %6108 = vmatprep.mubr.bf16.mxu1 %v14478_v8  ;;  %6221 = vmatprep.mubr.bf16.mxu0 %v14478_v8 }
0x1261   : > { %6109 = vmatmul.mubr.bf16.gmra.mrb[20].mxu1 %v5809_v25  ;;  %6222 = vmatmul.mubr.bf16.gmra.mrb[164].mxu0 %v5809_v25 }
0x1262   : > { %6118 = vmatprep.mubr.bf16.mxu1 %v14478_v8  ;;  %6231 = vmatprep.mubr.bf16.mxu0 %v14478_v8 }
0x1269   : > { %6119 = vmatmul.mubr.bf16.gmra.mrb[24].mxu1 %v5810_v42  ;;  %6232 = vmatmul.mubr.bf16.gmra.mrb[168].mxu0 %v5810_v42 }
0x126a   : > { %6128 = vmatprep.mubr.bf16.mxu1 %v14478_v8  ;;  %6241 = vmatprep.mubr.bf16.mxu0 %v14478_v8  ;;  %v9323_v8 = vld [vmem:[#allocation10 + $0x68] sm:$0xff]  }
0x126b   : > { %8217 = vmatprep.subr.bf16.mxu1 %v9323_v8 }
0x126c   : > { %8218 = vmatpush3.bf16.msra.mxu1 %v9324_v47 }
0x126d   : > { %8219 = vmatprep.subr.bf16.mxu1 %v9327_v22 }
0x1270   : > { %8220 = vmatpush3.bf16.msra.mxu1 %v9328_v38 }
0x1271   : > { %6129 = vmatmul.mubr.bf16.gmra.mrb[28].mxu1 %v5811_v23  ;;  %6242 = vmatmul.mubr.bf16.gmra.mrb[172].mxu0 %v5811_v23 }
0x1272   : > { %8221 = vmatprep.subr.bf16.mxu1 %v9331_v51 }
0x1274   : > { %8222 = vmatpush3.bf16.msra.mxu1 %v9332_v15 }
0x130c   : > { %v6060_v0 = vpop.f32.mrb[0].mxu1  ;;  %v6173_v54 = vpop.f32.mrb[144].mxu0 }
0x130d   : > { %v6061_v21 = vadd.f32 %v6060_v0, %v12988_v18  ;;  %v6174_v3 = vadd.f32 %v6173_v54, %v12990_v45  ;;  %v6062_v36 = vpop.f32.mrb[1].mxu1  ;;  %v6175_v60 = vpop.f32.mrb[145].mxu0 }
0x130e   : > { %v6064_v24 = vpop.f32.mrb[2].mxu1  ;;  %v6177_v7 = vpop.f32.mrb[146].mxu0  ;;  %v12999_v25 = vadd.f32 %v6062_v36, %v12992_v11  ;;  %v13002_v33 = vadd.f32 %v6175_v60, %v12994_v28 }
0x130f   : > { %v6316_v26 = vmul.f32 0.044715, %v6061_v21  ;;  %v6318_v6 = vmul.f32 0.044715, %v6174_v3  ;;  %v6065_v16 = vadd.f32 %v6064_v24, %v12988_v18  ;;  %v6178_v20 = vadd.f32 %v6177_v7, %v12990_v45  ;;  %v6066_v9 = vpop.f32.mrb[3].mxu1  ;;  %v6179_v12 = vpop.f32.mrb[147].mxu0 }
0x1310   : > { %v13007_v48 = vadd.f32 %v6066_v9, %v12992_v11  ;;  %v6317_v40 = vmul.f32 0.044715, %v12999_v25  ;;  %v6319_v17 = vmul.f32 0.044715, %v13002_v33  ;;  %v13011_v1 = vmul.f32 0.5, %v6061_v21 }
0x1311   : > { %v6380_v30 = vmul.f32 %v6316_v26, %v6061_v21  ;;  %v6382_v42 = vmul.f32 %v6318_v6, %v6174_v3  ;;  %v6320_v32 = vmul.f32 0.044715, %v6065_v16  ;;  %v6322_v43 = vmul.f32 0.044715, %v6178_v20 }
0x1312   : > { %v13014_v38 = vadd.f32 %v6179_v12, %v12994_v28  ;;  %v13016_v59 = vmul.f32 0.5, %v6174_v3  ;;  %v6321_v50 = vmul.f32 0.044715, %v13007_v48  ;;  %v6381_v56 = vmul.f32 %v6317_v40, %v12999_v25 }
0x1313   : > { %v6444_v23 = vmul.f32 %v6380_v30, %v6061_v21  ;;  %v6446_v10 = vmul.f32 %v6382_v42, %v6174_v3  ;;  %v6384_v8 = vmul.f32 %v6320_v32, %v6065_v16  ;;  %v6386_v14 = vmul.f32 %v6322_v43, %v6178_v20 }
0x1314   : > { %v6070_v19 = vpop.f32.mrb[4].mxu1  ;;  %v6183_v47 = vpop.f32.mrb[148].mxu0  ;;  %v6383_v36 = vmul.f32 %v6319_v17, %v13002_v33  ;;  %v13025_v7 = vmul.f32 0.5, %v6065_v16  ;;  %v6323_v6 = vmul.f32 0.044715, %v13014_v38  ;;  %v6385_v12 = vmul.f32 %v6321_v50, %v13007_v48 }
0x1315   : > { %v6508_v22 = vadd.f32 %v6444_v23, %v6061_v21  ;;  %v6072_v4 = vpop.f32.mrb[5].mxu1  ;;  %v6185_v51 = vpop.f32.mrb[149].mxu0  ;;  %v6448_v15 = vmul.f32 %v6384_v8, %v6065_v16  ;;  %v6071_v39 = vadd.f32 %v6070_v19, %v12988_v18  ;;  %v6450_v63 = vmul.f32 %v6386_v14, %v6178_v20 }
0x1316   : > { %v6074_v57 = vpop.f32.mrb[6].mxu1  ;;  %v6187_v2 = vpop.f32.mrb[150].mxu0  ;;  %v13022_v55 = vadd.f32 %v6183_v47, %v12990_v45  ;;  %v6510_v21 = vadd.f32 %v6446_v10, %v6174_v3  ;;  %v13030_v42 = vadd.f32 %v6072_v4, %v12992_v11  ;;  %v13032_v32 = vmul.f32 0.5, %v6178_v20 }
0x1317   : > { %v6572_v29 = vmul.f32 0.7978846, %v6508_v22  ;;  %v6076_v0 = vpop.f32.mrb[7].mxu1  ;;  %v6189_v54 = vpop.f32.mrb[151].mxu0  ;;  %v6512_v60 = vadd.f32 %v6448_v15, %v6065_v16  ;;  %v6324_v24 = vmul.f32 0.044715, %v6071_v39  ;;  %v6514_v26 = vadd.f32 %v6450_v63, %v6178_v20 }
0x1318   : > { %14496 = vst [vmem:[#allocation68_spill] sm:$0xff] %v13022_v55  ;;  %14497 = vst [vmem:[#allocation70_spill] sm:$0xff] %v13030_v42  ;;  %v6326_v3 = vmul.f32 0.044715, %v13022_v55  ;;  %v13036_v23 = vadd.f32 %v6185_v51, %v12994_v28  ;;  %v6075_v16 = vadd.f32 %v6074_v57, %v12988_v18  ;;  %v6574_v40 = vmul.f32 0.7978846, %v6510_v21 }
0x1319   : > { %9887 = vtanh.f32 %v6572_v29  ;;  %v6576_v9 = vmul.f32 0.7978846, %v6512_v60  ;;  %v6388_v30 = vmul.f32 %v6324_v24, %v6071_v39  ;;  %v13040_v43 = vmul.f32 %v6381_v56, %v12999_v25 }
0x131a   : > { %14498 = vst [vmem:[#allocation71_spill] sm:$0xff] %v13036_v23  ;;  %v13043_v19 = vmul.f32 %v6383_v36, %v13002_v33  ;;  %v6578_v20 = vmul.f32 0.7978846, %v6514_v26  ;;  %v6387_v47 = vmul.f32 %v6323_v6, %v13014_v38  ;;  %v6325_v22 = vmul.f32 0.044715, %v13030_v42 }
0x131b   : > { %9889 = vtanh.f32 %v6576_v9  ;;  %v6452_v10 = vmul.f32 %v6388_v30, %v6071_v39  ;;  %v13048_v51 = vmul.f32 %v6385_v12, %v13007_v48  ;;  %v6328_v50 = vmul.f32 0.044715, %v6075_v16 }
0x131c   : > { %v6080_v17 = vpop.f32.mrb[8].mxu1  ;;  %v6193_v8 = vpop.f32.mrb[152].mxu0  ;;  %v13051_v57 = vadd.f32 %v6187_v2, %v12990_v45  ;;  %v13053_v63 = vmul.f32 0.5, %v6071_v39  ;;  %v6390_v21 = vmul.f32 %v6326_v3, %v13022_v55  ;;  %v6327_v36 = vmul.f32 0.044715, %v13036_v23 }
0x131d   : > { %v6082_v14 = vpop.f32.mrb[9].mxu1  ;;  %v6195_v4 = vpop.f32.mrb[153].mxu0  ;;  %v6516_v15 = vadd.f32 %v6452_v10, %v6071_v39  ;;  %v6081_v60 = vadd.f32 %v6080_v17, %v12988_v18  ;;  %9891 = vtanh.f32 %v6574_v40  ;;  %v6392_v9 = vmul.f32 %v6328_v50, %v6075_v16 }
0x131e   : > { %14499 = vst [vmem:[#allocation73_spill] sm:$0xff] %v13051_v57  ;;  %v6084_v29 = vpop.f32.mrb[10].mxu1  ;;  %v6197_v56 = vpop.f32.mrb[154].mxu0  ;;  %v13063_v2 = vadd.f32 %v6076_v0, %v12992_v11  ;;  %9893 = vtanh.f32 %v6578_v20  ;;  %v13066_v39 = vmul.f32 %v6387_v47, %v13014_v38  ;;  %v6389_v12 = vmul.f32 %v6325_v22, %v13030_v42 }
0x131f   : > { %v13058_v24 = vpop.f32.mrb[11].mxu1  ;;  %v13060_v26 = vpop.f32.mrb[155].mxu0  ;;  %v6580_v6 = vmul.f32 0.7978846, %v6516_v15  ;;  %v13070_v30 = vadd.f32 %v6189_v54, %v12994_v28  ;;  %v6456_v3 = vmul.f32 %v6392_v9, %v6075_v16  ;;  %v6330_v10 = vmul.f32 0.044715, %v13051_v57 }
0x1320   : > { %14500 = vst [vmem:[#allocation72_spill] sm:$0xff] %v13063_v2  ;;  %v6332_v17 = vmul.f32 0.044715, %v6081_v60  ;;  %v13074_v15 = vmul.f32 %v6390_v21, %v13022_v55  ;;  %v6391_v0 = vmul.f32 %v6327_v36, %v13036_v23  ;;  %v13078_v20 = vadd.f32 %v6193_v8, %v12990_v45 }
0x1321   : > { %14501 = vst [vmem:[#allocation74_spill] sm:$0xff] %v13070_v30  ;;  %9895 = vtanh.f32 %v6580_v6  ;;  %v13081_v47 = vadd.f32 %v6082_v14, %v12992_v11  ;;  %v6520_v22 = vadd.f32 %v6456_v3, %v6075_v16  ;;  %v6329_v54 = vmul.f32 0.044715, %v13063_v2 }
0x1322   : > { %14502 = vst [vmem:[#allocation77_spill] sm:$0xff] %v13074_v15  ;;  %14503 = vst [vmem:[#allocation54_spill] sm:$0xff] %v13078_v20  ;;  %v6396_v50 = vmul.f32 %v6332_v17, %v6081_v60  ;;  %v13085_v6 = vadd.f32 %v6195_v4, %v12994_v28  ;;  %v13088_v21 = vmul.f32 %v6389_v12, %v13030_v42  ;;  %v13090_v36 = vmul.f32 0.5, %v6075_v16 }
0x1323   : > { %v9888_v40 = vpop.eup %9887  ;;  %14504 = vst [vmem:[#allocation59_spill] sm:$0xff] %v13081_v47  ;;  %v6331_v8 = vmul.f32 0.044715, %v13070_v30  ;;  %v6584_v3 = vmul.f32 0.7978846, %v6520_v22  ;;  %v6394_v53 = vmul.f32 %v6330_v10, %v13051_v57  ;;  %v13098_v12 = vmul.f32 %v6391_v0, %v13036_v23 }
0x1324   : > { %14505 = vst [vmem:[#allocation62_spill] sm:$0xff] %v13085_v6  ;;  %v6090_v9 = vpop.f32.mrb[12].mxu1  ;;  %v6203_v13 = vpop.f32.mrb[156].mxu0  ;;  %v6700_v37 = vadd.f32 1.0, %v9888_v40  ;;  %14506 = vst [vmem:[#allocation63_spill] sm:$0xff] %v13088_v21  ;;  %v6460_v17 = vmul.f32 %v6396_v50, %v6081_v60  ;;  %v6085_v49 = vadd.f32 %v6084_v29, %v12988_v18  ;;  %v6393_v10 = vmul.f32 %v6329_v54, %v13063_v2 }
0x1325   : > { %v6092_v46 = vpop.f32.mrb[13].mxu1  ;;  %v6205_v14 = vpop.f32.mrb[157].mxu0  ;;  %v6334_v4 = vmul.f32 0.044715, %v13078_v20  ;;  %14507 = vst [vmem:[#allocation64_spill] sm:$0xff] %v13098_v12  ;;  %9897 = vtanh.f32 %v6584_v3  ;;  %v6395_v0 = vmul.f32 %v6331_v8, %v13070_v30  ;;  %v13116_v29 = vadd.f32 %v6197_v56, %v12990_v45 }
0x1326   : > { %v9890_v61 = vpop.eup %9889  ;;  %v6094_v34 = vpop.f32.mrb[14].mxu1  ;;  %v6333_v16 = vmul.f32 0.044715, %v13081_v47  ;;  %v6524_v22 = vadd.f32 %v6460_v17, %v6081_v60  ;;  %v6335_v50 = vmul.f32 0.044715, %v13085_v6  ;;  %v13109_v44 = vmul.f32 %v6700_v37, %v13011_v1 }
0x1327   : > { %v13095_v35 = vpop.f32.mrb[158].mxu0  ;;  %v6704_v40 = vadd.f32 1.0, %v9890_v61  ;;  %v13102_v52 = vpop.f32.mrb[15].mxu1  ;;  %v13120_v41 = vmul.f32 0.5, %v6081_v60  ;;  %v6398_v54 = vmul.f32 %v6334_v4, %v13078_v20  ;;  %v6336_v17 = vmul.f32 0.044715, %v6085_v49 }
0x1328   : > { %v13104_v5 = vpop.f32.mrb[159].mxu0  ;;  %14508 = vst [vmem:[#allocation65_spill] sm:$0xff] %v13109_v44  ;;  %v13118_v27 = vpop.eup %9891  ;;  %v6588_v3 = vmul.f32 0.7978846, %v6524_v22  ;;  %v13128_v1 = vmul.f32 %v6394_v53, %v13051_v57  ;;  %v6091_v56 = vadd.f32 %v6090_v9, %v12988_v18  ;;  %v13133_v60 = vmul.f32 %v6393_v10, %v13063_v2 }
0x1329   : > { %v13112_v61 = vmul.f32 %v6704_v40, %v13025_v7  ;;  %v13123_v58 = vpop.eup %9893  ;;  %v6397_v7 = vmul.f32 %v6333_v16, %v13081_v47  ;;  %v6399_v4 = vmul.f32 %v6335_v50, %v13085_v6  ;;  %v6400_v40 = vmul.f32 %v6336_v17, %v6085_v49 }
0x132a   : > { %14510 = vst [vmem:[#allocation18_spill] sm:$0xff] %v13128_v1  ;;  %14511 = vst [vmem:[#allocation19_spill] sm:$0xff] %v13133_v60  ;;  %9899 = vtanh.f32 %v6588_v3  ;;  %v13141_v37 = vmul.f32 %v6395_v0, %v13070_v30  ;;  %v6338_v53 = vmul.f32 0.044715, %v13116_v29  ;;  %v13146_v9 = vadd.f32 %v13058_v24, %v12992_v11 }
0x132b   : > { %14509 = vst [vmem:[#allocation66_spill] sm:$0xff] %v13112_v61  ;;  %v9896_v8 = vpop.eup %9895  ;;  %v13150_v16 = vadd.f32 %v13060_v26, %v12994_v28  ;;  %v13153_v10 = vmul.f32 %v6398_v54, %v13078_v20  ;;  %v6464_v50 = vmul.f32 %v6400_v40, %v6085_v49  ;;  %v6340_v3 = vmul.f32 0.044715, %v6091_v56 }
0x132c   : > { %v13136_v22 = vpop.f32.mrb[16].mxu1  ;;  %v13138_v31 = vpop.f32.mrb[160].mxu0  ;;  %14512 = vst [vmem:[#allocation20_spill] sm:$0xff] %v13141_v37  ;;  %v13156_v17 = vadd.f32 %v6203_v13, %v12990_v45  ;;  %v6708_v1 = vadd.f32 1.0, %v9896_v8  ;;  %v13163_v24 = vmul.f32 %v6397_v7, %v13081_v47  ;;  %v13165_v57 = vmul.f32 0.5, %v6085_v49 }
0x132d   : > { %14513 = vst [vmem:[#allocation21_spill] sm:$0xff] %v13153_v10  ;;  %v13158_v0 = vpop.f32.mrb[17].mxu1  ;;  %v13160_v62 = vpop.f32.mrb[161].mxu0  ;;  %v13168_v26 = vadd.f32 %v6092_v46, %v12992_v11  ;;  %v13175_v13 = vmul.f32 %v6399_v4, %v13085_v6  ;;  %v6528_v10 = vadd.f32 %v6464_v50, %v6085_v49  ;;  %v6404_v20 = vmul.f32 %v6340_v3, %v6091_v56 }
0x132e   : > { %14514 = vst [vmem:[#allocation22_spill] sm:$0xff] %v13156_v17  ;;  %14515 = vst [vmem:[#allocation23_spill] sm:$0xff] %v13163_v24  ;;  %v13170_v54 = vpop.f32.mrb[18].mxu1  ;;  %v13172_v40 = vpop.f32.mrb[162].mxu0  ;;  %v13178_v15 = vadd.f32 %v6205_v14, %v12994_v28  ;;  %v6402_v24 = vmul.f32 %v6338_v53, %v13116_v29  ;;  %v6337_v46 = vmul.f32 0.044715, %v13146_v9  ;;  %v6095_v55 = vadd.f32 %v6094_v34, %v12988_v18 }
0x132f   : > { %14516 = vst [vmem:[#allocation24_spill] sm:$0xff] %v13168_v26  ;;  %14517 = vst [vmem:[#allocation25_spill] sm:$0xff] %v13175_v13  ;;  %v13180_v8 = vpop.f32.mrb[19].mxu1  ;;  %v13182_v7 = vpop.f32.mrb[163].mxu0  ;;  %v6339_v47 = vmul.f32 0.044715, %v13150_v16  ;;  %v6468_v49 = vmul.f32 %v6404_v20, %v6091_v56  ;;  %v13192_v50 = vmul.f32 %v6708_v1, %v13053_v63  ;;  %v13198_v34 = vadd.f32 %v13095_v35, %v12990_v45 }
0x1330   : > { %14518 = vst [vmem:[#allocation40_spill] sm:$0xff] %v13178_v15  ;;  %v9898_v37 = vpop.eup %9897  ;;  %v6592_v4 = vmul.f32 0.7978846, %v6528_v10  ;;  %v13188_v13 = vmul.f32 0.5, %v6091_v56  ;;  %v6342_v14 = vmul.f32 0.044715, %v13156_v17  ;;  %v6401_v63 = vmul.f32 %v6337_v46, %v13146_v9 }
0x1331   : > { %14519 = vst [vmem:[#allocation37_spill] sm:$0xff] %v13192_v50  ;;  %v6712_v3 = vadd.f32 1.0, %v9898_v37  ;;  %v6341_v6 = vmul.f32 0.044715, %v13168_v26  ;;  %v6344_v53 = vmul.f32 0.044715, %v6095_v55  ;;  %v6532_v30 = vadd.f32 %v6468_v49, %v6091_v56 }
0x1332   : > { %9901 = vtanh.f32 %v6592_v4  ;;  %v6343_v12 = vmul.f32 0.044715, %v13178_v15  ;;  %14520 = vst [vmem:[#allocation39_spill] sm:$0xff] %v13198_v34  ;;  %v13210_v1 = vadd.f32 %v13102_v52, %v12992_v11  ;;  %v6403_v49 = vmul.f32 %v6339_v47, %v13150_v16 }
0x1333   : > { %v13205_v23 = vmul.f32 %v6712_v3, %v13090_v36  ;;  %v6408_v37 = vmul.f32 %v6344_v53, %v6095_v55  ;;  %v6596_v44 = vmul.f32 0.7978846, %v6532_v30  ;;  %v6346_v61 = vmul.f32 0.044715, %v13198_v34 }
0x1334   : > { %v13200_v10 = vpop.f32.mrb[20].mxu1  ;;  %v13202_v20 = vpop.f32.mrb[164].mxu0  ;;  %14521 = vst [vmem:[#allocation36_spill] sm:$0xff] %v13210_v1  ;;  %v13220_v36 = vadd.f32 %v13104_v5, %v12994_v28  ;;  %v6406_v53 = vmul.f32 %v6342_v14, %v13156_v17  ;;  %v6345_v2 = vmul.f32 0.044715, %v13210_v1  ;;  %v6405_v5 = vmul.f32 %v6341_v6, %v13168_v26 }
0x1335   : > { %v13212_v56 = vpop.f32.mrb[21].mxu1  ;;  %v13214_v4 = vpop.f32.mrb[165].mxu0  ;;  %v6472_v60 = vmul.f32 %v6408_v37, %v6095_v55  ;;  %9903 = vtanh.f32 %v6596_v44  ;;  %v6407_v21 = vmul.f32 %v6343_v12, %v13178_v15  ;;  %v6410_v52 = vmul.f32 %v6346_v61, %v13198_v34 }
0x1336   : > { %v9900_v35 = vpop.eup %9899  ;;  %14522 = vst [vmem:[#allocation26_spill] sm:$0xff] %v13220_v36  ;;  %v13222_v46 = vpop.f32.mrb[22].mxu1  ;;  %v6347_v14 = vmul.f32 0.044715, %v13220_v36  ;;  %v13241_v37 = vmul.f32 %v6402_v24, %v13116_v29  ;;  %v13244_v50 = vmul.f32 %v6401_v63, %v13146_v9  ;;  %v13247_v44 = vmul.f32 %v6403_v49, %v13150_v16 }
0x1337   : > { %14523 = vst [vmem:[#allocation38_spill] sm:$0xff] %v13222_v46  ;;  %v13224_v3 = vpop.f32.mrb[166].mxu0  ;;  %v13230_v47 = vpop.f32.mrb[23].mxu1  ;;  %v6716_v46 = vadd.f32 1.0, %v9900_v35  ;;  %v6536_v42 = vadd.f32 %v6472_v60, %v6095_v55  ;;  %v13250_v12 = vmul.f32 %v6406_v53, %v13156_v17  ;;  %v6409_v61 = vmul.f32 %v6345_v2, %v13210_v1 }
0x1338   : > { %14524 = vst [vmem:[#allocation27_spill] sm:$0xff] %v13224_v3  ;;  %v13232_v30 = vpop.f32.mrb[167].mxu0  ;;  %v6101_v3 = vadd.f32 %v13136_v22, %v12988_v18  ;;  %14525 = vst [vmem:[#allocation28_spill] sm:$0xff] %v13241_v37  ;;  %v13252_v22 = vmul.f32 0.5, %v6095_v55  ;;  %v13256_v35 = vmul.f32 %v6405_v5, %v13168_v26  ;;  %v13259_v24 = vmul.f32 %v6407_v21, %v13178_v15 }
0x1339   : > { %14526 = vst [vmem:[#allocation34_spill] sm:$0xff] %v13250_v12  ;;  %v6600_v60 = vmul.f32 0.7978846, %v6536_v42  ;;  %v13263_v49 = vadd.f32 %v13138_v31, %v12990_v45  ;;  %v13270_v55 = vmul.f32 %v6716_v46, %v13120_v41  ;;  %v13273_v42 = vmul.f32 %v6410_v52, %v13198_v34 }
0x133a   : > { %v6348_v6 = vmul.f32 0.044715, %v6101_v3  ;;  %14527 = vst [vmem:[#allocation35_spill] sm:$0xff] %v13256_v35  ;;  %14528 = vst [vmem:[#allocation43_spill] sm:$0xff] %v13259_v24  ;;  %v6411_v2 = vmul.f32 %v6347_v14, %v13220_v36  ;;  %v13282_v12 = vadd.f32 %v13158_v0, %v12992_v11  ;;  %v6509_v41 = vadd.f32 %v13040_v43, %v12999_v25 }
0x133b   : > { %14529 = vst [vmem:[#allocation41_spill] sm:$0xff] %v13263_v49  ;;  %14530 = vst [vmem:[#allocation44_spill] sm:$0xff] %v13270_v55  ;;  %9905 = vtanh.f32 %v6600_v60  ;;  %v6513_v46 = vadd.f32 %v13048_v51, %v13007_v48  ;;  %v13295_v34 = vmul.f32 0.5, %v6101_v3  ;;  %v13299_v0 = vadd.f32 %v13160_v62, %v12994_v28 }
0x133c   : > { %v6412_v63 = vmul.f32 %v6348_v6, %v6101_v3  ;;  %v13265_v37 = vpop.f32.mrb[24].mxu1  ;;  %v13267_v53 = vpop.f32.mrb[168].mxu0  ;;  %14531 = vst [vmem:[#allocation42_spill] sm:$0xff] %v13273_v42  ;;  %v13293_v42 = vmul.f32 %v6409_v61, %v13210_v1  ;;  %v6350_v51 = vmul.f32 0.044715, %v13263_v49  ;;  %v13310_v61 = vmul.f32 %v6411_v2, %v13220_v36 }
0x133d   : > { %v13276_v21 = vpop.f32.mrb[25].mxu1  ;;  %v13278_v5 = vpop.f32.mrb[169].mxu0  ;;  %v6573_v24 = vmul.f32 0.7978846, %v6509_v41  ;;  %v6577_v15 = vmul.f32 0.7978846, %v6513_v46  ;;  %v6511_v62 = vadd.f32 %v13043_v19, %v13002_v33  ;;  %v6105_v19 = vadd.f32 %v13170_v54, %v12988_v18 }
0x133e   : > { %v9902_v6 = vpop.eup %9901  ;;  %v6476_v31 = vmul.f32 %v6412_v63, %v6101_v3  ;;  %v13288_v52 = vpop.f32.mrb[26].mxu1  ;;  %14532 = vst [vmem:[#allocation47_spill] sm:$0xff] %v13293_v42  ;;  %14534 = vst [vmem:[#allocation48_spill] sm:$0xff] %v13310_v61  ;;  %v13313_v42 = vmul.f32 0.5, %v12999_v25  ;;  %v6351_v2 = vmul.f32 0.044715, %v13299_v0 }
0x133f   : > { %v13290_v60 = vpop.f32.mrb[170].mxu0  ;;  %v6720_v14 = vadd.f32 1.0, %v9902_v6  ;;  %v13301_v63 = vpop.f32.mrb[27].mxu1  ;;  %9907 = vtanh.f32 %v6573_v24  ;;  %v6575_v41 = vmul.f32 0.7978846, %v6511_v62  ;;  %v6702_v24 = vadd.f32 1.0, %v13118_v27 }
0x1340   : > { %v13303_v43 = vpop.f32.mrb[171].mxu0  ;;  %v6540_v17 = vadd.f32 %v6476_v31, %v6101_v3  ;;  %v9904_v1 = vpop.eup %9903  ;;  %v6349_v3 = vmul.f32 0.044715, %v13282_v12  ;;  %v6515_v31 = vadd.f32 %v13066_v39, %v13014_v38  ;;  %9909 = vtanh.f32 %v6577_v15 }
0x1341   : > { %v13307_v6 = vmul.f32 %v6720_v14, %v13165_v57  ;;  %v6724_v25 = vadd.f32 1.0, %v9904_v1  ;;  %v13331_v39 = vadd.f32 %v13172_v40, %v12990_v45  ;;  %v6706_v15 = vadd.f32 1.0, %v13123_v58 }
0x1342   : > { %v6604_v35 = vmul.f32 0.7978846, %v6540_v17  ;;  %v6579_v46 = vmul.f32 0.7978846, %v6515_v31  ;;  %v6257_v54 = vmul.f32 0.5, %v13007_v48  ;;  %v13344_v40 = vmul.f32 %v6702_v24, %v13016_v59 }
0x1343   : > { %14533 = vst [vmem:[#allocation45_spill] sm:$0xff] %v13307_v6  ;;  %14535 = vst [vmem:[#allocation46_spill] sm:$0xff] %v13331_v39  ;;  %v6352_v31 = vmul.f32 0.044715, %v6105_v19  ;;  %v13347_v27 = vmul.f32 %v6706_v15, %v13032_v32  ;;  %v13351_v58 = vadd.f32 %v13180_v8, %v12992_v11  ;;  %v6413_v61 = vmul.f32 %v6349_v3, %v13282_v12 }
0x1344   : > { %9911 = vtanh.f32 %v6604_v35  ;;  %v13325_v17 = vpop.f32.mrb[28].mxu1  ;;  %v13327_v14 = vpop.f32.mrb[172].mxu0  ;;  %v6414_v35 = vmul.f32 %v6350_v51, %v13263_v49  ;;  %v13355_v51 = vadd.f32 %v13182_v7, %v12994_v28  ;;  %v6111_v32 = vadd.f32 %v13200_v10, %v12988_v18 }
0x1345   : > { %9913 = vtanh.f32 %v6575_v41  ;;  %v13335_v62 = vpop.f32.mrb[29].mxu1  ;;  %v13337_v1 = vpop.f32.mrb[173].mxu0  ;;  %v6416_v59 = vmul.f32 %v6352_v31, %v6105_v19  ;;  %v13367_v8 = vmul.f32 %v6724_v25, %v13188_v13  ;;  %v6415_v15 = vmul.f32 %v6351_v2, %v13299_v0 }
0x1346   : > { %9915 = vtanh.f32 %v6579_v46  ;;  %v13341_v57 = vpop.f32.mrb[30].mxu1  ;;  %v9906_v41 = vpop.eup %9905  ;;  %14537 = vst [vmem:[#allocation49_spill] sm:$0xff] %v13355_v51  ;;  %v6354_v7 = vmul.f32 0.044715, %v13331_v39  ;;  %v6353_v31 = vmul.f32 0.044715, %v13351_v58  ;;  %v13379_v10 = vadd.f32 %v13202_v20, %v12990_v45 }
0x1347   : > { %14536 = vst [vmem:[#allocation51_spill] sm:$0xff] %v13341_v57  ;;  %v13357_v48 = vpop.f32.mrb[174].mxu0  ;;  %v13359_v46 = vpop.f32.mrb[31].mxu1  ;;  %v6728_v57 = vadd.f32 1.0, %v9906_v41  ;;  %14541 = vst [vmem:[#allocation79_spill] sm:$0xff] %v13367_v8  ;;  %v6480_v3 = vmul.f32 %v6416_v59, %v6105_v19  ;;  %v13382_v13 = vmul.f32 %v6414_v35, %v13263_v49  ;;  %v6255_v2 = vmul.f32 0.5, %v13002_v33 }
0x1348   : > { %14538 = vst [vmem:[#allocation52_spill] sm:$0xff] %v13357_v48  ;;  %14539 = vst [vmem:[#allocation50_spill] sm:$0xff] %v13359_v46  ;;  %v13364_v24 = vpop.f32.mrb[175].mxu0  ;;  %v6355_v25 = vmul.f32 0.044715, %v13355_v51  ;;  %v6259_v59 = vmul.f32 0.5, %v13014_v38  ;;  %v13393_v36 = vmul.f32 %v6415_v15, %v13299_v0  ;;  %v6418_v33 = vmul.f32 %v6354_v7, %v13331_v39 }
0x1349   : > { %14540 = vst [vmem:[#allocation78_spill] sm:$0xff] %v13364_v24  ;;  %v13374_v41 = vmul.f32 %v6728_v57, %v13252_v22  ;;  %14543 = vst [vmem:[#allocation81_spill] sm:$0xff] %v13379_v10  ;;  %v6356_v24 = vmul.f32 0.044715, %v6111_v32  ;;  %v9908_v46 = vpop.eup %9907  ;;  %v13389_v57 = vmul.f32 %v6413_v61, %v13282_v12  ;;  %v6544_v48 = vadd.f32 %v6480_v3, %v6105_v19 }
0x134a   : > { %14544 = vst [vmem:[#allocation82_spill] sm:$0xff] %v13382_v13  ;;  %v9910_v20 = vpop.eup %9909  ;;  %v6701_v35 = vadd.f32 1.0, %v9908_v46  ;;  %v6417_v26 = vmul.f32 %v6353_v31, %v13351_v58  ;;  %v6358_v22 = vmul.f32 0.044715, %v13379_v10  ;;  %v6288_v8 = vmul.f32 0.5, %v6105_v19 }
0x134b   : > { %14542 = vst [vmem:[#allocation80_spill] sm:$0xff] %v13374_v41  ;;  %v6420_v13 = vmul.f32 %v6356_v24, %v6111_v32  ;;  %v6705_v55 = vadd.f32 1.0, %v9910_v20  ;;  %v6608_v6 = vmul.f32 0.7978846, %v6544_v48  ;;  %v6419_v38 = vmul.f32 %v6355_v25, %v13355_v51 }
0x134c   : > { %v13401_v15 = vadd.f32 %v13212_v56, %v12992_v11  ;;  %v6765_v7 = vmul.f32 %v6701_v35, %v13313_v42  ;;  %v13405_v31 = vmul.f32 %v6418_v33, %v13331_v39  ;;  %v13409_v19 = vadd.f32 %v13214_v4, %v12994_v28  ;;  %v14547_v4 = vld [vmem:[#allocation70_spill] sm:$0xff]  ;;  %v14552_v39 = vld [vmem:[#allocation65_spill] sm:$0xff] }
0x134d   : > { %v6484_v3 = vmul.f32 %v6420_v13, %v6111_v32  ;;  %v6769_v24 = vmul.f32 %v6705_v55, %v6257_v54  ;;  %9917 = vtanh.f32 %v6608_v6  ;;  %v13412_v25 = vmul.f32 %v6417_v26, %v13351_v58  ;;  %v14550_v26 = vld [vmem:[#allocation19_spill] sm:$0xff] }
0x134e   : > { %v9912_v49 = vpop.eup %9911  ;;  %14545 = vst [vmem:[#allocation83_spill] sm:$0xff] %v13405_v31  ;;  %v13414_v56 = vmul.f32 0.5, %v6111_v32  ;;  %v6422_v42 = vmul.f32 %v6358_v22, %v13379_v10  ;;  %v13418_v33 = vmul.f32 %v6419_v38, %v13355_v51  ;;  %v14551_v31 = vld [vmem:[#allocation66_spill] sm:$0xff] }
0x134f   : > { %v9914_v61 = vpop.eup %9913  ;;  %v6548_v20 = vadd.f32 %v6484_v3, %v6111_v32  ;;  %v6829_v13 = vpack.c.bf16 %v6769_v24, %v6765_v7  ;;  %v6732_v55 = vadd.f32 1.0, %v9912_v49  ;;  %v14548_v3 = vld [vmem:[#allocation63_spill] sm:$0xff]  ;;  %v14549_v7 = vld [vmem:[#allocation72_spill] sm:$0xff]  ;;  %v14553_v22 = vpack.c.bf16 %v14551_v31, %v14552_v39 }
0x1350   : > { %v9916_v46 = vpop.eup %9915  ;;  %v6703_v41 = vadd.f32 1.0, %v9914_v61  ;;  %14546 = vst [vmem:[#allocation84_spill] sm:$0xff] %v13418_v33  ;;  %v6357_v61 = vmul.f32 0.044715, %v13401_v15  ;;  %v6521_v24 = vadd.f32 %v14550_v26, %v14549_v7  ;;  %v6359_v49 = vmul.f32 0.044715, %v13409_v19 }
0x1351   : > { %v6707_v48 = vadd.f32 1.0, %v9916_v46  ;;  %v6612_v35 = vmul.f32 0.7978846, %v6548_v20  ;;  %7155 = vmatprep.mubr.bf16.mxu1 %v6829_v13  ;;  %v6517_v46 = vadd.f32 %v14548_v3, %v14547_v4  ;;  %v14556_v20 = vld [vmem:[#allocation74_spill] sm:$0xff]  ;;  %v14557_v13 = vld [vmem:[#allocation20_spill] sm:$0xff]  ;;  %v13439_v39 = vmul.f32 %v6422_v42, %v13379_v10  ;;  %v14565_v42 = vld [vmem:[#allocation77_spill] sm:$0xff] }
0x1352   : > { %v6767_v54 = vmul.f32 %v6703_v41, %v6255_v2  ;;  %7156 = vmatmul.mubr.bf16.vlgmr.msra.gmra.mrb[32].mxu1 %v14553_v22  ;;  %v14554_v41 = vld [vmem:[#allocation71_spill] sm:$0xff]  ;;  %v14555_v2 = vld [vmem:[#allocation64_spill] sm:$0xff]  ;;  %v6523_v33 = vadd.f32 %v14557_v13, %v14556_v20  ;;  %v14558_v3 = vld [vmem:[#allocation38_spill] sm:$0xff]  ;;  %v6421_v26 = vmul.f32 %v6357_v61, %v13401_v15  ;;  %v6423_v61 = vmul.f32 %v6359_v49, %v13409_v19 }
0x1353   : > { %v6771_v6 = vmul.f32 %v6707_v48, %v6259_v59  ;;  %9919 = vtanh.f32 %v6612_v35  ;;  %v6519_v59 = vadd.f32 %v14555_v2, %v14554_v41  ;;  %v6581_v38 = vmul.f32 0.7978846, %v6517_v46  ;;  %14560 = vst [vmem:[#allocation63_spill] sm:$0xff] %v13439_v39  ;;  %v14566_v2 = vld [vmem:[#allocation73_spill] sm:$0xff]  ;;  %v14573_v39 = vld [vmem:[#allocation23_spill] sm:$0xff] }
0x1354   : > { %v6585_v48 = vmul.f32 0.7978846, %v6521_v24  ;;  %v6115_v51 = vadd.f32 %v14558_v3, %v12988_v18  ;;  %v14563_v46 = vpack.c.bf16 %v13347_v27, %v13344_v40  ;;  %v6587_v24 = vmul.f32 0.7978846, %v6523_v33 }
0x1355   : > { %v6831_v32 = vpack.c.bf16 %v6771_v6, %v6767_v54  ;;  %v13436_v54 = vmul.f32 %v6732_v55, %v13295_v34  ;;  %v6583_v31 = vmul.f32 0.7978846, %v6519_v59  ;;  %v14561_v6 = vld [vmem:[#allocation27_spill] sm:$0xff]  ;;  %9921 = vtanh.f32 %v6581_v38  ;;  %v14564_v55 = vld [vmem:[#allocation68_spill] sm:$0xff]  ;;  %v14567_v59 = vld [vmem:[#allocation18_spill] sm:$0xff] }
0x1356   : > { %v13443_v35 = vadd.f32 %v14561_v6, %v12990_v45  ;;  %v6360_v22 = vmul.f32 0.044715, %v6115_v51  ;;  %9923 = vtanh.f32 %v6585_v48  ;;  %v6522_v13 = vadd.f32 %v14567_v59, %v14566_v2 }
0x1357   : > { %14559 = vst [vmem:[#allocation70_spill] sm:$0xff] %v13436_v54  ;;  %7252 = vmatprep.mubr.bf16.mxu0 %v6831_v32  ;;  %v6518_v32 = vadd.f32 %v14565_v42, %v14564_v55  ;;  %v9918_v3 = vpop.eup %9917  ;;  %9925 = vtanh.f32 %v6583_v31  ;;  %v13456_v40 = vadd.f32 %v13230_v47, %v12992_v11  ;;  %v13460_v27 = vadd.f32 %v13232_v30, %v12994_v28 }
0x1358   : > { %14562 = vst [vmem:[#allocation72_spill] sm:$0xff] %v13443_v35  ;;  %7253 = vmatmul.mubr.bf16.vlgmr.msra.gmra.mrb[176].mxu0 %v14563_v46  ;;  %v6362_v34 = vmul.f32 0.044715, %v13443_v35  ;;  %v6424_v6 = vmul.f32 %v6360_v22, %v6115_v51  ;;  %v6736_v33 = vadd.f32 1.0, %v9918_v3  ;;  %9927 = vtanh.f32 %v6587_v24 }
0x1359   : > { %14568 = vst [vmem:[#allocation19_spill] sm:$0xff] %v13460_v27  ;;  %v6582_v38 = vmul.f32 0.7978846, %v6518_v32  ;;  %v6261_v48 = vmul.f32 0.5, %v14547_v4  ;;  %v6586_v42 = vmul.f32 0.7978846, %v6522_v13  ;;  %v6121_v30 = vadd.f32 %v13265_v37, %v12988_v18 }
0x135a   : > { %v6488_v46 = vmul.f32 %v6424_v6, %v6115_v51  ;;  %v6361_v31 = vmul.f32 0.044715, %v13456_v40  ;;  %v13465_v22 = vmul.f32 %v6736_v33, %v6288_v8  ;;  %v6363_v47 = vmul.f32 0.044715, %v13460_v27 }
0x135b   : > { %9929 = vtanh.f32 %v6582_v38  ;;  %v13471_v59 = vmul.f32 %v6421_v26, %v13401_v15  ;;  %v6426_v24 = vmul.f32 %v6362_v34, %v13443_v35  ;;  %v13477_v8 = vmul.f32 %v6423_v61, %v13409_v19 }
0x135c   : > { %14569 = vst [vmem:[#allocation66_spill] sm:$0xff] %v13465_v22  ;;  %v6552_v49 = vadd.f32 %v6488_v46, %v6115_v51  ;;  %9931 = vtanh.f32 %v6586_v42  ;;  %v6265_v13 = vmul.f32 0.5, %v14549_v7  ;;  %v6364_v3 = vmul.f32 0.044715, %v6121_v30 }
0x135d   : > { %v9920_v4 = vpop.eup %9919  ;;  %14570 = vst [vmem:[#allocation65_spill] sm:$0xff] %v13477_v8  ;;  %v6263_v6 = vmul.f32 0.5, %v14554_v41  ;;  %v6267_v37 = vmul.f32 0.5, %v14556_v20  ;;  %v6425_v33 = vmul.f32 %v6361_v31, %v13456_v40  ;;  %v6262_v34 = vmul.f32 0.5, %v14564_v55 }
0x135e   : > { %v6616_v26 = vmul.f32 0.7978846, %v6552_v49  ;;  %v6427_v38 = vmul.f32 %v6363_v47, %v13460_v27  ;;  %v6428_v46 = vmul.f32 %v6364_v3, %v6121_v30  ;;  %v13487_v42 = vadd.f32 %v13267_v53, %v12990_v45  ;;  %v14572_v53 = vld [vmem:[#allocation59_spill] sm:$0xff] }
0x135f   : > { %v9922_v61 = vpop.eup %9921  ;;  %v6296_v32 = vmul.f32 0.5, %v6115_v51  ;;  %v13490_v7 = vmul.f32 %v6426_v24, %v13443_v35  ;;  %v6266_v41 = vmul.f32 0.5, %v14566_v2  ;;  %v6740_v49 = vadd.f32 1.0, %v9920_v4 }
0x1360   : > { %9933 = vtanh.f32 %v6616_v26  ;;  %v9924_v20 = vpop.eup %9923  ;;  %v6709_v31 = vadd.f32 1.0, %v9922_v61  ;;  %v13493_v54 = vmul.f32 0.5, %v6121_v30  ;;  %v6492_v55 = vmul.f32 %v6428_v46, %v6121_v30 }
0x1361   : > { %14571 = vst [vmem:[#allocation71_spill] sm:$0xff] %v13490_v7  ;;  %v9926_v47 = vpop.eup %9925  ;;  %v6713_v3 = vadd.f32 1.0, %v9924_v20  ;;  %v13496_v22 = vmul.f32 %v6425_v33, %v13456_v40  ;;  %v6525_v51 = vadd.f32 %v14573_v39, %v14572_v53  ;;  %v6529_v24 = vadd.f32 %v13244_v50, %v13146_v9 }
0x1362   : > { %v9928_v26 = vpop.eup %9927  ;;  %v6711_v7 = vadd.f32 1.0, %v9926_v47  ;;  %v13503_v2 = vmul.f32 %v6427_v38, %v13460_v27  ;;  %v6556_v4 = vadd.f32 %v6492_v55, %v6121_v30  ;;  %v6366_v61 = vmul.f32 0.044715, %v13487_v42 }
0x1363   : > { %v6773_v46 = vmul.f32 %v6709_v31, %v6261_v48  ;;  %v6777_v35 = vmul.f32 %v6713_v3, %v6265_v13  ;;  %v6715_v20 = vadd.f32 1.0, %v9928_v26  ;;  %v13508_v33 = vadd.f32 %v13276_v21, %v12992_v11 }
0x1364   : > { %14574 = vst [vmem:[#allocation64_spill] sm:$0xff] %v13503_v2  ;;  %v6620_v39 = vmul.f32 0.7978846, %v6556_v4  ;;  %v13512_v50 = vadd.f32 %v13278_v5, %v12994_v28  ;;  %v6589_v47 = vmul.f32 0.7978846, %v6525_v51  ;;  %v6775_v30 = vmul.f32 %v6711_v7, %v6263_v6  ;;  %v14576_v51 = vld [vmem:[#allocation37_spill] sm:$0xff] }
0x1365   : > { %v9930_v10 = vpop.eup %9929  ;;  %v6593_v8 = vmul.f32 0.7978846, %v6529_v24  ;;  %v6833_v2 = vpack.c.bf16 %v6777_v35, %v6773_v46  ;;  %v6779_v55 = vmul.f32 %v6715_v20, %v6267_v37  ;;  %v13515_v48 = vmul.f32 %v6740_v49, %v13414_v56  ;;  %v14579_v56 = vld [vmem:[#allocation25_spill] sm:$0xff]  ;;  %v14580_v46 = vld [vmem:[#allocation54_spill] sm:$0xff] }
0x1366   : > { %v9932_v38 = vpop.eup %9931  ;;  %v6710_v27 = vadd.f32 1.0, %v9930_v10  ;;  %9935 = vtanh.f32 %v6620_v39  ;;  %v13518_v21 = vmul.f32 0.5, %v14572_v53  ;;  %v6365_v5 = vmul.f32 0.044715, %v13508_v33  ;;  %v14578_v10 = vld [vmem:[#allocation62_spill] sm:$0xff]  ;;  %v14581_v20 = vld [vmem:[#allocation21_spill] sm:$0xff] }
0x1367   : > { %14575 = vst [vmem:[#allocation74_spill] sm:$0xff] %v13515_v48  ;;  %v6714_v13 = vadd.f32 1.0, %v9932_v38  ;;  %7163 = vmatprep.mubr.bf16.mxu1 %v6833_v2  ;;  %v6835_v31 = vpack.c.bf16 %v6779_v55, %v6775_v30  ;;  %9937 = vtanh.f32 %v6589_v47  ;;  %v14577_v35 = vpack.c.bf16 %v13205_v23, %v14576_v51 }
0x1368   : > { %v6774_v3 = vmul.f32 %v6710_v27, %v6262_v34  ;;  %9939 = vtanh.f32 %v6593_v8  ;;  %v6527_v37 = vadd.f32 %v14579_v56, %v14578_v10  ;;  %v6531_v7 = vadd.f32 %v13247_v44, %v13150_v16 }
0x1369   : > { %7164 = vmatmul.mubr.bf16.gmra.mrb[36].mxu1 %v14577_v35  ;;  %v6778_v6 = vmul.f32 %v6714_v13, %v6266_v41  ;;  %7260 = vmatprep.mubr.bf16.mxu0 %v6835_v31  ;;  %v6367_v53 = vmul.f32 0.044715, %v13512_v50  ;;  %v6273_v27 = vmul.f32 0.5, %v13146_v9  ;;  %v6125_v34 = vadd.f32 %v13288_v52, %v12988_v18  ;;  %v14582_v52 = vld [vmem:[#allocation28_spill] sm:$0xff] }
0x136a   : > { %v9934_v49 = vpop.eup %9933  ;;  %v13534_v23 = vadd.f32 %v13290_v60, %v12990_v45  ;;  %v6591_v24 = vmul.f32 0.7978846, %v6527_v37  ;;  %v6595_v26 = vmul.f32 0.7978846, %v6531_v7  ;;  %v6430_v2 = vmul.f32 %v6366_v61, %v13487_v42 }
0x136b   : > { %v6744_v8 = vadd.f32 1.0, %v9934_v49  ;;  %v6834_v41 = vpack.c.bf16 %v6778_v6, %v6774_v3  ;;  %v6429_v44 = vmul.f32 %v6365_v5, %v13508_v33  ;;  %v6368_v4 = vmul.f32 0.044715, %v6125_v34 }
0x136c   : > { %v6526_v39 = vadd.f32 %v14581_v20, %v14580_v46  ;;  %9941 = vtanh.f32 %v6591_v24  ;;  %v6530_v60 = vadd.f32 %v14582_v52, %v13116_v29  ;;  %v13546_v47 = vadd.f32 %v13301_v63, %v12992_v11 }
0x136d   : > { %v13540_v9 = vmul.f32 %v6744_v8, %v6296_v32  ;;  %7261 = vmatmul.mubr.bf16.gmra.mrb[180].mxu0 %v6834_v41  ;;  %v6431_v38 = vmul.f32 %v6367_v53, %v13512_v50  ;;  %9943 = vtanh.f32 %v6595_v26  ;;  %v6432_v61 = vmul.f32 %v6368_v4, %v6125_v34 }
0x136e   : > { %v6590_v30 = vmul.f32 0.7978846, %v6526_v39  ;;  %v6370_v32 = vmul.f32 0.044715, %v13534_v23  ;;  %v6594_v13 = vmul.f32 0.7978846, %v6530_v60  ;;  %v13554_v31 = vadd.f32 %v13303_v43, %v12994_v28 }
0x136f   : > { %v13557_v3 = vmul.f32 %v6430_v2, %v13487_v42  ;;  %v6496_v63 = vmul.f32 %v6432_v61, %v6125_v34  ;;  %v6131_v5 = vadd.f32 %v13325_v17, %v12988_v18  ;;  %v13562_v35 = vmul.f32 %v6429_v44, %v13508_v33 }
0x1370   : > { %9945 = vtanh.f32 %v6590_v30  ;;  %v9936_v51 = vpop.eup %9935  ;;  %v6369_v6 = vmul.f32 0.044715, %v13546_v47  ;;  %v6371_v56 = vmul.f32 0.044715, %v13554_v31  ;;  %v13567_v43 = vmul.f32 %v6431_v38, %v13512_v50 }
0x1371   : > { %9947 = vtanh.f32 %v6594_v13  ;;  %v9938_v37 = vpop.eup %9937  ;;  %v6271_v7 = vmul.f32 0.5, %v14578_v10  ;;  %v6560_v49 = vadd.f32 %v6496_v63, %v6125_v34  ;;  %v6372_v53 = vmul.f32 0.044715, %v6131_v5 }
0x1372   : > { %v9940_v8 = vpop.eup %9939  ;;  %v6717_v41 = vadd.f32 1.0, %v9938_v37  ;;  %v6275_v17 = vmul.f32 0.5, %v13150_v16  ;;  %v6434_v24 = vmul.f32 %v6370_v32, %v13534_v23  ;;  %v13574_v26 = vadd.f32 %v13327_v14, %v12990_v45  ;;  %v14584_v37 = vld [vmem:[#allocation35_spill] sm:$0xff] }
0x1373   : > { %v6721_v2 = vadd.f32 1.0, %v9940_v8  ;;  %v6624_v44 = vmul.f32 0.7978846, %v6560_v49  ;;  %v6270_v4 = vmul.f32 0.5, %v14580_v46  ;;  %v6436_v20 = vmul.f32 %v6372_v53, %v6131_v5  ;;  %v14585_v53 = vld [vmem:[#allocation36_spill] sm:$0xff]  ;;  %v14586_v8 = vld [vmem:[#allocation47_spill] sm:$0xff] }
0x1374   : > { %v6748_v39 = vadd.f32 1.0, %v9936_v51  ;;  %v6274_v10 = vmul.f32 0.5, %v13116_v29  ;;  %v6433_v52 = vmul.f32 %v6369_v6, %v13546_v47  ;;  %v6435_v60 = vmul.f32 %v6371_v56, %v13554_v31 }
0x1375   : > { %v6781_v16 = vmul.f32 %v6717_v41, %v13518_v21  ;;  %v6785_v38 = vmul.f32 %v6721_v2, %v6273_v27  ;;  %9949 = vtanh.f32 %v6624_v44  ;;  %v6500_v61 = vmul.f32 %v6436_v20, %v6131_v5 }
0x1376   : > { %v9942_v30 = vpop.eup %9941  ;;  %v6304_v14 = vmul.f32 0.5, %v6125_v34  ;;  %v13582_v32 = vmul.f32 %v6434_v24, %v13534_v23  ;;  %v13584_v13 = vmul.f32 0.5, %v6131_v5  ;;  %v6374_v46 = vmul.f32 0.044715, %v13574_v26  ;;  %v14583_v34 = vld [vmem:[#allocation24_spill] sm:$0xff] }
0x1377   : > { %v9944_v63 = vpop.eup %9943  ;;  %v6837_v29 = vpack.c.bf16 %v6785_v38, %v6781_v16  ;;  %v6719_v51 = vadd.f32 1.0, %v9942_v30  ;;  %v6564_v6 = vadd.f32 %v6500_v61, %v6131_v5  ;;  %v13589_v56 = vadd.f32 %v13335_v62, %v12992_v11  ;;  %v14588_v16 = vld [vmem:[#allocation45_spill] sm:$0xff]  ;;  %v14589_v38 = vld [vmem:[#allocation44_spill] sm:$0xff] }
0x1378   : > { %v6723_v21 = vadd.f32 1.0, %v9944_v63  ;;  %v13593_v27 = vadd.f32 %v13337_v1, %v12994_v28  ;;  %v6533_v49 = vadd.f32 %v14584_v37, %v14583_v34  ;;  %v6537_v41 = vadd.f32 %v14586_v8, %v14585_v53 }
0x1379   : > { %v13600_v2 = vmul.f32 %v6748_v39, %v13493_v54  ;;  %7171 = vmatprep.mubr.bf16.mxu1 %v6837_v29  ;;  %v6783_v5 = vmul.f32 %v6719_v51, %v6271_v7  ;;  %v13603_v62 = vmul.f32 %v6433_v52, %v13546_v47  ;;  %v13606_v44 = vmul.f32 %v6435_v60, %v13554_v31  ;;  %v14591_v51 = vld [vmem:[#allocation40_spill] sm:$0xff] }
0x137a   : > { %v9946_v24 = vpop.eup %9945  ;;  %v6787_v20 = vmul.f32 %v6723_v21, %v6275_v17  ;;  %v14590_v61 = vpack.c.bf16 %v14588_v16, %v14589_v38  ;;  %v6628_v63 = vmul.f32 0.7978846, %v6564_v6  ;;  %v6597_v37 = vmul.f32 0.7978846, %v6533_v49  ;;  %v14592_v21 = vld [vmem:[#allocation43_spill] sm:$0xff]  ;;  %v14594_v6 = vld [vmem:[#allocation48_spill] sm:$0xff] }
0x137b   : > { %14587 = vst [vmem:[#allocation20_spill] sm:$0xff] %v13600_v2  ;;  %v9948_v1 = vpop.eup %9947  ;;  %v6718_v30 = vadd.f32 1.0, %v9946_v24  ;;  %v13612_v54 = vmul.f32 %v6374_v46, %v13574_v26  ;;  %v6373_v7 = vmul.f32 0.044715, %v13589_v56  ;;  %v6601_v39 = vmul.f32 0.7978846, %v6537_v41 }
0x137c   : > { %7172 = vmatmul.mubr.bf16.gmra.mrb[40].mxu1 %v14590_v61  ;;  %v6722_v8 = vadd.f32 1.0, %v9948_v1  ;;  %v6839_v52 = vpack.c.bf16 %v6787_v20, %v6783_v5  ;;  %v6375_v60 = vmul.f32 0.044715, %v13593_v27  ;;  %9951 = vtanh.f32 %v6597_v37  ;;  %v14593_v24 = vld [vmem:[#allocation26_spill] sm:$0xff]  ;;  %v14595_v1 = vld [vmem:[#allocation51_spill] sm:$0xff] }
0x137d   : > { %v6782_v29 = vmul.f32 %v6718_v30, %v6270_v4  ;;  %9953 = vtanh.f32 %v6601_v39  ;;  %v6535_v16 = vadd.f32 %v14592_v21, %v14591_v51  ;;  %v6539_v49 = vadd.f32 %v14594_v6, %v14593_v24  ;;  %v14596_v4 = vld [vmem:[#allocation52_spill] sm:$0xff]  ;;  %v14597_v30 = vld [vmem:[#allocation22_spill] sm:$0xff] }
0x137e   : > { %v6786_v17 = vmul.f32 %v6722_v8, %v6274_v10  ;;  %7268 = vmatprep.mubr.bf16.mxu0 %v6839_v52  ;;  %9955 = vtanh.f32 %v6628_v63  ;;  %v6277_v46 = vmul.f32 0.5, %v14583_v34  ;;  %v6135_v41 = vadd.f32 %v14595_v1, %v12988_v18  ;;  %v14598_v37 = vld [vmem:[#allocation34_spill] sm:$0xff]  ;;  %v14599_v18 = vld [vmem:[#allocation39_spill] sm:$0xff] }
0x137f   : > { %v13625_v5 = vadd.f32 %v14596_v4, %v12990_v45  ;;  %v9950_v20 = vpop.eup %9949  ;;  %v6599_v38 = vmul.f32 0.7978846, %v6535_v16  ;;  %v6603_v61 = vmul.f32 0.7978846, %v6539_v49  ;;  %v6534_v8 = vadd.f32 %v14598_v37, %v14597_v30  ;;  %v14600_v21 = vld [vmem:[#allocation42_spill] sm:$0xff] }
0x1380   : > { %v6838_v10 = vpack.c.bf16 %v6786_v17, %v6782_v29  ;;  %v6752_v39 = vadd.f32 1.0, %v9950_v20  ;;  %v6437_v52 = vmul.f32 %v6373_v7, %v13589_v56  ;;  %v6439_v63 = vmul.f32 %v6375_v60, %v13593_v27  ;;  %v14601_v1 = vld [vmem:[#allocation50_spill] sm:$0xff] }
0x1381   : > { %v6376_v34 = vmul.f32 0.044715, %v6135_v41  ;;  %9957 = vtanh.f32 %v6599_v38  ;;  %v6538_v6 = vadd.f32 %v14600_v21, %v14599_v18  ;;  %v6598_v45 = vmul.f32 0.7978846, %v6534_v8  ;;  %v14608_v2 = vld [vmem:[#allocation46_spill] sm:$0xff] }
0x1382   : > { %7269 = vmatmul.mubr.bf16.gmra.mrb[184].mxu0 %v6838_v10  ;;  %v13635_v29 = vadd.f32 %v14601_v1, %v12992_v11  ;;  %v13637_v17 = vmul.f32 %v6752_v39, %v6304_v14  ;;  %v6281_v16 = vmul.f32 0.5, %v14585_v53  ;;  %9959 = vtanh.f32 %v6603_v61 }
0x1383   : > { %v6440_v49 = vmul.f32 %v6376_v34, %v6135_v41  ;;  %v6279_v7 = vmul.f32 0.5, %v14591_v51  ;;  %v6378_v60 = vmul.f32 0.044715, %v13625_v5  ;;  %v6602_v4 = vmul.f32 0.7978846, %v6538_v6  ;;  %v14603_v51 = vld [vmem:[#allocation78_spill] sm:$0xff] }
0x1384   : > { %14602 = vst [vmem:[#allocation38_spill] sm:$0xff] %v13637_v17  ;;  %9961 = vtanh.f32 %v6598_v45  ;;  %v13645_v10 = vmul.f32 %v6437_v52, %v13589_v56  ;;  %v13648_v11 = vmul.f32 %v6439_v63, %v13593_v27  ;;  %v6283_v53 = vmul.f32 0.5, %v14593_v24  ;;  %v14609_v17 = vld [vmem:[#allocation83_spill] sm:$0xff] }
0x1385   : > { %v6504_v14 = vmul.f32 %v6440_v49, %v6135_v41  ;;  %9963 = vtanh.f32 %v6602_v4  ;;  %v6377_v38 = vmul.f32 0.044715, %v13635_v29  ;;  %v13654_v61 = vadd.f32 %v14603_v51, %v12994_v28 }
0x1386   : > { %v9952_v37 = vpop.eup %9951  ;;  %v6278_v39 = vmul.f32 0.5, %v14597_v30  ;;  %v6541_v52 = vadd.f32 %v13389_v57, %v13282_v12  ;;  %v6545_v63 = vadd.f32 %v13412_v25, %v13351_v58  ;;  %v13661_v24 = vmul.f32 0.5, %v6135_v41 }
0x1387   : > { %v6568_v8 = vadd.f32 %v6504_v14, %v6135_v41  ;;  %v9954_v34 = vpop.eup %9953  ;;  %v6725_v21 = vadd.f32 1.0, %v9952_v37  ;;  %v13664_v6 = vmul.f32 %v6378_v60, %v13625_v5  ;;  %v6282_v28 = vmul.f32 0.5, %v14599_v18  ;;  %v14604_v37 = vld [vmem:[#allocation49_spill] sm:$0xff]  ;;  %v14605_v18 = vld [vmem:[#allocation84_spill] sm:$0xff] }
0x1388   : > { %v9956_v45 = vpop.eup %9955  ;;  %v6729_v1 = vadd.f32 1.0, %v9954_v34  ;;  %v13668_v30 = vmul.f32 0.5, %v13282_v12  ;;  %v6605_v4 = vmul.f32 0.7978846, %v6541_v52  ;;  %v6441_v14 = vmul.f32 %v6377_v38, %v13635_v29  ;;  %v14607_v52 = vld [vmem:[#allocation82_spill] sm:$0xff] }
0x1389   : > { %v6632_v49 = vmul.f32 0.7978846, %v6568_v8  ;;  %v6789_v57 = vmul.f32 %v6725_v21, %v6277_v46  ;;  %v6379_v25 = vmul.f32 0.044715, %v13654_v61  ;;  %v6609_v51 = vmul.f32 0.7978846, %v6545_v63 }
0x138a   : > { %v6793_v41 = vmul.f32 %v6729_v1, %v6281_v16  ;;  %v6543_v60 = vadd.f32 %v13393_v36, %v13299_v0  ;;  %v6547_v20 = vadd.f32 %v14605_v18, %v14604_v37  ;;  %v6756_v8 = vadd.f32 1.0, %v9956_v45  ;;  %v14606_v46 = vld [vmem:[#allocation41_spill] sm:$0xff] }
0x138b   : > { %9965 = vtanh.f32 %v6632_v49  ;;  %v9958_v34 = vpop.eup %9957  ;;  %v13677_v12 = vmul.f32 0.5, %v13351_v58  ;;  %v6542_v38 = vadd.f32 %v14607_v52, %v14606_v46  ;;  %v6546_v18 = vadd.f32 %v14609_v17, %v14608_v2 }
0x138c   : > { %9967 = vtanh.f32 %v6605_v4  ;;  %v9960_v21 = vpop.eup %9959  ;;  %v6841_v55 = vpack.c.bf16 %v6793_v41, %v6789_v57  ;;  %v6727_v63 = vadd.f32 1.0, %v9958_v34  ;;  %v6607_v16 = vmul.f32 0.7978846, %v6543_v60  ;;  %v14611_v60 = vld [vmem:[#allocation79_spill] sm:$0xff] }
0x138d   : > { %9969 = vtanh.f32 %v6609_v51  ;;  %v6731_v49 = vadd.f32 1.0, %v9960_v21  ;;  %v6611_v36 = vmul.f32 0.7978846, %v6547_v20  ;;  %v6606_v48 = vmul.f32 0.7978846, %v6542_v38  ;;  %v14610_v51 = vld [vmem:[#allocation80_spill] sm:$0xff] }
0x138e   : > { %v9962_v1 = vpop.eup %9961  ;;  %7179 = vmatprep.mubr.bf16.mxu1 %v6841_v55  ;;  %v13684_v58 = vmul.f32 %v6441_v14, %v13635_v29  ;;  %v6443_v4 = vmul.f32 %v6379_v25, %v13654_v61  ;;  %9971 = vtanh.f32 %v6607_v16  ;;  %v6791_v57 = vmul.f32 %v6727_v63, %v6279_v7  ;;  %v14613_v16 = vld [vmem:[#allocation65_spill] sm:$0xff] }
0x138f   : > { %v6726_v45 = vadd.f32 1.0, %v9962_v1  ;;  %v9964_v52 = vpop.eup %9963  ;;  %v6795_v41 = vmul.f32 %v6731_v49, %v6283_v53  ;;  %v14612_v34 = vpack.c.bf16 %v14610_v51, %v14611_v60  ;;  %9973 = vtanh.f32 %v6611_v36  ;;  %v14618_v51 = vld [vmem:[#allocation72_spill] sm:$0xff] }
0x1390   : > { %v6610_v20 = vmul.f32 0.7978846, %v6546_v18  ;;  %v6730_v21 = vadd.f32 1.0, %v9964_v52  ;;  %v6287_v17 = vmul.f32 0.5, %v13299_v0  ;;  %9975 = vtanh.f32 %v6606_v48 }
0x1391   : > { %7180 = vmatmul.mubr.bf16.gmra.mrb[44].mxu1 %v14612_v34  ;;  %v6549_v55 = vadd.f32 %v13471_v59, %v13401_v15  ;;  %v13694_v14 = vmul.f32 %v6756_v8, %v13584_v13  ;;  %v6843_v25 = vpack.c.bf16 %v6795_v41, %v6791_v57  ;;  %v6553_v7 = vadd.f32 %v13496_v22, %v13456_v40  ;;  %v14614_v13 = vld [vmem:[#allocation19_spill] sm:$0xff]  ;;  %v14615_v8 = vld [vmem:[#allocation64_spill] sm:$0xff] }
0x1392   : > { %9977 = vtanh.f32 %v6610_v20  ;;  %v6790_v53 = vmul.f32 %v6726_v45, %v6278_v39  ;;  %v6794_v38 = vmul.f32 %v6730_v21, %v6282_v28  ;;  %v6551_v1 = vadd.f32 %v14613_v16, %v13409_v19  ;;  %v14616_v39 = vld [vmem:[#allocation81_spill] sm:$0xff]  ;;  %v14617_v28 = vld [vmem:[#allocation63_spill] sm:$0xff] }
0x1393   : > { %v6613_v63 = vmul.f32 0.7978846, %v6549_v55  ;;  %7276 = vmatprep.mubr.bf16.mxu0 %v6843_v25  ;;  %v13701_v0 = vmul.f32 %v6443_v4, %v13654_v61  ;;  %v6291_v59 = vmul.f32 0.5, %v14604_v37  ;;  %v6617_v48 = vmul.f32 0.7978846, %v6553_v7  ;;  %v14619_v4 = vld [vmem:[#allocation71_spill] sm:$0xff] }
0x1394   : > { %v6555_v49 = vadd.f32 %v14615_v8, %v14614_v13  ;;  %v6842_v18 = vpack.c.bf16 %v6794_v38, %v6790_v53  ;;  %v6615_v22 = vmul.f32 0.7978846, %v6551_v1  ;;  %v6550_v45 = vadd.f32 %v14617_v28, %v14616_v39 }
0x1395   : > { %v9966_v36 = vpop.eup %9965  ;;  %9979 = vtanh.f32 %v6613_v63  ;;  %v6554_v60 = vadd.f32 %v14619_v4, %v14618_v51  ;;  %v6286_v20 = vmul.f32 0.5, %v14606_v46  ;;  %v6290_v63 = vmul.f32 0.5, %v14608_v2 }
0x1396   : > { %v9968_v52 = vpop.eup %9967  ;;  %v6760_v57 = vadd.f32 1.0, %v9966_v36  ;;  %9981 = vtanh.f32 %v6617_v48  ;;  %v6619_v41 = vmul.f32 0.7978846, %v6555_v49  ;;  %7277 = vmatmul.mubr.bf16.gmra.mrb[188].mxu0 %v6842_v18  ;;  %v6614_v21 = vmul.f32 0.7978846, %v6550_v45 }
0x1397   : > { %v9970_v34 = vpop.eup %9969  ;;  %v6733_v37 = vadd.f32 1.0, %v9968_v52  ;;  %9983 = vtanh.f32 %v6615_v22  ;;  %v6618_v7 = vmul.f32 0.7978846, %v6554_v60  ;;  %v6557_v16 = vadd.f32 %v13562_v35, %v13508_v33 }
0x1398   : > { %v13712_v55 = vmul.f32 %v6760_v57, %v13661_v24  ;;  %v6737_v25 = vadd.f32 1.0, %v9970_v34  ;;  %9985 = vtanh.f32 %v6619_v41  ;;  %v9972_v53 = vpop.eup %9971  ;;  %v6293_v36 = vmul.f32 0.5, %v13401_v15  ;;  %v14620_v34 = vld [vmem:[#allocation66_spill] sm:$0xff] }
0x1399   : > { %v6797_v38 = vmul.f32 %v6733_v37, %v13668_v30  ;;  %9987 = vtanh.f32 %v6614_v21  ;;  %v9974_v1 = vpop.eup %9973  ;;  %v6735_v24 = vadd.f32 1.0, %v9972_v53  ;;  %v6561_v30 = vadd.f32 %v13603_v62, %v13546_v47  ;;  %v14621_v37 = vld [vmem:[#allocation70_spill] sm:$0xff] }
0x139a   : > { %v6856_v46 = vpack.c.bf16 %v13712_v55, %v13694_v14  ;;  %v6801_v48 = vmul.f32 %v6737_v25, %v13677_v12  ;;  %9989 = vtanh.f32 %v6618_v7  ;;  %v9976_v8 = vpop.eup %9975  ;;  %v6739_v49 = vadd.f32 1.0, %v9974_v1 }
0x139b   : > { %v6621_v2 = vmul.f32 0.7978846, %v6557_v16  ;;  %v6799_v28 = vmul.f32 %v6735_v24, %v6287_v17  ;;  %v6734_v35 = vadd.f32 1.0, %v9976_v8  ;;  %v6297_v45 = vmul.f32 0.5, %v13456_v40 }
0x139c   : > { %v9978_v18 = vpop.eup %9977  ;;  %v6845_v22 = vpack.c.bf16 %v6801_v48, %v6797_v38  ;;  %v6803_v52 = vmul.f32 %v6739_v49, %v6291_v59  ;;  %v6625_v41 = vmul.f32 0.7978846, %v6561_v30  ;;  %v6295_v12 = vmul.f32 0.5, %v13409_v19 }
0x139d   : > { %v6738_v57 = vadd.f32 1.0, %v9978_v18  ;;  %9991 = vtanh.f32 %v6621_v2  ;;  %v6299_v4 = vmul.f32 0.5, %v14614_v13  ;;  %v6559_v15 = vadd.f32 %v13567_v43, %v13512_v50 }
0x139e   : > { %7187 = vmatprep.mubr.bf16.mxu1 %v6845_v22  ;;  %v6563_v62 = vadd.f32 %v13606_v44, %v13554_v31  ;;  %v6847_v17 = vpack.c.bf16 %v6803_v52, %v6799_v28  ;;  %v14622_v40 = vpack.c.bf16 %v14620_v34, %v14621_v37  ;;  %v6798_v59 = vmul.f32 %v6734_v35, %v6286_v20 }
0x139f   : > { %v9980_v60 = vpop.eup %9979  ;;  %v6802_v21 = vmul.f32 %v6738_v57, %v6290_v63  ;;  %9993 = vtanh.f32 %v6625_v41  ;;  %v6623_v19 = vmul.f32 0.7978846, %v6559_v15  ;;  %v6558_v13 = vadd.f32 %v13557_v3, %v13487_v42 }
0x13a0   : > { %7188 = vmatmul.mubr.bf16.gmra.mrb[48].mxu1 %v14622_v40  ;;  %v9982_v25 = vpop.eup %9981  ;;  %v6741_v7 = vadd.f32 1.0, %v9980_v60  ;;  %v6627_v53 = vmul.f32 0.7978846, %v6563_v62  ;;  %7284 = vmatprep.mubr.bf16.mxu0 %v6847_v17  ;;  %v6294_v16 = vmul.f32 0.5, %v14616_v39  ;;  %v6562_v1 = vadd.f32 %v13582_v32, %v13534_v23  ;;  %v14623_v62 = vld [vmem:[#allocation74_spill] sm:$0xff] }
0x13a1   : > { %v9984_v43 = vpop.eup %9983  ;;  %v6846_v38 = vpack.c.bf16 %v6802_v21, %v6798_v59  ;;  %v6745_v44 = vadd.f32 1.0, %v9982_v25  ;;  %9995 = vtanh.f32 %v6623_v19  ;;  %v6622_v24 = vmul.f32 0.7978846, %v6558_v13 }
0x13a2   : > { %v9986_v48 = vpop.eup %9985  ;;  %v6805_v20 = vmul.f32 %v6741_v7, %v6293_v36  ;;  %v6743_v63 = vadd.f32 1.0, %v9984_v43  ;;  %9997 = vtanh.f32 %v6627_v53  ;;  %v6626_v3 = vmul.f32 0.7978846, %v6562_v1 }
0x13a3   : > { %v9988_v8 = vpop.eup %9987  ;;  %7285 = vmatmul.mubr.bf16.gmra.mrb[192].mxu0 %v6846_v38  ;;  %v6809_v49 = vmul.f32 %v6745_v44, %v6297_v45  ;;  %v6747_v30 = vadd.f32 1.0, %v9986_v48  ;;  %v6298_v22 = vmul.f32 0.5, %v14618_v51  ;;  %9999 = vtanh.f32 %v6622_v24 }
0x13a4   : > { %v9990_v2 = vpop.eup %9989  ;;  %v6807_v18 = vmul.f32 %v6743_v63, %v6295_v12  ;;  %v6742_v28 = vadd.f32 1.0, %v9988_v8  ;;  %10001 = vtanh.f32 %v6626_v3  ;;  %v6502_v36 = vmul.f32 %v13612_v54, %v13574_v26  ;;  %v14625_v3 = vld [vmem:[#allocation38_spill] sm:$0xff] }
0x13a5   : > { %v6849_v39 = vpack.c.bf16 %v6809_v49, %v6805_v20  ;;  %v6811_v35 = vmul.f32 %v6747_v30, %v6299_v4  ;;  %v6746_v32 = vadd.f32 1.0, %v9990_v2  ;;  %v6506_v52 = vmul.f32 %v13664_v6, %v13625_v5  ;;  %v14626_v2 = vld [vmem:[#allocation20_spill] sm:$0xff] }
0x13a6   : > { %v6565_v45 = vadd.f32 %v13645_v10, %v13589_v56  ;;  %v6569_v57 = vadd.f32 %v13684_v58, %v13635_v29  ;;  %v6806_v12 = vmul.f32 %v6742_v28, %v6294_v16  ;;  %v6567_v4 = vadd.f32 %v13648_v11, %v13593_v27 }
0x13a7   : > { %v9992_v41 = vpop.eup %9991  ;;  %7195 = vmatprep.mubr.bf16.mxu1 %v6849_v39  ;;  %v6851_v51 = vpack.c.bf16 %v6811_v35, %v6807_v18  ;;  %v6810_v15 = vmul.f32 %v6746_v32, %v6298_v22  ;;  %v14624_v54 = vpack.c.bf16 %v13540_v9, %v14623_v62  ;;  %v6571_v10 = vadd.f32 %v13701_v0, %v13654_v61 }
0x13a8   : > { %v6749_v60 = vadd.f32 1.0, %v9992_v41  ;;  %v6629_v6 = vmul.f32 0.7978846, %v6565_v45  ;;  %v6633_v17 = vmul.f32 0.7978846, %v6569_v57  ;;  %v6301_v37 = vmul.f32 0.5, %v13508_v33 }
0x13a9   : > { %7196 = vmatmul.mubr.bf16.gmra.mrb[52].mxu1 %v14624_v54  ;;  %v9994_v34 = vpop.eup %9993  ;;  %7292 = vmatprep.mubr.bf16.mxu0 %v6851_v51  ;;  %v6850_v58 = vpack.c.bf16 %v6810_v15, %v6806_v12  ;;  %v6631_v40 = vmul.f32 0.7978846, %v6567_v4  ;;  %v6305_v59 = vmul.f32 0.5, %v13546_v47  ;;  %v6635_v11 = vmul.f32 0.7978846, %v6571_v10 }
0x13aa   : > { %v6753_v21 = vadd.f32 1.0, %v9994_v34  ;;  %10003 = vtanh.f32 %v6629_v6  ;;  %v6566_v9 = vadd.f32 %v6502_v36, %v13574_v26  ;;  %v6570_v25 = vadd.f32 %v6506_v52, %v13625_v5 }
0x13ab   : > { %7293 = vmatmul.mubr.bf16.gmra.mrb[196].mxu0 %v6850_v58  ;;  %10005 = vtanh.f32 %v6633_v17  ;;  %v9996_v7 = vpop.eup %9995  ;;  %v6813_v19 = vmul.f32 %v6749_v60, %v6301_v37  ;;  %v6303_v44 = vmul.f32 0.5, %v13512_v50  ;;  %v6307_v16 = vmul.f32 0.5, %v13554_v31 }
0x13ac   : > { %v6817_v0 = vmul.f32 %v6753_v21, %v6305_v59  ;;  %10007 = vtanh.f32 %v6631_v40  ;;  %v9998_v53 = vpop.eup %9997  ;;  %v6751_v13 = vadd.f32 1.0, %v9996_v7  ;;  %v6630_v33 = vmul.f32 0.7978846, %v6566_v9  ;;  %v13778_v59 = vld [vmem:[%s14628_s26] ss:$0 sm:$0xff]  ;;  %s14648_s26 = smov %s14647_s29 }
0x13ad   : > { %10009 = vtanh.f32 %v6635_v11  ;;  %v6634_v43 = vmul.f32 0.7978846, %v6570_v25  ;;  %v10000_v38 = vpop.eup %9999  ;;  %v6755_v1 = vadd.f32 1.0, %v9998_v53  ;;  %v6302_v20 = vmul.f32 0.5, %v13487_v42 }
0x13ae   : > { %v6853_v47 = vpack.c.bf16 %v6817_v0, %v6813_v19  ;;  %v10002_v48 = vpop.eup %10001  ;;  %v6306_v63 = vmul.f32 0.5, %v13534_v23  ;;  %v6750_v24 = vadd.f32 1.0, %v10000_v38  ;;  %10011 = vtanh.f32 %v6630_v33 }
0x13af   : > { %v6815_v8 = vmul.f32 %v6751_v13, %v6303_v44  ;;  %v6819_v49 = vmul.f32 %v6755_v1, %v6307_v16  ;;  %v6754_v30 = vadd.f32 1.0, %v10002_v48  ;;  %10013 = vtanh.f32 %v6634_v43  ;;  %v14629_v43 = vld [vmem:[#allocation29_spill] sm:$0xff] }
0x13b0   : > { %7203 = vmatprep.mubr.bf16.mxu1 %v6853_v47  ;;  %v14627_v18 = vpack.c.bf16 %v14625_v3, %v14626_v2  ;;  %v6814_v22 = vmul.f32 %v6750_v24, %v6302_v20  ;;  %v6309_v32 = vmul.f32 0.5, %v13589_v56  ;;  %v6313_v36 = vmul.f32 0.5, %v13635_v29  ;;  %v14630_v47 = vld [vmem:[#allocation30_spill] sm:$0xff] }
0x13b1   : > { %v6855_v50 = vpack.c.bf16 %v6819_v49, %v6815_v8  ;;  %v6818_v31 = vmul.f32 %v6754_v30, %v6306_v63  ;;  %v6311_v57 = vmul.f32 0.5, %v13593_v27  ;;  %v6315_v15 = vmul.f32 0.5, %v13654_v61 }
0x13b2   : > { %7204 = vmatmul.mubr.bf16.gmra.mrb[56].mxu1 %v14627_v18  ;;  %v6310_v56 = vmul.f32 0.5, %v13574_v26  ;;  %v6314_v29 = vmul.f32 0.5, %v13625_v5 }
0x13b3   : > { %7300 = vmatprep.mubr.bf16.mxu0 %v6855_v50  ;;  %v6854_v39 = vpack.c.bf16 %v6818_v31, %v6814_v22 }
0x13b4   : > { %v10004_v28 = vpop.eup %10003 }
0x13b5   : > { %v10006_v42 = vpop.eup %10005  ;;  %v6757_v35 = vadd.f32 1.0, %v10004_v28  ;;  %7301 = vmatmul.mubr.bf16.gmra.mrb[200].mxu0 %v6854_v39  ;;  %v14631_v39 = vld [vmem:[#allocation75_spill] sm:$0xff] }
0x13b6   : > { %v10008_v23 = vpop.eup %10007  ;;  %v6761_v52 = vadd.f32 1.0, %v10006_v42 }
0x13b7   : > { %v10010_v45 = vpop.eup %10009  ;;  %v6759_v41 = vadd.f32 1.0, %v10008_v23  ;;  %v6821_v51 = vmul.f32 %v6757_v35, %v6309_v32  ;;  %v14632_v35 = vld [vmem:[#allocation55_spill] sm:$0xff] }
0x13b8   : > { %v6825_v12 = vmul.f32 %v6761_v52, %v6313_v36  ;;  %v6763_v4 = vadd.f32 1.0, %v10010_v45  ;;  %v10012_v62 = vpop.eup %10011 }
0x13b9   : > { %v10014_v54 = vpop.eup %10013  ;;  %v6823_v6 = vmul.f32 %v6759_v41, %v6311_v57  ;;  %v6758_v10 = vadd.f32 1.0, %v10012_v62 }
0x13ba   : > { %v6857_v60 = vpack.c.bf16 %v6825_v12, %v6821_v51  ;;  %v6827_v17 = vmul.f32 %v6763_v4, %v6315_v15  ;;  %v6762_v34 = vadd.f32 1.0, %v10014_v54 }
0x13bb   : > { %v6822_v27 = vmul.f32 %v6758_v10, %v6310_v56  ;;  %v14633_v56 = vld [vmem:[#allocation31_spill] sm:$0xff] }
0x13bc   : > { %7211 = vmatprep.mubr.bf16.mxu1 %v6857_v60  ;;  %v6859_v58 = vpack.c.bf16 %v6827_v17, %v6823_v6  ;;  %v6826_v61 = vmul.f32 %v6762_v34, %v6314_v29  ;;  %v14634_v34 = vld [vmem:[#allocation56_spill] sm:$0xff] }
0x13bd   : > { %7212 = vmatmul.mubr.bf16.gmra.mrb[60].mxu1 %v6856_v46 }
0x13be   : > { %7308 = vmatprep.mubr.bf16.mxu0 %v6859_v58  ;;  %v6858_v37 = vpack.c.bf16 %v6826_v61, %v6822_v27 }
0x13c0   : > { %7309 = vmatmul.mubr.bf16.gmra.mrb[204].mxu0 %v6858_v37 }
0x1425   : > { %v8223_v40 = vpop.f32.mrb[32].mxu1 }
0x1426   : > { %v8224_v26 = vpop.f32.mrb[33].mxu1 }
0x1427   : > { %v8225_v5 = vadd.f32 %v8224_v26, %v8223_v40  ;;  %v8226_v21 = vpop.f32.mrb[34].mxu1 }
0x1428   : > { %v8227_v9 = vpop.f32.mrb[35].mxu1 }
0x1429   : > { %v7158_v25 = vadd.f32 %v8225_v5, %v13778_v59  ;;  %v8228_v55 = vadd.f32 %v8227_v9, %v8226_v21 }
0x142b   : > { %v8287_v11 = vpop.f32.mrb[176].mxu0  ;;  %v7161_v19 = vadd.f32 %v8228_v55, %v13778_v59 }
0x142c   : > { %v8288_v14 = vpop.f32.mrb[177].mxu0 }
0x142d   : > { %v8289_v46 = vadd.f32 %v8288_v14, %v8287_v11  ;;  %v8290_v7 = vpop.f32.mrb[178].mxu0 }
0x142e   : > { %v8291_v0 = vpop.f32.mrb[179].mxu0 }
0x142f   : > { %v7255_v53 = vadd.f32 %v8289_v46, %v7158_v25  ;;  %v8292_v13 = vadd.f32 %v8291_v0, %v8290_v7 }
0x1431   : > { %v7258_v33 = vadd.f32 %v8292_v13, %v7161_v19  ;;  %v13783_v38 = vadd.f32 %v7255_v53, %v14629_v43  ;;  %v14635_v53 = vld [vmem:[#allocation57_spill] sm:$0xff]  ;;  %v14636_v43 = vld [vmem:[#allocation76_spill] sm:$0xff] }
0x1433   : > { %7335 = vadd.xlane.f32.xlu0 %v13783_v38  ;;  %v13787_v44 = vadd.f32 %v7258_v33, %v14630_v47 }
0x1435   : > { %7337 = vadd.xlane.f32.xlu1 %v13787_v44 }
0x143c   : > { %v8229_v16 = vpop.f32.mrb[36].mxu1 }
0x143d   : > { %v8230_v1 = vpop.f32.mrb[37].mxu1 }
0x143e   : > { %v8231_v48 = vadd.f32 %v8230_v1, %v8229_v16  ;;  %v8232_v20 = vpop.f32.mrb[38].mxu1 }
0x143f   : > { %v8233_v63 = vpop.f32.mrb[39].mxu1 }
0x1440   : > { %v8293_v24 = vpop.f32.mrb[180].mxu0  ;;  %v7166_v8 = vadd.f32 %v8231_v48, %v13778_v59  ;;  %v8234_v49 = vadd.f32 %v8233_v63, %v8232_v20 }
0x1441   : > { %v8294_v30 = vpop.f32.mrb[181].mxu0 }
0x1442   : > { %v8295_v3 = vadd.f32 %v8294_v30, %v8293_v24  ;;  %v8296_v2 = vpop.f32.mrb[182].mxu0  ;;  %v7169_v18 = vadd.f32 %v8234_v49, %v13778_v59 }
0x1443   : > { %v8297_v50 = vpop.f32.mrb[183].mxu0 }
0x1444   : > { %v7263_v22 = vadd.f32 %v8295_v3, %v7166_v8  ;;  %v8298_v31 = vadd.f32 %v8297_v50, %v8296_v2 }
0x1446   : > { %v7266_v28 = vadd.f32 %v8298_v31, %v7169_v18  ;;  %v13793_v42 = vadd.f32 %v7263_v22, %v14631_v39 }
0x1448   : > { %7339 = vadd.xlane.f32.xlu0 %v13793_v42  ;;  %v13797_v23 = vadd.f32 %v7266_v28, %v14632_v35  ;;  %v14637_v35 = vld [vmem:[#allocation32_spill] sm:$0xff] }
0x144a   : > { %7341 = vadd.xlane.f32.xlu1 %v13797_v23 }
0x144f   : > { %v8235_v32 = vpop.f32.mrb[40].mxu1 }
0x1450   : > { %v8236_v36 = vpop.f32.mrb[41].mxu1 }
0x1451   : > { %v8237_v52 = vadd.f32 %v8236_v36, %v8235_v32  ;;  %v8238_v45 = vpop.f32.mrb[42].mxu1 }
0x1452   : > { %v8239_v57 = vpop.f32.mrb[43].mxu1 }
0x1453   : > { %v8240_v41 = vadd.f32 %v8239_v57, %v8238_v45  ;;  %v7174_v12 = vadd.f32 %v8237_v52, %v13778_v59 }
0x1455   : > { %v8299_v51 = vpop.f32.mrb[184].mxu0  ;;  %v7177_v54 = vadd.f32 %v8240_v41, %v13778_v59  ;;  %v14638_v41 = vld [vmem:[#allocation58_spill] sm:$0xff] }
0x1456   : > { %v8300_v15 = vpop.f32.mrb[185].mxu0 }
0x1457   : > { %v8301_v4 = vadd.f32 %v8300_v15, %v8299_v51  ;;  %v8302_v62 = vpop.f32.mrb[186].mxu0 }
0x1458   : > { %v8303_v60 = vpop.f32.mrb[187].mxu0 }
0x1459   : > { %v7271_v6 = vadd.f32 %v8301_v4, %v7174_v12  ;;  %v8304_v17 = vadd.f32 %v8303_v60, %v8302_v62 }
0x145b   : > { %v7274_v10 = vadd.f32 %v8304_v17, %v7177_v54  ;;  %v13803_v29 = vadd.f32 %v7271_v6, %v14633_v56 }
0x145d   : > { %7343 = vadd.xlane.f32.xlu0 %v13803_v29  ;;  %v13807_v58 = vadd.f32 %v7274_v10, %v14634_v34 }
0x145f   : > { %7345 = vadd.xlane.f32.xlu1 %v13807_v58 }
0x1464   : > { %v8241_v27 = vpop.f32.mrb[44].mxu1 }
0x1465   : > { %v8242_v61 = vpop.f32.mrb[45].mxu1 }
0x1466   : > { %v8243_v37 = vadd.f32 %v8242_v61, %v8241_v27  ;;  %v8244_v40 = vpop.f32.mrb[46].mxu1  ;;  %v14639_v27 = vld [vmem:[#allocation61_spill] sm:$0xff] }
0x1467   : > { %v8245_v26 = vpop.f32.mrb[47].mxu1 }
0x1468   : > { %v8246_v5 = vadd.f32 %v8245_v26, %v8244_v40  ;;  %v7182_v11 = vadd.f32 %v8243_v37, %v13778_v59 }
0x1469   : > { %v8305_v21 = vpop.f32.mrb[188].mxu0 }
0x146a   : > { %v8306_v9 = vpop.f32.mrb[189].mxu0  ;;  %v7185_v55 = vadd.f32 %v8246_v5, %v13778_v59  ;;  %v14640_v5 = vld [vmem:[#allocation60_spill] sm:$0xff] }
0x146b   : > { %v8307_v25 = vadd.f32 %v8306_v9, %v8305_v21  ;;  %v8308_v14 = vpop.f32.mrb[190].mxu0 }
0x146c   : > { %v8309_v46 = vpop.f32.mrb[191].mxu0 }
0x146d   : > { %v7279_v7 = vadd.f32 %v8307_v25, %v7182_v11  ;;  %v8310_v19 = vadd.f32 %v8309_v46, %v8308_v14 }
0x146f   : > { %v7282_v0 = vadd.f32 %v8310_v19, %v7185_v55  ;;  %v13813_v13 = vadd.f32 %v7279_v7, %v14635_v53 }
0x1471   : > { %7347 = vadd.xlane.f32.xlu0 %v13813_v13  ;;  %v13817_v47 = vadd.f32 %v7282_v0, %v14636_v43 }
0x1473   : > { %v8247_v33 = vpop.f32.mrb[48].mxu1  ;;  %7349 = vadd.xlane.f32.xlu1 %v13817_v47 }
0x1474   : > { %v8248_v16 = vpop.f32.mrb[49].mxu1 }
0x1475   : > { %v8249_v1 = vadd.f32 %v8248_v16, %v8247_v33  ;;  %v8250_v48 = vpop.f32.mrb[50].mxu1  ;;  %v14641_v16 = vld [vmem:[#allocation53_spill] sm:$0xff] }
0x1476   : > { %v8251_v20 = vpop.f32.mrb[51].mxu1  ;;  %v8311_v63 = vpop.f32.mrb[192].mxu0 }
0x1477   : > { %v7190_v24 = vadd.f32 %v8249_v1, %v13778_v59  ;;  %v8252_v8 = vadd.f32 %v8251_v20, %v8250_v48  ;;  %v8312_v49 = vpop.f32.mrb[193].mxu0 }
0x1478   : > { %v8313_v30 = vadd.f32 %v8312_v49, %v8311_v63  ;;  %v8314_v3 = vpop.f32.mrb[194].mxu0  ;;  %v14642_v63 = vld [vmem:[#allocation33_spill] sm:$0xff] }
0x1479   : > { %v7193_v2 = vadd.f32 %v8252_v8, %v13778_v59  ;;  %v8315_v18 = vpop.f32.mrb[195].mxu0 }
0x147a   : > { %v7287_v50 = vadd.f32 %v8313_v30, %v7190_v24  ;;  %v8316_v22 = vadd.f32 %v8315_v18, %v8314_v3 }
0x147c   : > { %v8253_v31 = vpop.f32.mrb[52].mxu1  ;;  %v7290_v28 = vadd.f32 %v8316_v22, %v7193_v2  ;;  %v13823_v32 = vadd.f32 %v7287_v50, %v14637_v35 }
0x147d   : > { %v8254_v39 = vpop.f32.mrb[53].mxu1 }
0x147e   : > { %v8255_v36 = vadd.f32 %v8254_v39, %v8253_v31  ;;  %v8256_v52 = vpop.f32.mrb[54].mxu1  ;;  %v8317_v45 = vpop.f32.mrb[196].mxu0  ;;  %7351 = vadd.xlane.f32.xlu0 %v13823_v32  ;;  %v13827_v51 = vadd.f32 %v7290_v28, %v14638_v41  ;;  %v14644_v41 = vld [vmem:[#allocation67_spill] sm:$0xff] }
0x147f   : > { %v8257_v57 = vpop.f32.mrb[55].mxu1  ;;  %v8318_v15 = vpop.f32.mrb[197].mxu0 }
0x1480   : > { %v7198_v12 = vadd.f32 %v8255_v36, %v13778_v59  ;;  %v8258_v4 = vadd.f32 %v8257_v57, %v8256_v52  ;;  %v8319_v62 = vadd.f32 %v8318_v15, %v8317_v45  ;;  %v8320_v54 = vpop.f32.mrb[198].mxu0  ;;  %7353 = vadd.xlane.f32.xlu1 %v13827_v51  ;;  %v14643_v45 = vld [vmem:[#allocation69_spill] sm:$0xff] }
0x1481   : > { %v8321_v6 = vpop.f32.mrb[199].mxu0 }
0x1482   : > { %v7201_v60 = vadd.f32 %v8258_v4, %v13778_v59  ;;  %v7295_v17 = vadd.f32 %v8319_v62, %v7198_v12  ;;  %v8322_v10 = vadd.f32 %v8321_v6, %v8320_v54 }
0x1484   : > { %v7298_v56 = vadd.f32 %v8322_v10, %v7201_v60  ;;  %v13833_v61 = vadd.f32 %v7295_v17, %v14639_v27 }
0x1485   : > { %v8259_v34 = vpop.f32.mrb[56].mxu1 }
0x1486   : > { %v8260_v37 = vpop.f32.mrb[57].mxu1  ;;  %7355 = vadd.xlane.f32.xlu0 %v13833_v61  ;;  %v13837_v21 = vadd.f32 %v7298_v56, %v14640_v5 }
0x1487   : > { %v8261_v40 = vadd.f32 %v8260_v37, %v8259_v34  ;;  %v8262_v26 = vpop.f32.mrb[58].mxu1 }
0x1488   : > { %v8263_v11 = vpop.f32.mrb[59].mxu1  ;;  %7357 = vadd.xlane.f32.xlu1 %v13837_v21  ;;  %v8323_v25 = vpop.f32.mrb[200].mxu0 }
0x1489   : > { %v8264_v9 = vadd.f32 %v8263_v11, %v8262_v26  ;;  %v7206_v14 = vadd.f32 %v8261_v40, %v13778_v59  ;;  %v8324_v55 = vpop.f32.mrb[201].mxu0 }
0x148a   : > { %v8325_v46 = vadd.f32 %v8324_v55, %v8323_v25  ;;  %v8326_v7 = vpop.f32.mrb[202].mxu0 }
0x148b   : > { %v7209_v19 = vadd.f32 %v8264_v9, %v13778_v59  ;;  %v8327_v0 = vpop.f32.mrb[203].mxu0 }
0x148c   : > { %v7303_v53 = vadd.f32 %v8325_v46, %v7206_v14  ;;  %v8328_v33 = vadd.f32 %v8327_v0, %v8326_v7 }
0x148e   : > { %v7306_v43 = vadd.f32 %v8328_v33, %v7209_v19  ;;  %v13843_v1 = vadd.f32 %v7303_v53, %v14641_v16 }
0x1490   : > { %v8265_v48 = vpop.f32.mrb[60].mxu1  ;;  %7359 = vadd.xlane.f32.xlu0 %v13843_v1  ;;  %v13847_v24 = vadd.f32 %v7306_v43, %v14642_v63 }
0x1491   : > { %v8266_v20 = vpop.f32.mrb[61].mxu1 }
0x1492   : > { %v8267_v8 = vadd.f32 %v8266_v20, %v8265_v48  ;;  %v8268_v49 = vpop.f32.mrb[62].mxu1  ;;  %7361 = vadd.xlane.f32.xlu1 %v13847_v24 }
0x1493   : > { %v8269_v30 = vpop.f32.mrb[63].mxu1  ;;  %v8329_v3 = vpop.f32.mrb[204].mxu0 }
0x1494   : > { %v7214_v2 = vadd.f32 %v8267_v8, %v13778_v59  ;;  %v8270_v18 = vadd.f32 %v8269_v30, %v8268_v49  ;;  %v8330_v50 = vpop.f32.mrb[205].mxu0 }
0x1495   : > { %v8331_v22 = vadd.f32 %v8330_v50, %v8329_v3  ;;  %v8332_v31 = vpop.f32.mrb[206].mxu0 }
0x1496   : > { %v7217_v28 = vadd.f32 %v8270_v18, %v13778_v59  ;;  %v8333_v39 = vpop.f32.mrb[207].mxu0 }
0x1497   : > { %v7311_v35 = vadd.f32 %v8331_v22, %v7214_v2  ;;  %v8334_v36 = vadd.f32 %v8333_v39, %v8332_v31 }
0x1499   : > { %v7314_v52 = vadd.f32 %v8334_v36, %v7217_v28  ;;  %v13853_v57 = vadd.f32 %v7311_v35, %v14643_v45 }
0x149b   : > { %7363 = vadd.xlane.f32.xlu0 %v13853_v57  ;;  %v13857_v12 = vadd.f32 %v7314_v52, %v14644_v41 }
0x149d   : > { %7365 = vadd.xlane.f32.xlu1 %v13857_v12 }
0x14c0   : > { %v7336_v15 = vpop.xlane.xlu0 %7335 }
0x14c1   : > { %v7367_v4 = vmul.f32 0.0078125, %v7336_v15 }
0x14c2   : > { %v7338_v62 = vpop.xlane.xlu1 %7337 }
0x14c3   : > { %v13861_v54 = vsub.f32 %v13783_v38, %v7367_v4  ;;  %v7368_v59 = vmul.f32 0.0078125, %v7338_v62 }
0x14c5   : > { %v13864_v60 = vsub.f32 %v13787_v44, %v7368_v59  ;;  %v7399_v6 = vmul.f32 %v13861_v54, %v13861_v54 }
0x14c7   : > { %7415 = vadd.xlane.f32.xlu0 %v7399_v6  ;;  %v7400_v17 = vmul.f32 %v13864_v60, %v13864_v60 }
0x14c9   : > { %7417 = vadd.xlane.f32.xlu1 %v7400_v17 }
0x14d5   : > { %v7340_v10 = vpop.xlane.xlu0 %7339 }
0x14d6   : > { %v7369_v56 = vmul.f32 0.0078125, %v7340_v10 }
0x14d7   : > { %v7342_v34 = vpop.xlane.xlu1 %7341 }
0x14d8   : > { %v13871_v27 = vsub.f32 %v13793_v42, %v7369_v56  ;;  %v7370_v38 = vmul.f32 0.0078125, %v7342_v34 }
0x14da   : > { %v13874_v37 = vsub.f32 %v13797_v23, %v7370_v38  ;;  %v7401_v44 = vmul.f32 %v13871_v27, %v13871_v27 }
0x14dc   : > { %7419 = vadd.xlane.f32.xlu0 %v7401_v44  ;;  %v7402_v40 = vmul.f32 %v13874_v37, %v13874_v37  ;;  %v13950_v44 = vld [vmem:[%s14646_s11] ss:$0 sm:$0xff] }
0x14de   : > { %7421 = vadd.xlane.f32.xlu1 %v7402_v40 }
0x14ea   : > { %v7344_v26 = vpop.xlane.xlu0 %7343 }
0x14eb   : > { %v7371_v5 = vmul.f32 0.0078125, %v7344_v26 }
0x14ec   : > { %v7346_v11 = vpop.xlane.xlu1 %7345 }
0x14ed   : > { %v13881_v9 = vsub.f32 %v13803_v29, %v7371_v5  ;;  %v7372_v42 = vmul.f32 0.0078125, %v7346_v11 }
0x14ef   : > { %v13884_v25 = vsub.f32 %v13807_v58, %v7372_v42  ;;  %v7403_v23 = vmul.f32 %v13881_v9, %v13881_v9 }
0x14f1   : > { %7423 = vadd.xlane.f32.xlu0 %v7403_v23  ;;  %v7404_v14 = vmul.f32 %v13884_v25, %v13884_v25 }
0x14f3   : > { %7425 = vadd.xlane.f32.xlu1 %v7404_v14 }
0x14fe   : > { %v7348_v55 = vpop.xlane.xlu0 %7347 }
0x14ff   : > { %v7373_v46 = vmul.f32 0.0078125, %v7348_v55 }
0x1500   : > { %v7350_v7 = vpop.xlane.xlu1 %7349 }
0x1501   : > { %v13891_v19 = vsub.f32 %v13813_v13, %v7373_v46  ;;  %v7374_v29 = vmul.f32 0.0078125, %v7350_v7 }
0x1503   : > { %v13894_v0 = vsub.f32 %v13817_v47, %v7374_v29  ;;  %v7405_v58 = vmul.f32 %v13891_v19, %v13891_v19 }
0x1505   : > { %7427 = vadd.xlane.f32.xlu0 %v7405_v58  ;;  %v7406_v53 = vmul.f32 %v13894_v0, %v13894_v0 }
0x1507   : > { %7429 = vadd.xlane.f32.xlu1 %v7406_v53 }
0x150b   : > { %v7352_v33 = vpop.xlane.xlu0 %7351 }
0x150c   : > { %v7375_v43 = vmul.f32 0.0078125, %v7352_v33 }
0x150d   : > { %v7354_v16 = vpop.xlane.xlu1 %7353 }
0x150e   : > { %v13901_v48 = vsub.f32 %v13823_v32, %v7375_v43  ;;  %v7376_v13 = vmul.f32 0.0078125, %v7354_v16 }
0x1510   : > { %v13904_v20 = vsub.f32 %v13827_v51, %v7376_v13  ;;  %v7407_v47 = vmul.f32 %v13901_v48, %v13901_v48 }
0x1512   : > { %7431 = vadd.xlane.f32.xlu0 %v7407_v47  ;;  %v7408_v63 = vmul.f32 %v13904_v20, %v13904_v20 }
0x1513   : > { %v7356_v8 = vpop.xlane.xlu0 %7355 }
0x1514   : > { %v7377_v49 = vmul.f32 0.0078125, %v7356_v8  ;;  %7433 = vadd.xlane.f32.xlu1 %v7408_v63 }
0x1515   : > { %v7358_v30 = vpop.xlane.xlu1 %7357 }
0x1516   : > { %v13911_v3 = vsub.f32 %v13833_v61, %v7377_v49  ;;  %v7378_v32 = vmul.f32 0.0078125, %v7358_v30 }
0x1518   : > { %v13914_v2 = vsub.f32 %v13837_v21, %v7378_v32  ;;  %v7409_v51 = vmul.f32 %v13911_v3, %v13911_v3 }
0x151a   : > { %7435 = vadd.xlane.f32.xlu0 %v7409_v51  ;;  %v7410_v18 = vmul.f32 %v13914_v2, %v13914_v2 }
0x151c   : > { %7437 = vadd.xlane.f32.xlu1 %v7410_v18 }
0x151d   : > { %v7360_v50 = vpop.xlane.xlu0 %7359 }
0x151e   : > { %v7379_v22 = vmul.f32 0.0078125, %v7360_v50 }
0x151f   : > { %v7362_v31 = vpop.xlane.xlu1 %7361 }
0x1520   : > { %v13921_v28 = vsub.f32 %v13843_v1, %v7379_v22  ;;  %v7380_v61 = vmul.f32 0.0078125, %v7362_v31 }
0x1522   : > { %v13924_v39 = vsub.f32 %v13847_v24, %v7380_v61  ;;  %v7411_v21 = vmul.f32 %v13921_v28, %v13921_v28 }
0x1524   : > { %7439 = vadd.xlane.f32.xlu0 %v7411_v21  ;;  %v7412_v35 = vmul.f32 %v13924_v39, %v13924_v39 }
0x1526   : > { %7441 = vadd.xlane.f32.xlu1 %v7412_v35 }
0x1528   : > { %v7364_v36 = vpop.xlane.xlu0 %7363 }
0x1529   : > { %v7381_v52 = vmul.f32 0.0078125, %v7364_v36 }
0x152a   : > { %v7366_v45 = vpop.xlane.xlu1 %7365 }
0x152b   : > { %v13931_v41 = vsub.f32 %v13853_v57, %v7381_v52  ;;  %v7382_v1 = vmul.f32 0.0078125, %v7366_v45 }
0x152d   : > { %v13934_v15 = vsub.f32 %v13857_v12, %v7382_v1  ;;  %v7413_v24 = vmul.f32 %v13931_v41, %v13931_v41  ;;  %v13943_v12 = vld [vmem:[%s14645_s27] ss:$0 sm:$0xff]  ;;  %s10285_s27 = smov [#allocation11]  }
0x152e   : > { %s10201_s20 = sshll.u32 %s10285_s27, 4  ;;  %s10202_s20 = int_to_ptr.vmem [resolvable:$false] %s10201_s20 }
0x152f   : > { %7443 = vadd.xlane.f32.xlu0 %v7413_v24  ;;  %v7414_v4 = vmul.f32 %v13934_v15, %v13934_v15  ;;  %s10203_s22 = scalar_lea.vmem %s10202_s20, 4096  ;;  %p10204_p1 = scmp.lt.s32.totalorder %s14021_s19, %s10202_s20 }
0x1530   : > { %p10205_p2 = scmp.lt.s32.totalorder %s10203_s22, %s10197_s14 }
0x1531   : > { %7445 = vadd.xlane.f32.xlu1 %v7414_v4 }
0x1532   : > { %p10206_p13 = por %p10205_p2, %p10204_p1 }
0x1534   : > { %p10207_p9 = pnand %p10206_p13, %p10200_p12 }
0x1554   : > { %v7416_v62 = vpop.xlane.xlu0 %7415 }
0x1555   : > { %v7447_v59 = vmul.f32 0.0078125, %v7416_v62 }
0x1556   : > { %v7418_v6 = vpop.xlane.xlu1 %7417 }
0x1557   : > { %v7463_v17 = vadd.f32 1e-12, %v7447_v59  ;;  %v7448_v10 = vmul.f32 0.0078125, %v7418_v6 }
0x1559   : > { %10015 = vrsqrt.f32 %v7463_v17  ;;  %v7464_v57 = vadd.f32 1e-12, %v7448_v10 }
0x155b   : > { %10017 = vrsqrt.f32 %v7464_v57 }
0x1563   : > { %v10016_v56 = vpop.eup %10015 }
0x1564   : > { %v7495_v34 = vmul.f32 %v10016_v56, %v13861_v54 }
0x1565   : > { %v10018_v38 = vpop.eup %10017 }
0x1566   : > { %v7517_v40 = vmul.f32 %v13943_v12, %v7495_v34  ;;  %v7496_v26 = vmul.f32 %v10018_v38, %v13864_v60 }
0x1568   : > { %v7539_v5 = vadd.f32 %v13950_v44, %v7517_v40  ;;  %v7518_v11 = vmul.f32 %v13943_v12, %v7496_v26 }
0x1569   : > { %v7420_v42 = vpop.xlane.xlu0 %7419 }
0x156a   : > { %7555 = vst [vmem:[%s13956_s23] sm:$0xff] %v7539_v5  ;;  %v7540_v54 = vadd.f32 %v13950_v44, %v7518_v11  ;;  %v7449_v23 = vmul.f32 0.0078125, %v7420_v42 }
0x156b   : > { %v7422_v14 = vpop.xlane.xlu1 %7421 }
0x156c   : > { %7556 = vst [vmem:[%s13956_s23 + $0x8] sm:$0xff] %v7540_v54  ;;  %v7465_v55 = vadd.f32 1e-12, %v7449_v23  ;;  %v7450_v46 = vmul.f32 0.0078125, %v7422_v14 }
0x156e   : > { %10019 = vrsqrt.f32 %v7465_v55  ;;  %v7466_v60 = vadd.f32 1e-12, %v7450_v46 }
0x1570   : > { %10021 = vrsqrt.f32 %v7466_v60 }
0x1578   : > { %v10020_v7 = vpop.eup %10019 }
0x1579   : > { %v7497_v29 = vmul.f32 %v10020_v7, %v13871_v27 }
0x157a   : > { %v10022_v58 = vpop.eup %10021 }
0x157b   : > { %v7519_v53 = vmul.f32 %v13943_v12, %v7497_v29  ;;  %v7498_v33 = vmul.f32 %v10022_v58, %v13874_v37 }
0x157d   : > { %v7541_v43 = vadd.f32 %v13950_v44, %v7519_v53  ;;  %v7520_v16 = vmul.f32 %v13943_v12, %v7498_v33 }
0x157e   : > { %v7424_v13 = vpop.xlane.xlu0 %7423 }
0x157f   : > { %7557 = vst [vmem:[%s13956_s23 + $0x10] sm:$0xff] %v7541_v43  ;;  %v7542_v47 = vadd.f32 %v13950_v44, %v7520_v16  ;;  %v7451_v63 = vmul.f32 0.0078125, %v7424_v13 }
0x1580   : > { %v7426_v8 = vpop.xlane.xlu1 %7425 }
0x1581   : > { %7558 = vst [vmem:[%s13956_s23 + $0x18] sm:$0xff] %v7542_v47  ;;  %v7467_v49 = vadd.f32 1e-12, %v7451_v63  ;;  %v7452_v30 = vmul.f32 0.0078125, %v7426_v8 }
0x1583   : > { %10023 = vrsqrt.f32 %v7467_v49  ;;  %v7468_v27 = vadd.f32 1e-12, %v7452_v30 }
0x1585   : > { %10025 = vrsqrt.f32 %v7468_v27 }
0x158d   : > { %v10024_v32 = vpop.eup %10023 }
0x158e   : > { %v7499_v37 = vmul.f32 %v10024_v32, %v13881_v9 }
0x158f   : > { %v10026_v51 = vpop.eup %10025 }
0x1590   : > { %v7521_v18 = vmul.f32 %v13943_v12, %v7499_v37  ;;  %v7500_v50 = vmul.f32 %v10026_v51, %v13884_v25 }
0x1592   : > { %v7543_v22 = vadd.f32 %v13950_v44, %v7521_v18  ;;  %v7522_v31 = vmul.f32 %v13943_v12, %v7500_v50  ;;  %v7428_v61 = vpop.xlane.xlu0 %7427 }
0x1593   : > { %v7453_v35 = vmul.f32 0.0078125, %v7428_v61 }
0x1594   : > { %7559 = vst [vmem:[%s13956_s23 + $0x20] sm:$0xff] %v7543_v22  ;;  %v7544_v21 = vadd.f32 %v13950_v44, %v7522_v31  ;;  %v7430_v36 = vpop.xlane.xlu1 %7429 }
0x1595   : > { %v7469_v52 = vadd.f32 1e-12, %v7453_v35  ;;  %v7454_v45 = vmul.f32 0.0078125, %v7430_v36 }
0x1596   : > { %7560 = vst [vmem:[%s13956_s23 + $0x28] sm:$0xff] %v7544_v21 }
0x1597   : > { %10027 = vrsqrt.f32 %v7469_v52  ;;  %v7470_v9 = vadd.f32 1e-12, %v7454_v45 }
0x1599   : > { %10029 = vrsqrt.f32 %v7470_v9 }
0x159f   : > { %v7432_v1 = vpop.xlane.xlu0 %7431 }
0x15a0   : > { %v7455_v24 = vmul.f32 0.0078125, %v7432_v1 }
0x15a1   : > { %v7434_v25 = vpop.xlane.xlu1 %7433  ;;  %v10028_v4 = vpop.eup %10027 }
0x15a2   : > { %v7471_v62 = vadd.f32 1e-12, %v7455_v24  ;;  %v7456_v59 = vmul.f32 0.0078125, %v7434_v25  ;;  %v7501_v6 = vmul.f32 %v10028_v4, %v13891_v19 }
0x15a3   : > { %v10030_v17 = vpop.eup %10029 }
0x15a4   : > { %10031 = vrsqrt.f32 %v7471_v62  ;;  %v7472_v10 = vadd.f32 1e-12, %v7456_v59  ;;  %v7523_v57 = vmul.f32 %v13943_v12, %v7501_v6  ;;  %v7502_v56 = vmul.f32 %v10030_v17, %v13894_v0 }
0x15a6   : > { %10033 = vrsqrt.f32 %v7472_v10  ;;  %v7545_v34 = vadd.f32 %v13950_v44, %v7523_v57  ;;  %v7524_v38 = vmul.f32 %v13943_v12, %v7502_v56 }
0x15a7   : > { %v7436_v40 = vpop.xlane.xlu0 %7435 }
0x15a8   : > { %v7457_v26 = vmul.f32 0.0078125, %v7436_v40  ;;  %7561 = vst [vmem:[%s13956_s23 + $0x30] sm:$0xff] %v7545_v34  ;;  %v7546_v5 = vadd.f32 %v13950_v44, %v7524_v38 }
0x15a9   : > { %v7438_v11 = vpop.xlane.xlu1 %7437 }
0x15aa   : > { %v7473_v19 = vadd.f32 1e-12, %v7457_v26  ;;  %v7458_v54 = vmul.f32 0.0078125, %v7438_v11  ;;  %7562 = vst [vmem:[%s13956_s23 + $0x38] sm:$0xff] %v7546_v5 }
0x15ac   : > { %10035 = vrsqrt.f32 %v7473_v19  ;;  %v7474_v42 = vadd.f32 1e-12, %v7458_v54 }
0x15ae   : > { %v10032_v23 = vpop.eup %10031  ;;  %10037 = vrsqrt.f32 %v7474_v42 }
0x15af   : > { %v7503_v0 = vmul.f32 %v10032_v23, %v13901_v48 }
0x15b0   : > { %v10034_v14 = vpop.eup %10033 }
0x15b1   : > { %v7525_v55 = vmul.f32 %v13943_v12, %v7503_v0  ;;  %v7504_v46 = vmul.f32 %v10034_v14, %v13904_v20  ;;  %v7440_v60 = vpop.xlane.xlu0 %7439 }
0x15b2   : > { %v7459_v58 = vmul.f32 0.0078125, %v7440_v60 }
0x15b3   : > { %v7547_v7 = vadd.f32 %v13950_v44, %v7525_v55  ;;  %v7526_v29 = vmul.f32 %v13943_v12, %v7504_v46  ;;  %v7442_v53 = vpop.xlane.xlu1 %7441 }
0x15b4   : > { %v7475_v43 = vadd.f32 1e-12, %v7459_v58  ;;  %v7460_v16 = vmul.f32 0.0078125, %v7442_v53 }
0x15b5   : > { %7563 = vst [vmem:[%s13956_s23 + $0x40] sm:$0xff] %v7547_v7  ;;  %v7548_v33 = vadd.f32 %v13950_v44, %v7526_v29 }
0x15b6   : > { %v10036_v48 = vpop.eup %10035  ;;  %10039 = vrsqrt.f32 %v7475_v43  ;;  %v7476_v20 = vadd.f32 1e-12, %v7460_v16 }
0x15b7   : > { %7564 = vst [vmem:[%s13956_s23 + $0x48] sm:$0xff] %v7548_v33  ;;  %v7505_v13 = vmul.f32 %v10036_v48, %v13911_v3 }
0x15b8   : > { %v10038_v47 = vpop.eup %10037  ;;  %10041 = vrsqrt.f32 %v7476_v20 }
0x15b9   : > { %v7527_v63 = vmul.f32 %v13943_v12, %v7505_v13  ;;  %v7506_v8 = vmul.f32 %v10038_v47, %v13914_v2 }
0x15bb   : > { %v7549_v49 = vadd.f32 %v13950_v44, %v7527_v63  ;;  %v7528_v30 = vmul.f32 %v13943_v12, %v7506_v8 }
0x15bc   : > { %v7444_v32 = vpop.xlane.xlu0 %7443 }
0x15bd   : > { %7565 = vst [vmem:[%s13956_s23 + $0x50] sm:$0xff] %v7549_v49  ;;  %v7550_v27 = vadd.f32 %v13950_v44, %v7528_v30  ;;  %v7461_v37 = vmul.f32 0.0078125, %v7444_v32 }
0x15be   : > { %v7446_v3 = vpop.xlane.xlu1 %7445 }
0x15bf   : > { %7566 = vst [vmem:[%s13956_s23 + $0x58] sm:$0xff] %v7550_v27  ;;  %v7477_v51 = vadd.f32 1e-12, %v7461_v37  ;;  %v7462_v18 = vmul.f32 0.0078125, %v7446_v3 }
0x15c0   : > { %v10040_v50 = vpop.eup %10039 }
0x15c1   : > { %v7507_v22 = vmul.f32 %v10040_v50, %v13921_v28  ;;  %10043 = vrsqrt.f32 %v7477_v51  ;;  %v7478_v2 = vadd.f32 1e-12, %v7462_v18 }
0x15c2   : > { %v10042_v31 = vpop.eup %10041 }
0x15c3   : > { %v7529_v61 = vmul.f32 %v13943_v12, %v7507_v22  ;;  %v7508_v21 = vmul.f32 %v10042_v31, %v13924_v39  ;;  %10045 = vrsqrt.f32 %v7478_v2 }
0x15c5   : > { %v7551_v35 = vadd.f32 %v13950_v44, %v7529_v61  ;;  %v7530_v36 = vmul.f32 %v13943_v12, %v7508_v21 }
0x15c7   : > { %7567 = vst [vmem:[%s13956_s23 + $0x60] sm:$0xff] %v7551_v35  ;;  %v7552_v52 = vadd.f32 %v13950_v44, %v7530_v36 }
0x15c9   : > { %7568 = vst [vmem:[%s13956_s23 + $0x68] sm:$0xff] %v7552_v52 }
0x15cb   : > { %v10044_v28 = vpop.eup %10043 }
0x15cc   : > { %v7509_v45 = vmul.f32 %v10044_v28, %v13931_v41 }
0x15cd   : > { %v10046_v9 = vpop.eup %10045 }
0x15ce   : > { %v7531_v1 = vmul.f32 %v13943_v12, %v7509_v45  ;;  %v7510_v39 = vmul.f32 %v10046_v9, %v13934_v15 }
0x15d0   : > { %v7553_v24 = vadd.f32 %v13950_v44, %v7531_v1  ;;  %v7532_v25 = vmul.f32 %v13943_v12, %v7510_v39 }
0x15d2   : > { %7569 = vst [vmem:[%s13956_s23 + $0x70] sm:$0xff] %v7553_v24  ;;  %v7554_v41 = vadd.f32 %v13950_v44, %v7532_v25 }
0x15d4   : > { %7570 = vst [vmem:[%s13956_s23 + $0x78] sm:$0xff] %v7554_v41 }
0x15d5   : > { %10210 = shalt.err (!%p10207_p9)
}
0x15d6   : > { %s10211_s25 = scalar_lea.hbm %s14019_s2, 2048  ;;  %s10215_s18 = scalar_lea.hbm %s14648_s26, 4096 }
0x15d7   : > { %p10212_p0 = scmp.ne.s32.totalorder %s14019_s2, %s10211_s25  ;;  %p10216_p4 = scmp.lt.u32.totalorder %s14019_s2, %s14648_s26 }
0x15d8   : > { %p10217_p8 = scmp.lt.u32.totalorder %s10215_s18, %s10211_s25  ;;  %p10219_p5 = scmp.lt.u32.totalorder %s10211_s25, %s14019_s2 }
0x15d9   : > { %p10213_p11 = pnand %p10212_p0, %p10538_p3 }
0x15da   : > { %p10218_p10 = por %p10217_p8, %p10216_p4 }
0x15db   : > { %p10214_p6 = pneg %p10213_p11 }
0x15dc   : > { %p10220_p7 = por %p10219_p5, %p10218_p10 }
0x15de   : > { %p10221_p12 = pnand %p10220_p7, %p10214_p6 }
0x15e0   : > { %10224 = shalt.err (!%p10221_p12)
}
0x15e1   : > { %s10286_s29 = smov 128   ;;  %s10287_s14 = smov 8  }
0x15e2   : > { %8977 = dma.vmem_to_hbm [thread:$0]  (%p10538_p3), %s14021_s19, 2048, %s14019_s2, %s7572_s17, %s10286_s29, %s10286_s29, %s10287_s14  }
0x15e3 PF: > { %s14649_s27 = sld [smem:[#allocation16_spill]]  ;;  %s14650_s20 = sld [smem:[#allocation17_spill]] }
0x15e4   : > { %p14652_p2 = scmp.ge.s32.totalorder %s10271_s16, 2 }
0x15e9   : > { %s7600_s22 = sand.u32 1, %s14649_s27   ;;  %p14651_p1 = scmp.ne.s32.totalorder %s14650_s20, 0 }
0x15ea   : > { %s7601_s25 = scalar_lea.sflag [#allocation4], %s7600_s22 }
0x15eb   : > { %p8997_p13 = pnand %p14652_p2, %p14651_p1 }
0x15ed   : > { %10254 = dma.done.wait (!%p8997_p13), %s7601_s25, 2048  }
0x15ee   : > { %10256 = vsyncadd (!%p8997_p13), %s7601_s25, 4294965248  ;;  %p29_p9 = scmp.ge.s32.totalorder %s10525_s9, 4   ;;  %s14653_s29 = smov %s10263_s30 }
0x15ef   : > { %s14654_s30 = smov %s10267_s15  ;;  %s14655_s15 = smov %s10534_s28 }
0x15f0   : > { %s14656_s16 = smov %s10525_s9  ;;  %31 = sbr.rel (!%p29_p9) target bundleno = 14 (0xe), region = 154 }
0x15f7   :  { %7606 = vsyncpa [#allocation3], 1 }
0x15f8   :  { %7608 = vsyncpa [#allocation3 + $0x1], 1 }
0x15f9   :  { %7609 = vsyncpa [#allocation6], 1 }
0x15fa   :  { %7610 = vsyncpa [#allocation9], 1 }
0x15fb   :  { %7611 = vsyncpa [#allocation4], 1 }
0x15fc   :  { %7613 = vsyncpa [#allocation4 + $0x1], 1 }

</bundles_post_ra>
